<compile_context>
chip_gen: v5e
topology: v5e:2x2
jax: 0.10.0
libtpu: 0.0.40
codegen_flags: <defaults>
</compile_context>

<pallas_src>
import jax
import jax.numpy as jnp
from jax.experimental import pallas as pl
from jax.experimental.pallas import tpu as pltpu

EPS = 1e-12
NUM_HEADS = 4
COMPUTE_DTYPE = jnp.bfloat16      # MXU operand dtype (accumulation stays f32)
LSTM_UNROLL_MAX_T = 32            # fully unroll the recurrence at/below this length


# --------------------------------------------------------------------------------------
# Fused Pallas kernel: self-attn + gLN -> src-attn + gLN -> biLSTM + ReLU + FC + gLN
# --------------------------------------------------------------------------------------
def make_fused_decoder_kernel(nb, t_len, e_dim, hid, num_heads, eps=EPS):
    dh = e_dim // num_heads
    scale = 1.0 / (float(dh) ** 0.5)
    cdt = COMPUTE_DTYPE

    def gln(y2, gamma, beta):
        # y2: (nb*T, E) f32; gLN statistics per batch element over its whole (T, E) slab.
        y3 = y2.reshape(nb, t_len, e_dim)
        mu = jnp.mean(jnp.mean(y3, axis=2, keepdims=True), axis=1, keepdims=True)
        d = y3 - mu
        var = jnp.mean(jnp.mean(d * d, axis=2, keepdims=True), axis=1, keepdims=True)
        yn = d * jax.lax.rsqrt(var + eps)
        yn = yn * gamma.reshape(1, 1, e_dim) + beta.reshape(1, 1, e_dim)
        return yn.reshape(nb * t_len, e_dim)

    def mha(res_f32, xq_bf, xkv_bf, wq_t, bq, wkv_t, bkv, wo_t, bo, gamma, beta):
        # res_f32: (nb*T, E) f32 residual; xq_bf / xkv_bf: bf16 MXU operands.
        q = jnp.dot(xq_bf, wq_t, preferred_element_type=jnp.float32) + bq       # (M, E)
        kv = jnp.dot(xkv_bf, wkv_t, preferred_element_type=jnp.float32) + bkv   # (M, 2E)
        q = (q * scale).reshape(nb, t_len, e_dim)
        k = kv[:, :e_dim].reshape(nb, t_len, e_dim)
        v = kv[:, e_dim:].reshape(nb, t_len, e_dim)
        # Residual + out-proj bias accumulated up front; each head adds its contribution
        # through the matching row-slice of wo_t (no lane-dim concatenate / relayout).
        y = res_f32 + bo
        for h in range(num_heads):                       # few heads; einsums batched over nb
            sl = slice(h * dh, (h + 1) * dh)
            s = jnp.einsum('btd,bsd->bts',
                           q[..., sl].astype(cdt), k[..., sl].astype(cdt),
                           preferred_element_type=jnp.float32)
            s = s - jnp.max(s, axis=-1, keepdims=True)                           # f32 softmax
            p = jnp.exp(s)
            p = p * pl.reciprocal(jnp.sum(p, axis=-1, keepdims=True), approx=True)
            oh = jnp.einsum('bts,bsd->btd', p.astype(cdt), v[..., sl].astype(cdt),
                            preferred_element_type=jnp.float32)                  # (nb, T, dh)
            y = y + jnp.dot(oh.reshape(nb * t_len, dh).astype(cdt), wo_t[sl, :],
                            preferred_element_type=jnp.float32)
        return gln(y, gamma, beta)

    def kernel(x_ref, src_ref,
               sa_wq_ref, sa_bq_ref, sa_wkv_ref, sa_bkv_ref,
               sa_wo_ref, sa_bo_ref, sa_g_ref, sa_b_ref,
               ca_wq_ref, ca_bq_ref, ca_wkv_ref, ca_bkv_ref,
               ca_wo_ref, ca_bo_ref, ca_g_ref, ca_b_ref,
               wih_f_ref, whh_f_ref, b_f_ref,
               wih_b_ref, whh_b_ref, b_b_ref,
               wfc_ref, bfc_ref, ff_g_ref, ff_b_ref,
               out_ref, gxf_ref, gxb_ref, hcat_ref):
        x_bf = x_ref[...]                                  # (nb*T, E) bf16
        x_f = x_bf.astype(jnp.float32)
        src_bf = src_ref[...]

        # --- stage 1: self attention + residual + gLN ----------------------------------
        x1 = mha(x_f, x_bf, x_bf,
                 sa_wq_ref[...], sa_bq_ref[...], sa_wkv_ref[...], sa_bkv_ref[...],
                 sa_wo_ref[...], sa_bo_ref[...], sa_g_ref[...], sa_b_ref[...])

        # --- stage 2: source attention + residual + gLN --------------------------------
        x2 = mha(x1, x1.astype(cdt), src_bf,
                 ca_wq_ref[...], ca_bq_ref[...], ca_wkv_ref[...], ca_bkv_ref[...],
                 ca_wo_ref[...], ca_bo_ref[...], ca_g_ref[...], ca_b_ref[...])

        # --- stage 3: biLSTM + ReLU + FC + residual + gLN -------------------------------
        # Input-to-hidden projections hoisted out of the recurrence; gate pre-activations
        # staged in VMEM scratch (f32) so the same step code serves unroll and fori_loop.
        x2_bf = x2.astype(cdt)
        gxf_ref[...] = (jnp.dot(x2_bf, wih_f_ref[...], preferred_element_type=jnp.float32)
                        + b_f_ref[...]).reshape(nb, t_len, 4 * hid)
        gxb_ref[...] = (jnp.dot(x2_bf, wih_b_ref[...], preferred_element_type=jnp.float32)
                        + b_b_ref[...]).reshape(nb, t_len, 4 * hid)
        whh_f = whh_f_ref[...]                             # (H, 4H) bf16, pre-transposed
        whh_b = whh_b_ref[...]

        def cell(g, c):
            ig = jax.nn.sigmoid(g[:, 0:hid])               # PyTorch gate order: i, f, g, o
            fg = jax.nn.sigmoid(g[:, hid:2 * hid])
            gg = jnp.tanh(g[:, 2 * hid:3 * hid])
            og = jax.nn.sigmoid(g[:, 3 * hid:4 * hid])
            c_new = fg * c + ig * gg
            h_new = og * jnp.tanh(c_new)
            return h_new, c_new

        def lstm_step(t_f, carry):
            # Forward and backward chains interleaved in one iteration (independent ->
            # scheduler overlaps them, ~halving the exposed recurrence latency).
            h_f, c_f, h_b, c_b = carry
            t_b = t_len - 1 - t_f
            g_f = (gxf_ref[:, pl.ds(t_f, 1), :].reshape(nb, 4 * hid)
                   + jnp.dot(h_f.astype(cdt), whh_f, preferred_element_type=jnp.float32))
            g_b = (gxb_ref[:, pl.ds(t_b, 1), :].reshape(nb, 4 * hid)
                   + jnp.dot(h_b.astype(cdt), whh_b, preferred_element_type=jnp.float32))
            h_f, c_f = cell(g_f, c_f)
            h_b, c_b = cell(g_b, c_b)
            hcat_ref[:, pl.ds(t_f, 1), 0:hid] = h_f.reshape(nb, 1, hid)
            hcat_ref[:, pl.ds(t_b, 1), hid:2 * hid] = h_b.reshape(nb, 1, hid)
            return h_f, c_f, h_b, c_b

        z = jnp.zeros((nb, hid), jnp.float32)
        carry = (z, z, z, z)
        if t_len <= LSTM_UNROLL_MAX_T:                     # static T -> fully unrolled
            for t in range(t_len):
                carry = lstm_step(t, carry)
        else:                                              # long T: bounded live set
            carry = jax.lax.fori_loop(0, t_len, lstm_step, carry)

        rnn = jnp.maximum(hcat_ref[...], 0.0).reshape(nb * t_len, 2 * hid)     # ReLU
        y = (jnp.dot(rnn.astype(cdt), wfc_ref[...], preferred_element_type=jnp.float32)
             + bfc_ref[...] + x2)                                              # residual
        out_ref[...] = gln(y, ff_g_ref[...], ff_b_ref[...])

    return kernel


# --------------------------------------------------------------------------------------
# Host-side weight packing (pre-transpose once, bf16 for MXU operands, f32 bias/affine)
# --------------------------------------------------------------------------------------
def pack_mha_params(p):
    cdt = COMPUTE_DTYPE
    wq_t = jnp.transpose(p["wq"]).astype(cdt)                                       # (E, E)
    wkv_t = jnp.transpose(jnp.concatenate([p["wk"], p["wv"]], axis=0)).astype(cdt)  # (E, 2E)
    bkv = jnp.concatenate([p["bk"], p["bv"]], axis=1)                               # (1, 2E)
    wo_t = jnp.transpose(p["wo"]).astype(cdt)                                       # (E, E)
    return (wq_t, p["bq"], wkv_t, bkv, wo_t, p["bo"], p["gamma"], p["beta"])


def pack_ffn_params(p):
    cdt = COMPUTE_DTYPE
    return (jnp.transpose(p["wih_f"]).astype(cdt), jnp.transpose(p["whh_f"]).astype(cdt),
            p["bih_f"] + p["bhh_f"],
            jnp.transpose(p["wih_b"]).astype(cdt), jnp.transpose(p["whh_b"]).astype(cdt),
            p["bih_b"] + p["bhh_b"],
            jnp.transpose(p["wfc"]).astype(cdt), p["bfc"], p["gamma"], p["beta"])


def pack_decoder_params(p):
    return pack_mha_params(p["self_attn"]) + pack_mha_params(p["src_attn"]) \
        + pack_ffn_params(p["ffn"])


# --------------------------------------------------------------------------------------
# VMEM-aware block-size / grid selection
# --------------------------------------------------------------------------------------
def _const_spec(shape):
    nd = len(shape)
    # TODO(synk): add pipeline_mode=pl.Buffered(1) for these grid-invariant weights once
    # that BlockSpec kwarg is confirmed stable in the deployed jax version.
    return pl.BlockSpec(shape, lambda i, _nd=nd: (0,) * _nd)


def _vmem_capacity_bytes():
    try:
        return int(pltpu.get_tpu_info().vmem_capacity_bytes)
    except Exception:
        return 64 << 20                    # conservative fallback (v7x per-core VMEM)


def _working_set_bytes(nb, t, e, h, heads):
    """Rough per-grid-step VMEM footprint."""
    m = nb * t
    streams = 2 * (m * e * 2 + m * e * 2 + m * e * 4)     # x/src (bf16) + out (f32), 2x buffered
    attn = m * e * 4 + m * 2 * e * 4 + 2 * m * e * 4      # q, packed kv, resident x1/x2
    scores = 2 * heads * nb * t * t * 4                   # per-head scores/probs (unrolled heads)
    lstm = 2 * m * 4 * h * 4 + m * 2 * h * 4              # gx scratches + h-concat scratch
    return streams + attn + scores + lstm


def _choose_nb(n, t, e, h, heads, budget_bytes):
    """Largest divisor of n whose working set fits the budget while keeping >=4 (else >=2)
    grid steps for pipelining / v7x megacore.  Fallback: smallest legal divisor."""
    sub = 16 if COMPUTE_DTYPE == jnp.bfloat16 else 8      # sublane multiple for partial blocks
    divisors = [d for d in range(1, n + 1) if n % d == 0]
    legal = [d for d in divisors if d == n or (d * t) % sub == 0]
    fitting = [d for d in legal if _working_set_bytes(d, t, e, h, heads) <= budget_bytes]
    if not fitting:
        return min(legal)                                 # smallest legal divisor fallback
    for min_steps in (4, 2, 1):
        capped = [d for d in fitting if n // d >= min_steps]
        if capped:
            return max(capped)
    return min(fitting)


# --------------------------------------------------------------------------------------
# pallas_call wrapper (one fused call per pass)
# --------------------------------------------------------------------------------------
def fused_decoder_pass(x_nte, src_nte, params, num_heads):
    """x_nte, src_nte: (N, T, E) batch-major bf16. Returns (N, T, E) f32."""
    N, T, E = x_nte.shape
    assert E % num_heads == 0
    H = params["ffn"]["whh_f"].shape[1]

    vmem_cap = _vmem_capacity_bytes()
    budget = min(vmem_cap // 3, 24 << 20)
    nb = _choose_nb(N, T, E, H, num_heads, budget)
    grid_steps = N // nb

    x2d = x_nte.reshape(N * T, E)
    s2d = src_nte.reshape(N * T, E)
    weights = pack_decoder_params(params)
    w_bytes = sum(int(w.size) * w.dtype.itemsize for w in weights)

    ws = _working_set_bytes(nb, T, E, H, num_heads)
    vmem_limit = int(min(max(ws + 2 * w_bytes + (8 << 20), 32 << 20), 56 << 20))

    dh = E // num_heads
    flops = (2 * (2 * N * T * E * 4 * E + 4 * N * num_heads * T * T * dh)   # 2 attn blocks
             + 2 * (2 * N * T * E * 4 * H + 2 * N * T * H * 4 * H)          # biLSTM
             + 2 * N * T * 2 * H * E)                                       # FC
    transcendentals = 2 * N * num_heads * T * T + 10 * N * T * H
    bytes_accessed = (x2d.size * 2 + s2d.size * 2 + N * T * E * 4 + w_bytes * grid_steps)

    block = pl.BlockSpec((nb * T, E), lambda i: (i, 0))
    in_specs = [block, block] + [_const_spec(w.shape) for w in weights]

    out = pl.pallas_call(
        make_fused_decoder_kernel(nb, T, E, H, num_heads),
        out_shape=jax.ShapeDtypeStruct((N * T, E), jnp.float32),
        grid=(grid_steps,),
        in_specs=in_specs,
        out_specs=block,
        scratch_shapes=[pltpu.VMEM((nb, T, 4 * H), jnp.float32),
                        pltpu.VMEM((nb, T, 4 * H), jnp.float32),
                        pltpu.VMEM((nb, T, 2 * H), jnp.float32)],
        compiler_params=pltpu.CompilerParams(
            dimension_semantics=("parallel",),            # independent steps -> megacore
            vmem_limit_bytes=vmem_limit),
        cost_estimate=pl.CostEstimate(flops=int(flops),
                                      transcendentals=int(transcendentals),
                                      bytes_accessed=int(bytes_accessed)),
    )(x2d, s2d, *weights)
    return out.reshape(N, T, E)


# --------------------------------------------------------------------------------------
# Decoder passes (single bf16 permute in / single f32 permute out per pass)
# --------------------------------------------------------------------------------------
def positional_encoding(length, dimension, base=10000):
    pos = jnp.arange(length, dtype=jnp.float32)[:, None]
    idx = (jnp.arange(dimension // 2, dtype=jnp.float32) / dimension)[None, :]
    ang = pos / (float(base) ** idx)
    return jnp.concatenate([jnp.sin(ang), jnp.cos(ang)], axis=1)            # (L, dim)


def decoder_intra(x, src, params, num_heads):
    B, F, S, K = x.shape
    pe = positional_encoding(S * K, F).T.reshape(F, S, K)
    xp = (x + pe[None]).astype(COMPUTE_DTYPE)           # PE add in f32, permute in bf16
    sp = src.astype(COMPUTE_DTYPE)
    xr = jnp.transpose(xp, (0, 2, 3, 1)).reshape(B * S, K, F)               # (N=B*S, T=K, F)
    sr = jnp.transpose(sp, (0, 2, 3, 1)).reshape(B * S, K, F)
    out = fused_decoder_pass(xr, sr, params, num_heads)
    out = jnp.transpose(out.reshape(B, S, K, F), (0, 3, 1, 2))              # (B, F, S, K)
    return out, src


def decoder_inter(x, src, params, num_heads):
    B, F, S, K = x.shape
    pe = positional_encoding(S * K, F).T.reshape(F, S, K)
    xp = (x + pe[None]).astype(COMPUTE_DTYPE)
    sp = src.astype(COMPUTE_DTYPE)
    xr = jnp.transpose(xp, (0, 3, 2, 1)).reshape(B * K, S, F)               # (N=B*K, T=S, F)
    sr = jnp.transpose(sp, (0, 3, 2, 1)).reshape(B * K, S, F)
    out = fused_decoder_pass(xr, sr, params, num_heads)
    out = jnp.transpose(out.reshape(B, K, S, F), (0, 3, 2, 1))              # (B, F, S, K)
    return out, src


def dp_transformer_decoder_block(x, src, params, num_heads=NUM_HEADS):
    # Faithful to the PyTorch code: the inter block consumes the ORIGINAL input
    # (the intra result is computed but not fed forward).
    out, src = decoder_intra(x, src, params["intra"], num_heads)
    out, src = decoder_inter(x, src, params["inter"], num_heads)
    return out, src


# --------------------------------------------------------------------------------------
# Deterministic parameter init (shapes follow the nn.Module __init__)
# --------------------------------------------------------------------------------------
def init_mha_params(key, E):
    k = jax.random.split(key, 4)
    s = 0.05
    w_in = jax.random.normal(k[0], (3 * E, E), jnp.float32) * s             # in_proj_weight
    b_in = jax.random.normal(k[1], (3 * E,), jnp.float32) * s               # in_proj_bias
    wo = jax.random.normal(k[2], (E, E), jnp.float32) * s                   # out_proj.weight
    bo = jax.random.normal(k[3], (E,), jnp.float32) * s                     # out_proj.bias
    return dict(
        wq=w_in[:E], wk=w_in[E:2 * E], wv=w_in[2 * E:],
        bq=b_in[:E].reshape(1, E), bk=b_in[E:2 * E].reshape(1, E), bv=b_in[2 * E:].reshape(1, E),
        wo=wo, bo=bo.reshape(1, E),
        gamma=jnp.ones((1, E), jnp.float32), beta=jnp.zeros((1, E), jnp.float32))


def init_ffn_params(key, F, H):
    k = jax.random.split(key, 10)
    s = 0.05
    return dict(
        wih_f=jax.random.normal(k[0], (4 * H, F), jnp.float32) * s,
        whh_f=jax.random.normal(k[1], (4 * H, H), jnp.float32) * s,
        bih_f=jax.random.normal(k[2], (1, 4 * H), jnp.float32) * s,
        bhh_f=jax.random.normal(k[3], (1, 4 * H), jnp.float32) * s,
        wih_b=jax.random.normal(k[4], (4 * H, F), jnp.float32) * s,
        whh_b=jax.random.normal(k[5], (4 * H, H), jnp.float32) * s,
        bih_b=jax.random.normal(k[6], (1, 4 * H), jnp.float32) * s,
        bhh_b=jax.random.normal(k[7], (1, 4 * H), jnp.float32) * s,
        wfc=jax.random.normal(k[8], (F, 2 * H), jnp.float32) * s,
        bfc=jax.random.normal(k[9], (1, F), jnp.float32) * s,
        gamma=jnp.ones((1, F), jnp.float32), beta=jnp.zeros((1, F), jnp.float32))


def init_decoder_params(key, F, H):
    k1, k2, k3 = jax.random.split(key, 3)
    return dict(self_attn=init_mha_params(k1, F),
                src_attn=init_mha_params(k2, F),
                ffn=init_ffn_params(k3, F, H))


def init_params(key, F, H):
    k1, k2 = jax.random.split(key, 2)
    return dict(intra=init_decoder_params(k1, F, H),
                inter=init_decoder_params(k2, F, H))


# --------------------------------------------------------------------------------------
if __name__ == "__main__":
    # T = chunk_size (intra) and T = S (inter) are both multiples of 8; E multiple of heads;
    # 4H = 128 keeps the LSTM gate matmuls lane-dense.
    B, F, S, K = 2, 64, 8, 8       # batch, num_features, S (chunks), chunk_size
    H = 32                         # LSTM hidden_channels

    key = jax.random.PRNGKey(0)
    kx, ks, kp = jax.random.split(key, 3)
    x = jax.random.normal(kx, (B, F, S, K), jnp.float32)
    src = jax.random.normal(ks, (B, F, S, K), jnp.float32)
    params = init_params(kp, F, H)

    fwd = jax.jit(lambda a, b: dp_transformer_decoder_block(a, b, params))
    out, src_out = fwd(x, src)
    jax.block_until_ready(out)
    jax.block_until_ready(src_out)

    assert out.shape == (B, F, S, K), out.shape
    assert src_out.shape == (B, F, S, K), src_out.shape
    assert bool(jnp.all(jnp.isfinite(out)))
    print("KERNEL_OK")
</pallas_src>

<mosaic_0001>
module attributes {stable_mosaic.version = 11 : i64} {
  func.func @kernel(%arg0: i32, %arg1: memref<32x64xbf16, #tpu.memory_space<vmem>>, %arg2: memref<32x64xbf16, #tpu.memory_space<vmem>>, %arg3: memref<64x64xbf16, #tpu.memory_space<vmem>>, %arg4: memref<1x64xf32, #tpu.memory_space<vmem>>, %arg5: memref<64x128xbf16, #tpu.memory_space<vmem>>, %arg6: memref<1x128xf32, #tpu.memory_space<vmem>>, %arg7: memref<64x64xbf16, #tpu.memory_space<vmem>>, %arg8: memref<1x64xf32, #tpu.memory_space<vmem>>, %arg9: memref<1x64xf32, #tpu.memory_space<vmem>>, %arg10: memref<1x64xf32, #tpu.memory_space<vmem>>, %arg11: memref<64x64xbf16, #tpu.memory_space<vmem>>, %arg12: memref<1x64xf32, #tpu.memory_space<vmem>>, %arg13: memref<64x128xbf16, #tpu.memory_space<vmem>>, %arg14: memref<1x128xf32, #tpu.memory_space<vmem>>, %arg15: memref<64x64xbf16, #tpu.memory_space<vmem>>, %arg16: memref<1x64xf32, #tpu.memory_space<vmem>>, %arg17: memref<1x64xf32, #tpu.memory_space<vmem>>, %arg18: memref<1x64xf32, #tpu.memory_space<vmem>>, %arg19: memref<64x128xbf16, #tpu.memory_space<vmem>>, %arg20: memref<32x128xbf16, #tpu.memory_space<vmem>>, %arg21: memref<1x128xf32, #tpu.memory_space<vmem>>, %arg22: memref<64x128xbf16, #tpu.memory_space<vmem>>, %arg23: memref<32x128xbf16, #tpu.memory_space<vmem>>, %arg24: memref<1x128xf32, #tpu.memory_space<vmem>>, %arg25: memref<64x64xbf16, #tpu.memory_space<vmem>>, %arg26: memref<1x64xf32, #tpu.memory_space<vmem>>, %arg27: memref<1x64xf32, #tpu.memory_space<vmem>>, %arg28: memref<1x64xf32, #tpu.memory_space<vmem>>, %arg29: memref<32x64xf32, #tpu.memory_space<vmem>>, %arg30: memref<4x8x128xf32, #tpu.memory_space<vmem>>, %arg31: memref<4x8x128xf32, #tpu.memory_space<vmem>>, %arg32: memref<4x8x64xf32, #tpu.memory_space<vmem>>) attributes {dimension_semantics = [#tpu.dimension_semantics<parallel>], iteration_bounds = array<i64: 4>, scalar_prefetch = 0 : i64, scratch_operands = 3 : i64, tpu.core_type = #tpu.core_type<tc>, window_params = [{transform_indices = @transform_0, window_bounds = array<i64: 32, 64>}, {transform_indices = @transform_1, window_bounds = array<i64: 32, 64>}, {pipeline_mode = #tpu.pipeline_mode<synchronous>, transform_indices = @transform_2, window_bounds = array<i64: 64, 64>}, {pipeline_mode = #tpu.pipeline_mode<synchronous>, transform_indices = @transform_3, window_bounds = array<i64: 1, 64>}, {pipeline_mode = #tpu.pipeline_mode<synchronous>, transform_indices = @transform_4, window_bounds = array<i64: 64, 128>}, {pipeline_mode = #tpu.pipeline_mode<synchronous>, transform_indices = @transform_5, window_bounds = array<i64: 1, 128>}, {pipeline_mode = #tpu.pipeline_mode<synchronous>, transform_indices = @transform_6, window_bounds = array<i64: 64, 64>}, {pipeline_mode = #tpu.pipeline_mode<synchronous>, transform_indices = @transform_7, window_bounds = array<i64: 1, 64>}, {pipeline_mode = #tpu.pipeline_mode<synchronous>, transform_indices = @transform_8, window_bounds = array<i64: 1, 64>}, {pipeline_mode = #tpu.pipeline_mode<synchronous>, transform_indices = @transform_9, window_bounds = array<i64: 1, 64>}, {pipeline_mode = #tpu.pipeline_mode<synchronous>, transform_indices = @transform_10, window_bounds = array<i64: 64, 64>}, {pipeline_mode = #tpu.pipeline_mode<synchronous>, transform_indices = @transform_11, window_bounds = array<i64: 1, 64>}, {pipeline_mode = #tpu.pipeline_mode<synchronous>, transform_indices = @transform_12, window_bounds = array<i64: 64, 128>}, {pipeline_mode = #tpu.pipeline_mode<synchronous>, transform_indices = @transform_13, window_bounds = array<i64: 1, 128>}, {pipeline_mode = #tpu.pipeline_mode<synchronous>, transform_indices = @transform_14, window_bounds = array<i64: 64, 64>}, {pipeline_mode = #tpu.pipeline_mode<synchronous>, transform_indices = @transform_15, window_bounds = array<i64: 1, 64>}, {pipeline_mode = #tpu.pipeline_mode<synchronous>, transform_indices = @transform_16, window_bounds = array<i64: 1, 64>}, {pipeline_mode = #tpu.pipeline_mode<synchronous>, transform_indices = @transform_17, window_bounds = array<i64: 1, 64>}, {pipeline_mode = #tpu.pipeline_mode<synchronous>, transform_indices = @transform_18, window_bounds = array<i64: 64, 128>}, {pipeline_mode = #tpu.pipeline_mode<synchronous>, transform_indices = @transform_19, window_bounds = array<i64: 32, 128>}, {pipeline_mode = #tpu.pipeline_mode<synchronous>, transform_indices = @transform_20, window_bounds = array<i64: 1, 128>}, {pipeline_mode = #tpu.pipeline_mode<synchronous>, transform_indices = @transform_21, window_bounds = array<i64: 64, 128>}, {pipeline_mode = #tpu.pipeline_mode<synchronous>, transform_indices = @transform_22, window_bounds = array<i64: 32, 128>}, {pipeline_mode = #tpu.pipeline_mode<synchronous>, transform_indices = @transform_23, window_bounds = array<i64: 1, 128>}, {pipeline_mode = #tpu.pipeline_mode<synchronous>, transform_indices = @transform_24, window_bounds = array<i64: 64, 64>}, {pipeline_mode = #tpu.pipeline_mode<synchronous>, transform_indices = @transform_25, window_bounds = array<i64: 1, 64>}, {pipeline_mode = #tpu.pipeline_mode<synchronous>, transform_indices = @transform_26, window_bounds = array<i64: 1, 64>}, {pipeline_mode = #tpu.pipeline_mode<synchronous>, transform_indices = @transform_27, window_bounds = array<i64: 1, 64>}, {transform_indices = @transform_28, window_bounds = array<i64: 32, 64>}]} {
    %c0 = arith.constant 0 : index
    %c0_0 = arith.constant 0 : index
    %0 = vector.load %arg1[%c0, %c0_0] : memref<32x64xbf16, #tpu.memory_space<vmem>>, vector<32x64xbf16>
    %1 = arith.extf %0 : vector<32x64xbf16> to vector<32x64xf32>
    %c0_1 = arith.constant 0 : index
    %c0_2 = arith.constant 0 : index
    %2 = vector.load %arg2[%c0_1, %c0_2] : memref<32x64xbf16, #tpu.memory_space<vmem>>, vector<32x64xbf16>
    %c0_3 = arith.constant 0 : index
    %c0_4 = arith.constant 0 : index
    %3 = vector.load %arg3[%c0_3, %c0_4] : memref<64x64xbf16, #tpu.memory_space<vmem>>, vector<64x64xbf16>
    %c0_5 = arith.constant 0 : index
    %c0_6 = arith.constant 0 : index
    %4 = vector.load %arg4[%c0_5, %c0_6] : memref<1x64xf32, #tpu.memory_space<vmem>>, vector<1x64xf32>
    %c0_7 = arith.constant 0 : index
    %c0_8 = arith.constant 0 : index
    %5 = vector.load %arg5[%c0_7, %c0_8] : memref<64x128xbf16, #tpu.memory_space<vmem>>, vector<64x128xbf16>
    %c0_9 = arith.constant 0 : index
    %c0_10 = arith.constant 0 : index
    %6 = vector.load %arg6[%c0_9, %c0_10] : memref<1x128xf32, #tpu.memory_space<vmem>>, vector<1x128xf32>
    %c0_11 = arith.constant 0 : index
    %c0_12 = arith.constant 0 : index
    %7 = vector.load %arg7[%c0_11, %c0_12] : memref<64x64xbf16, #tpu.memory_space<vmem>>, vector<64x64xbf16>
    %c0_13 = arith.constant 0 : index
    %c0_14 = arith.constant 0 : index
    %8 = vector.load %arg8[%c0_13, %c0_14] : memref<1x64xf32, #tpu.memory_space<vmem>>, vector<1x64xf32>
    %c0_15 = arith.constant 0 : index
    %c0_16 = arith.constant 0 : index
    %9 = vector.load %arg9[%c0_15, %c0_16] : memref<1x64xf32, #tpu.memory_space<vmem>>, vector<1x64xf32>
    %c0_17 = arith.constant 0 : index
    %c0_18 = arith.constant 0 : index
    %10 = vector.load %arg10[%c0_17, %c0_18] : memref<1x64xf32, #tpu.memory_space<vmem>>, vector<1x64xf32>
    %cst = arith.constant dense<0.000000e+00> : vector<32x64xf32>
    %11 = tpu.matmul %0, %3, %cst {dimension_numbers = #tpu.dot_dimension_numbers<[1], [0], [0], [1], [0, 0, 1, 1], [], []>} : vector<32x64xbf16>, vector<64x64xbf16>, vector<32x64xf32> -> vector<32x64xf32>
    %12 = vector.broadcast %4 : vector<1x64xf32> to vector<32x64xf32>
    %13 = arith.addf %11, %12 : vector<32x64xf32>
    %cst_19 = arith.constant dense<0.000000e+00> : vector<32x128xf32>
    %14 = tpu.matmul %0, %5, %cst_19 {dimension_numbers = #tpu.dot_dimension_numbers<[1], [0], [0], [1], [0, 0, 1, 1], [], []>} : vector<32x64xbf16>, vector<64x128xbf16>, vector<32x128xf32> -> vector<32x128xf32>
    %15 = vector.broadcast %6 : vector<1x128xf32> to vector<32x128xf32>
    %16 = arith.addf %14, %15 : vector<32x128xf32>
    %cst_20 = arith.constant 2.500000e-01 : f32
    %17 = vector.broadcast %cst_20 : f32 to vector<32x64xf32>
    %18 = arith.mulf %13, %17 : vector<32x64xf32>
    %19 = vector.shape_cast %18 : vector<32x64xf32> to vector<4x8x64xf32>
    %20 = vector.extract_strided_slice %16 {offsets = [0, 0], sizes = [32, 64], strides = [1, 1]} : vector<32x128xf32> to vector<32x64xf32>
    %21 = vector.shape_cast %20 : vector<32x64xf32> to vector<4x8x64xf32>
    %22 = vector.extract_strided_slice %16 {offsets = [0, 64], sizes = [32, 64], strides = [1, 1]} : vector<32x128xf32> to vector<32x64xf32>
    %23 = vector.shape_cast %22 : vector<32x64xf32> to vector<4x8x64xf32>
    %24 = vector.broadcast %8 : vector<1x64xf32> to vector<32x64xf32>
    %25 = arith.addf %1, %24 : vector<32x64xf32>
    %26 = vector.extract_strided_slice %19 {offsets = [0, 0, 0], sizes = [4, 8, 16], strides = [1, 1, 1]} : vector<4x8x64xf32> to vector<4x8x16xf32>
    %27 = arith.truncf %26 : vector<4x8x16xf32> to vector<4x8x16xbf16>
    %28 = vector.extract_strided_slice %21 {offsets = [0, 0, 0], sizes = [4, 8, 16], strides = [1, 1, 1]} : vector<4x8x64xf32> to vector<4x8x16xf32>
    %29 = arith.truncf %28 : vector<4x8x16xf32> to vector<4x8x16xbf16>
    "tpu.trace_start"() <{level = 10 : i32, message = "btd,bsd->bts"}> : () -> ()
    %cst_21 = arith.constant dense<0.000000e+00> : vector<4x8x8xf32>
    %30 = tpu.matmul %27, %29, %cst_21 {dimension_numbers = #tpu.dot_dimension_numbers<[2], [2], [1], [1], [0, 0, 0, 1, 1, 1], [0], [0]>} : vector<4x8x16xbf16>, vector<4x8x16xbf16>, vector<4x8x8xf32> -> vector<4x8x8xf32>
    "tpu.trace_stop"() : () -> ()
    %cst_22 = arith.constant dense<0xFF800000> : vector<4x8xf32>
    %31 = vector.multi_reduction <maximumf>, %30, %cst_22 [2] : vector<4x8x8xf32> to vector<4x8xf32>
    %32 = vector.shape_cast %31 : vector<4x8xf32> to vector<4x8x1xf32>
    %33 = vector.broadcast %32 : vector<4x8x1xf32> to vector<4x8x8xf32>
    %34 = arith.subf %30, %33 : vector<4x8x8xf32>
    %35 = math.exp %34 : vector<4x8x8xf32>
    %cst_23 = arith.constant dense<0.000000e+00> : vector<4x8xf32>
    %36 = vector.multi_reduction <add>, %35, %cst_23 [2] : vector<4x8x8xf32> to vector<4x8xf32>
    %37 = vector.shape_cast %36 : vector<4x8xf32> to vector<4x8x1xf32>
    %38 = tpu.reciprocal %37 {approx = true} : vector<4x8x1xf32> -> vector<4x8x1xf32>
    %39 = vector.broadcast %38 : vector<4x8x1xf32> to vector<4x8x8xf32>
    %40 = arith.mulf %35, %39 : vector<4x8x8xf32>
    %41 = arith.truncf %40 : vector<4x8x8xf32> to vector<4x8x8xbf16>
    %42 = vector.extract_strided_slice %23 {offsets = [0, 0, 0], sizes = [4, 8, 16], strides = [1, 1, 1]} : vector<4x8x64xf32> to vector<4x8x16xf32>
    %43 = arith.truncf %42 : vector<4x8x16xf32> to vector<4x8x16xbf16>
    "tpu.trace_start"() <{level = 10 : i32, message = "bts,bsd->btd"}> : () -> ()
    %cst_24 = arith.constant dense<0.000000e+00> : vector<4x8x16xf32>
    %44 = tpu.matmul %41, %43, %cst_24 {dimension_numbers = #tpu.dot_dimension_numbers<[2], [1], [1], [2], [0, 0, 0, 1, 1, 2], [0], [0]>} : vector<4x8x8xbf16>, vector<4x8x16xbf16>, vector<4x8x16xf32> -> vector<4x8x16xf32>
    "tpu.trace_stop"() : () -> ()
    %45 = vector.shape_cast %44 : vector<4x8x16xf32> to vector<32x16xf32>
    %46 = arith.truncf %45 : vector<32x16xf32> to vector<32x16xbf16>
    %47 = vector.extract_strided_slice %7 {offsets = [0, 0], sizes = [16, 64], strides = [1, 1]} : vector<64x64xbf16> to vector<16x64xbf16>
    %cst_25 = arith.constant dense<0.000000e+00> : vector<32x64xf32>
    %48 = tpu.matmul %46, %47, %cst_25 {dimension_numbers = #tpu.dot_dimension_numbers<[1], [0], [0], [1], [0, 0, 1, 1], [], []>} : vector<32x16xbf16>, vector<16x64xbf16>, vector<32x64xf32> -> vector<32x64xf32>
    %49 = arith.addf %25, %48 : vector<32x64xf32>
    %50 = vector.extract_strided_slice %19 {offsets = [0, 0, 16], sizes = [4, 8, 16], strides = [1, 1, 1]} : vector<4x8x64xf32> to vector<4x8x16xf32>
    %51 = arith.truncf %50 : vector<4x8x16xf32> to vector<4x8x16xbf16>
    %52 = vector.extract_strided_slice %21 {offsets = [0, 0, 16], sizes = [4, 8, 16], strides = [1, 1, 1]} : vector<4x8x64xf32> to vector<4x8x16xf32>
    %53 = arith.truncf %52 : vector<4x8x16xf32> to vector<4x8x16xbf16>
    "tpu.trace_start"() <{level = 10 : i32, message = "btd,bsd->bts"}> : () -> ()
    %cst_26 = arith.constant dense<0.000000e+00> : vector<4x8x8xf32>
    %54 = tpu.matmul %51, %53, %cst_26 {dimension_numbers = #tpu.dot_dimension_numbers<[2], [2], [1], [1], [0, 0, 0, 1, 1, 1], [0], [0]>} : vector<4x8x16xbf16>, vector<4x8x16xbf16>, vector<4x8x8xf32> -> vector<4x8x8xf32>
    "tpu.trace_stop"() : () -> ()
    %cst_27 = arith.constant dense<0xFF800000> : vector<4x8xf32>
    %55 = vector.multi_reduction <maximumf>, %54, %cst_27 [2] : vector<4x8x8xf32> to vector<4x8xf32>
    %56 = vector.shape_cast %55 : vector<4x8xf32> to vector<4x8x1xf32>
    %57 = vector.broadcast %56 : vector<4x8x1xf32> to vector<4x8x8xf32>
    %58 = arith.subf %54, %57 : vector<4x8x8xf32>
    %59 = math.exp %58 : vector<4x8x8xf32>
    %cst_28 = arith.constant dense<0.000000e+00> : vector<4x8xf32>
    %60 = vector.multi_reduction <add>, %59, %cst_28 [2] : vector<4x8x8xf32> to vector<4x8xf32>
    %61 = vector.shape_cast %60 : vector<4x8xf32> to vector<4x8x1xf32>
    %62 = tpu.reciprocal %61 {approx = true} : vector<4x8x1xf32> -> vector<4x8x1xf32>
    %63 = vector.broadcast %62 : vector<4x8x1xf32> to vector<4x8x8xf32>
    %64 = arith.mulf %59, %63 : vector<4x8x8xf32>
    %65 = arith.truncf %64 : vector<4x8x8xf32> to vector<4x8x8xbf16>
    %66 = vector.extract_strided_slice %23 {offsets = [0, 0, 16], sizes = [4, 8, 16], strides = [1, 1, 1]} : vector<4x8x64xf32> to vector<4x8x16xf32>
    %67 = arith.truncf %66 : vector<4x8x16xf32> to vector<4x8x16xbf16>
    "tpu.trace_start"() <{level = 10 : i32, message = "bts,bsd->btd"}> : () -> ()
    %cst_29 = arith.constant dense<0.000000e+00> : vector<4x8x16xf32>
    %68 = tpu.matmul %65, %67, %cst_29 {dimension_numbers = #tpu.dot_dimension_numbers<[2], [1], [1], [2], [0, 0, 0, 1, 1, 2], [0], [0]>} : vector<4x8x8xbf16>, vector<4x8x16xbf16>, vector<4x8x16xf32> -> vector<4x8x16xf32>
    "tpu.trace_stop"() : () -> ()
    %69 = vector.shape_cast %68 : vector<4x8x16xf32> to vector<32x16xf32>
    %70 = arith.truncf %69 : vector<32x16xf32> to vector<32x16xbf16>
    %71 = vector.extract_strided_slice %7 {offsets = [16, 0], sizes = [16, 64], strides = [1, 1]} : vector<64x64xbf16> to vector<16x64xbf16>
    %cst_30 = arith.constant dense<0.000000e+00> : vector<32x64xf32>
    %72 = tpu.matmul %70, %71, %cst_30 {dimension_numbers = #tpu.dot_dimension_numbers<[1], [0], [0], [1], [0, 0, 1, 1], [], []>} : vector<32x16xbf16>, vector<16x64xbf16>, vector<32x64xf32> -> vector<32x64xf32>
    %73 = arith.addf %49, %72 : vector<32x64xf32>
    %74 = vector.extract_strided_slice %19 {offsets = [0, 0, 32], sizes = [4, 8, 16], strides = [1, 1, 1]} : vector<4x8x64xf32> to vector<4x8x16xf32>
    %75 = arith.truncf %74 : vector<4x8x16xf32> to vector<4x8x16xbf16>
    %76 = vector.extract_strided_slice %21 {offsets = [0, 0, 32], sizes = [4, 8, 16], strides = [1, 1, 1]} : vector<4x8x64xf32> to vector<4x8x16xf32>
    %77 = arith.truncf %76 : vector<4x8x16xf32> to vector<4x8x16xbf16>
    "tpu.trace_start"() <{level = 10 : i32, message = "btd,bsd->bts"}> : () -> ()
    %cst_31 = arith.constant dense<0.000000e+00> : vector<4x8x8xf32>
    %78 = tpu.matmul %75, %77, %cst_31 {dimension_numbers = #tpu.dot_dimension_numbers<[2], [2], [1], [1], [0, 0, 0, 1, 1, 1], [0], [0]>} : vector<4x8x16xbf16>, vector<4x8x16xbf16>, vector<4x8x8xf32> -> vector<4x8x8xf32>
    "tpu.trace_stop"() : () -> ()
    %cst_32 = arith.constant dense<0xFF800000> : vector<4x8xf32>
    %79 = vector.multi_reduction <maximumf>, %78, %cst_32 [2] : vector<4x8x8xf32> to vector<4x8xf32>
    %80 = vector.shape_cast %79 : vector<4x8xf32> to vector<4x8x1xf32>
    %81 = vector.broadcast %80 : vector<4x8x1xf32> to vector<4x8x8xf32>
    %82 = arith.subf %78, %81 : vector<4x8x8xf32>
    %83 = math.exp %82 : vector<4x8x8xf32>
    %cst_33 = arith.constant dense<0.000000e+00> : vector<4x8xf32>
    %84 = vector.multi_reduction <add>, %83, %cst_33 [2] : vector<4x8x8xf32> to vector<4x8xf32>
    %85 = vector.shape_cast %84 : vector<4x8xf32> to vector<4x8x1xf32>
    %86 = tpu.reciprocal %85 {approx = true} : vector<4x8x1xf32> -> vector<4x8x1xf32>
    %87 = vector.broadcast %86 : vector<4x8x1xf32> to vector<4x8x8xf32>
    %88 = arith.mulf %83, %87 : vector<4x8x8xf32>
    %89 = arith.truncf %88 : vector<4x8x8xf32> to vector<4x8x8xbf16>
    %90 = vector.extract_strided_slice %23 {offsets = [0, 0, 32], sizes = [4, 8, 16], strides = [1, 1, 1]} : vector<4x8x64xf32> to vector<4x8x16xf32>
    %91 = arith.truncf %90 : vector<4x8x16xf32> to vector<4x8x16xbf16>
    "tpu.trace_start"() <{level = 10 : i32, message = "bts,bsd->btd"}> : () -> ()
    %cst_34 = arith.constant dense<0.000000e+00> : vector<4x8x16xf32>
    %92 = tpu.matmul %89, %91, %cst_34 {dimension_numbers = #tpu.dot_dimension_numbers<[2], [1], [1], [2], [0, 0, 0, 1, 1, 2], [0], [0]>} : vector<4x8x8xbf16>, vector<4x8x16xbf16>, vector<4x8x16xf32> -> vector<4x8x16xf32>
    "tpu.trace_stop"() : () -> ()
    %93 = vector.shape_cast %92 : vector<4x8x16xf32> to vector<32x16xf32>
    %94 = arith.truncf %93 : vector<32x16xf32> to vector<32x16xbf16>
    %95 = vector.extract_strided_slice %7 {offsets = [32, 0], sizes = [16, 64], strides = [1, 1]} : vector<64x64xbf16> to vector<16x64xbf16>
    %cst_35 = arith.constant dense<0.000000e+00> : vector<32x64xf32>
    %96 = tpu.matmul %94, %95, %cst_35 {dimension_numbers = #tpu.dot_dimension_numbers<[1], [0], [0], [1], [0, 0, 1, 1], [], []>} : vector<32x16xbf16>, vector<16x64xbf16>, vector<32x64xf32> -> vector<32x64xf32>
    %97 = arith.addf %73, %96 : vector<32x64xf32>
    %98 = vector.extract_strided_slice %19 {offsets = [0, 0, 48], sizes = [4, 8, 16], strides = [1, 1, 1]} : vector<4x8x64xf32> to vector<4x8x16xf32>
    %99 = arith.truncf %98 : vector<4x8x16xf32> to vector<4x8x16xbf16>
    %100 = vector.extract_strided_slice %21 {offsets = [0, 0, 48], sizes = [4, 8, 16], strides = [1, 1, 1]} : vector<4x8x64xf32> to vector<4x8x16xf32>
    %101 = arith.truncf %100 : vector<4x8x16xf32> to vector<4x8x16xbf16>
    "tpu.trace_start"() <{level = 10 : i32, message = "btd,bsd->bts"}> : () -> ()
    %cst_36 = arith.constant dense<0.000000e+00> : vector<4x8x8xf32>
    %102 = tpu.matmul %99, %101, %cst_36 {dimension_numbers = #tpu.dot_dimension_numbers<[2], [2], [1], [1], [0, 0, 0, 1, 1, 1], [0], [0]>} : vector<4x8x16xbf16>, vector<4x8x16xbf16>, vector<4x8x8xf32> -> vector<4x8x8xf32>
    "tpu.trace_stop"() : () -> ()
    %cst_37 = arith.constant dense<0xFF800000> : vector<4x8xf32>
    %103 = vector.multi_reduction <maximumf>, %102, %cst_37 [2] : vector<4x8x8xf32> to vector<4x8xf32>
    %104 = vector.shape_cast %103 : vector<4x8xf32> to vector<4x8x1xf32>
    %105 = vector.broadcast %104 : vector<4x8x1xf32> to vector<4x8x8xf32>
    %106 = arith.subf %102, %105 : vector<4x8x8xf32>
    %107 = math.exp %106 : vector<4x8x8xf32>
    %cst_38 = arith.constant dense<0.000000e+00> : vector<4x8xf32>
    %108 = vector.multi_reduction <add>, %107, %cst_38 [2] : vector<4x8x8xf32> to vector<4x8xf32>
    %109 = vector.shape_cast %108 : vector<4x8xf32> to vector<4x8x1xf32>
    %110 = tpu.reciprocal %109 {approx = true} : vector<4x8x1xf32> -> vector<4x8x1xf32>
    %111 = vector.broadcast %110 : vector<4x8x1xf32> to vector<4x8x8xf32>
    %112 = arith.mulf %107, %111 : vector<4x8x8xf32>
    %113 = arith.truncf %112 : vector<4x8x8xf32> to vector<4x8x8xbf16>
    %114 = vector.extract_strided_slice %23 {offsets = [0, 0, 48], sizes = [4, 8, 16], strides = [1, 1, 1]} : vector<4x8x64xf32> to vector<4x8x16xf32>
    %115 = arith.truncf %114 : vector<4x8x16xf32> to vector<4x8x16xbf16>
    "tpu.trace_start"() <{level = 10 : i32, message = "bts,bsd->btd"}> : () -> ()
    %cst_39 = arith.constant dense<0.000000e+00> : vector<4x8x16xf32>
    %116 = tpu.matmul %113, %115, %cst_39 {dimension_numbers = #tpu.dot_dimension_numbers<[2], [1], [1], [2], [0, 0, 0, 1, 1, 2], [0], [0]>} : vector<4x8x8xbf16>, vector<4x8x16xbf16>, vector<4x8x16xf32> -> vector<4x8x16xf32>
    "tpu.trace_stop"() : () -> ()
    %117 = vector.shape_cast %116 : vector<4x8x16xf32> to vector<32x16xf32>
    %118 = arith.truncf %117 : vector<32x16xf32> to vector<32x16xbf16>
    %119 = vector.extract_strided_slice %7 {offsets = [48, 0], sizes = [16, 64], strides = [1, 1]} : vector<64x64xbf16> to vector<16x64xbf16>
    %cst_40 = arith.constant dense<0.000000e+00> : vector<32x64xf32>
    %120 = tpu.matmul %118, %119, %cst_40 {dimension_numbers = #tpu.dot_dimension_numbers<[1], [0], [0], [1], [0, 0, 1, 1], [], []>} : vector<32x16xbf16>, vector<16x64xbf16>, vector<32x64xf32> -> vector<32x64xf32>
    %121 = arith.addf %97, %120 : vector<32x64xf32>
    %122 = vector.shape_cast %121 : vector<32x64xf32> to vector<4x8x64xf32>
    %cst_41 = arith.constant dense<0.000000e+00> : vector<4x8xf32>
    %123 = vector.multi_reduction <add>, %122, %cst_41 [2] : vector<4x8x64xf32> to vector<4x8xf32>
    %124 = vector.shape_cast %123 : vector<4x8xf32> to vector<4x8x1xf32>
    %cst_42 = arith.constant 6.400000e+01 : f32
    %125 = vector.broadcast %cst_42 : f32 to vector<4x8x1xf32>
    %126 = arith.divf %124, %125 : vector<4x8x1xf32>
    %cst_43 = arith.constant dense<0.000000e+00> : vector<4x1xf32>
    %127 = vector.multi_reduction <add>, %126, %cst_43 [1] : vector<4x8x1xf32> to vector<4x1xf32>
    %128 = vector.shape_cast %127 : vector<4x1xf32> to vector<4x1x1xf32>
    %cst_44 = arith.constant 8.000000e+00 : f32
    %129 = vector.broadcast %cst_44 : f32 to vector<4x1x1xf32>
    %130 = arith.divf %128, %129 : vector<4x1x1xf32>
    %131 = vector.broadcast %130 : vector<4x1x1xf32> to vector<4x8x64xf32>
    %132 = arith.subf %122, %131 : vector<4x8x64xf32>
    %133 = arith.mulf %132, %132 : vector<4x8x64xf32>
    %cst_45 = arith.constant dense<0.000000e+00> : vector<4x8xf32>
    %134 = vector.multi_reduction <add>, %133, %cst_45 [2] : vector<4x8x64xf32> to vector<4x8xf32>
    %135 = vector.shape_cast %134 : vector<4x8xf32> to vector<4x8x1xf32>
    %cst_46 = arith.constant 6.400000e+01 : f32
    %136 = vector.broadcast %cst_46 : f32 to vector<4x8x1xf32>
    %137 = arith.divf %135, %136 : vector<4x8x1xf32>
    %cst_47 = arith.constant dense<0.000000e+00> : vector<4x1xf32>
    %138 = vector.multi_reduction <add>, %137, %cst_47 [1] : vector<4x8x1xf32> to vector<4x1xf32>
    %139 = vector.shape_cast %138 : vector<4x1xf32> to vector<4x1x1xf32>
    %cst_48 = arith.constant 8.000000e+00 : f32
    %140 = vector.broadcast %cst_48 : f32 to vector<4x1x1xf32>
    %141 = arith.divf %139, %140 : vector<4x1x1xf32>
    %cst_49 = arith.constant 9.99999996E-13 : f32
    %142 = vector.broadcast %cst_49 : f32 to vector<4x1x1xf32>
    %143 = arith.addf %141, %142 : vector<4x1x1xf32>
    %144 = math.rsqrt %143 : vector<4x1x1xf32>
    %145 = vector.broadcast %144 : vector<4x1x1xf32> to vector<4x8x64xf32>
    %146 = arith.mulf %132, %145 : vector<4x8x64xf32>
    %147 = vector.shape_cast %9 : vector<1x64xf32> to vector<1x1x64xf32>
    %148 = vector.broadcast %147 : vector<1x1x64xf32> to vector<4x8x64xf32>
    %149 = arith.mulf %146, %148 : vector<4x8x64xf32>
    %150 = vector.shape_cast %10 : vector<1x64xf32> to vector<1x1x64xf32>
    %151 = vector.broadcast %150 : vector<1x1x64xf32> to vector<4x8x64xf32>
    %152 = arith.addf %149, %151 : vector<4x8x64xf32>
    %153 = vector.shape_cast %152 : vector<4x8x64xf32> to vector<32x64xf32>
    %154 = arith.truncf %153 : vector<32x64xf32> to vector<32x64xbf16>
    %c0_50 = arith.constant 0 : index
    %c0_51 = arith.constant 0 : index
    %155 = vector.load %arg11[%c0_50, %c0_51] : memref<64x64xbf16, #tpu.memory_space<vmem>>, vector<64x64xbf16>
    %c0_52 = arith.constant 0 : index
    %c0_53 = arith.constant 0 : index
    %156 = vector.load %arg12[%c0_52, %c0_53] : memref<1x64xf32, #tpu.memory_space<vmem>>, vector<1x64xf32>
    %c0_54 = arith.constant 0 : index
    %c0_55 = arith.constant 0 : index
    %157 = vector.load %arg13[%c0_54, %c0_55] : memref<64x128xbf16, #tpu.memory_space<vmem>>, vector<64x128xbf16>
    %c0_56 = arith.constant 0 : index
    %c0_57 = arith.constant 0 : index
    %158 = vector.load %arg14[%c0_56, %c0_57] : memref<1x128xf32, #tpu.memory_space<vmem>>, vector<1x128xf32>
    %c0_58 = arith.constant 0 : index
    %c0_59 = arith.constant 0 : index
    %159 = vector.load %arg15[%c0_58, %c0_59] : memref<64x64xbf16, #tpu.memory_space<vmem>>, vector<64x64xbf16>
    %c0_60 = arith.constant 0 : index
    %c0_61 = arith.constant 0 : index
    %160 = vector.load %arg16[%c0_60, %c0_61] : memref<1x64xf32, #tpu.memory_space<vmem>>, vector<1x64xf32>
    %c0_62 = arith.constant 0 : index
    %c0_63 = arith.constant 0 : index
    %161 = vector.load %arg17[%c0_62, %c0_63] : memref<1x64xf32, #tpu.memory_space<vmem>>, vector<1x64xf32>
    %c0_64 = arith.constant 0 : index
    %c0_65 = arith.constant 0 : index
    %162 = vector.load %arg18[%c0_64, %c0_65] : memref<1x64xf32, #tpu.memory_space<vmem>>, vector<1x64xf32>
    %cst_66 = arith.constant dense<0.000000e+00> : vector<32x64xf32>
    %163 = tpu.matmul %154, %155, %cst_66 {dimension_numbers = #tpu.dot_dimension_numbers<[1], [0], [0], [1], [0, 0, 1, 1], [], []>} : vector<32x64xbf16>, vector<64x64xbf16>, vector<32x64xf32> -> vector<32x64xf32>
    %164 = vector.broadcast %156 : vector<1x64xf32> to vector<32x64xf32>
    %165 = arith.addf %163, %164 : vector<32x64xf32>
    %cst_67 = arith.constant dense<0.000000e+00> : vector<32x128xf32>
    %166 = tpu.matmul %2, %157, %cst_67 {dimension_numbers = #tpu.dot_dimension_numbers<[1], [0], [0], [1], [0, 0, 1, 1], [], []>} : vector<32x64xbf16>, vector<64x128xbf16>, vector<32x128xf32> -> vector<32x128xf32>
    %167 = vector.broadcast %158 : vector<1x128xf32> to vector<32x128xf32>
    %168 = arith.addf %166, %167 : vector<32x128xf32>
    %cst_68 = arith.constant 2.500000e-01 : f32
    %169 = vector.broadcast %cst_68 : f32 to vector<32x64xf32>
    %170 = arith.mulf %165, %169 : vector<32x64xf32>
    %171 = vector.shape_cast %170 : vector<32x64xf32> to vector<4x8x64xf32>
    %172 = vector.extract_strided_slice %168 {offsets = [0, 0], sizes = [32, 64], strides = [1, 1]} : vector<32x128xf32> to vector<32x64xf32>
    %173 = vector.shape_cast %172 : vector<32x64xf32> to vector<4x8x64xf32>
    %174 = vector.extract_strided_slice %168 {offsets = [0, 64], sizes = [32, 64], strides = [1, 1]} : vector<32x128xf32> to vector<32x64xf32>
    %175 = vector.shape_cast %174 : vector<32x64xf32> to vector<4x8x64xf32>
    %176 = vector.broadcast %160 : vector<1x64xf32> to vector<32x64xf32>
    %177 = arith.addf %153, %176 : vector<32x64xf32>
    %178 = vector.extract_strided_slice %171 {offsets = [0, 0, 0], sizes = [4, 8, 16], strides = [1, 1, 1]} : vector<4x8x64xf32> to vector<4x8x16xf32>
    %179 = arith.truncf %178 : vector<4x8x16xf32> to vector<4x8x16xbf16>
    %180 = vector.extract_strided_slice %173 {offsets = [0, 0, 0], sizes = [4, 8, 16], strides = [1, 1, 1]} : vector<4x8x64xf32> to vector<4x8x16xf32>
    %181 = arith.truncf %180 : vector<4x8x16xf32> to vector<4x8x16xbf16>
    "tpu.trace_start"() <{level = 10 : i32, message = "btd,bsd->bts"}> : () -> ()
    %cst_69 = arith.constant dense<0.000000e+00> : vector<4x8x8xf32>
    %182 = tpu.matmul %179, %181, %cst_69 {dimension_numbers = #tpu.dot_dimension_numbers<[2], [2], [1], [1], [0, 0, 0, 1, 1, 1], [0], [0]>} : vector<4x8x16xbf16>, vector<4x8x16xbf16>, vector<4x8x8xf32> -> vector<4x8x8xf32>
    "tpu.trace_stop"() : () -> ()
    %cst_70 = arith.constant dense<0xFF800000> : vector<4x8xf32>
    %183 = vector.multi_reduction <maximumf>, %182, %cst_70 [2] : vector<4x8x8xf32> to vector<4x8xf32>
    %184 = vector.shape_cast %183 : vector<4x8xf32> to vector<4x8x1xf32>
    %185 = vector.broadcast %184 : vector<4x8x1xf32> to vector<4x8x8xf32>
    %186 = arith.subf %182, %185 : vector<4x8x8xf32>
    %187 = math.exp %186 : vector<4x8x8xf32>
    %cst_71 = arith.constant dense<0.000000e+00> : vector<4x8xf32>
    %188 = vector.multi_reduction <add>, %187, %cst_71 [2] : vector<4x8x8xf32> to vector<4x8xf32>
    %189 = vector.shape_cast %188 : vector<4x8xf32> to vector<4x8x1xf32>
    %190 = tpu.reciprocal %189 {approx = true} : vector<4x8x1xf32> -> vector<4x8x1xf32>
    %191 = vector.broadcast %190 : vector<4x8x1xf32> to vector<4x8x8xf32>
    %192 = arith.mulf %187, %191 : vector<4x8x8xf32>
    %193 = arith.truncf %192 : vector<4x8x8xf32> to vector<4x8x8xbf16>
    %194 = vector.extract_strided_slice %175 {offsets = [0, 0, 0], sizes = [4, 8, 16], strides = [1, 1, 1]} : vector<4x8x64xf32> to vector<4x8x16xf32>
    %195 = arith.truncf %194 : vector<4x8x16xf32> to vector<4x8x16xbf16>
    "tpu.trace_start"() <{level = 10 : i32, message = "bts,bsd->btd"}> : () -> ()
    %cst_72 = arith.constant dense<0.000000e+00> : vector<4x8x16xf32>
    %196 = tpu.matmul %193, %195, %cst_72 {dimension_numbers = #tpu.dot_dimension_numbers<[2], [1], [1], [2], [0, 0, 0, 1, 1, 2], [0], [0]>} : vector<4x8x8xbf16>, vector<4x8x16xbf16>, vector<4x8x16xf32> -> vector<4x8x16xf32>
    "tpu.trace_stop"() : () -> ()
    %197 = vector.shape_cast %196 : vector<4x8x16xf32> to vector<32x16xf32>
    %198 = arith.truncf %197 : vector<32x16xf32> to vector<32x16xbf16>
    %199 = vector.extract_strided_slice %159 {offsets = [0, 0], sizes = [16, 64], strides = [1, 1]} : vector<64x64xbf16> to vector<16x64xbf16>
    %cst_73 = arith.constant dense<0.000000e+00> : vector<32x64xf32>
    %200 = tpu.matmul %198, %199, %cst_73 {dimension_numbers = #tpu.dot_dimension_numbers<[1], [0], [0], [1], [0, 0, 1, 1], [], []>} : vector<32x16xbf16>, vector<16x64xbf16>, vector<32x64xf32> -> vector<32x64xf32>
    %201 = arith.addf %177, %200 : vector<32x64xf32>
    %202 = vector.extract_strided_slice %171 {offsets = [0, 0, 16], sizes = [4, 8, 16], strides = [1, 1, 1]} : vector<4x8x64xf32> to vector<4x8x16xf32>
    %203 = arith.truncf %202 : vector<4x8x16xf32> to vector<4x8x16xbf16>
    %204 = vector.extract_strided_slice %173 {offsets = [0, 0, 16], sizes = [4, 8, 16], strides = [1, 1, 1]} : vector<4x8x64xf32> to vector<4x8x16xf32>
    %205 = arith.truncf %204 : vector<4x8x16xf32> to vector<4x8x16xbf16>
    "tpu.trace_start"() <{level = 10 : i32, message = "btd,bsd->bts"}> : () -> ()
    %cst_74 = arith.constant dense<0.000000e+00> : vector<4x8x8xf32>
    %206 = tpu.matmul %203, %205, %cst_74 {dimension_numbers = #tpu.dot_dimension_numbers<[2], [2], [1], [1], [0, 0, 0, 1, 1, 1], [0], [0]>} : vector<4x8x16xbf16>, vector<4x8x16xbf16>, vector<4x8x8xf32> -> vector<4x8x8xf32>
    "tpu.trace_stop"() : () -> ()
    %cst_75 = arith.constant dense<0xFF800000> : vector<4x8xf32>
    %207 = vector.multi_reduction <maximumf>, %206, %cst_75 [2] : vector<4x8x8xf32> to vector<4x8xf32>
    %208 = vector.shape_cast %207 : vector<4x8xf32> to vector<4x8x1xf32>
    %209 = vector.broadcast %208 : vector<4x8x1xf32> to vector<4x8x8xf32>
    %210 = arith.subf %206, %209 : vector<4x8x8xf32>
    %211 = math.exp %210 : vector<4x8x8xf32>
    %cst_76 = arith.constant dense<0.000000e+00> : vector<4x8xf32>
    %212 = vector.multi_reduction <add>, %211, %cst_76 [2] : vector<4x8x8xf32> to vector<4x8xf32>
    %213 = vector.shape_cast %212 : vector<4x8xf32> to vector<4x8x1xf32>
    %214 = tpu.reciprocal %213 {approx = true} : vector<4x8x1xf32> -> vector<4x8x1xf32>
    %215 = vector.broadcast %214 : vector<4x8x1xf32> to vector<4x8x8xf32>
    %216 = arith.mulf %211, %215 : vector<4x8x8xf32>
    %217 = arith.truncf %216 : vector<4x8x8xf32> to vector<4x8x8xbf16>
    %218 = vector.extract_strided_slice %175 {offsets = [0, 0, 16], sizes = [4, 8, 16], strides = [1, 1, 1]} : vector<4x8x64xf32> to vector<4x8x16xf32>
    %219 = arith.truncf %218 : vector<4x8x16xf32> to vector<4x8x16xbf16>
    "tpu.trace_start"() <{level = 10 : i32, message = "bts,bsd->btd"}> : () -> ()
    %cst_77 = arith.constant dense<0.000000e+00> : vector<4x8x16xf32>
    %220 = tpu.matmul %217, %219, %cst_77 {dimension_numbers = #tpu.dot_dimension_numbers<[2], [1], [1], [2], [0, 0, 0, 1, 1, 2], [0], [0]>} : vector<4x8x8xbf16>, vector<4x8x16xbf16>, vector<4x8x16xf32> -> vector<4x8x16xf32>
    "tpu.trace_stop"() : () -> ()
    %221 = vector.shape_cast %220 : vector<4x8x16xf32> to vector<32x16xf32>
    %222 = arith.truncf %221 : vector<32x16xf32> to vector<32x16xbf16>
    %223 = vector.extract_strided_slice %159 {offsets = [16, 0], sizes = [16, 64], strides = [1, 1]} : vector<64x64xbf16> to vector<16x64xbf16>
    %cst_78 = arith.constant dense<0.000000e+00> : vector<32x64xf32>
    %224 = tpu.matmul %222, %223, %cst_78 {dimension_numbers = #tpu.dot_dimension_numbers<[1], [0], [0], [1], [0, 0, 1, 1], [], []>} : vector<32x16xbf16>, vector<16x64xbf16>, vector<32x64xf32> -> vector<32x64xf32>
    %225 = arith.addf %201, %224 : vector<32x64xf32>
    %226 = vector.extract_strided_slice %171 {offsets = [0, 0, 32], sizes = [4, 8, 16], strides = [1, 1, 1]} : vector<4x8x64xf32> to vector<4x8x16xf32>
    %227 = arith.truncf %226 : vector<4x8x16xf32> to vector<4x8x16xbf16>
    %228 = vector.extract_strided_slice %173 {offsets = [0, 0, 32], sizes = [4, 8, 16], strides = [1, 1, 1]} : vector<4x8x64xf32> to vector<4x8x16xf32>
    %229 = arith.truncf %228 : vector<4x8x16xf32> to vector<4x8x16xbf16>
    "tpu.trace_start"() <{level = 10 : i32, message = "btd,bsd->bts"}> : () -> ()
    %cst_79 = arith.constant dense<0.000000e+00> : vector<4x8x8xf32>
    %230 = tpu.matmul %227, %229, %cst_79 {dimension_numbers = #tpu.dot_dimension_numbers<[2], [2], [1], [1], [0, 0, 0, 1, 1, 1], [0], [0]>} : vector<4x8x16xbf16>, vector<4x8x16xbf16>, vector<4x8x8xf32> -> vector<4x8x8xf32>
    "tpu.trace_stop"() : () -> ()
    %cst_80 = arith.constant dense<0xFF800000> : vector<4x8xf32>
    %231 = vector.multi_reduction <maximumf>, %230, %cst_80 [2] : vector<4x8x8xf32> to vector<4x8xf32>
    %232 = vector.shape_cast %231 : vector<4x8xf32> to vector<4x8x1xf32>
    %233 = vector.broadcast %232 : vector<4x8x1xf32> to vector<4x8x8xf32>
    %234 = arith.subf %230, %233 : vector<4x8x8xf32>
    %235 = math.exp %234 : vector<4x8x8xf32>
    %cst_81 = arith.constant dense<0.000000e+00> : vector<4x8xf32>
    %236 = vector.multi_reduction <add>, %235, %cst_81 [2] : vector<4x8x8xf32> to vector<4x8xf32>
    %237 = vector.shape_cast %236 : vector<4x8xf32> to vector<4x8x1xf32>
    %238 = tpu.reciprocal %237 {approx = true} : vector<4x8x1xf32> -> vector<4x8x1xf32>
    %239 = vector.broadcast %238 : vector<4x8x1xf32> to vector<4x8x8xf32>
    %240 = arith.mulf %235, %239 : vector<4x8x8xf32>
    %241 = arith.truncf %240 : vector<4x8x8xf32> to vector<4x8x8xbf16>
    %242 = vector.extract_strided_slice %175 {offsets = [0, 0, 32], sizes = [4, 8, 16], strides = [1, 1, 1]} : vector<4x8x64xf32> to vector<4x8x16xf32>
    %243 = arith.truncf %242 : vector<4x8x16xf32> to vector<4x8x16xbf16>
    "tpu.trace_start"() <{level = 10 : i32, message = "bts,bsd->btd"}> : () -> ()
    %cst_82 = arith.constant dense<0.000000e+00> : vector<4x8x16xf32>
    %244 = tpu.matmul %241, %243, %cst_82 {dimension_numbers = #tpu.dot_dimension_numbers<[2], [1], [1], [2], [0, 0, 0, 1, 1, 2], [0], [0]>} : vector<4x8x8xbf16>, vector<4x8x16xbf16>, vector<4x8x16xf32> -> vector<4x8x16xf32>
    "tpu.trace_stop"() : () -> ()
    %245 = vector.shape_cast %244 : vector<4x8x16xf32> to vector<32x16xf32>
    %246 = arith.truncf %245 : vector<32x16xf32> to vector<32x16xbf16>
    %247 = vector.extract_strided_slice %159 {offsets = [32, 0], sizes = [16, 64], strides = [1, 1]} : vector<64x64xbf16> to vector<16x64xbf16>
    %cst_83 = arith.constant dense<0.000000e+00> : vector<32x64xf32>
    %248 = tpu.matmul %246, %247, %cst_83 {dimension_numbers = #tpu.dot_dimension_numbers<[1], [0], [0], [1], [0, 0, 1, 1], [], []>} : vector<32x16xbf16>, vector<16x64xbf16>, vector<32x64xf32> -> vector<32x64xf32>
    %249 = arith.addf %225, %248 : vector<32x64xf32>
    %250 = vector.extract_strided_slice %171 {offsets = [0, 0, 48], sizes = [4, 8, 16], strides = [1, 1, 1]} : vector<4x8x64xf32> to vector<4x8x16xf32>
    %251 = arith.truncf %250 : vector<4x8x16xf32> to vector<4x8x16xbf16>
    %252 = vector.extract_strided_slice %173 {offsets = [0, 0, 48], sizes = [4, 8, 16], strides = [1, 1, 1]} : vector<4x8x64xf32> to vector<4x8x16xf32>
    %253 = arith.truncf %252 : vector<4x8x16xf32> to vector<4x8x16xbf16>
    "tpu.trace_start"() <{level = 10 : i32, message = "btd,bsd->bts"}> : () -> ()
    %cst_84 = arith.constant dense<0.000000e+00> : vector<4x8x8xf32>
    %254 = tpu.matmul %251, %253, %cst_84 {dimension_numbers = #tpu.dot_dimension_numbers<[2], [2], [1], [1], [0, 0, 0, 1, 1, 1], [0], [0]>} : vector<4x8x16xbf16>, vector<4x8x16xbf16>, vector<4x8x8xf32> -> vector<4x8x8xf32>
    "tpu.trace_stop"() : () -> ()
    %cst_85 = arith.constant dense<0xFF800000> : vector<4x8xf32>
    %255 = vector.multi_reduction <maximumf>, %254, %cst_85 [2] : vector<4x8x8xf32> to vector<4x8xf32>
    %256 = vector.shape_cast %255 : vector<4x8xf32> to vector<4x8x1xf32>
    %257 = vector.broadcast %256 : vector<4x8x1xf32> to vector<4x8x8xf32>
    %258 = arith.subf %254, %257 : vector<4x8x8xf32>
    %259 = math.exp %258 : vector<4x8x8xf32>
    %cst_86 = arith.constant dense<0.000000e+00> : vector<4x8xf32>
    %260 = vector.multi_reduction <add>, %259, %cst_86 [2] : vector<4x8x8xf32> to vector<4x8xf32>
    %261 = vector.shape_cast %260 : vector<4x8xf32> to vector<4x8x1xf32>
    %262 = tpu.reciprocal %261 {approx = true} : vector<4x8x1xf32> -> vector<4x8x1xf32>
    %263 = vector.broadcast %262 : vector<4x8x1xf32> to vector<4x8x8xf32>
    %264 = arith.mulf %259, %263 : vector<4x8x8xf32>
    %265 = arith.truncf %264 : vector<4x8x8xf32> to vector<4x8x8xbf16>
    %266 = vector.extract_strided_slice %175 {offsets = [0, 0, 48], sizes = [4, 8, 16], strides = [1, 1, 1]} : vector<4x8x64xf32> to vector<4x8x16xf32>
    %267 = arith.truncf %266 : vector<4x8x16xf32> to vector<4x8x16xbf16>
    "tpu.trace_start"() <{level = 10 : i32, message = "bts,bsd->btd"}> : () -> ()
    %cst_87 = arith.constant dense<0.000000e+00> : vector<4x8x16xf32>
    %268 = tpu.matmul %265, %267, %cst_87 {dimension_numbers = #tpu.dot_dimension_numbers<[2], [1], [1], [2], [0, 0, 0, 1, 1, 2], [0], [0]>} : vector<4x8x8xbf16>, vector<4x8x16xbf16>, vector<4x8x16xf32> -> vector<4x8x16xf32>
    "tpu.trace_stop"() : () -> ()
    %269 = vector.shape_cast %268 : vector<4x8x16xf32> to vector<32x16xf32>
    %270 = arith.truncf %269 : vector<32x16xf32> to vector<32x16xbf16>
    %271 = vector.extract_strided_slice %159 {offsets = [48, 0], sizes = [16, 64], strides = [1, 1]} : vector<64x64xbf16> to vector<16x64xbf16>
    %cst_88 = arith.constant dense<0.000000e+00> : vector<32x64xf32>
    %272 = tpu.matmul %270, %271, %cst_88 {dimension_numbers = #tpu.dot_dimension_numbers<[1], [0], [0], [1], [0, 0, 1, 1], [], []>} : vector<32x16xbf16>, vector<16x64xbf16>, vector<32x64xf32> -> vector<32x64xf32>
    %273 = arith.addf %249, %272 : vector<32x64xf32>
    %274 = vector.shape_cast %273 : vector<32x64xf32> to vector<4x8x64xf32>
    %cst_89 = arith.constant dense<0.000000e+00> : vector<4x8xf32>
    %275 = vector.multi_reduction <add>, %274, %cst_89 [2] : vector<4x8x64xf32> to vector<4x8xf32>
    %276 = vector.shape_cast %275 : vector<4x8xf32> to vector<4x8x1xf32>
    %cst_90 = arith.constant 6.400000e+01 : f32
    %277 = vector.broadcast %cst_90 : f32 to vector<4x8x1xf32>
    %278 = arith.divf %276, %277 : vector<4x8x1xf32>
    %cst_91 = arith.constant dense<0.000000e+00> : vector<4x1xf32>
    %279 = vector.multi_reduction <add>, %278, %cst_91 [1] : vector<4x8x1xf32> to vector<4x1xf32>
    %280 = vector.shape_cast %279 : vector<4x1xf32> to vector<4x1x1xf32>
    %cst_92 = arith.constant 8.000000e+00 : f32
    %281 = vector.broadcast %cst_92 : f32 to vector<4x1x1xf32>
    %282 = arith.divf %280, %281 : vector<4x1x1xf32>
    %283 = vector.broadcast %282 : vector<4x1x1xf32> to vector<4x8x64xf32>
    %284 = arith.subf %274, %283 : vector<4x8x64xf32>
    %285 = arith.mulf %284, %284 : vector<4x8x64xf32>
    %cst_93 = arith.constant dense<0.000000e+00> : vector<4x8xf32>
    %286 = vector.multi_reduction <add>, %285, %cst_93 [2] : vector<4x8x64xf32> to vector<4x8xf32>
    %287 = vector.shape_cast %286 : vector<4x8xf32> to vector<4x8x1xf32>
    %cst_94 = arith.constant 6.400000e+01 : f32
    %288 = vector.broadcast %cst_94 : f32 to vector<4x8x1xf32>
    %289 = arith.divf %287, %288 : vector<4x8x1xf32>
    %cst_95 = arith.constant dense<0.000000e+00> : vector<4x1xf32>
    %290 = vector.multi_reduction <add>, %289, %cst_95 [1] : vector<4x8x1xf32> to vector<4x1xf32>
    %291 = vector.shape_cast %290 : vector<4x1xf32> to vector<4x1x1xf32>
    %cst_96 = arith.constant 8.000000e+00 : f32
    %292 = vector.broadcast %cst_96 : f32 to vector<4x1x1xf32>
    %293 = arith.divf %291, %292 : vector<4x1x1xf32>
    %cst_97 = arith.constant 9.99999996E-13 : f32
    %294 = vector.broadcast %cst_97 : f32 to vector<4x1x1xf32>
    %295 = arith.addf %293, %294 : vector<4x1x1xf32>
    %296 = math.rsqrt %295 : vector<4x1x1xf32>
    %297 = vector.broadcast %296 : vector<4x1x1xf32> to vector<4x8x64xf32>
    %298 = arith.mulf %284, %297 : vector<4x8x64xf32>
    %299 = vector.shape_cast %161 : vector<1x64xf32> to vector<1x1x64xf32>
    %300 = vector.broadcast %299 : vector<1x1x64xf32> to vector<4x8x64xf32>
    %301 = arith.mulf %298, %300 : vector<4x8x64xf32>
    %302 = vector.shape_cast %162 : vector<1x64xf32> to vector<1x1x64xf32>
    %303 = vector.broadcast %302 : vector<1x1x64xf32> to vector<4x8x64xf32>
    %304 = arith.addf %301, %303 : vector<4x8x64xf32>
    %305 = vector.shape_cast %304 : vector<4x8x64xf32> to vector<32x64xf32>
    %306 = arith.truncf %305 : vector<32x64xf32> to vector<32x64xbf16>
    %c0_98 = arith.constant 0 : index
    %c0_99 = arith.constant 0 : index
    %307 = vector.load %arg19[%c0_98, %c0_99] : memref<64x128xbf16, #tpu.memory_space<vmem>>, vector<64x128xbf16>
    %cst_100 = arith.constant dense<0.000000e+00> : vector<32x128xf32>
    %308 = tpu.matmul %306, %307, %cst_100 {dimension_numbers = #tpu.dot_dimension_numbers<[1], [0], [0], [1], [0, 0, 1, 1], [], []>} : vector<32x64xbf16>, vector<64x128xbf16>, vector<32x128xf32> -> vector<32x128xf32>
    %c0_101 = arith.constant 0 : index
    %c0_102 = arith.constant 0 : index
    %309 = vector.load %arg21[%c0_101, %c0_102] : memref<1x128xf32, #tpu.memory_space<vmem>>, vector<1x128xf32>
    %310 = vector.broadcast %309 : vector<1x128xf32> to vector<32x128xf32>
    %311 = arith.addf %308, %310 : vector<32x128xf32>
    %312 = vector.shape_cast %311 : vector<32x128xf32> to vector<4x8x128xf32>
    %c0_103 = arith.constant 0 : index
    %c0_104 = arith.constant 0 : index
    %c0_105 = arith.constant 0 : index
    %313 = vector.load %arg30[%c0_103, %c0_104, %c0_105] : memref<4x8x128xf32, #tpu.memory_space<vmem>>, vector<4x8x128xf32>
    tpu.vector_store %arg30[%c0_103, %c0_104, %c0_105], %312 {strides = array<i32>} : memref<4x8x128xf32, #tpu.memory_space<vmem>>, vector<4x8x128xf32>,
    %c0_106 = arith.constant 0 : index
    %c0_107 = arith.constant 0 : index
    %314 = vector.load %arg22[%c0_106, %c0_107] : memref<64x128xbf16, #tpu.memory_space<vmem>>, vector<64x128xbf16>
    %cst_108 = arith.constant dense<0.000000e+00> : vector<32x128xf32>
    %315 = tpu.matmul %306, %314, %cst_108 {dimension_numbers = #tpu.dot_dimension_numbers<[1], [0], [0], [1], [0, 0, 1, 1], [], []>} : vector<32x64xbf16>, vector<64x128xbf16>, vector<32x128xf32> -> vector<32x128xf32>
    %c0_109 = arith.constant 0 : index
    %c0_110 = arith.constant 0 : index
    %316 = vector.load %arg24[%c0_109, %c0_110] : memref<1x128xf32, #tpu.memory_space<vmem>>, vector<1x128xf32>
    %317 = vector.broadcast %316 : vector<1x128xf32> to vector<32x128xf32>
    %318 = arith.addf %315, %317 : vector<32x128xf32>
    %319 = vector.shape_cast %318 : vector<32x128xf32> to vector<4x8x128xf32>
    %c0_111 = arith.constant 0 : index
    %c0_112 = arith.constant 0 : index
    %c0_113 = arith.constant 0 : index
    %320 = vector.load %arg31[%c0_111, %c0_112, %c0_113] : memref<4x8x128xf32, #tpu.memory_space<vmem>>, vector<4x8x128xf32>
    tpu.vector_store %arg31[%c0_111, %c0_112, %c0_113], %319 {strides = array<i32>} : memref<4x8x128xf32, #tpu.memory_space<vmem>>, vector<4x8x128xf32>,
    %c0_114 = arith.constant 0 : index
    %c0_115 = arith.constant 0 : index
    %321 = vector.load %arg20[%c0_114, %c0_115] : memref<32x128xbf16, #tpu.memory_space<vmem>>, vector<32x128xbf16>
    %c0_116 = arith.constant 0 : index
    %c0_117 = arith.constant 0 : index
    %322 = vector.load %arg23[%c0_116, %c0_117] : memref<32x128xbf16, #tpu.memory_space<vmem>>, vector<32x128xbf16>
    %cst_118 = arith.constant 0.000000e+00 : f32
    %323 = vector.broadcast %cst_118 : f32 to vector<4x32xf32>
    %c0_119 = arith.constant 0 : index
    %c0_120 = arith.constant 0 : index
    %c0_121 = arith.constant 0 : index
    %324 = vector.load %arg30[%c0_119, %c0_120, %c0_121] : memref<4x8x128xf32, #tpu.memory_space<vmem>>, vector<4x1x128xf32>
    %325 = vector.shape_cast %324 : vector<4x1x128xf32> to vector<4x128xf32>
    %326 = arith.truncf %323 : vector<4x32xf32> to vector<4x32xbf16>
    %cst_122 = arith.constant dense<0.000000e+00> : vector<4x128xf32>
    %327 = tpu.matmul %326, %321, %cst_122 {dimension_numbers = #tpu.dot_dimension_numbers<[1], [0], [0], [1], [0, 0, 1, 1], [], []>} : vector<4x32xbf16>, vector<32x128xbf16>, vector<4x128xf32> -> vector<4x128xf32>
    %328 = arith.addf %325, %327 : vector<4x128xf32>
    %c0_123 = arith.constant 0 : index
    %c7 = arith.constant 7 : index
    %c0_124 = arith.constant 0 : index
    %329 = vector.load %arg31[%c0_123, %c7, %c0_124] : memref<4x8x128xf32, #tpu.memory_space<vmem>>, vector<4x1x128xf32>
    %330 = vector.shape_cast %329 : vector<4x1x128xf32> to vector<4x128xf32>
    %331 = arith.truncf %323 : vector<4x32xf32> to vector<4x32xbf16>
    %cst_125 = arith.constant dense<0.000000e+00> : vector<4x128xf32>
    %332 = tpu.matmul %331, %322, %cst_125 {dimension_numbers = #tpu.dot_dimension_numbers<[1], [0], [0], [1], [0, 0, 1, 1], [], []>} : vector<4x32xbf16>, vector<32x128xbf16>, vector<4x128xf32> -> vector<4x128xf32>
    %333 = arith.addf %330, %332 : vector<4x128xf32>
    %334 = vector.extract_strided_slice %328 {offsets = [0, 0], sizes = [4, 32], strides = [1, 1]} : vector<4x128xf32> to vector<4x32xf32>
    %335 = arith.negf %334 : vector<4x32xf32>
    %336 = math.exp %335 : vector<4x32xf32>
    %cst_126 = arith.constant 1.000000e+00 : f32
    %337 = vector.broadcast %cst_126 : f32 to vector<4x32xf32>
    %338 = arith.addf %337, %336 : vector<4x32xf32>
    %339 = arith.divf %337, %338 : vector<4x32xf32>
    %340 = vector.extract_strided_slice %328 {offsets = [0, 32], sizes = [4, 32], strides = [1, 1]} : vector<4x128xf32> to vector<4x32xf32>
    %341 = arith.negf %340 : vector<4x32xf32>
    %342 = math.exp %341 : vector<4x32xf32>
    %cst_127 = arith.constant 1.000000e+00 : f32
    %343 = vector.broadcast %cst_127 : f32 to vector<4x32xf32>
    %344 = arith.addf %343, %342 : vector<4x32xf32>
    %345 = arith.divf %343, %344 : vector<4x32xf32>
    %346 = vector.extract_strided_slice %328 {offsets = [0, 64], sizes = [4, 32], strides = [1, 1]} : vector<4x128xf32> to vector<4x32xf32>
    %347 = math.tanh %346 : vector<4x32xf32>
    %348 = vector.extract_strided_slice %328 {offsets = [0, 96], sizes = [4, 32], strides = [1, 1]} : vector<4x128xf32> to vector<4x32xf32>
    %349 = arith.negf %348 : vector<4x32xf32>
    %350 = math.exp %349 : vector<4x32xf32>
    %cst_128 = arith.constant 1.000000e+00 : f32
    %351 = vector.broadcast %cst_128 : f32 to vector<4x32xf32>
    %352 = arith.addf %351, %350 : vector<4x32xf32>
    %353 = arith.divf %351, %352 : vector<4x32xf32>
    %354 = arith.mulf %345, %323 : vector<4x32xf32>
    %355 = arith.mulf %339, %347 : vector<4x32xf32>
    %356 = arith.addf %354, %355 : vector<4x32xf32>
    %357 = math.tanh %356 : vector<4x32xf32>
    %358 = arith.mulf %353, %357 : vector<4x32xf32>
    %359 = vector.extract_strided_slice %333 {offsets = [0, 0], sizes = [4, 32], strides = [1, 1]} : vector<4x128xf32> to vector<4x32xf32>
    %360 = arith.negf %359 : vector<4x32xf32>
    %361 = math.exp %360 : vector<4x32xf32>
    %cst_129 = arith.constant 1.000000e+00 : f32
    %362 = vector.broadcast %cst_129 : f32 to vector<4x32xf32>
    %363 = arith.addf %362, %361 : vector<4x32xf32>
    %364 = arith.divf %362, %363 : vector<4x32xf32>
    %365 = vector.extract_strided_slice %333 {offsets = [0, 32], sizes = [4, 32], strides = [1, 1]} : vector<4x128xf32> to vector<4x32xf32>
    %366 = arith.negf %365 : vector<4x32xf32>
    %367 = math.exp %366 : vector<4x32xf32>
    %cst_130 = arith.constant 1.000000e+00 : f32
    %368 = vector.broadcast %cst_130 : f32 to vector<4x32xf32>
    %369 = arith.addf %368, %367 : vector<4x32xf32>
    %370 = arith.divf %368, %369 : vector<4x32xf32>
    %371 = vector.extract_strided_slice %333 {offsets = [0, 64], sizes = [4, 32], strides = [1, 1]} : vector<4x128xf32> to vector<4x32xf32>
    %372 = math.tanh %371 : vector<4x32xf32>
    %373 = vector.extract_strided_slice %333 {offsets = [0, 96], sizes = [4, 32], strides = [1, 1]} : vector<4x128xf32> to vector<4x32xf32>
    %374 = arith.negf %373 : vector<4x32xf32>
    %375 = math.exp %374 : vector<4x32xf32>
    %cst_131 = arith.constant 1.000000e+00 : f32
    %376 = vector.broadcast %cst_131 : f32 to vector<4x32xf32>
    %377 = arith.addf %376, %375 : vector<4x32xf32>
    %378 = arith.divf %376, %377 : vector<4x32xf32>
    %379 = arith.mulf %370, %323 : vector<4x32xf32>
    %380 = arith.mulf %364, %372 : vector<4x32xf32>
    %381 = arith.addf %379, %380 : vector<4x32xf32>
    %382 = math.tanh %381 : vector<4x32xf32>
    %383 = arith.mulf %378, %382 : vector<4x32xf32>
    %384 = vector.shape_cast %358 : vector<4x32xf32> to vector<4x1x32xf32>
    %c0_132 = arith.constant 0 : index
    %c0_133 = arith.constant 0 : index
    %c0_134 = arith.constant 0 : index
    %385 = vector.load %arg32[%c0_132, %c0_133, %c0_134] : memref<4x8x64xf32, #tpu.memory_space<vmem>>, vector<4x1x32xf32>
    tpu.vector_store %arg32[%c0_132, %c0_133, %c0_134], %384 {strides = array<i32>} : memref<4x8x64xf32, #tpu.memory_space<vmem>>, vector<4x1x32xf32>,
    %386 = vector.shape_cast %383 : vector<4x32xf32> to vector<4x1x32xf32>
    %c0_135 = arith.constant 0 : index
    %c7_136 = arith.constant 7 : index
    %c32 = arith.constant 32 : index
    %387 = vector.load %arg32[%c0_135, %c7_136, %c32] : memref<4x8x64xf32, #tpu.memory_space<vmem>>, vector<4x1x32xf32>
    tpu.vector_store %arg32[%c0_135, %c7_136, %c32], %386 {strides = array<i32>} : memref<4x8x64xf32, #tpu.memory_space<vmem>>, vector<4x1x32xf32>,
    %c0_137 = arith.constant 0 : index
    %c1 = arith.constant 1 : index
    %c0_138 = arith.constant 0 : index
    %388 = vector.load %arg30[%c0_137, %c1, %c0_138] : memref<4x8x128xf32, #tpu.memory_space<vmem>>, vector<4x1x128xf32>
    %389 = vector.shape_cast %388 : vector<4x1x128xf32> to vector<4x128xf32>
    %390 = arith.truncf %358 : vector<4x32xf32> to vector<4x32xbf16>
    %cst_139 = arith.constant dense<0.000000e+00> : vector<4x128xf32>
    %391 = tpu.matmul %390, %321, %cst_139 {dimension_numbers = #tpu.dot_dimension_numbers<[1], [0], [0], [1], [0, 0, 1, 1], [], []>} : vector<4x32xbf16>, vector<32x128xbf16>, vector<4x128xf32> -> vector<4x128xf32>
    %392 = arith.addf %389, %391 : vector<4x128xf32>
    %c0_140 = arith.constant 0 : index
    %c6 = arith.constant 6 : index
    %c0_141 = arith.constant 0 : index
    %393 = vector.load %arg31[%c0_140, %c6, %c0_141] : memref<4x8x128xf32, #tpu.memory_space<vmem>>, vector<4x1x128xf32>
    %394 = vector.shape_cast %393 : vector<4x1x128xf32> to vector<4x128xf32>
    %395 = arith.truncf %383 : vector<4x32xf32> to vector<4x32xbf16>
    %cst_142 = arith.constant dense<0.000000e+00> : vector<4x128xf32>
    %396 = tpu.matmul %395, %322, %cst_142 {dimension_numbers = #tpu.dot_dimension_numbers<[1], [0], [0], [1], [0, 0, 1, 1], [], []>} : vector<4x32xbf16>, vector<32x128xbf16>, vector<4x128xf32> -> vector<4x128xf32>
    %397 = arith.addf %394, %396 : vector<4x128xf32>
    %398 = vector.extract_strided_slice %392 {offsets = [0, 0], sizes = [4, 32], strides = [1, 1]} : vector<4x128xf32> to vector<4x32xf32>
    %399 = arith.negf %398 : vector<4x32xf32>
    %400 = math.exp %399 : vector<4x32xf32>
    %cst_143 = arith.constant 1.000000e+00 : f32
    %401 = vector.broadcast %cst_143 : f32 to vector<4x32xf32>
    %402 = arith.addf %401, %400 : vector<4x32xf32>
    %403 = arith.divf %401, %402 : vector<4x32xf32>
    %404 = vector.extract_strided_slice %392 {offsets = [0, 32], sizes = [4, 32], strides = [1, 1]} : vector<4x128xf32> to vector<4x32xf32>
    %405 = arith.negf %404 : vector<4x32xf32>
    %406 = math.exp %405 : vector<4x32xf32>
    %cst_144 = arith.constant 1.000000e+00 : f32
    %407 = vector.broadcast %cst_144 : f32 to vector<4x32xf32>
    %408 = arith.addf %407, %406 : vector<4x32xf32>
    %409 = arith.divf %407, %408 : vector<4x32xf32>
    %410 = vector.extract_strided_slice %392 {offsets = [0, 64], sizes = [4, 32], strides = [1, 1]} : vector<4x128xf32> to vector<4x32xf32>
    %411 = math.tanh %410 : vector<4x32xf32>
    %412 = vector.extract_strided_slice %392 {offsets = [0, 96], sizes = [4, 32], strides = [1, 1]} : vector<4x128xf32> to vector<4x32xf32>
    %413 = arith.negf %412 : vector<4x32xf32>
    %414 = math.exp %413 : vector<4x32xf32>
    %cst_145 = arith.constant 1.000000e+00 : f32
    %415 = vector.broadcast %cst_145 : f32 to vector<4x32xf32>
    %416 = arith.addf %415, %414 : vector<4x32xf32>
    %417 = arith.divf %415, %416 : vector<4x32xf32>
    %418 = arith.mulf %409, %356 : vector<4x32xf32>
    %419 = arith.mulf %403, %411 : vector<4x32xf32>
    %420 = arith.addf %418, %419 : vector<4x32xf32>
    %421 = math.tanh %420 : vector<4x32xf32>
    %422 = arith.mulf %417, %421 : vector<4x32xf32>
    %423 = vector.extract_strided_slice %397 {offsets = [0, 0], sizes = [4, 32], strides = [1, 1]} : vector<4x128xf32> to vector<4x32xf32>
    %424 = arith.negf %423 : vector<4x32xf32>
    %425 = math.exp %424 : vector<4x32xf32>
    %cst_146 = arith.constant 1.000000e+00 : f32
    %426 = vector.broadcast %cst_146 : f32 to vector<4x32xf32>
    %427 = arith.addf %426, %425 : vector<4x32xf32>
    %428 = arith.divf %426, %427 : vector<4x32xf32>
    %429 = vector.extract_strided_slice %397 {offsets = [0, 32], sizes = [4, 32], strides = [1, 1]} : vector<4x128xf32> to vector<4x32xf32>
    %430 = arith.negf %429 : vector<4x32xf32>
    %431 = math.exp %430 : vector<4x32xf32>
    %cst_147 = arith.constant 1.000000e+00 : f32
    %432 = vector.broadcast %cst_147 : f32 to vector<4x32xf32>
    %433 = arith.addf %432, %431 : vector<4x32xf32>
    %434 = arith.divf %432, %433 : vector<4x32xf32>
    %435 = vector.extract_strided_slice %397 {offsets = [0, 64], sizes = [4, 32], strides = [1, 1]} : vector<4x128xf32> to vector<4x32xf32>
    %436 = math.tanh %435 : vector<4x32xf32>
    %437 = vector.extract_strided_slice %397 {offsets = [0, 96], sizes = [4, 32], strides = [1, 1]} : vector<4x128xf32> to vector<4x32xf32>
    %438 = arith.negf %437 : vector<4x32xf32>
    %439 = math.exp %438 : vector<4x32xf32>
    %cst_148 = arith.constant 1.000000e+00 : f32
    %440 = vector.broadcast %cst_148 : f32 to vector<4x32xf32>
    %441 = arith.addf %440, %439 : vector<4x32xf32>
    %442 = arith.divf %440, %441 : vector<4x32xf32>
    %443 = arith.mulf %434, %381 : vector<4x32xf32>
    %444 = arith.mulf %428, %436 : vector<4x32xf32>
    %445 = arith.addf %443, %444 : vector<4x32xf32>
    %446 = math.tanh %445 : vector<4x32xf32>
    %447 = arith.mulf %442, %446 : vector<4x32xf32>
    %448 = vector.shape_cast %422 : vector<4x32xf32> to vector<4x1x32xf32>
    %c0_149 = arith.constant 0 : index
    %c1_150 = arith.constant 1 : index
    %c0_151 = arith.constant 0 : index
    %449 = vector.load %arg32[%c0_149, %c1_150, %c0_151] : memref<4x8x64xf32, #tpu.memory_space<vmem>>, vector<4x1x32xf32>
    tpu.vector_store %arg32[%c0_149, %c1_150, %c0_151], %448 {strides = array<i32>} : memref<4x8x64xf32, #tpu.memory_space<vmem>>, vector<4x1x32xf32>,
    %450 = vector.shape_cast %447 : vector<4x32xf32> to vector<4x1x32xf32>
    %c0_152 = arith.constant 0 : index
    %c6_153 = arith.constant 6 : index
    %c32_154 = arith.constant 32 : index
    %451 = vector.load %arg32[%c0_152, %c6_153, %c32_154] : memref<4x8x64xf32, #tpu.memory_space<vmem>>, vector<4x1x32xf32>
    tpu.vector_store %arg32[%c0_152, %c6_153, %c32_154], %450 {strides = array<i32>} : memref<4x8x64xf32, #tpu.memory_space<vmem>>, vector<4x1x32xf32>,
    %c0_155 = arith.constant 0 : index
    %c2 = arith.constant 2 : index
    %c0_156 = arith.constant 0 : index
    %452 = vector.load %arg30[%c0_155, %c2, %c0_156] : memref<4x8x128xf32, #tpu.memory_space<vmem>>, vector<4x1x128xf32>
    %453 = vector.shape_cast %452 : vector<4x1x128xf32> to vector<4x128xf32>
    %454 = arith.truncf %422 : vector<4x32xf32> to vector<4x32xbf16>
    %cst_157 = arith.constant dense<0.000000e+00> : vector<4x128xf32>
    %455 = tpu.matmul %454, %321, %cst_157 {dimension_numbers = #tpu.dot_dimension_numbers<[1], [0], [0], [1], [0, 0, 1, 1], [], []>} : vector<4x32xbf16>, vector<32x128xbf16>, vector<4x128xf32> -> vector<4x128xf32>
    %456 = arith.addf %453, %455 : vector<4x128xf32>
    %c0_158 = arith.constant 0 : index
    %c5 = arith.constant 5 : index
    %c0_159 = arith.constant 0 : index
    %457 = vector.load %arg31[%c0_158, %c5, %c0_159] : memref<4x8x128xf32, #tpu.memory_space<vmem>>, vector<4x1x128xf32>
    %458 = vector.shape_cast %457 : vector<4x1x128xf32> to vector<4x128xf32>
    %459 = arith.truncf %447 : vector<4x32xf32> to vector<4x32xbf16>
    %cst_160 = arith.constant dense<0.000000e+00> : vector<4x128xf32>
    %460 = tpu.matmul %459, %322, %cst_160 {dimension_numbers = #tpu.dot_dimension_numbers<[1], [0], [0], [1], [0, 0, 1, 1], [], []>} : vector<4x32xbf16>, vector<32x128xbf16>, vector<4x128xf32> -> vector<4x128xf32>
    %461 = arith.addf %458, %460 : vector<4x128xf32>
    %462 = vector.extract_strided_slice %456 {offsets = [0, 0], sizes = [4, 32], strides = [1, 1]} : vector<4x128xf32> to vector<4x32xf32>
    %463 = arith.negf %462 : vector<4x32xf32>
    %464 = math.exp %463 : vector<4x32xf32>
    %cst_161 = arith.constant 1.000000e+00 : f32
    %465 = vector.broadcast %cst_161 : f32 to vector<4x32xf32>
    %466 = arith.addf %465, %464 : vector<4x32xf32>
    %467 = arith.divf %465, %466 : vector<4x32xf32>
    %468 = vector.extract_strided_slice %456 {offsets = [0, 32], sizes = [4, 32], strides = [1, 1]} : vector<4x128xf32> to vector<4x32xf32>
    %469 = arith.negf %468 : vector<4x32xf32>
    %470 = math.exp %469 : vector<4x32xf32>
    %cst_162 = arith.constant 1.000000e+00 : f32
    %471 = vector.broadcast %cst_162 : f32 to vector<4x32xf32>
    %472 = arith.addf %471, %470 : vector<4x32xf32>
    %473 = arith.divf %471, %472 : vector<4x32xf32>
    %474 = vector.extract_strided_slice %456 {offsets = [0, 64], sizes = [4, 32], strides = [1, 1]} : vector<4x128xf32> to vector<4x32xf32>
    %475 = math.tanh %474 : vector<4x32xf32>
    %476 = vector.extract_strided_slice %456 {offsets = [0, 96], sizes = [4, 32], strides = [1, 1]} : vector<4x128xf32> to vector<4x32xf32>
    %477 = arith.negf %476 : vector<4x32xf32>
    %478 = math.exp %477 : vector<4x32xf32>
    %cst_163 = arith.constant 1.000000e+00 : f32
    %479 = vector.broadcast %cst_163 : f32 to vector<4x32xf32>
    %480 = arith.addf %479, %478 : vector<4x32xf32>
    %481 = arith.divf %479, %480 : vector<4x32xf32>
    %482 = arith.mulf %473, %420 : vector<4x32xf32>
    %483 = arith.mulf %467, %475 : vector<4x32xf32>
    %484 = arith.addf %482, %483 : vector<4x32xf32>
    %485 = math.tanh %484 : vector<4x32xf32>
    %486 = arith.mulf %481, %485 : vector<4x32xf32>
    %487 = vector.extract_strided_slice %461 {offsets = [0, 0], sizes = [4, 32], strides = [1, 1]} : vector<4x128xf32> to vector<4x32xf32>
    %488 = arith.negf %487 : vector<4x32xf32>
    %489 = math.exp %488 : vector<4x32xf32>
    %cst_164 = arith.constant 1.000000e+00 : f32
    %490 = vector.broadcast %cst_164 : f32 to vector<4x32xf32>
    %491 = arith.addf %490, %489 : vector<4x32xf32>
    %492 = arith.divf %490, %491 : vector<4x32xf32>
    %493 = vector.extract_strided_slice %461 {offsets = [0, 32], sizes = [4, 32], strides = [1, 1]} : vector<4x128xf32> to vector<4x32xf32>
    %494 = arith.negf %493 : vector<4x32xf32>
    %495 = math.exp %494 : vector<4x32xf32>
    %cst_165 = arith.constant 1.000000e+00 : f32
    %496 = vector.broadcast %cst_165 : f32 to vector<4x32xf32>
    %497 = arith.addf %496, %495 : vector<4x32xf32>
    %498 = arith.divf %496, %497 : vector<4x32xf32>
    %499 = vector.extract_strided_slice %461 {offsets = [0, 64], sizes = [4, 32], strides = [1, 1]} : vector<4x128xf32> to vector<4x32xf32>
    %500 = math.tanh %499 : vector<4x32xf32>
    %501 = vector.extract_strided_slice %461 {offsets = [0, 96], sizes = [4, 32], strides = [1, 1]} : vector<4x128xf32> to vector<4x32xf32>
    %502 = arith.negf %501 : vector<4x32xf32>
    %503 = math.exp %502 : vector<4x32xf32>
    %cst_166 = arith.constant 1.000000e+00 : f32
    %504 = vector.broadcast %cst_166 : f32 to vector<4x32xf32>
    %505 = arith.addf %504, %503 : vector<4x32xf32>
    %506 = arith.divf %504, %505 : vector<4x32xf32>
    %507 = arith.mulf %498, %445 : vector<4x32xf32>
    %508 = arith.mulf %492, %500 : vector<4x32xf32>
    %509 = arith.addf %507, %508 : vector<4x32xf32>
    %510 = math.tanh %509 : vector<4x32xf32>
    %511 = arith.mulf %506, %510 : vector<4x32xf32>
    %512 = vector.shape_cast %486 : vector<4x32xf32> to vector<4x1x32xf32>
    %c0_167 = arith.constant 0 : index
    %c2_168 = arith.constant 2 : index
    %c0_169 = arith.constant 0 : index
    %513 = vector.load %arg32[%c0_167, %c2_168, %c0_169] : memref<4x8x64xf32, #tpu.memory_space<vmem>>, vector<4x1x32xf32>
    tpu.vector_store %arg32[%c0_167, %c2_168, %c0_169], %512 {strides = array<i32>} : memref<4x8x64xf32, #tpu.memory_space<vmem>>, vector<4x1x32xf32>,
    %514 = vector.shape_cast %511 : vector<4x32xf32> to vector<4x1x32xf32>
    %c0_170 = arith.constant 0 : index
    %c5_171 = arith.constant 5 : index
    %c32_172 = arith.constant 32 : index
    %515 = vector.load %arg32[%c0_170, %c5_171, %c32_172] : memref<4x8x64xf32, #tpu.memory_space<vmem>>, vector<4x1x32xf32>
    tpu.vector_store %arg32[%c0_170, %c5_171, %c32_172], %514 {strides = array<i32>} : memref<4x8x64xf32, #tpu.memory_space<vmem>>, vector<4x1x32xf32>,
    %c0_173 = arith.constant 0 : index
    %c3 = arith.constant 3 : index
    %c0_174 = arith.constant 0 : index
    %516 = vector.load %arg30[%c0_173, %c3, %c0_174] : memref<4x8x128xf32, #tpu.memory_space<vmem>>, vector<4x1x128xf32>
    %517 = vector.shape_cast %516 : vector<4x1x128xf32> to vector<4x128xf32>
    %518 = arith.truncf %486 : vector<4x32xf32> to vector<4x32xbf16>
    %cst_175 = arith.constant dense<0.000000e+00> : vector<4x128xf32>
    %519 = tpu.matmul %518, %321, %cst_175 {dimension_numbers = #tpu.dot_dimension_numbers<[1], [0], [0], [1], [0, 0, 1, 1], [], []>} : vector<4x32xbf16>, vector<32x128xbf16>, vector<4x128xf32> -> vector<4x128xf32>
    %520 = arith.addf %517, %519 : vector<4x128xf32>
    %c0_176 = arith.constant 0 : index
    %c4 = arith.constant 4 : index
    %c0_177 = arith.constant 0 : index
    %521 = vector.load %arg31[%c0_176, %c4, %c0_177] : memref<4x8x128xf32, #tpu.memory_space<vmem>>, vector<4x1x128xf32>
    %522 = vector.shape_cast %521 : vector<4x1x128xf32> to vector<4x128xf32>
    %523 = arith.truncf %511 : vector<4x32xf32> to vector<4x32xbf16>
    %cst_178 = arith.constant dense<0.000000e+00> : vector<4x128xf32>
    %524 = tpu.matmul %523, %322, %cst_178 {dimension_numbers = #tpu.dot_dimension_numbers<[1], [0], [0], [1], [0, 0, 1, 1], [], []>} : vector<4x32xbf16>, vector<32x128xbf16>, vector<4x128xf32> -> vector<4x128xf32>
    %525 = arith.addf %522, %524 : vector<4x128xf32>
    %526 = vector.extract_strided_slice %520 {offsets = [0, 0], sizes = [4, 32], strides = [1, 1]} : vector<4x128xf32> to vector<4x32xf32>
    %527 = arith.negf %526 : vector<4x32xf32>
    %528 = math.exp %527 : vector<4x32xf32>
    %cst_179 = arith.constant 1.000000e+00 : f32
    %529 = vector.broadcast %cst_179 : f32 to vector<4x32xf32>
    %530 = arith.addf %529, %528 : vector<4x32xf32>
    %531 = arith.divf %529, %530 : vector<4x32xf32>
    %532 = vector.extract_strided_slice %520 {offsets = [0, 32], sizes = [4, 32], strides = [1, 1]} : vector<4x128xf32> to vector<4x32xf32>
    %533 = arith.negf %532 : vector<4x32xf32>
    %534 = math.exp %533 : vector<4x32xf32>
    %cst_180 = arith.constant 1.000000e+00 : f32
    %535 = vector.broadcast %cst_180 : f32 to vector<4x32xf32>
    %536 = arith.addf %535, %534 : vector<4x32xf32>
    %537 = arith.divf %535, %536 : vector<4x32xf32>
    %538 = vector.extract_strided_slice %520 {offsets = [0, 64], sizes = [4, 32], strides = [1, 1]} : vector<4x128xf32> to vector<4x32xf32>
    %539 = math.tanh %538 : vector<4x32xf32>
    %540 = vector.extract_strided_slice %520 {offsets = [0, 96], sizes = [4, 32], strides = [1, 1]} : vector<4x128xf32> to vector<4x32xf32>
    %541 = arith.negf %540 : vector<4x32xf32>
    %542 = math.exp %541 : vector<4x32xf32>
    %cst_181 = arith.constant 1.000000e+00 : f32
    %543 = vector.broadcast %cst_181 : f32 to vector<4x32xf32>
    %544 = arith.addf %543, %542 : vector<4x32xf32>
    %545 = arith.divf %543, %544 : vector<4x32xf32>
    %546 = arith.mulf %537, %484 : vector<4x32xf32>
    %547 = arith.mulf %531, %539 : vector<4x32xf32>
    %548 = arith.addf %546, %547 : vector<4x32xf32>
    %549 = math.tanh %548 : vector<4x32xf32>
    %550 = arith.mulf %545, %549 : vector<4x32xf32>
    %551 = vector.extract_strided_slice %525 {offsets = [0, 0], sizes = [4, 32], strides = [1, 1]} : vector<4x128xf32> to vector<4x32xf32>
    %552 = arith.negf %551 : vector<4x32xf32>
    %553 = math.exp %552 : vector<4x32xf32>
    %cst_182 = arith.constant 1.000000e+00 : f32
    %554 = vector.broadcast %cst_182 : f32 to vector<4x32xf32>
    %555 = arith.addf %554, %553 : vector<4x32xf32>
    %556 = arith.divf %554, %555 : vector<4x32xf32>
    %557 = vector.extract_strided_slice %525 {offsets = [0, 32], sizes = [4, 32], strides = [1, 1]} : vector<4x128xf32> to vector<4x32xf32>
    %558 = arith.negf %557 : vector<4x32xf32>
    %559 = math.exp %558 : vector<4x32xf32>
    %cst_183 = arith.constant 1.000000e+00 : f32
    %560 = vector.broadcast %cst_183 : f32 to vector<4x32xf32>
    %561 = arith.addf %560, %559 : vector<4x32xf32>
    %562 = arith.divf %560, %561 : vector<4x32xf32>
    %563 = vector.extract_strided_slice %525 {offsets = [0, 64], sizes = [4, 32], strides = [1, 1]} : vector<4x128xf32> to vector<4x32xf32>
    %564 = math.tanh %563 : vector<4x32xf32>
    %565 = vector.extract_strided_slice %525 {offsets = [0, 96], sizes = [4, 32], strides = [1, 1]} : vector<4x128xf32> to vector<4x32xf32>
    %566 = arith.negf %565 : vector<4x32xf32>
    %567 = math.exp %566 : vector<4x32xf32>
    %cst_184 = arith.constant 1.000000e+00 : f32
    %568 = vector.broadcast %cst_184 : f32 to vector<4x32xf32>
    %569 = arith.addf %568, %567 : vector<4x32xf32>
    %570 = arith.divf %568, %569 : vector<4x32xf32>
    %571 = arith.mulf %562, %509 : vector<4x32xf32>
    %572 = arith.mulf %556, %564 : vector<4x32xf32>
    %573 = arith.addf %571, %572 : vector<4x32xf32>
    %574 = math.tanh %573 : vector<4x32xf32>
    %575 = arith.mulf %570, %574 : vector<4x32xf32>
    %576 = vector.shape_cast %550 : vector<4x32xf32> to vector<4x1x32xf32>
    %c0_185 = arith.constant 0 : index
    %c3_186 = arith.constant 3 : index
    %c0_187 = arith.constant 0 : index
    %577 = vector.load %arg32[%c0_185, %c3_186, %c0_187] : memref<4x8x64xf32, #tpu.memory_space<vmem>>, vector<4x1x32xf32>
    tpu.vector_store %arg32[%c0_185, %c3_186, %c0_187], %576 {strides = array<i32>} : memref<4x8x64xf32, #tpu.memory_space<vmem>>, vector<4x1x32xf32>,
    %578 = vector.shape_cast %575 : vector<4x32xf32> to vector<4x1x32xf32>
    %c0_188 = arith.constant 0 : index
    %c4_189 = arith.constant 4 : index
    %c32_190 = arith.constant 32 : index
    %579 = vector.load %arg32[%c0_188, %c4_189, %c32_190] : memref<4x8x64xf32, #tpu.memory_space<vmem>>, vector<4x1x32xf32>
    tpu.vector_store %arg32[%c0_188, %c4_189, %c32_190], %578 {strides = array<i32>} : memref<4x8x64xf32, #tpu.memory_space<vmem>>, vector<4x1x32xf32>,
    %c0_191 = arith.constant 0 : index
    %c4_192 = arith.constant 4 : index
    %c0_193 = arith.constant 0 : index
    %580 = vector.load %arg30[%c0_191, %c4_192, %c0_193] : memref<4x8x128xf32, #tpu.memory_space<vmem>>, vector<4x1x128xf32>
    %581 = vector.shape_cast %580 : vector<4x1x128xf32> to vector<4x128xf32>
    %582 = arith.truncf %550 : vector<4x32xf32> to vector<4x32xbf16>
    %cst_194 = arith.constant dense<0.000000e+00> : vector<4x128xf32>
    %583 = tpu.matmul %582, %321, %cst_194 {dimension_numbers = #tpu.dot_dimension_numbers<[1], [0], [0], [1], [0, 0, 1, 1], [], []>} : vector<4x32xbf16>, vector<32x128xbf16>, vector<4x128xf32> -> vector<4x128xf32>
    %584 = arith.addf %581, %583 : vector<4x128xf32>
    %c0_195 = arith.constant 0 : index
    %c3_196 = arith.constant 3 : index
    %c0_197 = arith.constant 0 : index
    %585 = vector.load %arg31[%c0_195, %c3_196, %c0_197] : memref<4x8x128xf32, #tpu.memory_space<vmem>>, vector<4x1x128xf32>
    %586 = vector.shape_cast %585 : vector<4x1x128xf32> to vector<4x128xf32>
    %587 = arith.truncf %575 : vector<4x32xf32> to vector<4x32xbf16>
    %cst_198 = arith.constant dense<0.000000e+00> : vector<4x128xf32>
    %588 = tpu.matmul %587, %322, %cst_198 {dimension_numbers = #tpu.dot_dimension_numbers<[1], [0], [0], [1], [0, 0, 1, 1], [], []>} : vector<4x32xbf16>, vector<32x128xbf16>, vector<4x128xf32> -> vector<4x128xf32>
    %589 = arith.addf %586, %588 : vector<4x128xf32>
    %590 = vector.extract_strided_slice %584 {offsets = [0, 0], sizes = [4, 32], strides = [1, 1]} : vector<4x128xf32> to vector<4x32xf32>
    %591 = arith.negf %590 : vector<4x32xf32>
    %592 = math.exp %591 : vector<4x32xf32>
    %cst_199 = arith.constant 1.000000e+00 : f32
    %593 = vector.broadcast %cst_199 : f32 to vector<4x32xf32>
    %594 = arith.addf %593, %592 : vector<4x32xf32>
    %595 = arith.divf %593, %594 : vector<4x32xf32>
    %596 = vector.extract_strided_slice %584 {offsets = [0, 32], sizes = [4, 32], strides = [1, 1]} : vector<4x128xf32> to vector<4x32xf32>
    %597 = arith.negf %596 : vector<4x32xf32>
    %598 = math.exp %597 : vector<4x32xf32>
    %cst_200 = arith.constant 1.000000e+00 : f32
    %599 = vector.broadcast %cst_200 : f32 to vector<4x32xf32>
    %600 = arith.addf %599, %598 : vector<4x32xf32>
    %601 = arith.divf %599, %600 : vector<4x32xf32>
    %602 = vector.extract_strided_slice %584 {offsets = [0, 64], sizes = [4, 32], strides = [1, 1]} : vector<4x128xf32> to vector<4x32xf32>
    %603 = math.tanh %602 : vector<4x32xf32>
    %604 = vector.extract_strided_slice %584 {offsets = [0, 96], sizes = [4, 32], strides = [1, 1]} : vector<4x128xf32> to vector<4x32xf32>
    %605 = arith.negf %604 : vector<4x32xf32>
    %606 = math.exp %605 : vector<4x32xf32>
    %cst_201 = arith.constant 1.000000e+00 : f32
    %607 = vector.broadcast %cst_201 : f32 to vector<4x32xf32>
    %608 = arith.addf %607, %606 : vector<4x32xf32>
    %609 = arith.divf %607, %608 : vector<4x32xf32>
    %610 = arith.mulf %601, %548 : vector<4x32xf32>
    %611 = arith.mulf %595, %603 : vector<4x32xf32>
    %612 = arith.addf %610, %611 : vector<4x32xf32>
    %613 = math.tanh %612 : vector<4x32xf32>
    %614 = arith.mulf %609, %613 : vector<4x32xf32>
    %615 = vector.extract_strided_slice %589 {offsets = [0, 0], sizes = [4, 32], strides = [1, 1]} : vector<4x128xf32> to vector<4x32xf32>
    %616 = arith.negf %615 : vector<4x32xf32>
    %617 = math.exp %616 : vector<4x32xf32>
    %cst_202 = arith.constant 1.000000e+00 : f32
    %618 = vector.broadcast %cst_202 : f32 to vector<4x32xf32>
    %619 = arith.addf %618, %617 : vector<4x32xf32>
    %620 = arith.divf %618, %619 : vector<4x32xf32>
    %621 = vector.extract_strided_slice %589 {offsets = [0, 32], sizes = [4, 32], strides = [1, 1]} : vector<4x128xf32> to vector<4x32xf32>
    %622 = arith.negf %621 : vector<4x32xf32>
    %623 = math.exp %622 : vector<4x32xf32>
    %cst_203 = arith.constant 1.000000e+00 : f32
    %624 = vector.broadcast %cst_203 : f32 to vector<4x32xf32>
    %625 = arith.addf %624, %623 : vector<4x32xf32>
    %626 = arith.divf %624, %625 : vector<4x32xf32>
    %627 = vector.extract_strided_slice %589 {offsets = [0, 64], sizes = [4, 32], strides = [1, 1]} : vector<4x128xf32> to vector<4x32xf32>
    %628 = math.tanh %627 : vector<4x32xf32>
    %629 = vector.extract_strided_slice %589 {offsets = [0, 96], sizes = [4, 32], strides = [1, 1]} : vector<4x128xf32> to vector<4x32xf32>
    %630 = arith.negf %629 : vector<4x32xf32>
    %631 = math.exp %630 : vector<4x32xf32>
    %cst_204 = arith.constant 1.000000e+00 : f32
    %632 = vector.broadcast %cst_204 : f32 to vector<4x32xf32>
    %633 = arith.addf %632, %631 : vector<4x32xf32>
    %634 = arith.divf %632, %633 : vector<4x32xf32>
    %635 = arith.mulf %626, %573 : vector<4x32xf32>
    %636 = arith.mulf %620, %628 : vector<4x32xf32>
    %637 = arith.addf %635, %636 : vector<4x32xf32>
    %638 = math.tanh %637 : vector<4x32xf32>
    %639 = arith.mulf %634, %638 : vector<4x32xf32>
    %640 = vector.shape_cast %614 : vector<4x32xf32> to vector<4x1x32xf32>
    %c0_205 = arith.constant 0 : index
    %c4_206 = arith.constant 4 : index
    %c0_207 = arith.constant 0 : index
    %641 = vector.load %arg32[%c0_205, %c4_206, %c0_207] : memref<4x8x64xf32, #tpu.memory_space<vmem>>, vector<4x1x32xf32>
    tpu.vector_store %arg32[%c0_205, %c4_206, %c0_207], %640 {strides = array<i32>} : memref<4x8x64xf32, #tpu.memory_space<vmem>>, vector<4x1x32xf32>,
    %642 = vector.shape_cast %639 : vector<4x32xf32> to vector<4x1x32xf32>
    %c0_208 = arith.constant 0 : index
    %c3_209 = arith.constant 3 : index
    %c32_210 = arith.constant 32 : index
    %643 = vector.load %arg32[%c0_208, %c3_209, %c32_210] : memref<4x8x64xf32, #tpu.memory_space<vmem>>, vector<4x1x32xf32>
    tpu.vector_store %arg32[%c0_208, %c3_209, %c32_210], %642 {strides = array<i32>} : memref<4x8x64xf32, #tpu.memory_space<vmem>>, vector<4x1x32xf32>,
    %c0_211 = arith.constant 0 : index
    %c5_212 = arith.constant 5 : index
    %c0_213 = arith.constant 0 : index
    %644 = vector.load %arg30[%c0_211, %c5_212, %c0_213] : memref<4x8x128xf32, #tpu.memory_space<vmem>>, vector<4x1x128xf32>
    %645 = vector.shape_cast %644 : vector<4x1x128xf32> to vector<4x128xf32>
    %646 = arith.truncf %614 : vector<4x32xf32> to vector<4x32xbf16>
    %cst_214 = arith.constant dense<0.000000e+00> : vector<4x128xf32>
    %647 = tpu.matmul %646, %321, %cst_214 {dimension_numbers = #tpu.dot_dimension_numbers<[1], [0], [0], [1], [0, 0, 1, 1], [], []>} : vector<4x32xbf16>, vector<32x128xbf16>, vector<4x128xf32> -> vector<4x128xf32>
    %648 = arith.addf %645, %647 : vector<4x128xf32>
    %c0_215 = arith.constant 0 : index
    %c2_216 = arith.constant 2 : index
    %c0_217 = arith.constant 0 : index
    %649 = vector.load %arg31[%c0_215, %c2_216, %c0_217] : memref<4x8x128xf32, #tpu.memory_space<vmem>>, vector<4x1x128xf32>
    %650 = vector.shape_cast %649 : vector<4x1x128xf32> to vector<4x128xf32>
    %651 = arith.truncf %639 : vector<4x32xf32> to vector<4x32xbf16>
    %cst_218 = arith.constant dense<0.000000e+00> : vector<4x128xf32>
    %652 = tpu.matmul %651, %322, %cst_218 {dimension_numbers = #tpu.dot_dimension_numbers<[1], [0], [0], [1], [0, 0, 1, 1], [], []>} : vector<4x32xbf16>, vector<32x128xbf16>, vector<4x128xf32> -> vector<4x128xf32>
    %653 = arith.addf %650, %652 : vector<4x128xf32>
    %654 = vector.extract_strided_slice %648 {offsets = [0, 0], sizes = [4, 32], strides = [1, 1]} : vector<4x128xf32> to vector<4x32xf32>
    %655 = arith.negf %654 : vector<4x32xf32>
    %656 = math.exp %655 : vector<4x32xf32>
    %cst_219 = arith.constant 1.000000e+00 : f32
    %657 = vector.broadcast %cst_219 : f32 to vector<4x32xf32>
    %658 = arith.addf %657, %656 : vector<4x32xf32>
    %659 = arith.divf %657, %658 : vector<4x32xf32>
    %660 = vector.extract_strided_slice %648 {offsets = [0, 32], sizes = [4, 32], strides = [1, 1]} : vector<4x128xf32> to vector<4x32xf32>
    %661 = arith.negf %660 : vector<4x32xf32>
    %662 = math.exp %661 : vector<4x32xf32>
    %cst_220 = arith.constant 1.000000e+00 : f32
    %663 = vector.broadcast %cst_220 : f32 to vector<4x32xf32>
    %664 = arith.addf %663, %662 : vector<4x32xf32>
    %665 = arith.divf %663, %664 : vector<4x32xf32>
    %666 = vector.extract_strided_slice %648 {offsets = [0, 64], sizes = [4, 32], strides = [1, 1]} : vector<4x128xf32> to vector<4x32xf32>
    %667 = math.tanh %666 : vector<4x32xf32>
    %668 = vector.extract_strided_slice %648 {offsets = [0, 96], sizes = [4, 32], strides = [1, 1]} : vector<4x128xf32> to vector<4x32xf32>
    %669 = arith.negf %668 : vector<4x32xf32>
    %670 = math.exp %669 : vector<4x32xf32>
    %cst_221 = arith.constant 1.000000e+00 : f32
    %671 = vector.broadcast %cst_221 : f32 to vector<4x32xf32>
    %672 = arith.addf %671, %670 : vector<4x32xf32>
    %673 = arith.divf %671, %672 : vector<4x32xf32>
    %674 = arith.mulf %665, %612 : vector<4x32xf32>
    %675 = arith.mulf %659, %667 : vector<4x32xf32>
    %676 = arith.addf %674, %675 : vector<4x32xf32>
    %677 = math.tanh %676 : vector<4x32xf32>
    %678 = arith.mulf %673, %677 : vector<4x32xf32>
    %679 = vector.extract_strided_slice %653 {offsets = [0, 0], sizes = [4, 32], strides = [1, 1]} : vector<4x128xf32> to vector<4x32xf32>
    %680 = arith.negf %679 : vector<4x32xf32>
    %681 = math.exp %680 : vector<4x32xf32>
    %cst_222 = arith.constant 1.000000e+00 : f32
    %682 = vector.broadcast %cst_222 : f32 to vector<4x32xf32>
    %683 = arith.addf %682, %681 : vector<4x32xf32>
    %684 = arith.divf %682, %683 : vector<4x32xf32>
    %685 = vector.extract_strided_slice %653 {offsets = [0, 32], sizes = [4, 32], strides = [1, 1]} : vector<4x128xf32> to vector<4x32xf32>
    %686 = arith.negf %685 : vector<4x32xf32>
    %687 = math.exp %686 : vector<4x32xf32>
    %cst_223 = arith.constant 1.000000e+00 : f32
    %688 = vector.broadcast %cst_223 : f32 to vector<4x32xf32>
    %689 = arith.addf %688, %687 : vector<4x32xf32>
    %690 = arith.divf %688, %689 : vector<4x32xf32>
    %691 = vector.extract_strided_slice %653 {offsets = [0, 64], sizes = [4, 32], strides = [1, 1]} : vector<4x128xf32> to vector<4x32xf32>
    %692 = math.tanh %691 : vector<4x32xf32>
    %693 = vector.extract_strided_slice %653 {offsets = [0, 96], sizes = [4, 32], strides = [1, 1]} : vector<4x128xf32> to vector<4x32xf32>
    %694 = arith.negf %693 : vector<4x32xf32>
    %695 = math.exp %694 : vector<4x32xf32>
    %cst_224 = arith.constant 1.000000e+00 : f32
    %696 = vector.broadcast %cst_224 : f32 to vector<4x32xf32>
    %697 = arith.addf %696, %695 : vector<4x32xf32>
    %698 = arith.divf %696, %697 : vector<4x32xf32>
    %699 = arith.mulf %690, %637 : vector<4x32xf32>
    %700 = arith.mulf %684, %692 : vector<4x32xf32>
    %701 = arith.addf %699, %700 : vector<4x32xf32>
    %702 = math.tanh %701 : vector<4x32xf32>
    %703 = arith.mulf %698, %702 : vector<4x32xf32>
    %704 = vector.shape_cast %678 : vector<4x32xf32> to vector<4x1x32xf32>
    %c0_225 = arith.constant 0 : index
    %c5_226 = arith.constant 5 : index
    %c0_227 = arith.constant 0 : index
    %705 = vector.load %arg32[%c0_225, %c5_226, %c0_227] : memref<4x8x64xf32, #tpu.memory_space<vmem>>, vector<4x1x32xf32>
    tpu.vector_store %arg32[%c0_225, %c5_226, %c0_227], %704 {strides = array<i32>} : memref<4x8x64xf32, #tpu.memory_space<vmem>>, vector<4x1x32xf32>,
    %706 = vector.shape_cast %703 : vector<4x32xf32> to vector<4x1x32xf32>
    %c0_228 = arith.constant 0 : index
    %c2_229 = arith.constant 2 : index
    %c32_230 = arith.constant 32 : index
    %707 = vector.load %arg32[%c0_228, %c2_229, %c32_230] : memref<4x8x64xf32, #tpu.memory_space<vmem>>, vector<4x1x32xf32>
    tpu.vector_store %arg32[%c0_228, %c2_229, %c32_230], %706 {strides = array<i32>} : memref<4x8x64xf32, #tpu.memory_space<vmem>>, vector<4x1x32xf32>,
    %c0_231 = arith.constant 0 : index
    %c6_232 = arith.constant 6 : index
    %c0_233 = arith.constant 0 : index
    %708 = vector.load %arg30[%c0_231, %c6_232, %c0_233] : memref<4x8x128xf32, #tpu.memory_space<vmem>>, vector<4x1x128xf32>
    %709 = vector.shape_cast %708 : vector<4x1x128xf32> to vector<4x128xf32>
    %710 = arith.truncf %678 : vector<4x32xf32> to vector<4x32xbf16>
    %cst_234 = arith.constant dense<0.000000e+00> : vector<4x128xf32>
    %711 = tpu.matmul %710, %321, %cst_234 {dimension_numbers = #tpu.dot_dimension_numbers<[1], [0], [0], [1], [0, 0, 1, 1], [], []>} : vector<4x32xbf16>, vector<32x128xbf16>, vector<4x128xf32> -> vector<4x128xf32>
    %712 = arith.addf %709, %711 : vector<4x128xf32>
    %c0_235 = arith.constant 0 : index
    %c1_236 = arith.constant 1 : index
    %c0_237 = arith.constant 0 : index
    %713 = vector.load %arg31[%c0_235, %c1_236, %c0_237] : memref<4x8x128xf32, #tpu.memory_space<vmem>>, vector<4x1x128xf32>
    %714 = vector.shape_cast %713 : vector<4x1x128xf32> to vector<4x128xf32>
    %715 = arith.truncf %703 : vector<4x32xf32> to vector<4x32xbf16>
    %cst_238 = arith.constant dense<0.000000e+00> : vector<4x128xf32>
    %716 = tpu.matmul %715, %322, %cst_238 {dimension_numbers = #tpu.dot_dimension_numbers<[1], [0], [0], [1], [0, 0, 1, 1], [], []>} : vector<4x32xbf16>, vector<32x128xbf16>, vector<4x128xf32> -> vector<4x128xf32>
    %717 = arith.addf %714, %716 : vector<4x128xf32>
    %718 = vector.extract_strided_slice %712 {offsets = [0, 0], sizes = [4, 32], strides = [1, 1]} : vector<4x128xf32> to vector<4x32xf32>
    %719 = arith.negf %718 : vector<4x32xf32>
    %720 = math.exp %719 : vector<4x32xf32>
    %cst_239 = arith.constant 1.000000e+00 : f32
    %721 = vector.broadcast %cst_239 : f32 to vector<4x32xf32>
    %722 = arith.addf %721, %720 : vector<4x32xf32>
    %723 = arith.divf %721, %722 : vector<4x32xf32>
    %724 = vector.extract_strided_slice %712 {offsets = [0, 32], sizes = [4, 32], strides = [1, 1]} : vector<4x128xf32> to vector<4x32xf32>
    %725 = arith.negf %724 : vector<4x32xf32>
    %726 = math.exp %725 : vector<4x32xf32>
    %cst_240 = arith.constant 1.000000e+00 : f32
    %727 = vector.broadcast %cst_240 : f32 to vector<4x32xf32>
    %728 = arith.addf %727, %726 : vector<4x32xf32>
    %729 = arith.divf %727, %728 : vector<4x32xf32>
    %730 = vector.extract_strided_slice %712 {offsets = [0, 64], sizes = [4, 32], strides = [1, 1]} : vector<4x128xf32> to vector<4x32xf32>
    %731 = math.tanh %730 : vector<4x32xf32>
    %732 = vector.extract_strided_slice %712 {offsets = [0, 96], sizes = [4, 32], strides = [1, 1]} : vector<4x128xf32> to vector<4x32xf32>
    %733 = arith.negf %732 : vector<4x32xf32>
    %734 = math.exp %733 : vector<4x32xf32>
    %cst_241 = arith.constant 1.000000e+00 : f32
    %735 = vector.broadcast %cst_241 : f32 to vector<4x32xf32>
    %736 = arith.addf %735, %734 : vector<4x32xf32>
    %737 = arith.divf %735, %736 : vector<4x32xf32>
    %738 = arith.mulf %729, %676 : vector<4x32xf32>
    %739 = arith.mulf %723, %731 : vector<4x32xf32>
    %740 = arith.addf %738, %739 : vector<4x32xf32>
    %741 = math.tanh %740 : vector<4x32xf32>
    %742 = arith.mulf %737, %741 : vector<4x32xf32>
    %743 = vector.extract_strided_slice %717 {offsets = [0, 0], sizes = [4, 32], strides = [1, 1]} : vector<4x128xf32> to vector<4x32xf32>
    %744 = arith.negf %743 : vector<4x32xf32>
    %745 = math.exp %744 : vector<4x32xf32>
    %cst_242 = arith.constant 1.000000e+00 : f32
    %746 = vector.broadcast %cst_242 : f32 to vector<4x32xf32>
    %747 = arith.addf %746, %745 : vector<4x32xf32>
    %748 = arith.divf %746, %747 : vector<4x32xf32>
    %749 = vector.extract_strided_slice %717 {offsets = [0, 32], sizes = [4, 32], strides = [1, 1]} : vector<4x128xf32> to vector<4x32xf32>
    %750 = arith.negf %749 : vector<4x32xf32>
    %751 = math.exp %750 : vector<4x32xf32>
    %cst_243 = arith.constant 1.000000e+00 : f32
    %752 = vector.broadcast %cst_243 : f32 to vector<4x32xf32>
    %753 = arith.addf %752, %751 : vector<4x32xf32>
    %754 = arith.divf %752, %753 : vector<4x32xf32>
    %755 = vector.extract_strided_slice %717 {offsets = [0, 64], sizes = [4, 32], strides = [1, 1]} : vector<4x128xf32> to vector<4x32xf32>
    %756 = math.tanh %755 : vector<4x32xf32>
    %757 = vector.extract_strided_slice %717 {offsets = [0, 96], sizes = [4, 32], strides = [1, 1]} : vector<4x128xf32> to vector<4x32xf32>
    %758 = arith.negf %757 : vector<4x32xf32>
    %759 = math.exp %758 : vector<4x32xf32>
    %cst_244 = arith.constant 1.000000e+00 : f32
    %760 = vector.broadcast %cst_244 : f32 to vector<4x32xf32>
    %761 = arith.addf %760, %759 : vector<4x32xf32>
    %762 = arith.divf %760, %761 : vector<4x32xf32>
    %763 = arith.mulf %754, %701 : vector<4x32xf32>
    %764 = arith.mulf %748, %756 : vector<4x32xf32>
    %765 = arith.addf %763, %764 : vector<4x32xf32>
    %766 = math.tanh %765 : vector<4x32xf32>
    %767 = arith.mulf %762, %766 : vector<4x32xf32>
    %768 = vector.shape_cast %742 : vector<4x32xf32> to vector<4x1x32xf32>
    %c0_245 = arith.constant 0 : index
    %c6_246 = arith.constant 6 : index
    %c0_247 = arith.constant 0 : index
    %769 = vector.load %arg32[%c0_245, %c6_246, %c0_247] : memref<4x8x64xf32, #tpu.memory_space<vmem>>, vector<4x1x32xf32>
    tpu.vector_store %arg32[%c0_245, %c6_246, %c0_247], %768 {strides = array<i32>} : memref<4x8x64xf32, #tpu.memory_space<vmem>>, vector<4x1x32xf32>,
    %770 = vector.shape_cast %767 : vector<4x32xf32> to vector<4x1x32xf32>
    %c0_248 = arith.constant 0 : index
    %c1_249 = arith.constant 1 : index
    %c32_250 = arith.constant 32 : index
    %771 = vector.load %arg32[%c0_248, %c1_249, %c32_250] : memref<4x8x64xf32, #tpu.memory_space<vmem>>, vector<4x1x32xf32>
    tpu.vector_store %arg32[%c0_248, %c1_249, %c32_250], %770 {strides = array<i32>} : memref<4x8x64xf32, #tpu.memory_space<vmem>>, vector<4x1x32xf32>,
    %c0_251 = arith.constant 0 : index
    %c7_252 = arith.constant 7 : index
    %c0_253 = arith.constant 0 : index
    %772 = vector.load %arg30[%c0_251, %c7_252, %c0_253] : memref<4x8x128xf32, #tpu.memory_space<vmem>>, vector<4x1x128xf32>
    %773 = vector.shape_cast %772 : vector<4x1x128xf32> to vector<4x128xf32>
    %774 = arith.truncf %742 : vector<4x32xf32> to vector<4x32xbf16>
    %cst_254 = arith.constant dense<0.000000e+00> : vector<4x128xf32>
    %775 = tpu.matmul %774, %321, %cst_254 {dimension_numbers = #tpu.dot_dimension_numbers<[1], [0], [0], [1], [0, 0, 1, 1], [], []>} : vector<4x32xbf16>, vector<32x128xbf16>, vector<4x128xf32> -> vector<4x128xf32>
    %776 = arith.addf %773, %775 : vector<4x128xf32>
    %c0_255 = arith.constant 0 : index
    %c0_256 = arith.constant 0 : index
    %c0_257 = arith.constant 0 : index
    %777 = vector.load %arg31[%c0_255, %c0_256, %c0_257] : memref<4x8x128xf32, #tpu.memory_space<vmem>>, vector<4x1x128xf32>
    %778 = vector.shape_cast %777 : vector<4x1x128xf32> to vector<4x128xf32>
    %779 = arith.truncf %767 : vector<4x32xf32> to vector<4x32xbf16>
    %cst_258 = arith.constant dense<0.000000e+00> : vector<4x128xf32>
    %780 = tpu.matmul %779, %322, %cst_258 {dimension_numbers = #tpu.dot_dimension_numbers<[1], [0], [0], [1], [0, 0, 1, 1], [], []>} : vector<4x32xbf16>, vector<32x128xbf16>, vector<4x128xf32> -> vector<4x128xf32>
    %781 = arith.addf %778, %780 : vector<4x128xf32>
    %782 = vector.extract_strided_slice %776 {offsets = [0, 0], sizes = [4, 32], strides = [1, 1]} : vector<4x128xf32> to vector<4x32xf32>
    %783 = arith.negf %782 : vector<4x32xf32>
    %784 = math.exp %783 : vector<4x32xf32>
    %cst_259 = arith.constant 1.000000e+00 : f32
    %785 = vector.broadcast %cst_259 : f32 to vector<4x32xf32>
    %786 = arith.addf %785, %784 : vector<4x32xf32>
    %787 = arith.divf %785, %786 : vector<4x32xf32>
    %788 = vector.extract_strided_slice %776 {offsets = [0, 32], sizes = [4, 32], strides = [1, 1]} : vector<4x128xf32> to vector<4x32xf32>
    %789 = arith.negf %788 : vector<4x32xf32>
    %790 = math.exp %789 : vector<4x32xf32>
    %cst_260 = arith.constant 1.000000e+00 : f32
    %791 = vector.broadcast %cst_260 : f32 to vector<4x32xf32>
    %792 = arith.addf %791, %790 : vector<4x32xf32>
    %793 = arith.divf %791, %792 : vector<4x32xf32>
    %794 = vector.extract_strided_slice %776 {offsets = [0, 64], sizes = [4, 32], strides = [1, 1]} : vector<4x128xf32> to vector<4x32xf32>
    %795 = math.tanh %794 : vector<4x32xf32>
    %796 = vector.extract_strided_slice %776 {offsets = [0, 96], sizes = [4, 32], strides = [1, 1]} : vector<4x128xf32> to vector<4x32xf32>
    %797 = arith.negf %796 : vector<4x32xf32>
    %798 = math.exp %797 : vector<4x32xf32>
    %cst_261 = arith.constant 1.000000e+00 : f32
    %799 = vector.broadcast %cst_261 : f32 to vector<4x32xf32>
    %800 = arith.addf %799, %798 : vector<4x32xf32>
    %801 = arith.divf %799, %800 : vector<4x32xf32>
    %802 = arith.mulf %793, %740 : vector<4x32xf32>
    %803 = arith.mulf %787, %795 : vector<4x32xf32>
    %804 = arith.addf %802, %803 : vector<4x32xf32>
    %805 = math.tanh %804 : vector<4x32xf32>
    %806 = arith.mulf %801, %805 : vector<4x32xf32>
    %807 = vector.extract_strided_slice %781 {offsets = [0, 0], sizes = [4, 32], strides = [1, 1]} : vector<4x128xf32> to vector<4x32xf32>
    %808 = arith.negf %807 : vector<4x32xf32>
    %809 = math.exp %808 : vector<4x32xf32>
    %cst_262 = arith.constant 1.000000e+00 : f32
    %810 = vector.broadcast %cst_262 : f32 to vector<4x32xf32>
    %811 = arith.addf %810, %809 : vector<4x32xf32>
    %812 = arith.divf %810, %811 : vector<4x32xf32>
    %813 = vector.extract_strided_slice %781 {offsets = [0, 32], sizes = [4, 32], strides = [1, 1]} : vector<4x128xf32> to vector<4x32xf32>
    %814 = arith.negf %813 : vector<4x32xf32>
    %815 = math.exp %814 : vector<4x32xf32>
    %cst_263 = arith.constant 1.000000e+00 : f32
    %816 = vector.broadcast %cst_263 : f32 to vector<4x32xf32>
    %817 = arith.addf %816, %815 : vector<4x32xf32>
    %818 = arith.divf %816, %817 : vector<4x32xf32>
    %819 = vector.extract_strided_slice %781 {offsets = [0, 64], sizes = [4, 32], strides = [1, 1]} : vector<4x128xf32> to vector<4x32xf32>
    %820 = math.tanh %819 : vector<4x32xf32>
    %821 = vector.extract_strided_slice %781 {offsets = [0, 96], sizes = [4, 32], strides = [1, 1]} : vector<4x128xf32> to vector<4x32xf32>
    %822 = arith.negf %821 : vector<4x32xf32>
    %823 = math.exp %822 : vector<4x32xf32>
    %cst_264 = arith.constant 1.000000e+00 : f32
    %824 = vector.broadcast %cst_264 : f32 to vector<4x32xf32>
    %825 = arith.addf %824, %823 : vector<4x32xf32>
    %826 = arith.divf %824, %825 : vector<4x32xf32>
    %827 = arith.mulf %818, %765 : vector<4x32xf32>
    %828 = arith.mulf %812, %820 : vector<4x32xf32>
    %829 = arith.addf %827, %828 : vector<4x32xf32>
    %830 = math.tanh %829 : vector<4x32xf32>
    %831 = arith.mulf %826, %830 : vector<4x32xf32>
    %832 = vector.shape_cast %806 : vector<4x32xf32> to vector<4x1x32xf32>
    %c0_265 = arith.constant 0 : index
    %c7_266 = arith.constant 7 : index
    %c0_267 = arith.constant 0 : index
    %833 = vector.load %arg32[%c0_265, %c7_266, %c0_267] : memref<4x8x64xf32, #tpu.memory_space<vmem>>, vector<4x1x32xf32>
    tpu.vector_store %arg32[%c0_265, %c7_266, %c0_267], %832 {strides = array<i32>} : memref<4x8x64xf32, #tpu.memory_space<vmem>>, vector<4x1x32xf32>,
    %834 = vector.shape_cast %831 : vector<4x32xf32> to vector<4x1x32xf32>
    %c0_268 = arith.constant 0 : index
    %c0_269 = arith.constant 0 : index
    %c32_270 = arith.constant 32 : index
    %835 = vector.load %arg32[%c0_268, %c0_269, %c32_270] : memref<4x8x64xf32, #tpu.memory_space<vmem>>, vector<4x1x32xf32>
    tpu.vector_store %arg32[%c0_268, %c0_269, %c32_270], %834 {strides = array<i32>} : memref<4x8x64xf32, #tpu.memory_space<vmem>>, vector<4x1x32xf32>,
    %c0_271 = arith.constant 0 : index
    %c0_272 = arith.constant 0 : index
    %c0_273 = arith.constant 0 : index
    %836 = vector.load %arg32[%c0_271, %c0_272, %c0_273] : memref<4x8x64xf32, #tpu.memory_space<vmem>>, vector<4x8x64xf32>
    %cst_274 = arith.constant 0.000000e+00 : f32
    %837 = vector.broadcast %cst_274 : f32 to vector<4x8x64xf32>
    %838 = arith.maximumf %836, %837 : vector<4x8x64xf32>
    %839 = vector.shape_cast %838 : vector<4x8x64xf32> to vector<32x64xf32>
    %840 = arith.truncf %839 : vector<32x64xf32> to vector<32x64xbf16>
    %c0_275 = arith.constant 0 : index
    %c0_276 = arith.constant 0 : index
    %841 = vector.load %arg25[%c0_275, %c0_276] : memref<64x64xbf16, #tpu.memory_space<vmem>>, vector<64x64xbf16>
    %cst_277 = arith.constant dense<0.000000e+00> : vector<32x64xf32>
    %842 = tpu.matmul %840, %841, %cst_277 {dimension_numbers = #tpu.dot_dimension_numbers<[1], [0], [0], [1], [0, 0, 1, 1], [], []>} : vector<32x64xbf16>, vector<64x64xbf16>, vector<32x64xf32> -> vector<32x64xf32>
    %c0_278 = arith.constant 0 : index
    %c0_279 = arith.constant 0 : index
    %843 = vector.load %arg26[%c0_278, %c0_279] : memref<1x64xf32, #tpu.memory_space<vmem>>, vector<1x64xf32>
    %844 = vector.broadcast %843 : vector<1x64xf32> to vector<32x64xf32>
    %845 = arith.addf %842, %844 : vector<32x64xf32>
    %846 = arith.addf %845, %305 : vector<32x64xf32>
    %c0_280 = arith.constant 0 : index
    %c0_281 = arith.constant 0 : index
    %847 = vector.load %arg27[%c0_280, %c0_281] : memref<1x64xf32, #tpu.memory_space<vmem>>, vector<1x64xf32>
    %c0_282 = arith.constant 0 : index
    %c0_283 = arith.constant 0 : index
    %848 = vector.load %arg28[%c0_282, %c0_283] : memref<1x64xf32, #tpu.memory_space<vmem>>, vector<1x64xf32>
    %849 = vector.shape_cast %846 : vector<32x64xf32> to vector<4x8x64xf32>
    %cst_284 = arith.constant dense<0.000000e+00> : vector<4x8xf32>
    %850 = vector.multi_reduction <add>, %849, %cst_284 [2] : vector<4x8x64xf32> to vector<4x8xf32>
    %851 = vector.shape_cast %850 : vector<4x8xf32> to vector<4x8x1xf32>
    %cst_285 = arith.constant 6.400000e+01 : f32
    %852 = vector.broadcast %cst_285 : f32 to vector<4x8x1xf32>
    %853 = arith.divf %851, %852 : vector<4x8x1xf32>
    %cst_286 = arith.constant dense<0.000000e+00> : vector<4x1xf32>
    %854 = vector.multi_reduction <add>, %853, %cst_286 [1] : vector<4x8x1xf32> to vector<4x1xf32>
    %855 = vector.shape_cast %854 : vector<4x1xf32> to vector<4x1x1xf32>
    %cst_287 = arith.constant 8.000000e+00 : f32
    %856 = vector.broadcast %cst_287 : f32 to vector<4x1x1xf32>
    %857 = arith.divf %855, %856 : vector<4x1x1xf32>
    %858 = vector.broadcast %857 : vector<4x1x1xf32> to vector<4x8x64xf32>
    %859 = arith.subf %849, %858 : vector<4x8x64xf32>
    %860 = arith.mulf %859, %859 : vector<4x8x64xf32>
    %cst_288 = arith.constant dense<0.000000e+00> : vector<4x8xf32>
    %861 = vector.multi_reduction <add>, %860, %cst_288 [2] : vector<4x8x64xf32> to vector<4x8xf32>
    %862 = vector.shape_cast %861 : vector<4x8xf32> to vector<4x8x1xf32>
    %cst_289 = arith.constant 6.400000e+01 : f32
    %863 = vector.broadcast %cst_289 : f32 to vector<4x8x1xf32>
    %864 = arith.divf %862, %863 : vector<4x8x1xf32>
    %cst_290 = arith.constant dense<0.000000e+00> : vector<4x1xf32>
    %865 = vector.multi_reduction <add>, %864, %cst_290 [1] : vector<4x8x1xf32> to vector<4x1xf32>
    %866 = vector.shape_cast %865 : vector<4x1xf32> to vector<4x1x1xf32>
    %cst_291 = arith.constant 8.000000e+00 : f32
    %867 = vector.broadcast %cst_291 : f32 to vector<4x1x1xf32>
    %868 = arith.divf %866, %867 : vector<4x1x1xf32>
    %cst_292 = arith.constant 9.99999996E-13 : f32
    %869 = vector.broadcast %cst_292 : f32 to vector<4x1x1xf32>
    %870 = arith.addf %868, %869 : vector<4x1x1xf32>
    %871 = math.rsqrt %870 : vector<4x1x1xf32>
    %872 = vector.broadcast %871 : vector<4x1x1xf32> to vector<4x8x64xf32>
    %873 = arith.mulf %859, %872 : vector<4x8x64xf32>
    %874 = vector.shape_cast %847 : vector<1x64xf32> to vector<1x1x64xf32>
    %875 = vector.broadcast %874 : vector<1x1x64xf32> to vector<4x8x64xf32>
    %876 = arith.mulf %873, %875 : vector<4x8x64xf32>
    %877 = vector.shape_cast %848 : vector<1x64xf32> to vector<1x1x64xf32>
    %878 = vector.broadcast %877 : vector<1x1x64xf32> to vector<4x8x64xf32>
    %879 = arith.addf %876, %878 : vector<4x8x64xf32>
    %880 = vector.shape_cast %879 : vector<4x8x64xf32> to vector<32x64xf32>
    %c0_293 = arith.constant 0 : index
    %c0_294 = arith.constant 0 : index
    %881 = vector.load %arg29[%c0_293, %c0_294] : memref<32x64xf32, #tpu.memory_space<vmem>>, vector<32x64xf32>
    tpu.vector_store %arg29[%c0_293, %c0_294], %880 {strides = array<i32>} : memref<32x64xf32, #tpu.memory_space<vmem>>, vector<32x64xf32>,
    return
  }
  func.func @transform_0(%arg0: i32) -> (i32, i32) {
    %c0_i32 = arith.constant 0 : i32
    %c0_i32_0 = arith.constant 0 : i32
    return %arg0, %c0_i32 : i32, i32
  }
  func.func @transform_1(%arg0: i32) -> (i32, i32) {
    %c0_i32 = arith.constant 0 : i32
    %c0_i32_0 = arith.constant 0 : i32
    return %arg0, %c0_i32 : i32, i32
  }
  func.func @transform_2(%arg0: i32) -> (i32, i32) {
    %c0_i32 = arith.constant 0 : i32
    %c0_i32_0 = arith.constant 0 : i32
    %c0_i32_1 = arith.constant 0 : i32
    return %c0_i32, %c0_i32_0 : i32, i32
  }
  func.func @transform_3(%arg0: i32) -> (i32, i32) {
    %c0_i32 = arith.constant 0 : i32
    %c0_i32_0 = arith.constant 0 : i32
    %c0_i32_1 = arith.constant 0 : i32
    return %c0_i32, %c0_i32_0 : i32, i32
  }
  func.func @transform_4(%arg0: i32) -> (i32, i32) {
    %c0_i32 = arith.constant 0 : i32
    %c0_i32_0 = arith.constant 0 : i32
    %c0_i32_1 = arith.constant 0 : i32
    return %c0_i32, %c0_i32_0 : i32, i32
  }
  func.func @transform_5(%arg0: i32) -> (i32, i32) {
    %c0_i32 = arith.constant 0 : i32
    %c0_i32_0 = arith.constant 0 : i32
    %c0_i32_1 = arith.constant 0 : i32
    return %c0_i32, %c0_i32_0 : i32, i32
  }
  func.func @transform_6(%arg0: i32) -> (i32, i32) {
    %c0_i32 = arith.constant 0 : i32
    %c0_i32_0 = arith.constant 0 : i32
    %c0_i32_1 = arith.constant 0 : i32
    return %c0_i32, %c0_i32_0 : i32, i32
  }
  func.func @transform_7(%arg0: i32) -> (i32, i32) {
    %c0_i32 = arith.constant 0 : i32
    %c0_i32_0 = arith.constant 0 : i32
    %c0_i32_1 = arith.constant 0 : i32
    return %c0_i32, %c0_i32_0 : i32, i32
  }
  func.func @transform_8(%arg0: i32) -> (i32, i32) {
    %c0_i32 = arith.constant 0 : i32
    %c0_i32_0 = arith.constant 0 : i32
    %c0_i32_1 = arith.constant 0 : i32
    return %c0_i32, %c0_i32_0 : i32, i32
  }
  func.func @transform_9(%arg0: i32) -> (i32, i32) {
    %c0_i32 = arith.constant 0 : i32
    %c0_i32_0 = arith.constant 0 : i32
    %c0_i32_1 = arith.constant 0 : i32
    return %c0_i32, %c0_i32_0 : i32, i32
  }
  func.func @transform_10(%arg0: i32) -> (i32, i32) {
    %c0_i32 = arith.constant 0 : i32
    %c0_i32_0 = arith.constant 0 : i32
    %c0_i32_1 = arith.constant 0 : i32
    return %c0_i32, %c0_i32_0 : i32, i32
  }
  func.func @transform_11(%arg0: i32) -> (i32, i32) {
    %c0_i32 = arith.constant 0 : i32
    %c0_i32_0 = arith.constant 0 : i32
    %c0_i32_1 = arith.constant 0 : i32
    return %c0_i32, %c0_i32_0 : i32, i32
  }
  func.func @transform_12(%arg0: i32) -> (i32, i32) {
    %c0_i32 = arith.constant 0 : i32
    %c0_i32_0 = arith.constant 0 : i32
    %c0_i32_1 = arith.constant 0 : i32
    return %c0_i32, %c0_i32_0 : i32, i32
  }
  func.func @transform_13(%arg0: i32) -> (i32, i32) {
    %c0_i32 = arith.constant 0 : i32
    %c0_i32_0 = arith.constant 0 : i32
    %c0_i32_1 = arith.constant 0 : i32
    return %c0_i32, %c0_i32_0 : i32, i32
  }
  func.func @transform_14(%arg0: i32) -> (i32, i32) {
    %c0_i32 = arith.constant 0 : i32
    %c0_i32_0 = arith.constant 0 : i32
    %c0_i32_1 = arith.constant 0 : i32
    return %c0_i32, %c0_i32_0 : i32, i32
  }
  func.func @transform_15(%arg0: i32) -> (i32, i32) {
    %c0_i32 = arith.constant 0 : i32
    %c0_i32_0 = arith.constant 0 : i32
    %c0_i32_1 = arith.constant 0 : i32
    return %c0_i32, %c0_i32_0 : i32, i32
  }
  func.func @transform_16(%arg0: i32) -> (i32, i32) {
    %c0_i32 = arith.constant 0 : i32
    %c0_i32_0 = arith.constant 0 : i32
    %c0_i32_1 = arith.constant 0 : i32
    return %c0_i32, %c0_i32_0 : i32, i32
  }
  func.func @transform_17(%arg0: i32) -> (i32, i32) {
    %c0_i32 = arith.constant 0 : i32
    %c0_i32_0 = arith.constant 0 : i32
    %c0_i32_1 = arith.constant 0 : i32
    return %c0_i32, %c0_i32_0 : i32, i32
  }
  func.func @transform_18(%arg0: i32) -> (i32, i32) {
    %c0_i32 = arith.constant 0 : i32
    %c0_i32_0 = arith.constant 0 : i32
    %c0_i32_1 = arith.constant 0 : i32
    return %c0_i32, %c0_i32_0 : i32, i32
  }
  func.func @transform_19(%arg0: i32) -> (i32, i32) {
    %c0_i32 = arith.constant 0 : i32
    %c0_i32_0 = arith.constant 0 : i32
    %c0_i32_1 = arith.constant 0 : i32
    return %c0_i32, %c0_i32_0 : i32, i32
  }
  func.func @transform_20(%arg0: i32) -> (i32, i32) {
    %c0_i32 = arith.constant 0 : i32
    %c0_i32_0 = arith.constant 0 : i32
    %c0_i32_1 = arith.constant 0 : i32
    return %c0_i32, %c0_i32_0 : i32, i32
  }
  func.func @transform_21(%arg0: i32) -> (i32, i32) {
    %c0_i32 = arith.constant 0 : i32
    %c0_i32_0 = arith.constant 0 : i32
    %c0_i32_1 = arith.constant 0 : i32
    return %c0_i32, %c0_i32_0 : i32, i32
  }
  func.func @transform_22(%arg0: i32) -> (i32, i32) {
    %c0_i32 = arith.constant 0 : i32
    %c0_i32_0 = arith.constant 0 : i32
    %c0_i32_1 = arith.constant 0 : i32
    return %c0_i32, %c0_i32_0 : i32, i32
  }
  func.func @transform_23(%arg0: i32) -> (i32, i32) {
    %c0_i32 = arith.constant 0 : i32
    %c0_i32_0 = arith.constant 0 : i32
    %c0_i32_1 = arith.constant 0 : i32
    return %c0_i32, %c0_i32_0 : i32, i32
  }
  func.func @transform_24(%arg0: i32) -> (i32, i32) {
    %c0_i32 = arith.constant 0 : i32
    %c0_i32_0 = arith.constant 0 : i32
    %c0_i32_1 = arith.constant 0 : i32
    return %c0_i32, %c0_i32_0 : i32, i32
  }
  func.func @transform_25(%arg0: i32) -> (i32, i32) {
    %c0_i32 = arith.constant 0 : i32
    %c0_i32_0 = arith.constant 0 : i32
    %c0_i32_1 = arith.constant 0 : i32
    return %c0_i32, %c0_i32_0 : i32, i32
  }
  func.func @transform_26(%arg0: i32) -> (i32, i32) {
    %c0_i32 = arith.constant 0 : i32
    %c0_i32_0 = arith.constant 0 : i32
    %c0_i32_1 = arith.constant 0 : i32
    return %c0_i32, %c0_i32_0 : i32, i32
  }
  func.func @transform_27(%arg0: i32) -> (i32, i32) {
    %c0_i32 = arith.constant 0 : i32
    %c0_i32_0 = arith.constant 0 : i32
    %c0_i32_1 = arith.constant 0 : i32
    return %c0_i32, %c0_i32_0 : i32, i32
  }
  func.func @transform_28(%arg0: i32) -> (i32, i32) {
    %c0_i32 = arith.constant 0 : i32
    %c0_i32_0 = arith.constant 0 : i32
    return %arg0, %c0_i32 : i32, i32
  }
}

</mosaic_0001>

<bundles_post_ra>
// kernel: _lambda_.1
= control target key start
LH: loop header
LB: loop body
LE: loop exit
PB: predicated region body
PF: predicated region fallthrough
CT: control target
= control target key end

     0   :  { %s11647_s0 = inlined_call_operand.vmem [shape: bf16[128,64], index: 0, kind: input, shape index: {}]   ;;  %s11648_s1 = inlined_call_operand.vmem [shape: bf16[128,64], index: 1, kind: input, shape index: {}]   ;;  %s11649_s2 = inlined_call_operand.vmem [shape: bf16[64,64], index: 2, kind: input, shape index: {}]   ;;  %s11650_s3 = inlined_call_operand.vmem [shape: f32[1,64], index: 3, kind: input, shape index: {}]   ;;  %s11651_s4 = inlined_call_operand.vmem [shape: bf16[64,128], index: 4, kind: input, shape index: {}]   ;;  %s11652_s5 = inlined_call_operand.vmem [shape: f32[1,128], index: 5, kind: input, shape index: {}]   ;;  %s11653_s6 = inlined_call_operand.vmem [shape: bf16[64,64], index: 6, kind: input, shape index: {}]   ;;  %s11654_s7 = inlined_call_operand.vmem [shape: f32[1,64], index: 7, kind: input, shape index: {}]   ;;  %s11655_s8 = inlined_call_operand.vmem [shape: f32[1,64], index: 8, kind: input, shape index: {}, may-alias: {8,16,26}]   ;;  %s11656_s9 = inlined_call_operand.vmem [shape: f32[1,64], index: 9, kind: input, shape index: {}, may-alias: {9,17,27}]   ;;  %s11657_s10 = inlined_call_operand.vmem [shape: bf16[64,64], index: 10, kind: input, shape index: {}]   ;;  %s11658_s11 = inlined_call_operand.vmem [shape: f32[1,64], index: 11, kind: input, shape index: {}]   ;;  %s11659_s12 = inlined_call_operand.vmem [shape: bf16[64,128], index: 12, kind: input, shape index: {}]   ;;  %s11660_s13 = inlined_call_operand.vmem [shape: f32[1,128], index: 13, kind: input, shape index: {}]   ;;  %s11661_s14 = inlined_call_operand.vmem [shape: bf16[64,64], index: 14, kind: input, shape index: {}]   ;;  %s11662_s15 = inlined_call_operand.vmem [shape: f32[1,64], index: 15, kind: input, shape index: {}]   ;;  %s11663_s16 = inlined_call_operand.vmem [shape: f32[1,64], index: 16, kind: input, shape index: {}, may-alias: {8,16,26}]   ;;  %s11664_s17 = inlined_call_operand.vmem [shape: f32[1,64], index: 17, kind: input, shape index: {}, may-alias: {9,17,27}]   ;;  %s11665_s18 = inlined_call_operand.vmem [shape: bf16[64,128], index: 18, kind: input, shape index: {}]   ;;  %s11666_s19 = inlined_call_operand.vmem [shape: bf16[32,128], index: 19, kind: input, shape index: {}]   ;;  %s11667_s20 = inlined_call_operand.vmem [shape: f32[1,128], index: 20, kind: input, shape index: {}]   ;;  %s11668_s21 = inlined_call_operand.vmem [shape: bf16[64,128], index: 21, kind: input, shape index: {}]   ;;  %s11669_s22 = inlined_call_operand.vmem [shape: bf16[32,128], index: 22, kind: input, shape index: {}]   ;;  %s11670_s23 = inlined_call_operand.vmem [shape: f32[1,128], index: 23, kind: input, shape index: {}]   ;;  %s11671_s24 = inlined_call_operand.vmem [shape: bf16[64,64], index: 24, kind: input, shape index: {}]   ;;  %s11672_s25 = inlined_call_operand.vmem [shape: f32[1,64], index: 25, kind: input, shape index: {}]   ;;  %s11673_s26 = inlined_call_operand.vmem [shape: f32[1,64], index: 26, kind: input, shape index: {}, may-alias: {8,16,26}]   ;;  %s11674_s27 = inlined_call_operand.vmem [shape: f32[1,64], index: 27, kind: input, shape index: {}, may-alias: {9,17,27}]   ;;  %s11675_s28 = inlined_call_operand.vmem [shape: f32[128,64], index: 28, kind: output, shape index: {}]  }
   0x1   :  { %11728 = sst [smem:[#allocation32_spill]] %s11647_s0 }
   0x2   :  { %11729 = sst [smem:[#allocation33_spill]] %s11648_s1 }
   0x3   :  { %11730 = sst [smem:[#allocation34_spill]] %s11649_s2 }
   0x4   :  { %11731 = sst [smem:[#allocation35_spill]] %s11650_s3 }
   0x5   :  { %11732 = sst [smem:[#allocation36_spill]] %s11651_s4 }
   0x6   :  { %11733 = sst [smem:[#allocation37_spill]] %s11652_s5 }
   0x7   :  { %11734 = sst [smem:[#allocation38_spill]] %s11653_s6 }
   0x8   :  { %11735 = sst [smem:[#allocation39_spill]] %s11654_s7 }
   0x9   :  { %11736 = sst [smem:[#allocation40_spill]] %s11655_s8  ;;  %s8877_s8 = smov 0  }
   0xa   :  { %11737 = sst [smem:[#allocation41_spill]] %s11656_s9 }
   0xb   :  { %11738 = sst [smem:[#allocation42_spill]] %s11657_s10 }
   0xc   :  { %11739 = sst [smem:[#allocation43_spill]] %s11658_s11 }
   0xd   :  { %11740 = sst [smem:[#allocation44_spill]] %s11659_s12 }
   0xe LB: > { %s7604_s5 = sadd.s32 4294967295, %s8720_s8   ;;  %p7608_p0 = scmp.ge.s32.totalorder %s8720_s8, 1  ;;  %s8720_s8 = sphi %s8877_s8, %s38_s8  }
   0xf   : > { %p774_p1 = scmp.lt.s32.totalorder %s8720_s8, 5 }
  0x11   : > { %p775_p2 = pnand %p7608_p0, %p774_p1 }
  0x13   : > { %778 = sbr.rel (%p775_p2) target bundleno = 10121 (0x2789), region = 132 }
  0x18   : > { %s11741_s3 = sld [smem:[#allocation34_spill]]  ;;  %s7609_s11 = sshll.u32 %s7604_s5, 2  ;;  %vm950_vm0 = vcmask 523264   ;;  %vm1041_vm1 = vcmask 130048   ;;  %vm1175_vm2 = vcmask 1043456   ;;  %vm1118_vm3 = vcmask 64512  }
  0x19   : > { %s11742_s0 = sld [smem:[#allocation36_spill]]  ;;  %p854_p3 = scmp.lt.s32.totalorder %s7609_s11, 15 }
  0x1a   : > { %s11743_s1 = sld [smem:[#allocation32_spill]]  ;;  %s11693_s7 = smov 64  }
  0x1b   : > { %s11831_s11 = smov (!%p854_p3, %s7609_s11), 15  ;;  %s11744_s6 = sld [smem:[#allocation35_spill]] }
  0x1c   : > { %s11695_s30 = sshll.u32 %s11831_s11, 2  ;;  %s11745_s2 = sld [smem:[#allocation37_spill]] }
  0x1d   : > { %s11691_s12 = smov 112   ;;  %s11687_s5 = smov 96  }
  0x1e   : > { %v7972_v0 = vld [vmem:[%s11741_s3 + $0x18] sm:$0xff]  ;;  %v7971_v2 = vld [vmem:[%s11741_s3 + $0x10] sm:$0xff]  ;;  %v7970_v4 = vld [vmem:[%s11741_s3 + $0x8] sm:$0xff]  ;;  %s11746_s10 = sld [smem:[#allocation38_spill]]  ;;  %s11681_s29 = smov 32  }
  0x1f   : > { %v7976_v1 = vld [vmem:[%s11742_s0 + $0x18] sm:$0xff]  ;;  %961 = vmatpush.bf16.msra.mxu0 %v7972_v0  ;;  %v7975_v3 = vld [vmem:[%s11742_s0 + $0x10] sm:$0xff]  ;;  %v7974_v5 = vld [vmem:[%s11742_s0 + $0x8] sm:$0xff]  ;;  %s11685_s9 = smov 16  }
  0x20   : > { %1007 = vmatpush.bf16.msra.mxu1 %v7976_v1  ;;  %v7969_v6 = vld [vmem:[%s11741_s3] sm:$0xff]  ;;  %s8917_s4 = scalar_lea.vmem %s11743_s1, %s11695_s30  ;;  %s11689_s1 = smov 48  }
  0x21   : > { %v7973_v7 = vld [vmem:[%s11742_s0] sm:$0xff]  ;;  %v7966_v9 = vld [vmem:[%s8917_s4 + $0x8] sm:$0xff]  ;;  %s11753_s3 = sld [smem:[#allocation33_spill]]  ;;  %s11762_s30 = smov 32  }
  0x22   : > { %v7965_v8 = vld [vmem:[%s8917_s4] sm:$0xff] }
  0x23   : > { %962 = vmatpush.bf16.msra.mxu0 %v7971_v2  ;;  %v8027_v10 = vld [vmem:[%s11744_s6] ss:$0 sm:$0xff]  ;;  %s11760_s6 = smov 96  }
  0x24   : > { %1008 = vmatpush.bf16.msra.mxu1 %v7975_v3  ;;  %v8028_v11 = vld [vmem:[%s11745_s2] ss:$0 sm:$0xff]  ;;  %s11683_s2 = smov 80  }
  0x27   : > { %963 = vmatpush.bf16.msra.mxu0 %v7970_v4 }
  0x28   : > { %1009 = vmatpush.bf16.msra.mxu1 %v7974_v5 }
  0x2b   : > { %964 = vmatpush.bf16.msra.mxu0 %v7969_v6 }
  0x2c   : > { %1010 = vmatpush.bf16.msra.mxu1 %v7973_v7 }
  0x2e   : > { %7639 = vmatmul.msk.bf16.vlgmr.msra.gmra.mxu0 %vm950_vm0, %v7965_v8 }
  0x2f   : > { %7657 = vmatmul.msk.bf16.vlgmr.msra.gmra.mxu1 %vm950_vm0, %v7965_v8 }
  0x3e   : > { %7640 = vmatmul.msk.bf16.gmra.mxu0 %vm950_vm0, %v7966_v9 }
  0x3f   : > { %7658 = vmatmul.msk.bf16.gmra.mxu1 %vm950_vm0, %v7966_v9 }
  0xab   : > { %v966_v12 = vpop.f32.mrf.mxu0 }
  0xac   : > { %v1012_v13 = vpop.f32.mrf.mxu1  ;;  %v967_v14 = vadd.f32 %v8027_v10, %v966_v12 }
  0xad   : > { %v1013_v15 = vadd.f32 %v8028_v11, %v1012_v13 }
  0xae   : > { %v1022_v17 = vmul.f32 0.25, %v967_v14 }
  0xaf   : > { %v8931_v16 = vpack.c.bf16 %v1013_v15, %v1013_v15 }
  0xb0   : > { %v8935_v21 = vpack.c.bf16 %v1022_v17, %v1022_v17 }
  0xb1   : > { %v1046_v18 = vsel %vm1041_vm1, %v8931_v16, 0  ;;  %v1168_v63 = vunpack.c.l.b16 %v8931_v16 }
  0xb2   : > { %1055 = vmatpush.bf16.xpose.msra.mxu3 %v1046_v18  ;;  %v1302_v1 = vunpack.c.l.b16 %v8935_v21 }
  0xb3   : > { %v968_v19 = vpop.f32.mrf.mxu0  ;;  %v8972_v0 = vpack.c.b16 %v1168_v63, %v1168_v63 }
  0xb4   : > { %v1014_v20 = vpop.f32.mrf.mxu1  ;;  %v969_v31 = vadd.f32 %v8027_v10, %v968_v19  ;;  %v8977_v2 = vpack.c.b16 %v1302_v1, %v1302_v1 }
  0xb5   : > { %v1015_v22 = vadd.f32 %v8028_v11, %v1014_v20 }
  0xb6   : > { %v1023_v35 = vmul.f32 0.25, %v969_v31 }
  0xb7   : > { %v1038_v23 = vpack.c.bf16 %v1015_v22, %v1015_v22 }
  0xb8   : > { %v8945_v39 = vpack.c.bf16 %v1023_v35, %v1023_v35 }
  0xb9   : > { %v1193_v24 = vunpack.c.l.b16 %v1038_v23  ;;  %7659 = vmatmul.msk.bf16.vlgmr.msra.gmra.mxu3 %vm1041_vm1, %v8935_v21  ;;  %v1065_v25 = vsel %vm1041_vm1, %v1038_v23, 0 }
  0xba   : > { %1074 = vmatpush.bf16.xpose.msrb.mxu3 %v1065_v25  ;;  %v1328_v31 = vunpack.c.l.b16 %v8945_v39 }
  0xbb   : > { %v8940_v26 = vpack.c.b16 %v1193_v24, %v1193_v24  ;;  %v971_v28 = vpop.f32.mrf.mxu0 }
  0xbc   : > { %v1017_v27 = vpop.f32.mrf.mxu1  ;;  %v972_v30 = vadd.f32 %v8027_v10, %v971_v28 }
  0xbd   : > { %v1018_v29 = vadd.f32 %v8028_v11, %v1017_v27  ;;  %1195 = vrot.lane.b32.xlu2 %v8940_v26, %s11693_s7 }
  0xbe   : > { %v1024_v33 = vmul.f32 0.25, %v972_v30 }
  0xbf   : > { %v1039_v32 = vpack.c.bf16 %v1018_v29, %v1018_v29 }
  0xc0   : > { %v1035_v37 = vpack.c.bf16 %v1024_v33, %v1024_v33  ;;  %v9005_v33 = vpack.c.b16 %v1328_v31, %v1328_v31 }
  0xc1   : > { %v1084_v34 = vsel %vm1041_vm1, %v1039_v32, 0  ;;  %v1217_v3 = vunpack.c.l.b16 %v1039_v32 }
  0xc2   : > { %1093 = vmatpush.bf16.xpose.msra.mxu2 %v1084_v34  ;;  %v1354_v45 = vunpack.c.l.b16 %v1035_v37 }
  0xc3   : > { %v973_v44 = vpop.f32.mrf.mxu0  ;;  %v8981_v4 = vpack.c.b16 %v1217_v3, %v1217_v3 }
  0xc4   : > { %v1019_v36 = vpop.f32.mrf.mxu1  ;;  %v974_v46 = vadd.f32 %v8027_v10, %v973_v44  ;;  %v8955_v47 = vpack.c.b16 %v1354_v45, %v1354_v45 }
  0xc5   : > { %v1020_v38 = vadd.f32 %v8028_v11, %v1019_v36 }
  0xc6   : > { %v1025_v48 = vmul.f32 0.25, %v974_v46 }
  0xc7   : > { %v1040_v40 = vpack.c.bf16 %v1020_v38, %v1020_v38 }
  0xc8   : > { %v8959_v49 = vpack.c.bf16 %v1025_v48, %v1025_v48 }
  0xc9   : > { %v1241_v41 = vunpack.c.l.b16 %v1040_v40  ;;  %7660 = vmatmul.msk.bf16.vlgmr.msrb.gmra.mxu3 %vm1041_vm1, %v8945_v39  ;;  %7661 = vmatmul.msk.bf16.vlgmr.msra.gmra.mxu2 %vm1041_vm1, %v1035_v37  ;;  %v1103_v42 = vsel %vm1041_vm1, %v1040_v40, 0 }
  0xca   : > { %1112 = vmatpush.bf16.xpose.msra.mxu3 %v1103_v42  ;;  %v1380_v27 = vunpack.c.l.b16 %v8959_v49 }
  0xcb   : > { %v8951_v43 = vpack.c.b16 %v1241_v41, %v1241_v41 }
  0xcc   : > { %v8999_v29 = vpack.c.b16 %v1380_v27, %v1380_v27 }
  0xcd   : > { %1384 = vrot.lane.b32.xlu2 %v8951_v43, %s11691_s12 }
  0xd5   : > { %1356 = vrot.lane.b32.xlu2 %v8955_v47, %s11691_s12 }
  0xd9   : > { %7662 = vmatmul.msk.bf16.vlgmr.msra.gmra.mxu3 %vm1041_vm1, %v8959_v49 }
 0x117   : > { %v1196_v50 = vpop.permute.xlu2 %1195 }
 0x118   : > { %v1201_v51 = vsel %vm1175_vm2, %v1196_v50, 0 }
 0x119   : > { %1210 = vmatpush.bf16.msrb.mxu3 %v1201_v51 }
 0x127   : > { %v1385_v42 = vpop.permute.xlu2 %1384 }
 0x128   : > { %v1390_v51 = vsel %vm1041_vm1, %v1385_v42, 0 }
 0x12f   : > { %v1357_v46 = vpop.permute.xlu2 %1356 }
 0x13c   : > { %v8964_v52 = vpop.f32.mrf.mxu3 }
 0x13d   : > { %v1119_v5 = vsel %vm1118_vm3, %v8964_v52, -inf }
 0x144   : > { %v1059_v53 = vpop.f32.mrf.mxu3 }
 0x14c   : > { %v1076_v54 = vpop.f32.mrf.mxu3  ;;  %v1095_v55 = vpop.f32.mrf.mxu2 }
 0x14d   : > { %v1125_v56 = vsel %vm1118_vm3, %v1095_v55, -inf  ;;  %v1122_v57 = vsel %vm1118_vm3, %v1076_v54, -inf }
 0x14e   : > { %1126 = vmax.xlane.f32.xlu1 %v1125_v56  ;;  %1123 = vmax.xlane.f32.xlu0 %v1122_v57 }
 0x154   : > { %v1078_v58 = vpop.f32.mrf.mxu3  ;;  %v1097_v59 = vpop.f32.mrf.mxu2 }
 0x15c   : > { %v1114_v60 = vpop.f32.mrf.mxu3 }
 0x15d   : > { %v1128_v61 = vsel %vm1118_vm3, %v1114_v60, -inf }
 0x15e   : > { %1129 = vmax.xlane.f32.xlu0 %v1128_v61 }
 0x164   : > { %v1116_v62 = vpop.f32.mrf.mxu3 }
 0x167   : > { %1243 = vrot.lane.b32.xlu1 %v8951_v43, %s11693_s7 }
 0x172   : > { %1306 = vrot.lane.b32.xlu0 %v8972_v0, %s11691_s12 }
 0x17a   : > { %1304 = vrot.lane.b32.xlu0 %v8977_v2, %s11691_s12 }
 0x182   : > { %1358 = vrot.lane.b32.xlu0 %v8981_v4, %s11691_s12 }
 0x18a   : > { %1219 = vrot.lane.b32.xlu0 %v8981_v4, %s11693_s7 }
 0x1b4   : > { %1120 = vmax.xlane.f32.xlu0 %v1119_v5 }
 0x1c1   : > { %v1124_v6 = vpop.xlane.xlu0 %1123  ;;  %v1127_v7 = vpop.xlane.xlu1 %1126 }
 0x1c2   : > { %v1132_v8 = vsub.f32 %v1076_v54, %v1124_v6  ;;  %v1133_v10 = vsub.f32 %v1095_v55, %v1127_v7 }
 0x1c4   : > { %v1137_v9 = vmul.f32 1.442695, %v1132_v8  ;;  %v1139_v11 = vmul.f32 1.442695, %v1133_v10 }
 0x1c6   : > { %8042 = vpow2.f32 %v1137_v9 }
 0x1c7   : > { %8044 = vpow2.f32 %v1139_v11 }
 0x1c8   : > { %1170 = vrot.lane.b32.xlu0 %v8972_v0, %s11693_s7 }
 0x1cc   : > { %v8043_v12 = vpop.eup %8042 }
 0x1cd   : > { %v1146_v13 = vsel %vm1118_vm3, %v8043_v12, 0.0  ;;  %v8045_v16 = vpop.eup %8044 }
 0x1ce   : > { %1147 = vadd.xlane.f32.xlu1 %v1146_v13  ;;  %v1149_v18 = vsel %vm1118_vm3, %v8045_v16, 0.0 }
 0x1d1   : > { %v1130_v14 = vpop.xlane.xlu0 %1129 }
 0x1d2   : > { %v1134_v15 = vsub.f32 %v1114_v60, %v1130_v14 }
 0x1d4   : > { %v1141_v17 = vmul.f32 1.442695, %v1134_v15 }
 0x1d6   : > { %8046 = vpow2.f32 %v1141_v17  ;;  %1150 = vadd.xlane.f32.xlu1 %v1149_v18 }
 0x1d9   : > { %v1244_v19 = vpop.permute.xlu1 %1243 }
 0x1da   : > { %v1249_v20 = vsel %vm1175_vm2, %v1244_v19, 0 }
 0x1db   : > { %1258 = vmatpush.bf16.msrb.mxu1 %v1249_v20 }
 0x1dc   : > { %v8047_v21 = vpop.eup %8046 }
 0x1dd   : > { %v1152_v22 = vsel %vm1118_vm3, %v8047_v21, 0.0 }
 0x1de   : > { %1153 = vadd.xlane.f32.xlu2 %v1152_v22 }
 0x1e4   : > { %v1307_v23 = vpop.permute.xlu0 %1306 }
 0x1e5   : > { %v1312_v24 = vsel %vm1041_vm1, %v1307_v23, 0 }
 0x1e6   : > { %1321 = vmatpush.bf16.xpose.msra.mxu3 %v1312_v24  ;;  %v7977_v24 = vld [vmem:[%s11746_s10] sm:$0xff] }
 0x1ec   : > { %v1305_v25 = vpop.permute.xlu0 %1304 }
 0x1ef   : > { %1332 = vrot.lane.b32.xlu1 %v8940_v26, %s11691_s12 }
 0x1f4   : > { %v1359_v28 = vpop.permute.xlu0 %1358 }
 0x1f5   : > { %v1364_v30 = vsel %vm1041_vm1, %v1359_v28, 0 }
 0x1f6   : > { %1382 = vrot.lane.b32.xlu2 %v8999_v29, %s11691_s12  ;;  %1373 = vmatpush.bf16.xpose.msra.mxu1 %v1364_v30 }
 0x1fc   : > { %v1220_v32 = vpop.permute.xlu0 %1219 }
 0x1fd   : > { %v1225_v34 = vsel %vm1175_vm2, %v1220_v32, 0 }
 0x1fe   : > { %1330 = vrot.lane.b32.xlu2 %v9005_v33, %s11691_s12  ;;  %1234 = vmatpush.bf16.msrb.mxu0 %v1225_v34  ;;  %s11755_s12 = sld [smem:[#allocation41_spill]] }
 0x227   : > { %v1121_v35 = vpop.xlane.xlu0 %1120 }
 0x228   : > { %v1131_v36 = vsub.f32 %v8964_v52, %v1121_v35 }
 0x22a   : > { %v1135_v37 = vmul.f32 1.442695, %v1131_v36 }
 0x22c   : > { %8048 = vpow2.f32 %v1135_v37 }
 0x232   : > { %v8049_v38 = vpop.eup %8048 }
 0x233   : > { %v1143_v40 = vsel %vm1118_vm3, %v8049_v38, 0.0 }
 0x234   : > { %1144 = vadd.xlane.f32.xlu2 %v1143_v40 }
 0x23a   : > { %v1171_v41 = vpop.permute.xlu0 %1170 }
 0x23b   : > { %v1177_v39 = vsel %vm1175_vm2, %v1171_v41, 0 }
 0x23c   : > { %1186 = vmatpush.bf16.msrb.mxu2 %v1177_v39 }
 0x240   : > { %1285 = vmatpush.bf16.msra.mxu2 %v7977_v24 }
 0x241   : > { %v1148_v44 = vpop.xlane.xlu1 %1147 }
 0x242   : > { %8050 = vrcp.f32 %v1148_v44 }
 0x248   : > { %v8051_v45 = vpop.eup %8050 }
 0x249   : > { %v1160_v48 = vmul.f32 %v8051_v45, %v8043_v12  ;;  %v1151_v49 = vpop.xlane.xlu1 %1150 }
 0x24a   : > { %8052 = vrcp.f32 %v1151_v49 }
 0x24b   : > { %v1164_v50 = vpack.c.bf16 %v1160_v48, %v1160_v48 }
 0x24d   : > { %7664 = vmatmul.msk.bf16.vlgmr.msrb.gmra.mxu3 %vm1118_vm3, %v1164_v50 }
 0x24e   : > { %1399 = vmatpush.bf16.xpose.msrb.mxu3 %v1390_v51 }
 0x250   : > { %v8053_v52 = vpop.eup %8052 }
 0x251   : > { %v1154_v53 = vpop.xlane.xlu2 %1153  ;;  %v1161_v54 = vmul.f32 %v8053_v52, %v8045_v16 }
 0x252   : > { %8054 = vrcp.f32 %v1154_v53 }
 0x253   : > { %v1165_v55 = vpack.c.bf16 %v1161_v54, %v1161_v54 }
 0x255   : > { %7665 = vmatmul.msk.bf16.vlgmr.msrb.gmra.mxu0 %vm1118_vm3, %v1165_v55 }
 0x258   : > { %v8055_v56 = vpop.eup %8054 }
 0x259   : > { %v1162_v57 = vmul.f32 %v8055_v56, %v8047_v21  ;;  %v1383_v59 = vpop.permute.xlu2 %1382 }
 0x25b   : > { %v1166_v58 = vpack.c.bf16 %v1162_v57, %v1162_v57 }
 0x25d   : > { %7666 = vmatmul.msk.bf16.vlgmr.msrb.gmra.mxu1 %vm1118_vm3, %v1166_v58  ;;  %7673 = vmatmul.msk.bf16.vlgmr.msra.gmra.mxu3 %vm1041_vm1, %v1305_v25 }
 0x261   : > { %v1333_v60 = vpop.permute.xlu1 %1332  ;;  %v1331_v62 = vpop.permute.xlu2 %1330 }
 0x262   : > { %v1338_v61 = vsel %vm1041_vm1, %v1333_v60, 0 }
 0x263   : > { %1347 = vmatpush.bf16.xpose.msra.mxu0 %v1338_v61 }
 0x26a   : > { %7674 = vmatmul.msk.bf16.vlgmr.msra.gmra.mxu0 %vm1041_vm1, %v1331_v62 }
 0x26d   : > { %7675 = vmatmul.msk.bf16.vlgmr.msra.gmra.mxu1 %vm1041_vm1, %v1357_v46  ;;  %7676 = vmatmul.msk.bf16.vlgmr.msrb.gmra.mxu3 %vm1041_vm1, %v1383_v59 }
 0x2a7   : > { %v1145_v63 = vpop.xlane.xlu2 %1144 }
 0x2a8   : > { %8056 = vrcp.f32 %v1145_v63 }
 0x2ae   : > { %v8057_v1 = vpop.eup %8056 }
 0x2af   : > { %v1159_v3 = vmul.f32 %v8057_v1, %v8049_v38 }
 0x2b1   : > { %v1163_v5 = vpack.c.bf16 %v1159_v3, %v1159_v3 }
 0x2b3   : > { %7663 = vmatmul.msk.bf16.vlgmr.msrb.gmra.mxu2 %vm1118_vm3, %v1163_v5 }
 0x2d0   : > { %v1212_v6 = vpop.f32.mrf.mxu3 }
 0x2d2   : > { %v1236_v7 = vpop.f32.mrf.mxu0 }
 0x2d8   : > { %v1214_v8 = vpop.f32.mrf.mxu3 }
 0x2da   : > { %v1260_v9 = vpop.f32.mrf.mxu1  ;;  %v1238_v10 = vpop.f32.mrf.mxu0 }
 0x2db   : > { %v1265_v11 = vpack.c.bf16 %v1260_v9, %v1236_v7 }
 0x2e0   : > { %v9023_v12 = vpop.f32.mrf.mxu3 }
 0x2e1   : > { %v1405_v58 = vsel %vm1118_vm3, %v9023_v12, -inf }
 0x2e2   : > { %v1262_v13 = vpop.f32.mrf.mxu1 }
 0x2e7   : > { %v1349_v14 = vpop.f32.mrf.mxu0 }
 0x2e8   : > { %v1325_v15 = vpop.f32.mrf.mxu3  ;;  %v1408_v16 = vsel %vm1118_vm3, %v1349_v14, -inf }
 0x2e9   : > { %1409 = vmax.xlane.f32.xlu2 %v1408_v16 }
 0x2ea   : > { %v1375_v17 = vpop.f32.mrf.mxu1 }
 0x2eb   : > { %v1411_v18 = vsel %vm1118_vm3, %v1375_v17, -inf }
 0x2ec   : > { %1412 = vmax.xlane.f32.xlu1 %v1411_v18 }
 0x2ef   : > { %v1351_v19 = vpop.f32.mrf.mxu0 }
 0x2f0   : > { %v1401_v20 = vpop.f32.mrf.mxu3 }
 0x2f1   : > { %v1414_v22 = vsel %vm1118_vm3, %v1401_v20, -inf }
 0x2f2   : > { %v1377_v21 = vpop.f32.mrf.mxu1  ;;  %1415 = vmax.xlane.f32.xlu0 %v1414_v22 }
 0x2f8   : > { %v1403_v23 = vpop.f32.mrf.mxu3 }
 0x301   : > { %1495 = vrot.lane.b32.xlu2 %v8981_v4, %s11689_s1 }
 0x305   : > { %1599 = vrot.lane.b32.xlu1 %v8940_v26, %s11687_s5 }
 0x306   : > { %1516 = vrot.lane.b32.xlu0 %v8951_v43, %s11689_s1 }
 0x309   : > { %1474 = vrot.lane.b32.xlu2 %v8940_v26, %s11689_s1 }
 0x30e   : > { %1622 = vrot.lane.b32.xlu0 %v8981_v4, %s11687_s5 }
 0x316   : > { %1620 = vrot.lane.b32.xlu0 %v8955_v47, %s11687_s5 }
 0x31e   : > { %1645 = vrot.lane.b32.xlu0 %v8951_v43, %s11687_s5 }
 0x336   : > { %v1188_v25 = vpop.f32.mrf.mxu2 }
 0x337   : > { %v1264_v27 = vpack.c.bf16 %v1212_v6, %v1188_v25 }
 0x339   : > { %7671 = vmatmul.msk.bf16.vlgmr.msra.gmra.mxu2 %vm1041_vm1, %v1264_v27 }
 0x33e   : > { %v1190_v28 = vpop.f32.mrf.mxu2 }
 0x349   : > { %7672 = vmatmul.msk.bf16.gmra.mxu2 %vm1041_vm1, %v1265_v11 }
 0x35c   : > { %v1410_v30 = vpop.xlane.xlu2 %1409 }
 0x35d   : > { %v1418_v31 = vsub.f32 %v1349_v14, %v1410_v30 }
 0x35f   : > { %v1413_v32 = vpop.xlane.xlu1 %1412  ;;  %v1423_v34 = vmul.f32 1.442695, %v1418_v31 }
 0x360   : > { %v1419_v35 = vsub.f32 %v1375_v17, %v1413_v32 }
 0x361   : > { %8058 = vpow2.f32 %v1423_v34 }
 0x362   : > { %v1425_v36 = vmul.f32 1.442695, %v1419_v35 }
 0x364   : > { %8060 = vpow2.f32 %v1425_v36  ;;  %v1496_v37 = vpop.permute.xlu2 %1495 }
 0x365   : > { %v1501_v38 = vsel %vm1175_vm2, %v1496_v37, 0  ;;  %v1416_v40 = vpop.xlane.xlu0 %1415 }
 0x366   : > { %v1420_v41 = vsub.f32 %v1401_v20, %v1416_v40  ;;  %1510 = vmatpush.bf16.msrb.mxu2 %v1501_v38 }
 0x367   : > { %v8059_v39 = vpop.eup %8058 }
 0x368   : > { %v1427_v42 = vmul.f32 1.442695, %v1420_v41  ;;  %v1432_v44 = vsel %vm1118_vm3, %v8059_v39, 0.0 }
 0x369   : > { %1433 = vadd.xlane.f32.xlu1 %v1432_v44 }
 0x36a   : > { %v8061_v45 = vpop.eup %8060  ;;  %8062 = vpow2.f32 %v1427_v42 }
 0x36b   : > { %v1435_v46 = vsel %vm1118_vm3, %v8061_v45, 0.0 }
 0x36c   : > { %1436 = vadd.xlane.f32.xlu2 %v1435_v46  ;;  %v1475_v48 = vpop.permute.xlu2 %1474 }
 0x36d   : > { %v1480_v49 = vsel %vm1175_vm2, %v1475_v48, 0 }
 0x36e   : > { %1489 = vmatpush.bf16.msrb.mxu1 %v1480_v49 }
 0x370   : > { %v8063_v50 = vpop.eup %8062 }
 0x371   : > { %v1438_v51 = vsel %vm1118_vm3, %v8063_v50, 0.0 }
 0x372   : > { %1439 = vadd.xlane.f32.xlu1 %v1438_v51 }
 0x377   : > { %v1600_v52 = vpop.permute.xlu1 %1599 }
 0x378   : > { %v1605_v53 = vsel %vm1041_vm1, %v1600_v52, 0  ;;  %v1517_v54 = vpop.permute.xlu0 %1516 }
 0x379   : > { %1614 = vmatpush.bf16.xpose.msra.mxu2 %v1605_v53  ;;  %v1522_v55 = vsel %vm1175_vm2, %v1517_v54, 0 }
 0x37a   : > { %1531 = vmatpush.bf16.msra.mxu3 %v1522_v55 }
 0x380   : > { %v1623_v56 = vpop.permute.xlu0 %1622 }
 0x381   : > { %v1628_v57 = vsel %vm1041_vm1, %v1623_v56, 0  ;;  %v7978_v56 = vld [vmem:[%s11746_s10 + $0x8] sm:$0xff] }
 0x382   : > { %1637 = vmatpush.bf16.xpose.msrb.mxu3 %v1628_v57 }
 0x384   : > { %1597 = vrot.lane.b32.xlu2 %v9005_v33, %s11687_s5 }
 0x388   : > { %v1621_v13 = vpop.permute.xlu0 %1620 }
 0x38b   : > { %1576 = vrot.lane.b32.xlu1 %v8972_v0, %s11687_s5 }
 0x38c   : > { %1574 = vrot.lane.b32.xlu2 %v8977_v2, %s11687_s5 }
 0x390   : > { %v1646_v15 = vpop.permute.xlu0 %1645 }
 0x391   : > { %v1651_v19 = vsel %vm1041_vm1, %v1646_v15, 0 }
 0x394   : > { %1643 = vrot.lane.b32.xlu2 %v8999_v29, %s11687_s5  ;;  %s11757_s5 = smov 64  }
 0x39c   : > { %1453 = vrot.lane.b32.xlu2 %v8972_v0, %s11689_s1  ;;  %s11756_s1 = sld [smem:[#allocation43_spill]] }
 0x3b5   : > { %1406 = vmax.xlane.f32.xlu1 %v1405_v58 }
 0x3bc   : > { %v9079_v27 = vpop.f32.mrf.mxu2 }
 0x3c4   : > { %v9081_v28 = vpop.f32.mrf.mxu2 }
 0x3cc   : > { %v9083_v30 = vpop.f32.mrf.mxu2 }
 0x3d4   : > { %v9085_v31 = vpop.f32.mrf.mxu2 }
 0x3dc   : > { %v1434_v59 = vpop.xlane.xlu1 %1433 }
 0x3dd   : > { %8064 = vrcp.f32 %v1434_v59 }
 0x3df   : > { %v1437_v60 = vpop.xlane.xlu2 %1436 }
 0x3e0   : > { %8066 = vrcp.f32 %v1437_v60 }
 0x3e3   : > { %v8065_v61 = vpop.eup %8064 }
 0x3e4   : > { %v1446_v62 = vmul.f32 %v8065_v61, %v8059_v39 }
 0x3e5   : > { %v1440_v1 = vpop.xlane.xlu1 %1439 }
 0x3e6   : > { %v8067_v63 = vpop.eup %8066  ;;  %v1450_v3 = vpack.c.bf16 %v1446_v62, %v1446_v62  ;;  %8068 = vrcp.f32 %v1440_v1 }
 0x3e7   : > { %v1447_v5 = vmul.f32 %v8067_v63, %v8061_v45  ;;  %v1598_v6 = vpop.permute.xlu2 %1597 }
 0x3e8   : > { %7678 = vmatmul.msk.bf16.vlgmr.msrb.gmra.mxu1 %vm1118_vm3, %v1450_v3 }
 0x3e9   : > { %v1451_v7 = vpack.c.bf16 %v1447_v5, %v1447_v5 }
 0x3eb   : > { %7679 = vmatmul.msk.bf16.vlgmr.msrb.gmra.mxu2 %vm1118_vm3, %v1451_v7 }
 0x3ec   : > { %v8069_v8 = vpop.eup %8068 }
 0x3ed   : > { %v1448_v9 = vmul.f32 %v8069_v8, %v8063_v50 }
 0x3ef   : > { %v1575_v10 = vpop.permute.xlu2 %1574  ;;  %v1452_v11 = vpack.c.bf16 %v1448_v9, %v1448_v9 }
 0x3f1   : > { %7680 = vmatmul.msk.bf16.vlgmr.msra.gmra.mxu3 %vm1118_vm3, %v1452_v11 }
 0x3f7   : > { %v1644_v14 = vpop.permute.xlu2 %1643 }
 0x3fb   : > { %7688 = vmatmul.msk.bf16.vlgmr.msra.gmra.mxu2 %vm1041_vm1, %v1598_v6 }
 0x3fd   : > { %v1577_v16 = vpop.permute.xlu1 %1576 }
 0x3fe   : > { %v1582_v17 = vsel %vm1041_vm1, %v1577_v16, 0 }
 0x3ff   : > { %v1454_v18 = vpop.permute.xlu2 %1453  ;;  %1591 = vmatpush.bf16.xpose.msra.mxu1 %v1582_v17 }
 0x400   : > { %v1459_v20 = vsel %vm1175_vm2, %v1454_v18, 0 }
 0x401   : > { %1468 = vmatpush.bf16.msrb.mxu0 %v1459_v20  ;;  %7689 = vmatmul.msk.bf16.vlgmr.msrb.gmra.mxu3 %vm1041_vm1, %v1621_v13 }
 0x405   : > { %1558 = vmatpush.bf16.msra.mxu0 %v7978_v56  ;;  %v9170_v56 = vld [vmem:[%s8917_s4 + $0x8] sm:$0xff]  }
 0x406   : > { %7687 = vmatmul.msk.bf16.vlgmr.msra.gmra.mxu1 %vm1041_vm1, %v1575_v10 }
 0x407   : > { %1660 = vmatpush.bf16.xpose.msrb.mxu1 %v1651_v19 }
 0x416   : > { %7690 = vmatmul.msk.bf16.vlgmr.msrb.gmra.mxu1 %vm1041_vm1, %v1644_v14 }
 0x428   : > { %v1407_v21 = vpop.xlane.xlu1 %1406 }
 0x429   : > { %v1417_v22 = vsub.f32 %v9023_v12, %v1407_v21 }
 0x42b   : > { %v1421_v23 = vmul.f32 1.442695, %v1417_v22 }
 0x42d   : > { %8070 = vpow2.f32 %v1421_v23 }
 0x433   : > { %v8071_v24 = vpop.eup %8070 }
 0x434   : > { %v1429_v25 = vsel %vm1118_vm3, %v8071_v24, 0.0 }
 0x435   : > { %1430 = vadd.xlane.f32.xlu0 %v1429_v25 }
 0x465   : > { %v9087_v32 = vpop.f32.mrf.mxu1 }
 0x46d   : > { %v1493_v34 = vpop.f32.mrf.mxu1 }
 0x46e   : > { %v9089_v35 = vpop.f32.mrf.mxu2 }
 0x474   : > { %v9091_v12 = vpop.f32.mrf.mxu3 }
 0x475   : > { %v1538_v36 = vpack.c.bf16 %v9091_v12, %v9089_v35 }
 0x476   : > { %v1514_v37 = vpop.f32.mrf.mxu2 }
 0x47c   : > { %v1535_v38 = vpop.f32.mrf.mxu3 }
 0x47e   : > { %v1616_v40 = vpop.f32.mrf.mxu2 }
 0x47f   : > { %v1669_v41 = vsel %vm1118_vm3, %v1616_v40, -inf }
 0x480   : > { %1670 = vmax.xlane.f32.xlu2 %v1669_v41 }
 0x483   : > { %v9096_v39 = vpop.f32.mrf.mxu1 }
 0x484   : > { %v1639_v42 = vpop.f32.mrf.mxu3  ;;  %v1666_v22 = vsel %vm1118_vm3, %v9096_v39, -inf }
 0x485   : > { %v1672_v51 = vsel %vm1118_vm3, %v1639_v42, -inf }
 0x486   : > { %v1618_v44 = vpop.f32.mrf.mxu2 }
 0x48b   : > { %v1595_v45 = vpop.f32.mrf.mxu1 }
 0x48c   : > { %v1641_v46 = vpop.f32.mrf.mxu3  ;;  %v9154_v45 = vld [vmem:[%s8917_s4] sm:$0xff]   ;;  %s11751_s4 = sld [smem:[#allocation42_spill]] }
 0x48d   : > { %v876_v46 = vunpack.c.l.bf16 %v9154_v45 }
 0x493   : > { %v1662_v48 = vpop.f32.mrf.mxu1 }
 0x494   : > { %v1675_v49 = vsel %vm1118_vm3, %v1662_v48, -inf }
 0x495   : > { %1676 = vmax.xlane.f32.xlu1 %v1675_v49 }
 0x498   : > { %1756 = vrot.lane.b32.xlu2 %v8981_v4, %s11681_s29 }
 0x49b   : > { %v1664_v50 = vpop.f32.mrf.mxu1 }
 0x49d   : > { %1673 = vmax.xlane.f32.xlu1 %v1672_v51 }
 0x4a0   : > { %1860 = vrot.lane.b32.xlu2 %v8940_v26, %s11683_s2 }
 0x4a8   : > { %1777 = vrot.lane.b32.xlu2 %v8951_v43, %s11681_s29  ;;  %v1431_v52 = vpop.xlane.xlu0 %1430 }
 0x4a9   : > { %8072 = vrcp.f32 %v1431_v52 }
 0x4af   : > { %v8073_v53 = vpop.eup %8072 }
 0x4b0   : > { %1906 = vrot.lane.b32.xlu2 %v8951_v43, %s11683_s2  ;;  %v1445_v54 = vmul.f32 %v8073_v53, %v8071_v24 }
 0x4b2   : > { %v1449_v55 = vpack.c.bf16 %v1445_v54, %v1445_v54 }
 0x4b4   : > { %7677 = vmatmul.msk.bf16.vlgmr.msrb.gmra.mxu0 %vm1118_vm3, %v1449_v55 }
 0x4b6   : > { %1837 = vrot.lane.b32.xlu1 %v8972_v0, %s11683_s2 }
 0x4b8   : > { %1904 = vrot.lane.b32.xlu2 %v8999_v29, %s11683_s2 }
 0x4be   : > { %1835 = vrot.lane.b32.xlu1 %v8977_v2, %s11683_s2 }
 0x4c0   : > { %1881 = vrot.lane.b32.xlu2 %v8955_v47, %s11683_s2 }
 0x4c6   : > { %1858 = vrot.lane.b32.xlu1 %v9005_v33, %s11683_s2 }
 0x4c8   : > { %1714 = vrot.lane.b32.xlu2 %v8972_v0, %s11681_s29 }
 0x4f3   : > { %v1671_v57 = vpop.xlane.xlu2 %1670 }
 0x4f4   : > { %v1679_v58 = vsub.f32 %v1616_v40, %v1671_v57 }
 0x4f6   : > { %v1684_v29 = vmul.f32 1.442695, %v1679_v58  ;;  %v878_v58 = vunpack.c.l.bf16 %v9170_v56 }
 0x4f8   : > { %8074 = vpow2.f32 %v1684_v29 }
 0x4fb   : > { %v1757_v59 = vpop.permute.xlu2 %1756 }
 0x4fc   : > { %v1762_v2 = vsel %vm1175_vm2, %v1757_v59, 0 }
 0x4fd   : > { %1771 = vmatpush.bf16.msrb.mxu0 %v1762_v2 }
 0x4fe   : > { %v8075_v47 = vpop.eup %8074 }
 0x4ff   : > { %v1693_v60 = vsel %vm1118_vm3, %v8075_v47, 0.0 }
 0x500   : > { %1694 = vadd.xlane.f32.xlu0 %v1693_v60 }
 0x503   : > { %v1861_v33 = vpop.permute.xlu2 %1860 }
 0x504   : > { %v1866_v18 = vsel %vm1041_vm1, %v1861_v33, 0 }
 0x508   : > { %v1677_v61 = vpop.xlane.xlu1 %1676 }
 0x509   : > { %v1681_v13 = vsub.f32 %v1662_v48, %v1677_v61 }
 0x50b   : > { %v1778_v62 = vpop.permute.xlu2 %1777  ;;  %v1688_v15 = vmul.f32 1.442695, %v1681_v13 }
 0x50c   : > { %v1783_v63 = vsel %vm1175_vm2, %v1778_v62, 0 }
 0x50d   : > { %1792 = vmatpush.bf16.msra.mxu1 %v1783_v63 }
 0x510   : > { %v1674_v1 = vpop.xlane.xlu1 %1673 }
 0x511   : > { %v1680_v3 = vsub.f32 %v1639_v42, %v1674_v1 }
 0x513   : > { %v1907_v5 = vpop.permute.xlu2 %1906  ;;  %v1686_v6 = vmul.f32 1.442695, %v1680_v3 }
 0x514   : > { %1735 = vrot.lane.b32.xlu0 %v8940_v26, %s11681_s29  ;;  %v1912_v40 = vsel %vm1041_vm1, %v1907_v5, 0  ;;  %s11758_s29 = smov 112  }
 0x515   : > { %8076 = vpow2.f32 %v1686_v6 }
 0x516   : > { %8078 = vpow2.f32 %v1688_v15 }
 0x51b   : > { %v1905_v7 = vpop.permute.xlu2 %1904  ;;  %v8077_v8 = vpop.eup %8076 }
 0x51c   : > { %v1696_v9 = vsel %vm1118_vm3, %v8077_v8, 0.0  ;;  %v8079_v19 = vpop.eup %8078 }
 0x51d   : > { %1697 = vadd.xlane.f32.xlu1 %v1696_v9  ;;  %v1699_v21 = vsel %vm1118_vm3, %v8079_v19, 0.0 }
 0x523   : > { %v9130_v10 = vpop.permute.xlu2 %1881 }
 0x528   : > { %v1838_v23 = vpop.permute.xlu1 %1837 }
 0x529   : > { %v1843_v35 = vsel %vm1041_vm1, %v1838_v23, 0 }
 0x52b   : > { %v1715_v11 = vpop.permute.xlu2 %1714 }
 0x52c   : > { %v1720_v14 = vsel %vm1175_vm2, %v1715_v11, 0 }
 0x52d   : > { %1729 = vmatpush.bf16.msrb.mxu2 %v1720_v14 }
 0x530   : > { %v1836_v25 = vpop.permute.xlu1 %1835 }
 0x531   : > { %v1470_v16 = vpop.f32.mrf.mxu0 }
 0x532   : > { %v1537_v17 = vpack.c.bf16 %v9087_v32, %v1470_v16 }
 0x534   : > { %7685 = vmatmul.msk.bf16.vlgmr.msra.gmra.mxu0 %vm1041_vm1, %v1537_v17 }
 0x535   : > { %1875 = vmatpush.bf16.xpose.msra.mxu0 %v1866_v18 }
 0x536   : > { %1883 = vrot.lane.b32.xlu1 %v8981_v4, %s11683_s2  ;;  %s11747_s2 = sld [smem:[#allocation39_spill]] }
 0x538   : > { %v1859_v12 = vpop.permute.xlu1 %1858 }
 0x539   : > { %v1472_v20 = vpop.f32.mrf.mxu0 }
 0x53c   : > { %v9160_v48 = vld [vmem:[%s11747_s2] ss:$0 sm:$0xff]  ;;  %s11750_s2 = sld [smem:[#allocation44_spill]] }
 0x53d   : > { %v1029_v51 = vadd.f32 %v9160_v48, %v876_v46 }
 0x53e   : > { %1700 = vadd.xlane.f32.xlu0 %v1699_v21 }
 0x53f   : > { %v1297_v52 = vadd.f32 %v9079_v27, %v1029_v51 }
 0x544   : > { %7686 = vmatmul.msk.bf16.gmra.mxu0 %vm1041_vm1, %v1538_v36 }
 0x560   : > { %1667 = vmax.xlane.f32.xlu1 %v1666_v22 }
 0x573   : > { %v1695_v24 = vpop.xlane.xlu0 %1694 }
 0x574   : > { %8080 = vrcp.f32 %v1695_v24 }
 0x579   : > { %1996 = vrot.lane.b32.xlu1 %v8940_v26, %s11685_s9 }
 0x57a   : > { %v8081_v32 = vpop.eup %8080 }
 0x57b   : > { %v1707_v34 = vmul.f32 %v8081_v32, %v8075_v47  ;;  %v1031_v47 = vadd.f32 %v9160_v48, %v878_v58 }
 0x57d   : > { %v1711_v36 = vpack.c.bf16 %v1707_v34, %v1707_v34  ;;  %v1299_v27 = vadd.f32 %v9083_v30, %v1031_v47 }
 0x586   : > { %v1736_v37 = vpop.permute.xlu0 %1735 }
 0x587   : > { %v1741_v38 = vsel %vm1175_vm2, %v1736_v37, 0 }
 0x588   : > { %1750 = vmatpush.bf16.msra.mxu3 %v1741_v38 }
 0x58b   : > { %7692 = vmatmul.msk.bf16.vlgmr.msra.gmra.mxu3 %vm1118_vm3, %v1711_v36 }
 0x58c   : > { %1852 = vmatpush.bf16.xpose.msrb.mxu3 %v1843_v35 }
 0x590   : > { %v1698_v26 = vpop.xlane.xlu1 %1697 }
 0x591   : > { %8082 = vrcp.f32 %v1698_v26 }
 0x594   : > { %1921 = vmatpush.bf16.xpose.msra.mxu3 %v1912_v40 }
 0x597   : > { %v8083_v41 = vpop.eup %8082 }
 0x598   : > { %v1708_v42 = vmul.f32 %v8083_v41, %v8077_v8 }
 0x59a   : > { %v1712_v44 = vpack.c.bf16 %v1708_v42, %v1708_v42 }
 0x59b   : > { %7701 = vmatmul.msk.bf16.vlgmr.msrb.gmra.mxu3 %vm1041_vm1, %v1836_v25 }
 0x59c   : > { %7693 = vmatmul.msk.bf16.vlgmr.msrb.gmra.mxu0 %vm1118_vm3, %v1712_v44 }
 0x5a8   : > { %v1884_v49 = vpop.permute.xlu1 %1883 }
 0x5a9   : > { %v1889_v50 = vsel %vm1041_vm1, %v1884_v49, 0 }
 0x5aa   : > { %1898 = vmatpush.bf16.xpose.msrb.mxu1 %v1889_v50 }
 0x5ab   : > { %7704 = vmatmul.msk.bf16.vlgmr.msra.gmra.mxu3 %vm1041_vm1, %v1905_v7 }
 0x5ac   : > { %7702 = vmatmul.msk.bf16.vlgmr.msra.gmra.mxu0 %vm1041_vm1, %v1859_v12 }
 0x5b1   : > { %v1701_v53 = vpop.xlane.xlu0 %1700  ;;  %v1560_v54 = vpop.f32.mrf.mxu0 }
 0x5b2   : > { %8084 = vrcp.f32 %v1701_v53  ;;  %v9167_v55 = vadd.f32 %v1560_v54, %v1297_v52  ;;  %v7979_v53 = vld [vmem:[%s11746_s10 + $0x10] sm:$0xff] }
 0x5b3   : > { %1819 = vmatpush.bf16.msra.mxu2 %v7979_v53 }
 0x5b8   : > { %v8085_v57 = vpop.eup %8084 }
 0x5b9   : > { %v1709_v29 = vmul.f32 %v8085_v57, %v8079_v19  ;;  %v9173_v59 = vpop.f32.mrf.mxu0 }
 0x5bb   : > { %v1713_v2 = vpack.c.bf16 %v1709_v29, %v1709_v29 }
 0x5bd   : > { %7694 = vmatmul.msk.bf16.vlgmr.msra.gmra.mxu1 %vm1118_vm3, %v1713_v2 }
 0x5c1   : > { %v1565_v60 = vpop.f32.mrf.mxu0 }
 0x5c2   : > { %v9178_v33 = vadd.f32 %v1565_v60, %v1299_v27 }
 0x5c9   : > { %v9187_v7 = vpop.f32.mrf.mxu0 }
 0x5cd   : > { %7703 = vmatmul.msk.bf16.vlgmr.msrb.gmra.mxu1 %vm1041_vm1, %v9130_v10 }
 0x5d3   : > { %v1668_v61 = vpop.xlane.xlu1 %1667 }
 0x5d4   : > { %v1678_v62 = vsub.f32 %v9096_v39, %v1668_v61 }
 0x5d6   : > { %v1682_v63 = vmul.f32 1.442695, %v1678_v62 }
 0x5d8   : > { %8086 = vpow2.f32 %v1682_v63 }
 0x5de   : > { %v8087_v1 = vpop.eup %8086 }
 0x5df   : > { %v1690_v3 = vsel %vm1118_vm3, %v8087_v1, 0.0 }
 0x5e0   : > { %1691 = vadd.xlane.f32.xlu0 %v1690_v3 }
 0x5eb   : > { %v1997_v5 = vpop.permute.xlu1 %1996 }
 0x5ec   : > { %v2002_v6 = vsel %vm1175_vm2, %v1997_v5, 0 }
 0x5ed   : > { %2011 = vmatpush.bf16.msra.mxu1 %v2002_v6 }
 0x60e   : > { %v9185_v30 = vpop.f32.mrf.mxu3 }
 0x616   : > { %v1754_v8 = vpop.f32.mrf.mxu3 }
 0x619   : > { %v9189_v9 = vpop.f32.mrf.mxu0 }
 0x61e   : > { %v1854_v10 = vpop.f32.mrf.mxu3 }
 0x61f   : > { %v1927_v39 = vsel %vm1118_vm3, %v1854_v10, -inf }
 0x620   : > { %1928 = vmax.xlane.f32.xlu0 %v1927_v39 }
 0x621   : > { %v1775_v11 = vpop.f32.mrf.mxu0 }
 0x626   : > { %v1856_v13 = vpop.f32.mrf.mxu3 }
 0x629   : > { %v1877_v14 = vpop.f32.mrf.mxu0 }
 0x62a   : > { %v1930_v15 = vsel %vm1118_vm3, %v1877_v14, -inf }
 0x62b   : > { %1931 = vmax.xlane.f32.xlu2 %v1930_v15 }
 0x62e   : > { %v1923_v16 = vpop.f32.mrf.mxu3 }
 0x62f   : > { %v1936_v25 = vsel %vm1118_vm3, %v1923_v16, -inf }
 0x631   : > { %v1879_v17 = vpop.f32.mrf.mxu0 }
 0x636   : > { %v1925_v18 = vpop.f32.mrf.mxu3 }
 0x63a   : > { %v1794_v19 = vpop.f32.mrf.mxu1 }
 0x63b   : > { %v1799_v20 = vpack.c.bf16 %v1794_v19, %v9189_v9 }
 0x642   : > { %v1796_v21 = vpop.f32.mrf.mxu1 }
 0x64a   : > { %v1900_v22 = vpop.f32.mrf.mxu1 }
 0x64b   : > { %v1933_v23 = vsel %vm1118_vm3, %v1900_v22, -inf }
 0x64c   : > { %1934 = vmax.xlane.f32.xlu0 %v1933_v23 }
 0x652   : > { %v1902_v24 = vpop.f32.mrf.mxu1 }
 0x653   : > { %v1692_v32 = vpop.xlane.xlu0 %1691 }
 0x654   : > { %1937 = vmax.xlane.f32.xlu0 %v1936_v25  ;;  %8088 = vrcp.f32 %v1692_v32  ;;  %v7980_v32 = vld [vmem:[%s11746_s10 + $0x18] sm:$0xff] }
 0x65a   : > { %v8089_v34 = vpop.eup %8088 }
 0x65b   : > { %v1706_v37 = vmul.f32 %v8089_v34, %v8087_v1 }
 0x65d   : > { %v1710_v38 = vpack.c.bf16 %v1706_v37, %v1706_v37 }
 0x65f   : > { %7691 = vmatmul.msk.bf16.vlgmr.msrb.gmra.mxu2 %vm1118_vm3, %v1710_v38 }
 0x693   : > { %v1929_v35 = vpop.xlane.xlu0 %1928 }
 0x694   : > { %v1939_v12 = vsub.f32 %v1854_v10, %v1929_v35 }
 0x696   : > { %v1943_v36 = vmul.f32 1.442695, %v1939_v12 }
 0x698   : > { %8090 = vpow2.f32 %v1943_v36 }
 0x69e   : > { %v8091_v40 = vpop.eup %8090  ;;  %v1932_v26 = vpop.xlane.xlu2 %1931 }
 0x69f   : > { %v1951_v41 = vsel %vm1118_vm3, %v8091_v40, 0.0  ;;  %v1940_v42 = vsub.f32 %v1877_v14, %v1932_v26 }
 0x6a0   : > { %1952 = vadd.xlane.f32.xlu0 %v1951_v41 }
 0x6a1   : > { %v1945_v44 = vmul.f32 1.442695, %v1940_v42  ;;  %v877_v42 = vunpack.c.h.bf16 %v9154_v45 }
 0x6a3   : > { %8092 = vpow2.f32 %v1945_v44  ;;  %v1030_v44 = vadd.f32 %v9160_v48, %v877_v42 }
 0x6a9   : > { %v8093_v46 = vpop.eup %8092 }
 0x6aa   : > { %v1954_v49 = vsel %vm1118_vm3, %v8093_v46, 0.0 }
 0x6ab   : > { %1955 = vadd.xlane.f32.xlu1 %v1954_v49 }
 0x6b4   : > { %1975 = vrot.lane.b32.xlu0 %v8972_v0, %s11685_s9 }
 0x6bf   : > { %v1935_v50 = vpop.xlane.xlu0 %1934 }
 0x6c0   : > { %v1941_v51 = vsub.f32 %v1900_v22, %v1935_v50  ;;  %v1298_v50 = vadd.f32 %v9081_v28, %v1030_v44 }
 0x6c2   : > { %v1947_v52 = vmul.f32 1.442695, %v1941_v51 }
 0x6c4   : > { %8094 = vpow2.f32 %v1947_v52  ;;  %2038 = vrot.lane.b32.xlu1 %v8951_v43, %s11685_s9  ;;  %v1571_v52 = vadd.f32 %v9173_v59, %v1298_v50 }
 0x6c7   : > { %v1938_v54 = vpop.xlane.xlu0 %1937 }
 0x6c8   : > { %v1942_v29 = vsub.f32 %v1923_v16, %v1938_v54 }
 0x6ca   : > { %v8095_v57 = vpop.eup %8094  ;;  %v1949_v2 = vmul.f32 1.442695, %v1942_v29  ;;  %v879_v29 = vunpack.c.h.bf16 %v9170_v56 }
 0x6cb   : > { %v1957_v58 = vsel %vm1118_vm3, %v8095_v57, 0.0 }
 0x6cc   : > { %1958 = vadd.xlane.f32.xlu2 %v1957_v58  ;;  %8096 = vpow2.f32 %v1949_v2  ;;  %v1032_v45 = vadd.f32 %v9160_v48, %v879_v29  ;;  %v8729_v48 = vmov 64.0  }
 0x6ce   : > { %v1300_v28 = vadd.f32 %v9085_v31, %v1032_v45  ;;  %v8730_v31 = vmov 8.0  }
 0x6d0   : > { %v1573_v59 = vadd.f32 %v9187_v7, %v1300_v28 }
 0x6d2   : > { %v8097_v0 = vpop.eup %8096 }
 0x6d3   : > { %v1960_v47 = vsel %vm1118_vm3, %v8097_v0, 0.0 }
 0x6de   : > { %1961 = vadd.xlane.f32.xlu0 %v1960_v47 }
 0x6e2   : > { %v1731_v27 = vpop.f32.mrf.mxu2 }
 0x6e3   : > { %v1798_v60 = vpack.c.bf16 %v9185_v30, %v1731_v27 }
 0x6e4   : > { %2017 = vrot.lane.b32.xlu2 %v8981_v4, %s11685_s9  ;;  %s11752_s9 = sshll.u32 %s11831_s11, 2 }
 0x6e5   : > { %7699 = vmatmul.msk.bf16.vlgmr.msra.gmra.mxu2 %vm1041_vm1, %v1798_v60  ;;  %s9300_s10 = scalar_lea.vmem %s11753_s3, %s11752_s9  ;;  %s11754_s9 = sld [smem:[#allocation40_spill]] }
 0x6ea   : > { %v1733_v43 = vpop.f32.mrf.mxu2 }
 0x6f5   : > { %7700 = vmatmul.msk.bf16.gmra.mxu2 %vm1041_vm1, %v1799_v20 }
 0x713   : > { %v1953_v61 = vpop.xlane.xlu0 %1952 }
 0x714   : > { %8098 = vrcp.f32 %v1953_v61 }
 0x71a   : > { %v8099_v63 = vpop.eup %8098 }
 0x71b   : > { %v1967_v1 = vmul.f32 %v8099_v63, %v8091_v40 }
 0x71d   : > { %v1971_v30 = vpack.c.bf16 %v1967_v1, %v1967_v1 }
 0x71e   : > { %v1956_v62 = vpop.xlane.xlu1 %1955 }
 0x71f   : > { %8100 = vrcp.f32 %v1956_v62 }
 0x725   : > { %v8101_v3 = vpop.eup %8100 }
 0x726   : > { %v1976_v5 = vpop.permute.xlu0 %1975  ;;  %v1968_v6 = vmul.f32 %v8101_v3, %v8093_v46 }
 0x727   : > { %v1981_v8 = vsel %vm1175_vm2, %v1976_v5, 0 }
 0x728   : > { %1990 = vmatpush.bf16.msrb.mxu0 %v1981_v8  ;;  %v1972_v9 = vpack.c.bf16 %v1968_v6, %v1968_v6 }
 0x72a   : > { %7706 = vmatmul.msk.bf16.vlgmr.msra.gmra.mxu1 %vm1118_vm3, %v1972_v9 }
 0x72b   : > { %7705 = vmatmul.msk.bf16.vlgmr.msrb.gmra.mxu0 %vm1118_vm3, %v1971_v30 }
 0x72c   : > { %2080 = vmatpush.bf16.msra.mxu0 %v7980_v32 }
 0x736   : > { %v2039_v4 = vpop.permute.xlu1 %2038 }
 0x737   : > { %v2044_v10 = vsel %vm1175_vm2, %v2039_v4, 0 }
 0x738   : > { %2053 = vmatpush.bf16.msrb.mxu3 %v2044_v10 }
 0x73f   : > { %v1959_v39 = vpop.xlane.xlu2 %1958 }
 0x740   : > { %8102 = vrcp.f32 %v1959_v39 }
 0x746   : > { %v8103_v11 = vpop.eup %8102 }
 0x747   : > { %v1969_v13 = vmul.f32 %v8103_v11, %v8095_v57  ;;  %v2018_v14 = vpop.permute.xlu2 %2017 }
 0x748   : > { %v2023_v15 = vsel %vm1175_vm2, %v2018_v14, 0 }
 0x749   : > { %v1973_v16 = vpack.c.bf16 %v1969_v13, %v1969_v13  ;;  %2032 = vmatpush.bf16.msrb.mxu2 %v2023_v15 }
 0x74c   : > { %7707 = vmatmul.msk.bf16.vlgmr.msrb.gmra.mxu2 %vm1118_vm3, %v1973_v16 }
 0x751   : > { %v1962_v17 = vpop.xlane.xlu0 %1961 }
 0x752   : > { %8104 = vrcp.f32 %v1962_v17 }
 0x753   : > { %8106 = vrcp.f32 %v8729_v48  ;;  %v7987_v48 = vld [vmem:[%s11750_s2 + $0x10] sm:$0xff] }
 0x754   : > { %8108 = vrcp.f32 %v8730_v31 }
 0x758   : > { %v8105_v18 = vpop.eup %8104 }
 0x759   : > { %v1970_v19 = vmul.f32 %v8105_v18, %v8097_v0  ;;  %v8107_v61 = vpop.eup %8106 }
 0x75a   : > { %v2109_v62 = vmul.f32 64.0, %v8107_v61  ;;  %v8109_v3 = vpop.eup %8108  ;;  %vm2113_vm4 = vweird.f32 %v8107_v61 }
 0x75b   : > { %v1974_v20 = vpack.c.bf16 %v1970_v19, %v1970_v19  ;;  %v2144_v7 = vmul.f32 8.0, %v8109_v3  ;;  %vm2148_vm5 = vweird.f32 %v8109_v3 }
 0x75c   : > { %v2110_v63 = vsub.f32 1.0, %v2109_v62  ;;  %v7986_v62 = vld [vmem:[%s11750_s2 + $0x8] sm:$0xff] }
 0x75d   : > { %7708 = vmatmul.msk.bf16.vlgmr.msrb.gmra.mxu3 %vm1118_vm3, %v1974_v20  ;;  %v2145_v30 = vsub.f32 1.0, %v2144_v7 }
 0x75e   : > { %v2111_v1 = vmul.f32 %v8107_v61, %v2110_v63 }
 0x75f   : > { %v2146_v10 = vmul.f32 %v8109_v3, %v2145_v30 }
 0x760   : > { %v2112_v5 = vadd.f32 %v8107_v61, %v2111_v1  ;;  %v7984_v1 = vld [vmem:[%s11751_s4 + $0x18] sm:$0xff] }
 0x761   : > { %v2147_v14 = vadd.f32 %v8109_v3, %v2146_v10  ;;  %2336 = vmatpush.bf16.msrb.mxu1 %v7984_v1 }
 0x762   : > { %v9245_v6 = vsel %vm2113_vm4, %v8107_v61, %v2112_v5 }
 0x763   : > { %11748 = vst [vmem:[#allocation5_spill] sm:$0xff] %v9245_v6  ;;  %v9249_v19 = vsel %vm2148_vm5, %v8109_v3, %v2147_v14  ;;  %v7985_v3 = vld [vmem:[%s11750_s2] sm:$0xff] }
 0x764   : > { %11749 = vst [vmem:[#allocation6_spill] sm:$0xff] %v9249_v19 }
 0x768   : > { %v1821_v21 = vpop.f32.mrf.mxu2 }
 0x769   : > { %v1831_v22 = vadd.f32 %v1821_v21, %v9167_v55 }
 0x770   : > { %v1823_v23 = vpop.f32.mrf.mxu2 }
 0x771   : > { %v1832_v53 = vadd.f32 %v1823_v23, %v1571_v52 }
 0x778   : > { %v1826_v24 = vpop.f32.mrf.mxu2 }
 0x779   : > { %v1833_v25 = vadd.f32 %v1826_v24, %v9178_v33 }
 0x780   : > { %v1828_v36 = vpop.f32.mrf.mxu2 }
 0x781   : > { %v1834_v27 = vadd.f32 %v1828_v36, %v1573_v59 }
 0x7a7   : > { %v2013_v34 = vpop.f32.mrf.mxu1 }
 0x7a8   : > { %v1992_v37 = vpop.f32.mrf.mxu0 }
 0x7a9   : > { %v2059_v38 = vpack.c.bf16 %v2013_v34, %v1992_v37 }
 0x7ab   : > { %7713 = vmatmul.msk.bf16.vlgmr.msra.gmra.mxu0 %vm1041_vm1, %v2059_v38 }
 0x7af   : > { %v2015_v35 = vpop.f32.mrf.mxu1 }
 0x7b0   : > { %v1994_v12 = vpop.f32.mrf.mxu0 }
 0x7cf   : > { %v2034_v40 = vpop.f32.mrf.mxu2 }
 0x7d7   : > { %v2036_v26 = vpop.f32.mrf.mxu2 }
 0x7e0   : > { %v2055_v55 = vpop.f32.mrf.mxu3 }
 0x7e1   : > { %v2060_v41 = vpack.c.bf16 %v2055_v55, %v2034_v40 }
 0x7e3   : > { %7714 = vmatmul.msk.bf16.gmra.mxu0 %vm1041_vm1, %v2060_v41 }
 0x7e8   : > { %v2057_v33 = vpop.f32.mrf.mxu3 }
 0x828   : > { %v2082_v46 = vpop.f32.mrf.mxu0 }
 0x829   : > { %v2092_v49 = vadd.f32 %v2082_v46, %v1831_v22 }
 0x82b   : > { %v2096_v51 = vsel %vm950_vm0, %v2092_v49, 0.0 }
 0x82c   : > { %2097 = vadd.xlane.f32.xlu1 %v2096_v51 }
 0x830   : > { %v2084_v54 = vpop.f32.mrf.mxu0 }
 0x831   : > { %v2093_v57 = vadd.f32 %v2084_v54, %v1832_v53 }
 0x833   : > { %v2099_v58 = vsel %vm950_vm0, %v2093_v57, 0.0 }
 0x834   : > { %2100 = vadd.xlane.f32.xlu2 %v2099_v58 }
 0x860   : > { %v2087_v2 = vpop.f32.mrf.mxu0 }
 0x861   : > { %v9235_v0 = vadd.f32 %v2087_v2, %v1833_v25 }
 0x863   : > { %v2102_v47 = vsel %vm950_vm0, %v9235_v0, 0.0 }
 0x864   : > { %2103 = vadd.xlane.f32.xlu0 %v2102_v47 }
 0x868   : > { %v2089_v60 = vpop.f32.mrf.mxu0 }
 0x869   : > { %v9241_v43 = vadd.f32 %v2089_v60, %v1834_v27 }
 0x86b   : > { %v2105_v56 = vsel %vm950_vm0, %v9241_v43, 0.0 }
 0x86c   : > { %2106 = vadd.xlane.f32.xlu0 %v2105_v56  ;;  %v7988_v56 = vld [vmem:[%s11750_s2 + $0x18] sm:$0xff] }
 0x86d   : > { %2398 = vmatpush.bf16.msra.mxu2 %v7988_v56 }
 0x871   : > { %2399 = vmatpush.bf16.msra.mxu2 %v7987_v48 }
 0x875   : > { %2400 = vmatpush.bf16.msra.mxu2 %v7986_v62 }
 0x879   : > { %2401 = vmatpush.bf16.msra.mxu2 %v7985_v3 }
 0x89f   : > { %v2098_v8 = vpop.xlane.xlu1 %2097 }
 0x8a0   : > { %v2115_v9 = vmul.f32 %v9245_v6, %v2098_v8 }
 0x8a2   : > { %v2119_v4 = vrot.slane %v2115_v9, 4 }
 0x8a4   : > { %v2120_v39 = vadd.f32 %v2119_v4, %v2115_v9  ;;  %v7967_v9 = vld [vmem:[%s9300_s10] sm:$0xff]  ;;  %v7983_v4 = vld [vmem:[%s11751_s4 + $0x10] sm:$0xff] }
 0x8a5   : > { %7757 = vmatmul.msk.bf16.vlgmr.msra.gmra.mxu2 %vm950_vm0, %v7967_v9  ;;  %2337 = vmatpush.bf16.msrb.mxu1 %v7983_v4 }
 0x8a6   : > { %v2121_v11 = vrot.slane %v2120_v39, 2 }
 0x8a7   : > { %v2101_v13 = vpop.xlane.xlu2 %2100 }
 0x8a8   : > { %v2122_v15 = vadd.f32 %v2121_v11, %v2120_v39  ;;  %v2116_v16 = vmul.f32 %v9245_v6, %v2101_v13  ;;  %v7982_v11 = vld [vmem:[%s11751_s4 + $0x8] sm:$0xff] }
 0x8a9   : > { %2338 = vmatpush.bf16.msrb.mxu1 %v7982_v11 }
 0x8aa   : > { %v2123_v17 = vrot.slane %v2122_v15, 1  ;;  %v2125_v18 = vrot.slane %v2116_v16, 4 }
 0x8ac   : > { %v2124_v20 = vadd.f32 %v2123_v17, %v2122_v15  ;;  %v2126_v21 = vadd.f32 %v2125_v18, %v2116_v16  ;;  %v7981_v17 = vld [vmem:[%s11751_s4] sm:$0xff] }
 0x8ad   : > { %2339 = vmatpush.bf16.msrb.mxu1 %v7981_v17 }
 0x8ae   : > { %v2127_v22 = vrot.slane %v2126_v21, 2  ;;  %v2150_v23 = vmul.f32 %v9249_v19, %v2124_v20 }
 0x8b0   : > { %v2128_v24 = vadd.f32 %v2127_v22, %v2126_v21  ;;  %v9252_v25 = vsub.f32 %v2092_v49, %v2150_v23 }
 0x8b2   : > { %v2129_v32 = vrot.slane %v2128_v24, 1  ;;  %v2158_v34 = vmul.f32 %v9252_v25, %v9252_v25 }
 0x8b4   : > { %v2130_v37 = vadd.f32 %v2129_v32, %v2128_v24  ;;  %v2162_v38 = vsel %vm950_vm0, %v2158_v34, 0.0 }
 0x8b5   : > { %2163 = vadd.xlane.f32.xlu0 %v2162_v38 }
 0x8b6   : > { %v2151_v35 = vmul.f32 %v9249_v19, %v2130_v37 }
 0x8b8   : > { %v9258_v12 = vsub.f32 %v2093_v57, %v2151_v35 }
 0x8ba   : > { %v2159_v36 = vmul.f32 %v9258_v12, %v9258_v12 }
 0x8bc   : > { %v2165_v40 = vsel %vm950_vm0, %v2159_v36, 0.0 }
 0x8bd   : > { %2166 = vadd.xlane.f32.xlu1 %v2165_v40 }
 0x8d7   : > { %v2104_v26 = vpop.xlane.xlu0 %2103 }
 0x8d8   : > { %v2117_v55 = vmul.f32 %v9245_v6, %v2104_v26 }
 0x8da   : > { %v2131_v41 = vrot.slane %v2117_v55, 4 }
 0x8dc   : > { %v2132_v33 = vadd.f32 %v2131_v41, %v2117_v55 }
 0x8de   : > { %v2133_v42 = vrot.slane %v2132_v33, 2 }
 0x8df   : > { %v2107_v44 = vpop.xlane.xlu0 %2106 }
 0x8e0   : > { %v2134_v46 = vadd.f32 %v2133_v42, %v2132_v33  ;;  %v2118_v49 = vmul.f32 %v9245_v6, %v2107_v44 }
 0x8e2   : > { %v2135_v50 = vrot.slane %v2134_v46, 1  ;;  %v2137_v51 = vrot.slane %v2118_v49, 4 }
 0x8e4   : > { %v2136_v52 = vadd.f32 %v2135_v50, %v2134_v46  ;;  %v2138_v53 = vadd.f32 %v2137_v51, %v2118_v49  ;;  %v8030_v46 = vld [vmem:[%s11754_s9] ss:$0 sm:$0xff]  ;;  %s11759_s9 = smov 48  }
 0x8e6   : > { %v2139_v54 = vrot.slane %v2138_v53, 2  ;;  %v2152_v57 = vmul.f32 %v9249_v19, %v2136_v52 }
 0x8e8   : > { %v2140_v58 = vadd.f32 %v2139_v54, %v2138_v53  ;;  %v9267_v29 = vsub.f32 %v9235_v0, %v2152_v57  ;;  %v8031_v53 = vld [vmem:[%s11755_s12] ss:$0 sm:$0xff] }
 0x8ea   : > { %v2141_v45 = vrot.slane %v2140_v58, 1  ;;  %v2160_v2 = vmul.f32 %v9267_v29, %v9267_v29 }
 0x8ec   : > { %v2142_v28 = vadd.f32 %v2141_v45, %v2140_v58  ;;  %v2168_v47 = vsel %vm950_vm0, %v2160_v2, 0.0 }
 0x8ed   : > { %2169 = vadd.xlane.f32.xlu2 %v2168_v47 }
 0x8ee   : > { %v2153_v59 = vmul.f32 %v9249_v19, %v2142_v28  ;;  %v7968_v28 = vld [vmem:[%s9300_s10 + $0x8] sm:$0xff]  ;;  %s11761_s10 = smov 80  }
 0x8ef   : > { %7758 = vmatmul.msk.bf16.gmra.mxu2 %vm950_vm0, %v7968_v28 }
 0x8f0   : > { %v9274_v27 = vsub.f32 %v9241_v43, %v2153_v59 }
 0x8f2   : > { %v2161_v60 = vmul.f32 %v9274_v27, %v9274_v27 }
 0x8f4   : > { %v2171_v0 = vsel %vm950_vm0, %v2161_v60, 0.0 }
 0x8f5   : > { %2172 = vadd.xlane.f32.xlu0 %v2171_v0 }
 0x928   : > { %v2164_v61 = vpop.xlane.xlu0 %2163 }
 0x929   : > { %v2174_v43 = vmul.f32 %v2164_v61, %v9245_v6 }
 0x92b   : > { %v2178_v63 = vrot.slane %v2174_v43, 4 }
 0x92d   : > { %v2179_v31 = vadd.f32 %v2178_v63, %v2174_v43 }
 0x92f   : > { %v2180_v5 = vrot.slane %v2179_v31, 2 }
 0x930   : > { %v2167_v7 = vpop.xlane.xlu1 %2166 }
 0x931   : > { %v2181_v8 = vadd.f32 %v2180_v5, %v2179_v31  ;;  %v2175_v30 = vmul.f32 %v2167_v7, %v9245_v6 }
 0x933   : > { %v2182_v10 = vrot.slane %v2181_v8, 1  ;;  %v2184_v39 = vrot.slane %v2175_v30, 4 }
 0x935   : > { %v2183_v13 = vadd.f32 %v2182_v10, %v2181_v8  ;;  %v2185_v14 = vadd.f32 %v2184_v39, %v2175_v30 }
 0x937   : > { %v2202_v15 = vmul.f32 %v2183_v13, %v9249_v19  ;;  %v2186_v16 = vrot.slane %v2185_v14, 2 }
 0x939   : > { %v2206_v18 = vadd.f32 1e-12, %v2202_v15  ;;  %v2187_v20 = vadd.f32 %v2186_v16, %v2185_v14 }
 0x93b   : > { %8110 = vrsqrt.f32 %v2206_v18  ;;  %v2188_v21 = vrot.slane %v2187_v20, 1  ;;  %vm2216_vm7 = vweird.f32 %v2206_v18 }
 0x93d   : > { %v2189_v22 = vadd.f32 %v2188_v21, %v2187_v20 }
 0x93f   : > { %v2203_v23 = vmul.f32 %v2189_v22, %v9249_v19 }
 0x941   : > { %v8111_v24 = vpop.eup %8110  ;;  %v2207_v32 = vadd.f32 1e-12, %v2203_v23 }
 0x942   : > { %v2211_v34 = vmul.f32 %v8111_v24, %v2206_v18  ;;  %vm2217_vm6 = vweird.f32 %v8111_v24 }
 0x943   : > { %8112 = vrsqrt.f32 %v2207_v32  ;;  %vm2218_vm8 = vmor %vm2216_vm7, %vm2217_vm6  ;;  %vm2226_vm10 = vweird.f32 %v2207_v32 }
 0x944   : > { %v2212_v37 = vmul.f32 %v8111_v24, %v2211_v34 }
 0x946   : > { %v2213_v38 = vmul.f32 0.5, %v2212_v37 }
 0x948   : > { %v2214_v35 = vsub.f32 1.5, %v2213_v38 }
 0x949   : > { %v8113_v36 = vpop.eup %8112 }
 0x94a   : > { %v2215_v40 = vmul.f32 %v8111_v24, %v2214_v35  ;;  %v2221_v26 = vmul.f32 %v8113_v36, %v2207_v32  ;;  %vm2227_vm9 = vweird.f32 %v8113_v36 }
 0x94b   : > { %vm2228_vm11 = vmor %vm2226_vm10, %vm2227_vm9 }
 0x94c   : > { %v2222_v55 = vmul.f32 %v8113_v36, %v2221_v26  ;;  %v2219_v41 = vsel %vm2218_vm8, %v8111_v24, %v2215_v40 }
 0x94d   : > { %v2250_v44 = vmul.f32 %v2219_v41, %v9252_v25 }
 0x94e   : > { %v2223_v33 = vmul.f32 0.5, %v2222_v55 }
 0x94f   : > { %v2257_v52 = vmul.f32 %v8030_v46, %v2250_v44  ;;  %v8033_v44 = vld [vmem:[%s11756_s1] ss:$0 sm:$0xff] }
 0x950   : > { %v2224_v42 = vsub.f32 1.5, %v2223_v33 }
 0x951   : > { %v9324_v57 = vadd.f32 %v8031_v53, %v2257_v52 }
 0x952   : > { %v2225_v49 = vmul.f32 %v8113_v36, %v2224_v42 }
 0x954   : > { %v2229_v50 = vsel %vm2228_vm11, %v8113_v36, %v2225_v49  ;;  %v2403_v36 = vpop.f32.mrf.mxu2 }
 0x955   : > { %v2251_v51 = vmul.f32 %v2229_v50, %v9258_v12 }
 0x957   : > { %v2258_v54 = vmul.f32 %v8030_v46, %v2251_v51 }
 0x959   : > { %v9326_v25 = vadd.f32 %v8031_v53, %v2258_v54 }
 0x95b   : > { %v2268_v58 = vpack.c.bf16 %v9326_v25, %v9324_v57 }
 0x95c   : > { %v2405_v55 = vpop.f32.mrf.mxu2 }
 0x95d   : > { %7731 = vmatmul.msk.bf16.vlgmr.msrb.gmra.mxu1 %vm950_vm0, %v2268_v58 }
 0x960   : > { %v2170_v45 = vpop.xlane.xlu2 %2169 }
 0x961   : > { %v2176_v2 = vmul.f32 %v2170_v45, %v9245_v6 }
 0x963   : > { %v2190_v12 = vrot.slane %v2176_v2, 4 }
 0x965   : > { %v2191_v47 = vadd.f32 %v2190_v12, %v2176_v2 }
 0x967   : > { %v2192_v59 = vrot.slane %v2191_v47, 2 }
 0x968   : > { %v2173_v60 = vpop.xlane.xlu0 %2172 }
 0x969   : > { %v2193_v0 = vadd.f32 %v2192_v59, %v2191_v47  ;;  %v2177_v56 = vmul.f32 %v2173_v60, %v9245_v6 }
 0x96b   : > { %v2194_v48 = vrot.slane %v2193_v0, 1  ;;  %v2196_v61 = vrot.slane %v2177_v56, 4 }
 0x96d   : > { %v2195_v43 = vadd.f32 %v2194_v48, %v2193_v0  ;;  %v2197_v62 = vadd.f32 %v2196_v61, %v2177_v56 }
 0x96f   : > { %v2204_v63 = vmul.f32 %v2195_v43, %v9249_v19  ;;  %v2198_v31 = vrot.slane %v2197_v62, 2 }
 0x971   : > { %v2208_v1 = vadd.f32 1e-12, %v2204_v63  ;;  %v2199_v3 = vadd.f32 %v2198_v31, %v2197_v62 }
 0x973   : > { %8114 = vrsqrt.f32 %v2208_v1  ;;  %v2200_v5 = vrot.slane %v2199_v3, 1  ;;  %vm2236_vm13 = vweird.f32 %v2208_v1 }
 0x975   : > { %v2201_v7 = vadd.f32 %v2200_v5, %v2199_v3 }
 0x977   : > { %v2205_v8 = vmul.f32 %v2201_v7, %v9249_v19 }
 0x979   : > { %v8115_v30 = vpop.eup %8114  ;;  %v2209_v9 = vadd.f32 1e-12, %v2205_v8 }
 0x97a   : > { %v2231_v4 = vmul.f32 %v8115_v30, %v2208_v1  ;;  %vm2237_vm12 = vweird.f32 %v8115_v30 }
 0x97b   : > { %8116 = vrsqrt.f32 %v2209_v9  ;;  %vm2238_vm14 = vmor %vm2236_vm13, %vm2237_vm12  ;;  %vm2246_vm4 = vweird.f32 %v2209_v9 }
 0x97c   : > { %v2232_v10 = vmul.f32 %v8115_v30, %v2231_v4 }
 0x97e   : > { %v2233_v39 = vmul.f32 0.5, %v2232_v10 }
 0x980   : > { %v2234_v11 = vsub.f32 1.5, %v2233_v39 }
 0x981   : > { %v8117_v13 = vpop.eup %8116 }
 0x982   : > { %v2241_v14 = vmul.f32 %v8117_v13, %v2209_v9  ;;  %v2235_v15 = vmul.f32 %v8115_v30, %v2234_v11  ;;  %vm2247_vm15 = vweird.f32 %v8117_v13 }
 0x983   : > { %vm2248_vm5 = vmor %vm2246_vm4, %vm2247_vm15 }
 0x984   : > { %v2242_v16 = vmul.f32 %v8117_v13, %v2241_v14  ;;  %v2239_v18 = vsel %vm2238_vm14, %v8115_v30, %v2235_v15 }
 0x985   : > { %v2252_v21 = vmul.f32 %v2239_v18, %v9267_v29  ;;  %v8032_v29 = vld [vmem:[%s11660_s13] ss:$0 sm:$0xff] }
 0x986   : > { %v2243_v17 = vmul.f32 0.5, %v2242_v16  ;;  %v2404_v40 = vadd.f32 %v8032_v29, %v2403_v36  ;;  %v2406_v41 = vadd.f32 %v8032_v29, %v2405_v55 }
 0x987   : > { %v2259_v32 = vmul.f32 %v8030_v46, %v2252_v21 }
 0x988   : > { %v2244_v20 = vsub.f32 1.5, %v2243_v17  ;;  %v2428_v26 = vpack.c.bf16 %v2404_v40, %v2404_v40  ;;  %v2429_v33 = vpack.c.bf16 %v2406_v41, %v2406_v41 }
 0x989   : > { %v9339_v37 = vadd.f32 %v8031_v53, %v2259_v32 }
 0x98a   : > { %v2245_v22 = vmul.f32 %v8117_v13, %v2244_v20  ;;  %v2455_v42 = vsel %vm1041_vm1, %v2429_v33, 0  ;;  %v2557_v17 = vunpack.c.l.b16 %v2428_v26 }
 0x98c   : > { %v2249_v23 = vsel %vm2248_vm5, %v8117_v13, %v2245_v22  ;;  %v9379_v20 = vpack.c.b16 %v2557_v17, %v2557_v17  ;;  %v2581_v22 = vunpack.c.l.b16 %v2429_v33 }
 0x98d   : > { %v2253_v24 = vmul.f32 %v2249_v23, %v9274_v27  ;;  %v2436_v27 = vsel %vm1041_vm1, %v2428_v26, 0 }
 0x98e   : > { %2445 = vmatpush.bf16.xpose.msra.mxu3 %v2436_v27 }
 0x98f   : > { %v2260_v34 = vmul.f32 %v8030_v46, %v2253_v24  ;;  %v9387_v24 = vpack.c.b16 %v2581_v22, %v2581_v22 }
 0x991   : > { %v9341_v38 = vadd.f32 %v8031_v53, %v2260_v34  ;;  %v2408_v53 = vpop.f32.mrf.mxu2 }
 0x992   : > { %v2409_v58 = vadd.f32 %v8032_v29, %v2408_v53 }
 0x993   : > { %v2269_v35 = vpack.c.bf16 %v9341_v38, %v9339_v37 }
 0x994   : > { %v2430_v45 = vpack.c.bf16 %v2409_v58, %v2409_v58 }
 0x995   : > { %7732 = vmatmul.msk.bf16.gmra.mxu1 %vm950_vm0, %v2269_v35 }
 0x996   : > { %2464 = vmatpush.bf16.xpose.msrb.mxu3 %v2455_v42  ;;  %v2474_v28 = vsel %vm1041_vm1, %v2430_v45, 0  ;;  %v2605_v21 = vunpack.c.l.b16 %v2430_v45 }
 0x997   : > { %2483 = vmatpush.bf16.xpose.msrb.mxu0 %v2474_v28 }
 0x998   : > { %v9383_v23 = vpack.c.b16 %v2605_v21, %v2605_v21 }
 0x999   : > { %v2410_v12 = vpop.f32.mrf.mxu2 }
 0x99a   : > { %v2411_v59 = vadd.f32 %v8032_v29, %v2410_v12 }
 0x99c   : > { %v2431_v60 = vpack.c.bf16 %v2411_v59, %v2411_v59 }
 0x99e   : > { %v2493_v0 = vsel %vm1041_vm1, %v2431_v60, 0  ;;  %v2629_v9 = vunpack.c.l.b16 %v2431_v60 }
 0x99f   : > { %2502 = vmatpush.bf16.xpose.msra.mxu1 %v2493_v0 }
 0x9a0   : > { %v9369_v4 = vpack.c.b16 %v2629_v9, %v2629_v9 }
 0x9da   : > { %v2341_v46 = vpop.f32.mrf.mxu1 }
 0x9db   : > { %v2342_v49 = vadd.f32 %v8033_v44, %v2341_v46 }
 0x9dd   : > { %v2413_v50 = vmul.f32 0.25, %v2342_v49 }
 0x9df   : > { %v2424_v51 = vpack.c.bf16 %v2413_v50, %v2413_v50 }
 0x9e1   : > { %7759 = vmatmul.msk.bf16.vlgmr.msra.gmra.mxu3 %vm1041_vm1, %v2424_v51  ;;  %v2690_v10 = vunpack.c.l.b16 %v2424_v51 }
 0x9e2   : > { %v2343_v52 = vpop.f32.mrf.mxu1 }
 0x9e3   : > { %v2344_v54 = vadd.f32 %v8033_v44, %v2343_v52  ;;  %v9373_v39 = vpack.c.b16 %v2690_v10, %v2690_v10 }
 0x9e5   : > { %v2414_v2 = vmul.f32 0.25, %v2344_v54 }
 0x9e7   : > { %v9356_v47 = vpack.c.bf16 %v2414_v2, %v2414_v2 }
 0x9e9   : > { %v2716_v59 = vunpack.c.l.b16 %v9356_v47 }
 0x9eb   : > { %v9409_v0 = vpack.c.b16 %v2716_v59, %v2716_v59 }
 0x9f1   : > { %7760 = vmatmul.msk.bf16.vlgmr.msrb.gmra.mxu3 %vm1041_vm1, %v9356_v47 }
 0xa12   : > { %v2346_v56 = vpop.f32.mrf.mxu1 }
 0xa13   : > { %v2347_v48 = vadd.f32 %v8033_v44, %v2346_v56 }
 0xa15   : > { %v2415_v61 = vmul.f32 0.25, %v2347_v48 }
 0xa17   : > { %v2426_v43 = vpack.c.bf16 %v2415_v61, %v2415_v61 }
 0xa19   : > { %7761 = vmatmul.msk.bf16.vlgmr.msrb.gmra.mxu0 %vm1041_vm1, %v2426_v43  ;;  %v2742_v32 = vunpack.c.l.b16 %v2426_v43 }
 0xa1a   : > { %v2348_v62 = vpop.f32.mrf.mxu1 }
 0xa1b   : > { %v2349_v63 = vadd.f32 %v8033_v44, %v2348_v62  ;;  %v9393_v34 = vpack.c.b16 %v2742_v32, %v2742_v32 }
 0xa1d   : > { %v2416_v31 = vmul.f32 0.25, %v2349_v63 }
 0xa1f   : > { %v9362_v1 = vpack.c.bf16 %v2416_v31, %v2416_v31 }
 0xa21   : > { %7762 = vmatmul.msk.bf16.vlgmr.msra.gmra.mxu1 %vm1041_vm1, %v9362_v1  ;;  %v2768_v56 = vunpack.c.l.b16 %v9362_v1 }
 0xa23   : > { %v9414_v48 = vpack.c.b16 %v2768_v56, %v2768_v56 }
 0xa64   : > { %v9366_v3 = vpop.f32.mrf.mxu3 }
 0xa65   : > { %v2508_v47 = vsel %vm1118_vm3, %v9366_v3, -inf }
 0xa6c   : > { %v2449_v5 = vpop.f32.mrf.mxu3 }
 0xa74   : > { %v2466_v7 = vpop.f32.mrf.mxu3 }
 0xa75   : > { %v2511_v8 = vsel %vm1118_vm3, %v2466_v7, -inf }
 0xa76   : > { %2512 = vmax.xlane.f32.xlu1 %v2511_v8 }
 0xa7c   : > { %v2468_v30 = vpop.f32.mrf.mxu3 }
 0xa8f   : > { %2631 = vrot.lane.b32.xlu1 %v9369_v4, %s11757_s5 }
 0xa96   : > { %v2485_v11 = vpop.f32.mrf.mxu0 }
 0xa97   : > { %2692 = vrot.lane.b32.xlu1 %v9373_v39, %s11758_s29  ;;  %v2514_v13 = vsel %vm1118_vm3, %v2485_v11, -inf }
 0xa98   : > { %2515 = vmax.xlane.f32.xlu0 %v2514_v13 }
 0xa9e   : > { %v2487_v14 = vpop.f32.mrf.mxu0  ;;  %v2504_v15 = vpop.f32.mrf.mxu1 }
 0xa9f   : > { %v2517_v16 = vsel %vm1118_vm3, %v2504_v15, -inf }
 0xaa0   : > { %2518 = vmax.xlane.f32.xlu2 %v2517_v16 }
 0xaa6   : > { %v2506_v18 = vpop.f32.mrf.mxu1 }
 0xaac   : > { %2694 = vrot.lane.b32.xlu0 %v9379_v20, %s11758_s29 }
 0xab4   : > { %2607 = vrot.lane.b32.xlu0 %v9383_v23, %s11757_s5 }
 0xab8   : > { %2583 = vrot.lane.b32.xlu2 %v9387_v24, %s11757_s5 }
 0xabc   : > { %2772 = vrot.lane.b32.xlu0 %v9369_v4, %s11758_s29 }
 0xac4   : > { %2744 = vrot.lane.b32.xlu0 %v9393_v34, %s11758_s29 }
 0xacc   : > { %2720 = vrot.lane.b32.xlu0 %v9387_v24, %s11758_s29 }
 0xae9   : > { %v2513_v35 = vpop.xlane.xlu1 %2512 }
 0xaea   : > { %v2521_v29 = vsub.f32 %v2466_v7, %v2513_v35 }
 0xaec   : > { %v2526_v36 = vmul.f32 1.442695, %v2521_v29 }
 0xaee   : > { %8118 = vpow2.f32 %v2526_v36 }
 0xaf4   : > { %v8119_v40 = vpop.eup %8118 }
 0xaf5   : > { %v2535_v26 = vsel %vm1118_vm3, %v8119_v40, 0.0 }
 0xaf6   : > { %2536 = vadd.xlane.f32.xlu1 %v2535_v26 }
 0xb01   : > { %v2632_v27 = vpop.permute.xlu1 %2631 }
 0xb02   : > { %v2637_v55 = vsel %vm1175_vm2, %v2632_v27, 0 }
 0xb03   : > { %2646 = vmatpush.bf16.msrb.mxu1 %v2637_v55 }
 0xb09   : > { %v2693_v63 = vpop.permute.xlu1 %2692 }
 0xb0b   : > { %v2516_v41 = vpop.xlane.xlu0 %2515 }
 0xb0c   : > { %v2522_v33 = vsub.f32 %v2485_v11, %v2516_v41 }
 0xb0e   : > { %v2528_v42 = vmul.f32 1.442695, %v2522_v33 }
 0xb0f   : > { %2746 = vrot.lane.b32.xlu1 %v9383_v23, %s11758_s29 }
 0xb10   : > { %8120 = vpow2.f32 %v2528_v42 }
 0xb13   : > { %v2519_v44 = vpop.xlane.xlu2 %2518 }
 0xb14   : > { %v2523_v46 = vsub.f32 %v2504_v15, %v2519_v44 }
 0xb16   : > { %v8121_v49 = vpop.eup %8120  ;;  %v2530_v50 = vmul.f32 1.442695, %v2523_v46 }
 0xb17   : > { %v2538_v51 = vsel %vm1118_vm3, %v8121_v49, 0.0 }
 0xb18   : > { %8122 = vpow2.f32 %v2530_v50  ;;  %2539 = vadd.xlane.f32.xlu2 %v2538_v51 }
 0xb1b   : > { %v2584_v52 = vpop.permute.xlu2 %2583 }
 0xb1c   : > { %v2589_v53 = vsel %vm1175_vm2, %v2584_v52, 0  ;;  %v7989_v52 = vld [vmem:[%s11661_s14] sm:$0xff] }
 0xb1d   : > { %2598 = vmatpush.bf16.msra.mxu3 %v2589_v53 }
 0xb1e   : > { %v8123_v54 = vpop.eup %8122  ;;  %v2695_v58 = vpop.permute.xlu0 %2694 }
 0xb1f   : > { %v2700_v45 = vsel %vm1041_vm1, %v2695_v58, 0  ;;  %v2541_v2 = vsel %vm1118_vm3, %v8123_v54, 0.0 }
 0xb20   : > { %2542 = vadd.xlane.f32.xlu0 %v2541_v2 }
 0xb21   : > { %2709 = vmatpush.bf16.xpose.msrb.mxu3 %v2700_v45 }
 0xb26   : > { %v2608_v28 = vpop.permute.xlu0 %2607 }
 0xb27   : > { %v2613_v12 = vsel %vm1175_vm2, %v2608_v28, 0 }
 0xb28   : > { %2622 = vmatpush.bf16.msra.mxu0 %v2613_v12 }
 0xb2e   : > { %v2773_v60 = vpop.permute.xlu0 %2772 }
 0xb2f   : > { %v2778_v8 = vsel %vm1041_vm1, %v2773_v60, 0 }
 0xb30   : > { %2718 = vrot.lane.b32.xlu2 %v9409_v0, %s11758_s29 }
 0xb34   : > { %2770 = vrot.lane.b32.xlu0 %v9414_v48, %s11758_s29 }
 0xb36   : > { %v2745_v61 = vpop.permute.xlu0 %2744 }
 0xb38   : > { %2862 = vrot.lane.b32.xlu2 %v9387_v24, %s11759_s9 }
 0xb39   : > { %2509 = vmax.xlane.f32.xlu1 %v2508_v47 }
 0xb3e   : > { %v2721_v43 = vpop.permute.xlu0 %2720 }
 0xb3f   : > { %v2726_v62 = vsel %vm1041_vm1, %v2721_v43, 0 }
 0xb40   : > { %2735 = vmatpush.bf16.xpose.msrb.mxu0 %v2726_v62 }
 0xb52   : > { %2559 = vrot.lane.b32.xlu1 %v9379_v20, %s11757_s5 }
 0xb69   : > { %v2537_v31 = vpop.xlane.xlu1 %2536 }
 0xb6a   : > { %8124 = vrcp.f32 %v2537_v31 }
 0xb70   : > { %v8125_v1 = vpop.eup %8124 }
 0xb71   : > { %v2549_v5 = vmul.f32 %v8125_v1, %v8119_v40 }
 0xb73   : > { %v2553_v7 = vpack.c.bf16 %v2549_v5, %v2549_v5 }
 0xb75   : > { %7764 = vmatmul.msk.bf16.vlgmr.msra.gmra.mxu3 %vm1118_vm3, %v2553_v7 }
 0xb76   : > { %2787 = vmatpush.bf16.xpose.msra.mxu3 %v2778_v8 }
 0xb81   : > { %v2747_v30 = vpop.permute.xlu1 %2746 }
 0xb82   : > { %v2752_v9 = vsel %vm1041_vm1, %v2747_v30, 0 }
 0xb83   : > { %2761 = vmatpush.bf16.xpose.msra.mxu1 %v2752_v9 }
 0xb85   : > { %7773 = vmatmul.msk.bf16.vlgmr.msrb.gmra.mxu3 %vm1041_vm1, %v2693_v63 }
 0xb8b   : > { %v2540_v10 = vpop.xlane.xlu2 %2539 }
 0xb8c   : > { %8126 = vrcp.f32 %v2540_v10 }
 0xb92   : > { %v8127_v11 = vpop.eup %8126 }
 0xb93   : > { %v2550_v13 = vmul.f32 %v8127_v11, %v8121_v49  ;;  %v2543_v14 = vpop.xlane.xlu0 %2542  ;;  %v2719_v15 = vpop.permute.xlu2 %2718 }
 0xb94   : > { %8128 = vrcp.f32 %v2543_v14 }
 0xb95   : > { %v2554_v16 = vpack.c.bf16 %v2550_v13, %v2550_v13 }
 0xb97   : > { %7765 = vmatmul.msk.bf16.vlgmr.msra.gmra.mxu0 %vm1118_vm3, %v2554_v16 }
 0xb9a   : > { %v8129_v17 = vpop.eup %8128 }
 0xb9b   : > { %v2551_v18 = vmul.f32 %v8129_v17, %v8123_v54  ;;  %v2863_v21 = vpop.permute.xlu2 %2862 }
 0xb9c   : > { %v2868_v32 = vsel %vm1175_vm2, %v2863_v21, 0 }
 0xb9d   : > { %v2555_v22 = vpack.c.bf16 %v2551_v18, %v2551_v18 }
 0xb9f   : > { %7766 = vmatmul.msk.bf16.vlgmr.msrb.gmra.mxu1 %vm1118_vm3, %v2555_v22 }
 0xba0   : > { %2877 = vmatpush.bf16.msrb.mxu1 %v2868_v32 }
 0xba6   : > { %v2771_v35 = vpop.permute.xlu0 %2770 }
 0xba7   : > { %7774 = vmatmul.msk.bf16.vlgmr.msrb.gmra.mxu0 %vm1041_vm1, %v2719_v15  ;;  %7776 = vmatmul.msk.bf16.vlgmr.msra.gmra.mxu3 %vm1041_vm1, %v2771_v35 }
 0xbac   : > { %v2510_v29 = vpop.xlane.xlu1 %2509 }
 0xbad   : > { %v2520_v36 = vsub.f32 %v9366_v3, %v2510_v29 }
 0xbaf   : > { %v2524_v40 = vmul.f32 1.442695, %v2520_v36  ;;  %7775 = vmatmul.msk.bf16.vlgmr.msra.gmra.mxu1 %vm1041_vm1, %v2745_v61 }
 0xbb1   : > { %8130 = vpow2.f32 %v2524_v40 }
 0xbb7   : > { %v8131_v26 = vpop.eup %8130 }
 0xbb8   : > { %v2532_v27 = vsel %vm1118_vm3, %v8131_v26, 0.0 }
 0xbb9   : > { %2533 = vadd.xlane.f32.xlu0 %v2532_v27 }
 0xbc4   : > { %v2560_v55 = vpop.permute.xlu1 %2559 }
 0xbc5   : > { %v2565_v41 = vsel %vm1175_vm2, %v2560_v55, 0 }
 0xbc6   : > { %2574 = vmatpush.bf16.msrb.mxu2 %v2565_v41 }
 0xbca   : > { %2673 = vmatpush.bf16.msra.mxu2 %v7989_v52 }
 0xbcd   : > { %2883 = vrot.lane.b32.xlu0 %v9383_v23, %s11759_s9 }
 0xbd5   : > { %2904 = vrot.lane.b32.xlu0 %v9369_v4, %s11759_s9 }
 0xbdd   : > { %2985 = vrot.lane.b32.xlu0 %v9409_v0, %s11760_s6 }
 0xbf8   : > { %v9444_v3 = vpop.f32.mrf.mxu3 }
 0xc00   : > { %v2602_v33 = vpop.f32.mrf.mxu3 }
 0xc08   : > { %v9446_v42 = vpop.f32.mrf.mxu3 }
 0xc10   : > { %v2713_v44 = vpop.f32.mrf.mxu3 }
 0xc14   : > { %v9448_v46 = vpop.f32.mrf.mxu0 }
 0xc1c   : > { %v2626_v49 = vpop.f32.mrf.mxu0  ;;  %v9450_v50 = vpop.f32.mrf.mxu1 }
 0xc1d   : > { %v2653_v51 = vpack.c.bf16 %v9450_v50, %v9448_v46 }
 0xc24   : > { %v2650_v53 = vpop.f32.mrf.mxu1  ;;  %v2737_v54 = vpop.f32.mrf.mxu0 }
 0xc25   : > { %v2796_v58 = vsel %vm1118_vm3, %v2737_v54, -inf }
 0xc26   : > { %2797 = vmax.xlane.f32.xlu1 %v2796_v58 }
 0xc2a   : > { %v2789_v45 = vpop.f32.mrf.mxu3 }
 0xc2b   : > { %v2802_v2 = vsel %vm1118_vm3, %v2789_v45, -inf }
 0xc2c   : > { %v2739_v28 = vpop.f32.mrf.mxu0  ;;  %v2763_v12 = vpop.f32.mrf.mxu1  ;;  %2803 = vmax.xlane.f32.xlu0 %v2802_v2 }
 0xc2d   : > { %v2534_v59 = vpop.xlane.xlu0 %2533  ;;  %v2799_v60 = vsel %vm1118_vm3, %v2763_v12, -inf }
 0xc2e   : > { %8132 = vrcp.f32 %v2534_v59  ;;  %2800 = vmax.xlane.f32.xlu2 %v2799_v60 }
 0xc32   : > { %v2791_v56 = vpop.f32.mrf.mxu3 }
 0xc34   : > { %v8133_v61 = vpop.eup %8132  ;;  %v2765_v47 = vpop.f32.mrf.mxu1 }
 0xc35   : > { %v2548_v43 = vmul.f32 %v8133_v61, %v8131_v26 }
 0xc37   : > { %v2552_v62 = vpack.c.bf16 %v2548_v43, %v2548_v43 }
 0xc39   : > { %7763 = vmatmul.msk.bf16.vlgmr.msrb.gmra.mxu2 %vm1118_vm3, %v2552_v62 }
 0xc3f   : > { %2987 = vrot.lane.b32.xlu1 %v9387_v24, %s11760_s6  ;;  %v2884_v63 = vpop.permute.xlu0 %2883 }
 0xc40   : > { %v2889_v31 = vsel %vm1175_vm2, %v2884_v63, 0  ;;  %2964 = vrot.lane.b32.xlu0 %v9379_v20, %s11760_s6  ;;  %v9507_v63 = vld [vmem:[%s11662_s15] ss:$0 sm:$0xff] }
 0xc41   : > { %2898 = vmatpush.bf16.msrb.mxu2 %v2889_v31  ;;  %v2420_v31 = vadd.f32 %v9507_v63, %v9324_v57 }
 0xc46   : > { %3010 = vrot.lane.b32.xlu2 %v9383_v23, %s11760_s6 }
 0xc47   : > { %3008 = vrot.lane.b32.xlu1 %v9393_v34, %s11760_s6  ;;  %v2905_v1 = vpop.permute.xlu0 %2904 }
 0xc48   : > { %v2910_v5 = vsel %vm1175_vm2, %v2905_v1, 0 }
 0xc49   : > { %2919 = vmatpush.bf16.msrb.mxu3 %v2910_v5 }
 0xc4f   : > { %3031 = vrot.lane.b32.xlu1 %v9414_v48, %s11760_s6  ;;  %v9475_v7 = vpop.permute.xlu0 %2985 }
 0xc57   : > { %2841 = vrot.lane.b32.xlu1 %v9379_v20, %s11759_s9  ;;  %s11763_s9 = smov 16  }
 0xc99   : > { %v2798_v8 = vpop.xlane.xlu1 %2797 }
 0xc9a   : > { %v2806_v30 = vsub.f32 %v2737_v54, %v2798_v8 }
 0xc9c   : > { %v2811_v9 = vmul.f32 1.442695, %v2806_v30  ;;  %v2422_v30 = vadd.f32 %v9507_v63, %v9339_v37 }
 0xc9e   : > { %8134 = vpow2.f32 %v2811_v9 }
 0xc9f   : > { %v2804_v10 = vpop.xlane.xlu0 %2803 }
 0xca0   : > { %v2808_v11 = vsub.f32 %v2789_v45, %v2804_v10 }
 0xca1   : > { %v2801_v13 = vpop.xlane.xlu2 %2800 }
 0xca2   : > { %v2815_v14 = vmul.f32 1.442695, %v2808_v11  ;;  %v2807_v15 = vsub.f32 %v2763_v12, %v2801_v13 }
 0xca4   : > { %v8135_v16 = vpop.eup %8134  ;;  %8136 = vpow2.f32 %v2815_v14  ;;  %v2813_v17 = vmul.f32 1.442695, %v2807_v15 }
 0xca5   : > { %v2820_v18 = vsel %vm1118_vm3, %v8135_v16, 0.0 }
 0xca6   : > { %8138 = vpow2.f32 %v2813_v17  ;;  %2821 = vadd.xlane.f32.xlu2 %v2820_v18 }
 0xca9   : > { %v3011_v21 = vpop.permute.xlu2 %3010 }
 0xcaa   : > { %v8137_v22 = vpop.eup %8136  ;;  %v3016_v32 = vsel %vm1041_vm1, %v3011_v21, 0 }
 0xcab   : > { %3025 = vmatpush.bf16.xpose.msra.mxu3 %v3016_v32  ;;  %v2826_v36 = vsel %vm1118_vm3, %v8137_v22, 0.0 }
 0xcac   : > { %v8139_v35 = vpop.eup %8138 }
 0xcad   : > { %v2823_v29 = vsel %vm1118_vm3, %v8139_v35, 0.0 }
 0xcae   : > { %2824 = vadd.xlane.f32.xlu0 %v2823_v29  ;;  %2827 = vadd.xlane.f32.xlu2 %v2826_v36 }
 0xcb1   : > { %v2988_v40 = vpop.permute.xlu1 %2987 }
 0xcb2   : > { %v2965_v26 = vpop.permute.xlu0 %2964  ;;  %v2993_v44 = vsel %vm1041_vm1, %v2988_v40, 0 }
 0xcb3   : > { %v2970_v27 = vsel %vm1041_vm1, %v2965_v26, 0 }
 0xcb4   : > { %2979 = vmatpush.bf16.xpose.msra.mxu1 %v2970_v27 }
 0xcb9   : > { %v3009_v55 = vpop.permute.xlu1 %3008 }
 0xcbc   : > { %v2576_v41 = vpop.f32.mrf.mxu2 }
 0xcbd   : > { %v2652_v33 = vpack.c.bf16 %v9444_v3, %v2576_v41  ;;  %v2793_v3 = vsel %vm1118_vm3, %v9446_v42, -inf }
 0xcbf   : > { %7771 = vmatmul.msk.bf16.vlgmr.msra.gmra.mxu2 %vm1041_vm1, %v2652_v33 }
 0xcc0   : > { %3002 = vmatpush.bf16.xpose.msra.mxu2 %v2993_v44 }
 0xcc1   : > { %v3032_v49 = vpop.permute.xlu1 %3031 }
 0xcc2   : > { %2962 = vrot.lane.b32.xlu0 %v9373_v39, %s11760_s6 }
 0xcc4   : > { %v2578_v52 = vpop.f32.mrf.mxu2 }
 0xcc6   : > { %3033 = vrot.lane.b32.xlu2 %v9369_v4, %s11760_s6 }
 0xcc9   : > { %v2842_v53 = vpop.permute.xlu1 %2841 }
 0xcca   : > { %v2847_v54 = vsel %vm1175_vm2, %v2842_v53, 0 }
 0xccb   : > { %2856 = vmatpush.bf16.msra.mxu0 %v2847_v54 }
 0xccf   : > { %7772 = vmatmul.msk.bf16.gmra.mxu2 %vm1041_vm1, %v2653_v51 }
 0xcec   : > { %2794 = vmax.xlane.f32.xlu0 %v2793_v3 }
 0xd00   : > { %3225 = vrot.lane.b32.xlu0 %v9379_v20, %s11761_s10 }
 0xd19   : > { %v2822_v58 = vpop.xlane.xlu2 %2821 }
 0xd1a   : > { %8140 = vrcp.f32 %v2822_v58  ;;  %v7990_v58 = vld [vmem:[%s11661_s14 + $0x8] sm:$0xff] }
 0xd1b   : > { %2946 = vmatpush.bf16.msrb.mxu0 %v7990_v58 }
 0xd20   : > { %v8141_v45 = vpop.eup %8140 }
 0xd21   : > { %v2834_v2 = vmul.f32 %v8141_v45, %v8135_v16  ;;  %v2828_v28 = vpop.xlane.xlu2 %2827  ;;  %v2825_v12 = vpop.xlane.xlu0 %2824 }
 0xd22   : > { %8142 = vrcp.f32 %v2828_v28 }
 0xd23   : > { %v2838_v59 = vpack.c.bf16 %v2834_v2, %v2834_v2  ;;  %8144 = vrcp.f32 %v2825_v12 }
 0xd25   : > { %7778 = vmatmul.msk.bf16.vlgmr.msrb.gmra.mxu1 %vm1118_vm3, %v2838_v59 }
 0xd28   : > { %v8143_v46 = vpop.eup %8142 }
 0xd29   : > { %v8145_v50 = vpop.eup %8144  ;;  %v2836_v51 = vmul.f32 %v8143_v46, %v8137_v22  ;;  %v3034_v60 = vpop.permute.xlu2 %3033 }
 0xd2a   : > { %v2835_v56 = vmul.f32 %v8145_v50, %v8139_v35  ;;  %v3039_v61 = vsel %vm1041_vm1, %v3034_v60, 0 }
 0xd2b   : > { %v2840_v47 = vpack.c.bf16 %v2836_v51, %v2836_v51  ;;  %3048 = vmatpush.bf16.xpose.msrb.mxu1 %v3039_v61 }
 0xd2c   : > { %v2839_v43 = vpack.c.bf16 %v2835_v56, %v2835_v56 }
 0xd2d   : > { %7780 = vmatmul.msk.bf16.vlgmr.msrb.gmra.mxu3 %vm1118_vm3, %v2840_v47 }
 0xd2e   : > { %7779 = vmatmul.msk.bf16.vlgmr.msrb.gmra.mxu2 %vm1118_vm3, %v2839_v43 }
 0xd34   : > { %v2963_v62 = vpop.permute.xlu0 %2962 }
 0xd35   : > { %7787 = vmatmul.msk.bf16.vlgmr.msra.gmra.mxu1 %vm1041_vm1, %v2963_v62 }
 0xd3d   : > { %7789 = vmatmul.msk.bf16.vlgmr.msra.gmra.mxu3 %vm1041_vm1, %v3009_v55 }
 0xd3e   : > { %7788 = vmatmul.msk.bf16.vlgmr.msra.gmra.mxu2 %vm1041_vm1, %v9475_v7 }
 0xd42   : > { %v2675_v1 = vpop.f32.mrf.mxu2 }
 0xd43   : > { %v9513_v5 = vadd.f32 %v2675_v1, %v2420_v31 }
 0xd45   : > { %7790 = vmatmul.msk.bf16.vlgmr.msrb.gmra.mxu1 %vm1041_vm1, %v3032_v49 }
 0xd4a   : > { %v9516_v8 = vpop.f32.mrf.mxu2 }
 0xd52   : > { %v2680_v9 = vpop.f32.mrf.mxu2 }
 0xd53   : > { %v9520_v10 = vadd.f32 %v2680_v9, %v2422_v30 }
 0xd5a   : > { %v9526_v16 = vpop.f32.mrf.mxu2 }
 0xd5f   : > { %v2795_v11 = vpop.xlane.xlu0 %2794 }
 0xd60   : > { %v2805_v13 = vsub.f32 %v9446_v42, %v2795_v11 }
 0xd62   : > { %v2809_v7 = vmul.f32 1.442695, %v2805_v13 }
 0xd64   : > { %8146 = vpow2.f32 %v2809_v7 }
 0xd6a   : > { %v8147_v14 = vpop.eup %8146 }
 0xd6b   : > { %v2817_v57 = vsel %vm1118_vm3, %v8147_v14, 0.0 }
 0xd6c   : > { %2818 = vadd.xlane.f32.xlu2 %v2817_v57 }
 0xd72   : > { %v3226_v50 = vpop.permute.xlu0 %3225 }
 0xd73   : > { %v3231_v61 = vsel %vm1041_vm1, %v3226_v50, 0 }
 0xda2   : > { %v9524_v15 = vpop.f32.mrf.mxu1 }
 0xdaa   : > { %v2881_v17 = vpop.f32.mrf.mxu1 }
 0xdb0   : > { %v9528_v18 = vpop.f32.mrf.mxu3 }
 0xdb1   : > { %v9530_v37 = vpop.f32.mrf.mxu2 }
 0xdb2   : > { %v2926_v21 = vpack.c.bf16 %v9528_v18, %v9530_v37  ;;  %v9534_v22 = vpop.f32.mrf.mxu1 }
 0xdb3   : > { %v3054_v3 = vsel %vm1118_vm3, %v9534_v22, -inf }
 0xdb8   : > { %v2923_v42 = vpop.f32.mrf.mxu3 }
 0xdb9   : > { %v2902_v32 = vpop.f32.mrf.mxu2 }
 0xdba   : > { %v2983_v35 = vpop.f32.mrf.mxu1 }
 0xdc0   : > { %v9536_v29 = vpop.f32.mrf.mxu3 }
 0xdc1   : > { %v3004_v36 = vpop.f32.mrf.mxu2  ;;  %v3060_v40 = vsel %vm1118_vm3, %v9536_v29, -inf }
 0xdc2   : > { %v3057_v26 = vsel %vm1118_vm3, %v3004_v36, -inf  ;;  %v3050_v27 = vpop.f32.mrf.mxu1  ;;  %3061 = vmax.xlane.f32.xlu0 %v3060_v40 }
 0xdc3   : > { %3058 = vmax.xlane.f32.xlu1 %v3057_v26  ;;  %v3063_v55 = vsel %vm1118_vm3, %v3050_v27, -inf }
 0xdc4   : > { %3064 = vmax.xlane.f32.xlu2 %v3063_v55 }
 0xdc8   : > { %v3029_v41 = vpop.f32.mrf.mxu3 }
 0xdc9   : > { %v3006_v33 = vpop.f32.mrf.mxu2 }
 0xdca   : > { %v3052_v44 = vpop.f32.mrf.mxu1 }
 0xddc   : > { %3144 = vrot.lane.b32.xlu1 %v9383_v23, %s11762_s30  ;;  %3123 = vrot.lane.b32.xlu2 %v9387_v24, %s11762_s30 }
 0xddf   : > { %v2819_v49 = vpop.xlane.xlu2 %2818 }
 0xde0   : > { %8148 = vrcp.f32 %v2819_v49 }
 0xde4   : > { %3165 = vrot.lane.b32.xlu1 %v9369_v4, %s11762_s30 }
 0xde6   : > { %v8149_v52 = vpop.eup %8148 }
 0xde7   : > { %v2833_v53 = vmul.f32 %v8149_v52, %v8147_v14 }
 0xde9   : > { %v2837_v54 = vpack.c.bf16 %v2833_v53, %v2833_v53 }
 0xdeb   : > { %7777 = vmatmul.msk.bf16.vlgmr.msra.gmra.mxu0 %vm1118_vm3, %v2837_v54 }
 0xdec   : > { %3294 = vrot.lane.b32.xlu1 %v9369_v4, %s11761_s10 }
 0xdf4   : > { %3271 = vrot.lane.b32.xlu1 %v9383_v23, %s11761_s10 }
 0xe1e   : > { %3055 = vmax.xlane.f32.xlu1 %v3054_v3 }
 0xe36   : > { %v3059_v45 = vpop.xlane.xlu1 %3058 }
 0xe37   : > { %v3067_v2 = vsub.f32 %v3004_v36, %v3059_v45  ;;  %3384 = vrot.lane.b32.xlu1 %v9387_v24, %s11763_s9  ;;  %v3065_v28 = vpop.xlane.xlu2 %3064  ;;  %v2421_v45 = vadd.f32 %v9507_v63, %v9326_v25 }
 0xe38   : > { %v3069_v12 = vsub.f32 %v3050_v27, %v3065_v28 }
 0xe39   : > { %v3072_v59 = vmul.f32 1.442695, %v3067_v2  ;;  %v2686_v2 = vadd.f32 %v9516_v8, %v2421_v45 }
 0xe3a   : > { %v3076_v46 = vmul.f32 1.442695, %v3069_v12 }
 0xe3b   : > { %8150 = vpow2.f32 %v3072_v59 }
 0xe3c   : > { %8152 = vpow2.f32 %v3076_v46 }
 0xe3f   : > { %v3124_v51 = vpop.permute.xlu2 %3123 }
 0xe40   : > { %v3129_v60 = vsel %vm1175_vm2, %v3124_v51, 0 }
 0xe41   : > { %v8151_v56 = vpop.eup %8150  ;;  %3138 = vmatpush.bf16.msrb.mxu3 %v3129_v60 }
 0xe42   : > { %v8153_v47 = vpop.eup %8152  ;;  %v3081_v43 = vsel %vm1118_vm3, %v8151_v56, 0.0 }
 0xe43   : > { %3082 = vadd.xlane.f32.xlu0 %v3081_v43  ;;  %v3087_v62 = vsel %vm1118_vm3, %v8153_v47, 0.0 }
 0xe44   : > { %3088 = vadd.xlane.f32.xlu2 %v3087_v62 }
 0xe45   : > { %3240 = vmatpush.bf16.xpose.msra.mxu3 %v3231_v61 }
 0xe4e   : > { %v3145_v31 = vpop.permute.xlu1 %3144 }
 0xe4f   : > { %v3150_v1 = vsel %vm1175_vm2, %v3145_v31, 0 }
 0xe50   : > { %3159 = vmatpush.bf16.msra.mxu0 %v3150_v1 }
 0xe56   : > { %v3166_v30 = vpop.permute.xlu1 %3165 }
 0xe57   : > { %v3171_v9 = vsel %vm1175_vm2, %v3166_v30, 0  ;;  %3223 = vrot.lane.b32.xlu0 %v9373_v39, %s11761_s10 }
 0xe58   : > { %3180 = vmatpush.bf16.msra.mxu1 %v3171_v9 }
 0xe5e   : > { %v3295_v11 = vpop.permute.xlu1 %3294 }
 0xe5f   : > { %3248 = vrot.lane.b32.xlu0 %v9387_v24, %s11761_s10  ;;  %v3062_v24 = vpop.xlane.xlu0 %3061  ;;  %v3300_v33 = vsel %vm1041_vm1, %v3295_v11, 0 }
 0xe60   : > { %v3068_v17 = vsub.f32 %v9536_v29, %v3062_v24 }
 0xe62   : > { %v3074_v42 = vmul.f32 1.442695, %v3068_v17 }
 0xe64   : > { %8154 = vpow2.f32 %v3074_v42 }
 0xe66   : > { %v3272_v13 = vpop.permute.xlu1 %3271 }
 0xe67   : > { %v3277_v7 = vsel %vm1041_vm1, %v3272_v13, 0  ;;  %3246 = vrot.lane.b32.xlu0 %v9409_v0, %s11761_s10 }
 0xe68   : > { %3286 = vmatpush.bf16.xpose.msrb.mxu1 %v3277_v7  ;;  %v2858_v14 = vpop.f32.mrf.mxu0 }
 0xe69   : > { %v2925_v57 = vpack.c.bf16 %v9524_v15, %v2858_v14 }
 0xe6a   : > { %v8155_v35 = vpop.eup %8154 }
 0xe6b   : > { %7785 = vmatmul.msk.bf16.vlgmr.msrb.gmra.mxu0 %vm1041_vm1, %v2925_v57  ;;  %v3084_v36 = vsel %vm1118_vm3, %v8155_v35, 0.0 }
 0xe6f   : > { %3292 = vrot.lane.b32.xlu0 %v9414_v48, %s11761_s10 }
 0xe70   : > { %v2860_v39 = vpop.f32.mrf.mxu0 }
 0xe71   : > { %v7991_v39 = vld [vmem:[%s11661_s14 + $0x10] sm:$0xff] }
 0xe7b   : > { %7786 = vmatmul.msk.bf16.gmra.mxu0 %vm1041_vm1, %v2926_v21 }
 0xe91   : > { %v3056_v0 = vpop.xlane.xlu1 %3055 }
 0xe92   : > { %v3066_v32 = vsub.f32 %v9534_v22, %v3056_v0 }
 0xe94   : > { %v3070_v15 = vmul.f32 1.442695, %v3066_v32 }
 0xe96   : > { %8156 = vpow2.f32 %v3070_v15 }
 0xe99   : > { %3085 = vadd.xlane.f32.xlu0 %v3084_v36 }
 0xe9c   : > { %v8157_v48 = vpop.eup %8156 }
 0xe9d   : > { %v3078_v40 = vsel %vm1118_vm3, %v8157_v48, 0.0 }
 0xe9e   : > { %3079 = vadd.xlane.f32.xlu2 %v3078_v40 }
 0xea9   : > { %v3385_v27 = vpop.permute.xlu1 %3384 }
 0xead   : > { %3269 = vrot.lane.b32.xlu0 %v9393_v34, %s11761_s10  ;;  %v3390_v34 = vsel %vm1175_vm2, %v3385_v27, 0 }
 0xeb5   : > { %3102 = vrot.lane.b32.xlu0 %v9379_v20, %s11762_s30 }
 0xeb6   : > { %v3083_v18 = vpop.xlane.xlu0 %3082 }
 0xeb7   : > { %8158 = vrcp.f32 %v3083_v18  ;;  %v3089_v37 = vpop.xlane.xlu2 %3088 }
 0xeb8   : > { %8160 = vrcp.f32 %v3089_v37 }
 0xebd   : > { %v8159_v21 = vpop.eup %8158 }
 0xebe   : > { %v8161_v22 = vpop.eup %8160  ;;  %v3095_v29 = vmul.f32 %v8159_v21, %v8151_v56 }
 0xebf   : > { %v3097_v26 = vmul.f32 %v8161_v22, %v8153_v47 }
 0xec0   : > { %v3099_v55 = vpack.c.bf16 %v3095_v29, %v3095_v29 }
 0xec1   : > { %v3101_v41 = vpack.c.bf16 %v3097_v26, %v3097_v26 }
 0xec2   : > { %7792 = vmatmul.msk.bf16.vlgmr.msrb.gmra.mxu3 %vm1118_vm3, %v3099_v55 }
 0xec3   : > { %3309 = vmatpush.bf16.xpose.msrb.mxu3 %v3300_v33  ;;  %7794 = vmatmul.msk.bf16.vlgmr.msra.gmra.mxu1 %vm1118_vm3, %v3101_v41 }
 0xec4   : > { %3399 = vmatpush.bf16.msra.mxu1 %v3390_v34 }
 0xec9   : > { %v3224_v44 = vpop.permute.xlu0 %3223 }
 0xed1   : > { %v3249_v49 = vpop.permute.xlu0 %3248 }
 0xed2   : > { %v3254_v52 = vsel %vm1041_vm1, %v3249_v49, 0  ;;  %7801 = vmatmul.msk.bf16.vlgmr.msra.gmra.mxu3 %vm1041_vm1, %v3224_v44 }
 0xed3   : > { %3263 = vmatpush.bf16.xpose.msrb.mxu0 %v3254_v52 }
 0xed9   : > { %v3247_v53 = vpop.permute.xlu0 %3246 }
 0xee1   : > { %v3293_v54 = vpop.permute.xlu0 %3292 }
 0xee2   : > { %7804 = vmatmul.msk.bf16.vlgmr.msrb.gmra.mxu3 %vm1041_vm1, %v3293_v54 }
 0xee8   : > { %v2948_v3 = vpop.f32.mrf.mxu0 }
 0xee9   : > { %v9597_v58 = vadd.f32 %v2948_v3, %v9513_v5 }
 0xef0   : > { %v2950_v28 = vpop.f32.mrf.mxu0 }
 0xef1   : > { %v9602_v12 = vadd.f32 %v2950_v28, %v2686_v2 }
 0xef8   : > { %v2953_v59 = vpop.f32.mrf.mxu0 }
 0xef9   : > { %v9605_v46 = vadd.f32 %v2953_v59, %v9520_v10 }
 0xf00   : > { %v9613_v57 = vpop.f32.mrf.mxu0 }
 0xf0c   : > { %v3086_v50 = vpop.xlane.xlu0 %3085 }
 0xf0d   : > { %8162 = vrcp.f32 %v3086_v50 }
 0xf11   : > { %v3080_v5 = vpop.xlane.xlu2 %3079 }
 0xf12   : > { %8164 = vrcp.f32 %v3080_v5 }
 0xf13   : > { %v8163_v51 = vpop.eup %8162 }
 0xf14   : > { %v3096_v60 = vmul.f32 %v8163_v51, %v8155_v35 }
 0xf16   : > { %v3100_v56 = vpack.c.bf16 %v3096_v60, %v3096_v60 }
 0xf18   : > { %7793 = vmatmul.msk.bf16.vlgmr.msra.gmra.mxu0 %vm1118_vm3, %v3100_v56  ;;  %v8165_v25 = vpop.eup %8164 }
 0xf19   : > { %v3094_v8 = vmul.f32 %v8165_v25, %v8157_v48 }
 0xf1b   : > { %v3098_v10 = vpack.c.bf16 %v3094_v8, %v3094_v8 }
 0xf1f   : > { %v3270_v61 = vpop.permute.xlu0 %3269 }
 0xf20   : > { %7803 = vmatmul.msk.bf16.vlgmr.msrb.gmra.mxu1 %vm1041_vm1, %v3270_v61 }
 0xf27   : > { %v3103_v47 = vpop.permute.xlu0 %3102 }
 0xf28   : > { %v3108_v43 = vsel %vm1175_vm2, %v3103_v47, 0  ;;  %7802 = vmatmul.msk.bf16.vlgmr.msrb.gmra.mxu0 %vm1041_vm1, %v3247_v53 }
 0xf29   : > { %3117 = vmatpush.bf16.msrb.mxu2 %v3108_v43 }
 0xf2c   : > { %7791 = vmatmul.msk.bf16.vlgmr.msrb.gmra.mxu2 %vm1118_vm3, %v3098_v10 }
 0xf2d   : > { %3207 = vmatpush.bf16.msra.mxu2 %v7991_v39 }
 0xf40   : > { %v3182_v62 = vpop.f32.mrf.mxu1 }
 0xf45   : > { %v3140_v31 = vpop.f32.mrf.mxu3 }
 0xf48   : > { %v3184_v1 = vpop.f32.mrf.mxu1 }
 0xf4d   : > { %v3142_v30 = vpop.f32.mrf.mxu3 }
 0xf55   : > { %v3242_v9 = vpop.f32.mrf.mxu3 }
 0xf56   : > { %v3315_v11 = vsel %vm1118_vm3, %v3242_v9, -inf }
 0xf57   : > { %3316 = vmax.xlane.f32.xlu2 %v3315_v11 }
 0xf5d   : > { %v3244_v13 = vpop.f32.mrf.mxu3 }
 0xf65   : > { %v3311_v7 = vpop.f32.mrf.mxu3 }
 0xf66   : > { %v3324_v36 = vsel %vm1118_vm3, %v3311_v7, -inf }
 0xf6d   : > { %v3313_v14 = vpop.f32.mrf.mxu3 }
 0xf95   : > { %v3161_v24 = vpop.f32.mrf.mxu0 }
 0xf96   : > { %v3187_v21 = vpack.c.bf16 %v3182_v62, %v3161_v24 }
 0xf9d   : > { %v3163_v17 = vpop.f32.mrf.mxu0  ;;  %v3288_v42 = vpop.f32.mrf.mxu1 }
 0xf9e   : > { %v3321_v0 = vsel %vm1118_vm3, %v3288_v42, -inf }
 0xf9f   : > { %3322 = vmax.xlane.f32.xlu2 %v3321_v0 }
 0xfa5   : > { %v3265_v32 = vpop.f32.mrf.mxu0  ;;  %v3290_v15 = vpop.f32.mrf.mxu1 }
 0xfa6   : > { %v3318_v35 = vsel %vm1118_vm3, %v3265_v32, -inf  ;;  %v7992_v15 = vld [vmem:[%s11661_s14 + $0x18] sm:$0xff] }
 0xfa7   : > { %3319 = vmax.xlane.f32.xlu0 %v3318_v35  ;;  %3325 = vmax.xlane.f32.xlu2 %v3324_v36 }
 0xfad   : > { %v3267_v48 = vpop.f32.mrf.mxu0 }
 0xfaf   : > { %v3119_v40 = vpop.f32.mrf.mxu2 }
 0xfb0   : > { %v3186_v18 = vpack.c.bf16 %v3140_v31, %v3119_v40 }
 0xfb2   : > { %7799 = vmatmul.msk.bf16.vlgmr.msra.gmra.mxu2 %vm1041_vm1, %v3186_v18 }
 0xfb7   : > { %v3121_v37 = vpop.f32.mrf.mxu2 }
 0xfbf   : > { %3363 = vrot.lane.b32.xlu2 %v9379_v20, %s11763_s9 }
 0xfc2   : > { %7800 = vmatmul.msk.bf16.gmra.mxu2 %vm1041_vm1, %v3187_v21 }
 0xfca   : > { %v3317_v22 = vpop.xlane.xlu2 %3316 }
 0xfcb   : > { %v3327_v29 = vsub.f32 %v3242_v9, %v3317_v22 }
 0xfcd   : > { %v3331_v26 = vmul.f32 1.442695, %v3327_v29 }
 0xfcf   : > { %8166 = vpow2.f32 %v3331_v26 }
 0xfd5   : > { %v8167_v27 = vpop.eup %8166 }
 0xfd6   : > { %v3339_v55 = vsel %vm1118_vm3, %v8167_v27, 0.0 }
 0xfe8   : > { %3340 = vadd.xlane.f32.xlu2 %v3339_v55 }
0x1000   : > { %3405 = vrot.lane.b32.xlu2 %v9383_v23, %s11763_s9 }
0x1012   : > { %v3323_v41 = vpop.xlane.xlu2 %3322 }
0x1013   : > { %v3329_v33 = vsub.f32 %v3288_v42, %v3323_v41 }
0x1015   : > { %v3335_v34 = vmul.f32 1.442695, %v3329_v33 }
0x1017   : > { %8168 = vpow2.f32 %v3335_v34 }
0x101a   : > { %v3320_v44 = vpop.xlane.xlu0 %3319  ;;  %v3326_v20 = vpop.xlane.xlu2 %3325 }
0x101b   : > { %v3328_v49 = vsub.f32 %v3265_v32, %v3320_v44  ;;  %v3330_v52 = vsub.f32 %v3311_v7, %v3326_v20  ;;  %v2423_v20 = vadd.f32 %v9507_v63, %v9341_v38 }
0x101d   : > { %v8169_v53 = vpop.eup %8168  ;;  %v3333_v54 = vmul.f32 1.442695, %v3328_v49  ;;  %v3337_v3 = vmul.f32 1.442695, %v3330_v52  ;;  %v2688_v52 = vadd.f32 %v9526_v16, %v2423_v20  ;;  %v8000_v20 = vld [vmem:[%s11668_s21 + $0x18] sm:$0xff] }
0x101e   : > { %v3345_v45 = vsel %vm1118_vm3, %v8169_v53, 0.0 }
0x101f   : > { %8170 = vpow2.f32 %v3333_v54  ;;  %3346 = vadd.xlane.f32.xlu0 %v3345_v45  ;;  %v2961_v54 = vadd.f32 %v9613_v57, %v2688_v52  ;;  %v9694_v52 = vld [vmem:[%s11666_s19 + $0x8] sm:$0xff] }
0x1020   : > { %8172 = vpow2.f32 %v3337_v3 }
0x1022   : > { %v3364_v2 = vpop.permute.xlu2 %3363 }
0x1023   : > { %v3369_v28 = vsel %vm1175_vm2, %v3364_v2, 0 }
0x1024   : > { %3378 = vmatpush.bf16.msra.mxu0 %v3369_v28 }
0x1025   : > { %v8171_v23 = vpop.eup %8170 }
0x1026   : > { %v8173_v59 = vpop.eup %8172  ;;  %v3342_v50 = vsel %vm1118_vm3, %v8171_v23, 0.0 }
0x1027   : > { %3343 = vadd.xlane.f32.xlu1 %v3342_v50  ;;  %v3348_v51 = vsel %vm1118_vm3, %v8173_v59, 0.0 }
0x1028   : > { %3349 = vadd.xlane.f32.xlu0 %v3348_v51  ;;  %3468 = vmatpush.bf16.msrb.mxu0 %v7992_v15 }
0x1035   : > { %v3209_v60 = vpop.f32.mrf.mxu2 }
0x1036   : > { %v3219_v56 = vadd.f32 %v3209_v60, %v9597_v58 }
0x103d   : > { %v3211_v5 = vpop.f32.mrf.mxu2 }
0x103e   : > { %v3220_v61 = vadd.f32 %v3211_v5, %v9602_v12 }
0x1040   : > { %3426 = vrot.lane.b32.xlu1 %v9369_v4, %s11763_s9 }
0x1045   : > { %v3214_v25 = vpop.f32.mrf.mxu2 }
0x1046   : > { %v3221_v8 = vadd.f32 %v3214_v25, %v9605_v46 }
0x104d   : > { %v3216_v35 = vpop.f32.mrf.mxu2 }
0x104e   : > { %v3222_v3 = vadd.f32 %v3216_v35, %v2961_v54 }
0x105b   : > { %v3341_v47 = vpop.xlane.xlu2 %3340 }
0x105c   : > { %8174 = vrcp.f32 %v3341_v47 }
0x1062   : > { %v8175_v43 = vpop.eup %8174 }
0x1063   : > { %v3355_v10 = vmul.f32 %v8175_v43, %v8167_v27  ;;  %v3406_v62 = vpop.permute.xlu2 %3405 }
0x1064   : > { %v3411_v31 = vsel %vm1175_vm2, %v3406_v62, 0 }
0x1065   : > { %v3359_v1 = vpack.c.bf16 %v3355_v10, %v3355_v10  ;;  %3420 = vmatpush.bf16.msrb.mxu2 %v3411_v31 }
0x1067   : > { %7805 = vmatmul.msk.bf16.vlgmr.msra.gmra.mxu0 %vm1118_vm3, %v3359_v1 }
0x1068   : > { %4237 = vmatpush.bf16.msra.mxu0 %v9694_v52 }
0x1069   : > { %3749 = vmatpush.bf16.msra.mxu2 %v8000_v20 }
0x1092   : > { %v3347_v58 = vpop.xlane.xlu0 %3346 }
0x1093   : > { %8176 = vrcp.f32 %v3347_v58 }
0x1099   : > { %v8177_v12 = vpop.eup %8176 }
0x109a   : > { %v3357_v30 = vmul.f32 %v8177_v12, %v8169_v53  ;;  %v3344_v9 = vpop.xlane.xlu1 %3343 }
0x109b   : > { %8178 = vrcp.f32 %v3344_v9  ;;  %v3350_v7 = vpop.xlane.xlu0 %3349 }
0x109c   : > { %v3361_v4 = vpack.c.bf16 %v3357_v30, %v3357_v30  ;;  %8180 = vrcp.f32 %v3350_v7 }
0x109e   : > { %7807 = vmatmul.msk.bf16.vlgmr.msrb.gmra.mxu2 %vm1118_vm3, %v3361_v4 }
0x10a1   : > { %v8179_v46 = vpop.eup %8178 }
0x10a2   : > { %v3356_v11 = vmul.f32 %v8179_v46, %v8171_v23  ;;  %v8181_v14 = vpop.eup %8180 }
0x10a3   : > { %v3358_v39 = vmul.f32 %v8181_v14, %v8173_v59 }
0x10a4   : > { %v3360_v13 = vpack.c.bf16 %v3356_v11, %v3356_v11 }
0x10a5   : > { %v3362_v42 = vpack.c.bf16 %v3358_v39, %v3358_v39 }
0x10a6   : > { %7806 = vmatmul.msk.bf16.vlgmr.msra.gmra.mxu1 %vm1118_vm3, %v3360_v13 }
0x10b2   : > { %v3427_v24 = vpop.permute.xlu1 %3426 }
0x10b3   : > { %v3432_v17 = vsel %vm1175_vm2, %v3427_v24, 0 }
0x10b4   : > { %3441 = vmatpush.bf16.msra.mxu3 %v3432_v17 }
0x10b7   : > { %7808 = vmatmul.msk.bf16.vlgmr.msra.gmra.mxu3 %vm1118_vm3, %v3362_v42 }
0x10b8   : > { %3802 = vmatpush.bf16.msrb.mxu3 %v9694_v52 }
0x10e4   : > { %v3380_v0 = vpop.f32.mrf.mxu0 }
0x10ec   : > { %v3382_v32 = vpop.f32.mrf.mxu0 }
0x1121   : > { %v3422_v36 = vpop.f32.mrf.mxu2 }
0x1123   : > { %v3401_v48 = vpop.f32.mrf.mxu1 }
0x1124   : > { %v3447_v40 = vpack.c.bf16 %v3401_v48, %v3380_v0 }
0x1126   : > { %7813 = vmatmul.msk.bf16.vlgmr.msrb.gmra.mxu0 %vm1041_vm1, %v3447_v40 }
0x1129   : > { %v3424_v18 = vpop.f32.mrf.mxu2 }
0x112b   : > { %v3403_v37 = vpop.f32.mrf.mxu1 }
0x113a   : > { %v3443_v21 = vpop.f32.mrf.mxu3 }
0x113b   : > { %v3448_v22 = vpack.c.bf16 %v3443_v21, %v3422_v36 }
0x113d   : > { %7814 = vmatmul.msk.bf16.gmra.mxu0 %vm1041_vm1, %v3448_v22 }
0x1142   : > { %v3445_v29 = vpop.f32.mrf.mxu3 }
0x11a3   : > { %v3470_v26 = vpop.f32.mrf.mxu0 }
0x11a4   : > { %v3480_v27 = vadd.f32 %v3470_v26, %v3219_v56 }
0x11a6   : > { %v3484_v55 = vsel %vm950_vm0, %v3480_v27, 0.0 }
0x11a7   : > { %3485 = vadd.xlane.f32.xlu0 %v3484_v55 }
0x11ab   : > { %v3472_v41 = vpop.f32.mrf.mxu0 }
0x11ac   : > { %v3481_v33 = vadd.f32 %v3472_v41, %v3220_v61 }
0x11ae   : > { %v3487_v34 = vsel %vm950_vm0, %v3481_v33, 0.0 }
0x11af   : > { %3488 = vadd.xlane.f32.xlu2 %v3487_v34 }
0x11ba   : > { %v3475_v44 = vpop.f32.mrf.mxu0 }
0x11bb   : > { %v3482_v49 = vadd.f32 %v3475_v44, %v3221_v8  ;;  %v7996_v44 = vld [vmem:[%s11665_s18 + $0x18] sm:$0xff] }
0x11bc   : > { %3690 = vmatpush.bf16.msrb.mxu1 %v7996_v44 }
0x11bd   : > { %v3490_v53 = vsel %vm950_vm0, %v3482_v49, 0.0 }
0x11be   : > { %3491 = vadd.xlane.f32.xlu1 %v3490_v53 }
0x11c2   : > { %v3477_v45 = vpop.f32.mrf.mxu0 }
0x11c3   : > { %v3483_v2 = vadd.f32 %v3477_v45, %v3222_v3  ;;  %v7995_v45 = vld [vmem:[%s11665_s18 + $0x10] sm:$0xff] }
0x11c4   : > { %3691 = vmatpush.bf16.msrb.mxu1 %v7995_v45 }
0x11c5   : > { %v3493_v28 = vsel %vm950_vm0, %v3483_v2, 0.0 }
0x11c6   : > { %3494 = vadd.xlane.f32.xlu0 %v3493_v28 }
0x121a   : > { %v3486_v23 = vpop.xlane.xlu0 %3485 }
0x121b   : > { %v3496_v59 = vmul.f32 %v3486_v23, %v9245_v6 }
0x121d   : > { %v3500_v50 = vrot.slane %v3496_v59, 4 }
0x121f   : > { %v3501_v51 = vadd.f32 %v3500_v50, %v3496_v59  ;;  %v9708_v59 = vld [vmem:[%s11666_s19] sm:$0xff] }
0x1220   : > { %3803 = vmatpush.bf16.msrb.mxu3 %v9708_v59  ;;  %4238 = vmatpush.bf16.msra.mxu0 %v9708_v59 }
0x1221   : > { %v3502_v38 = vrot.slane %v3501_v51, 2 }
0x1222   : > { %v3489_v63 = vpop.xlane.xlu2 %3488 }
0x1223   : > { %v3503_v60 = vadd.f32 %v3502_v38, %v3501_v51  ;;  %v3497_v16 = vmul.f32 %v3489_v63, %v9245_v6  ;;  %v7994_v38 = vld [vmem:[%s11665_s18 + $0x8] sm:$0xff] }
0x1224   : > { %v7998_v63 = vld [vmem:[%s11668_s21 + $0x8] sm:$0xff]  ;;  %5121 = vmatpush.bf16.msrb.mxu0 %v9694_v52  ;;  %3692 = vmatpush.bf16.msrb.mxu1 %v7994_v38 }
0x1225   : > { %v3504_v56 = vrot.slane %v3503_v60, 1  ;;  %v3506_v5 = vrot.slane %v3497_v16, 4 }
0x1227   : > { %v3505_v61 = vadd.f32 %v3504_v56, %v3503_v60  ;;  %v3507_v57 = vadd.f32 %v3506_v5, %v3497_v16  ;;  %v8731_v56 = vmov 0  }
0x1228   : > { %3804 = vmatmul.bf16.vlgmr.msrb.gmra.mxu3 %v8731_v56  ;;  %5122 = vmatpush.bf16.msrb.mxu0 %v9708_v59 }
0x1229   : > { %v3508_v25 = vrot.slane %v3507_v57, 2  ;;  %v3524_v8 = vmul.f32 %v3505_v61, %v9249_v19 }
0x122b   : > { %v3509_v47 = vadd.f32 %v3508_v25, %v3507_v57  ;;  %v9659_v43 = vsub.f32 %v3480_v27, %v3524_v8  ;;  %v7993_v57 = vld [vmem:[%s11665_s18] sm:$0xff] }
0x122c   : > { %v7997_v25 = vld [vmem:[%s11668_s21] sm:$0xff]  ;;  %3693 = vmatpush.bf16.msrb.mxu1 %v7993_v57 }
0x122d   : > { %v3510_v10 = vrot.slane %v3509_v47, 1  ;;  %v3532_v62 = vmul.f32 %v9659_v43, %v9659_v43 }
0x122f   : > { %v3511_v31 = vadd.f32 %v3510_v10, %v3509_v47  ;;  %v3536_v1 = vsel %vm950_vm0, %v3532_v62, 0.0 }
0x1230   : > { %3537 = vadd.xlane.f32.xlu0 %v3536_v1 }
0x1231   : > { %v3492_v58 = vpop.xlane.xlu1 %3491  ;;  %v3525_v12 = vmul.f32 %v3511_v31, %v9249_v19  ;;  %v9732_v31 = vld [vmem:[%s11669_s22 + $0x8] sm:$0xff] }
0x1232   : > { %v3498_v30 = vmul.f32 %v3492_v58, %v9245_v6  ;;  %3843 = vmatpush.bf16.msra.mxu3 %v9732_v31  ;;  %4290 = vmatpush.bf16.msra.mxu1 %v9732_v31 }
0x1233   : > { %v9666_v9 = vsub.f32 %v3481_v33, %v3525_v12 }
0x1234   : > { %v3512_v4 = vrot.slane %v3498_v30, 4 }
0x1235   : > { %v3533_v46 = vmul.f32 %v9666_v9, %v9666_v9 }
0x1236   : > { %v3513_v11 = vadd.f32 %v3512_v4, %v3498_v30 }
0x1237   : > { %v3539_v13 = vsel %vm950_vm0, %v3533_v46, 0.0  ;;  %v9741_v46 = vld [vmem:[%s11669_s22] sm:$0xff] }
0x1238   : > { %v3514_v7 = vrot.slane %v3513_v11, 2  ;;  %3540 = vadd.xlane.f32.xlu0 %v3539_v13  ;;  %3844 = vmatpush.bf16.msra.mxu3 %v9741_v46 }
0x1239   : > { %v3495_v14 = vpop.xlane.xlu0 %3494  ;;  %4291 = vmatpush.bf16.msra.mxu1 %v9741_v46 }
0x123a   : > { %v3515_v39 = vadd.f32 %v3514_v7, %v3513_v11  ;;  %v3499_v24 = vmul.f32 %v3495_v14, %v9245_v6 }
0x123b   : > { %3845 = vmatmul.bf16.vlgmr.msra.gmra.mxu3 %v8731_v56 }
0x123c   : > { %v3516_v17 = vrot.slane %v3515_v39, 1  ;;  %v3518_v42 = vrot.slane %v3499_v24, 4  ;;  %4732 = vmatpush.bf16.msrb.mxu3 %v9732_v31 }
0x123e   : > { %v3517_v0 = vadd.f32 %v3516_v17, %v3515_v39  ;;  %v3519_v32 = vadd.f32 %v3518_v42, %v3499_v24 }
0x1240   : > { %v3520_v15 = vrot.slane %v3519_v32, 2  ;;  %v3526_v35 = vmul.f32 %v3517_v0, %v9249_v19  ;;  %4733 = vmatpush.bf16.msrb.mxu3 %v9741_v46 }
0x1242   : > { %v3521_v36 = vadd.f32 %v3520_v15, %v3519_v32  ;;  %v9673_v48 = vsub.f32 %v3482_v49, %v3526_v35 }
0x1244   : > { %v3522_v40 = vrot.slane %v3521_v36, 1  ;;  %v3534_v18 = vmul.f32 %v9673_v48, %v9673_v48  ;;  %5616 = vmatpush.bf16.msra.mxu3 %v9732_v31 }
0x1246   : > { %v3523_v37 = vadd.f32 %v3522_v40, %v3521_v36  ;;  %v3542_v21 = vsel %vm950_vm0, %v3534_v18, 0.0 }
0x1247   : > { %3543 = vadd.xlane.f32.xlu0 %v3542_v21 }
0x1248   : > { %v3527_v22 = vmul.f32 %v3523_v37, %v9249_v19  ;;  %5617 = vmatpush.bf16.msra.mxu3 %v9741_v46 }
0x124a   : > { %v9679_v29 = vsub.f32 %v3483_v2, %v3527_v22  ;;  %v7999_v2 = vld [vmem:[%s11668_s21 + $0x10] sm:$0xff] }
0x124b   : > { %3750 = vmatpush.bf16.msra.mxu2 %v7999_v2  ;;  %v8036_v2 = vld [vmem:[%s11664_s17] ss:$0 sm:$0xff] }
0x124c   : > { %v3535_v26 = vmul.f32 %v9679_v29, %v9679_v29 }
0x124e   : > { %v3545_v27 = vsel %vm950_vm0, %v3535_v26, 0.0 }
0x124f   : > { %3546 = vadd.xlane.f32.xlu0 %v3545_v27  ;;  %3751 = vmatpush.bf16.msra.mxu2 %v7998_v63 }
0x1253   : > { %3752 = vmatpush.bf16.msra.mxu2 %v7997_v25 }
0x1257   : > { %4679 = vmatpush.bf16.msrb.mxu2 %v9694_v52 }
0x125b   : > { %4680 = vmatpush.bf16.msrb.mxu2 %v9708_v59 }
0x12a3   : > { %v3538_v55 = vpop.xlane.xlu0 %3537 }
0x12a4   : > { %v3548_v41 = vmul.f32 %v3538_v55, %v9245_v6 }
0x12a6   : > { %v3552_v33 = vrot.slane %v3548_v41, 4 }
0x12a8   : > { %v3553_v34 = vadd.f32 %v3552_v33, %v3548_v41  ;;  %v8035_v33 = vld [vmem:[%s11663_s16] ss:$0 sm:$0xff] }
0x12aa   : > { %v3554_v49 = vrot.slane %v3553_v34, 2 }
0x12ab   : > { %v3541_v53 = vpop.xlane.xlu0 %3540 }
0x12ac   : > { %v3555_v54 = vadd.f32 %v3554_v49, %v3553_v34  ;;  %v3549_v3 = vmul.f32 %v3541_v53, %v9245_v6 }
0x12ae   : > { %v3556_v28 = vrot.slane %v3555_v54, 1  ;;  %v3558_v23 = vrot.slane %v3549_v3, 4 }
0x12b0   : > { %v3557_v50 = vadd.f32 %v3556_v28, %v3555_v54  ;;  %v3559_v51 = vadd.f32 %v3558_v23, %v3549_v3 }
0x12b2   : > { %v3576_v60 = vmul.f32 %v3557_v50, %v9249_v19  ;;  %v3560_v16 = vrot.slane %v3559_v51, 2 }
0x12b4   : > { %v3580_v5 = vadd.f32 1e-12, %v3576_v60  ;;  %v3561_v61 = vadd.f32 %v3560_v16, %v3559_v51 }
0x12b6   : > { %8182 = vrsqrt.f32 %v3580_v5  ;;  %v3562_v8 = vrot.slane %v3561_v61, 1  ;;  %vm3590_vm2 = vweird.f32 %v3580_v5 }
0x12b8   : > { %v3563_v47 = vadd.f32 %v3562_v8, %v3561_v61 }
0x12ba   : > { %v3577_v10 = vmul.f32 %v3563_v47, %v9249_v19  ;;  %v3544_v62 = vpop.xlane.xlu0 %3543 }
0x12bb   : > { %v3550_v1 = vmul.f32 %v3544_v62, %v9245_v6 }
0x12bc   : > { %v8183_v58 = vpop.eup %8182  ;;  %v3581_v12 = vadd.f32 1e-12, %v3577_v10 }
0x12bd   : > { %v3585_v30 = vmul.f32 %v8183_v58, %v3580_v5  ;;  %v3564_v4 = vrot.slane %v3550_v1, 4  ;;  %vm3591_vm1 = vweird.f32 %v8183_v58 }
0x12be   : > { %8184 = vrsqrt.f32 %v3581_v12  ;;  %vm3592_vm3 = vmor %vm3590_vm2, %vm3591_vm1  ;;  %vm3600_vm7 = vweird.f32 %v3581_v12 }
0x12bf   : > { %v3586_v11 = vmul.f32 %v8183_v58, %v3585_v30  ;;  %v3565_v13 = vadd.f32 %v3564_v4, %v3550_v1 }
0x12c1   : > { %v3587_v7 = vmul.f32 0.5, %v3586_v11  ;;  %v3566_v14 = vrot.slane %v3565_v13, 2 }
0x12c2   : > { %v3547_v39 = vpop.xlane.xlu0 %3546 }
0x12c3   : > { %v3588_v24 = vsub.f32 1.5, %v3587_v7  ;;  %v3567_v17 = vadd.f32 %v3566_v14, %v3565_v13  ;;  %v3551_v42 = vmul.f32 %v3547_v39, %v9245_v6 }
0x12c4   : > { %v8185_v0 = vpop.eup %8184 }
0x12c5   : > { %v3589_v32 = vmul.f32 %v8183_v58, %v3588_v24  ;;  %v3595_v15 = vmul.f32 %v8185_v0, %v3581_v12  ;;  %v3568_v35 = vrot.slane %v3567_v17, 1  ;;  %v3570_v36 = vrot.slane %v3551_v42, 4 }
0x12c6   : > { %vm3601_vm6 = vweird.f32 %v8185_v0 }
0x12c7   : > { %v3596_v40 = vmul.f32 %v8185_v0, %v3595_v15  ;;  %v3569_v18 = vadd.f32 %v3568_v35, %v3567_v17  ;;  %v3571_v37 = vadd.f32 %v3570_v36, %v3551_v42  ;;  %v3593_v21 = vsel %vm3592_vm3, %v8183_v58, %v3589_v32  ;;  %vm3602_vm8 = vmor %vm3600_vm7, %vm3601_vm6 }
0x12c8   : > { %v3624_v34 = vmul.f32 %v3593_v21, %v9659_v43 }
0x12c9   : > { %v3597_v22 = vmul.f32 0.5, %v3596_v40  ;;  %v3578_v26 = vmul.f32 %v3569_v18, %v9249_v19  ;;  %v3572_v27 = vrot.slane %v3571_v37, 2 }
0x12ca   : > { %v3631_v54 = vmul.f32 %v8035_v33, %v3624_v34 }
0x12cb   : > { %v3598_v55 = vsub.f32 1.5, %v3597_v22  ;;  %v3582_v41 = vadd.f32 1e-12, %v3578_v26  ;;  %v3573_v44 = vadd.f32 %v3572_v27, %v3571_v37 }
0x12cc   : > { %v9760_v38 = vadd.f32 %v8036_v2, %v3631_v54 }
0x12cd   : > { %v3599_v20 = vmul.f32 %v8185_v0, %v3598_v55  ;;  %8186 = vrsqrt.f32 %v3582_v41  ;;  %v3574_v49 = vrot.slane %v3573_v44, 1  ;;  %vm3610_vm10 = vweird.f32 %v3582_v41 }
0x12ce   : > { %11764 = vst [vmem:[#allocation7_spill] sm:$0xff] %v9760_v38 }
0x12cf   : > { %v3603_v53 = vsel %vm3602_vm8, %v8185_v0, %v3599_v20  ;;  %v3575_v45 = vadd.f32 %v3574_v49, %v3573_v44  ;;  %v8038_v0 = vld [vmem:[%s11670_s23] ss:$0 sm:$0xff] }
0x12d0   : > { %v3625_v3 = vmul.f32 %v3603_v53, %v9666_v9 }
0x12d1   : > { %v3579_v23 = vmul.f32 %v3575_v45, %v9249_v19 }
0x12d2   : > { %v3632_v28 = vmul.f32 %v8035_v33, %v3625_v3 }
0x12d3   : > { %v8187_v50 = vpop.eup %8186  ;;  %v3583_v51 = vadd.f32 1e-12, %v3579_v23 }
0x12d4   : > { %v3605_v43 = vmul.f32 %v8187_v50, %v3582_v41  ;;  %v9762_v63 = vadd.f32 %v8036_v2, %v3632_v28  ;;  %vm3611_vm9 = vweird.f32 %v8187_v50 }
0x12d5   : > { %8188 = vrsqrt.f32 %v3583_v51  ;;  %vm3612_vm11 = vmor %vm3610_vm10, %vm3611_vm9  ;;  %vm3620_vm13 = vweird.f32 %v3583_v51 }
0x12d6   : > { %11765 = vst [vmem:[#allocation8_spill] sm:$0xff] %v9762_v63  ;;  %v3606_v60 = vmul.f32 %v8187_v50, %v3605_v43  ;;  %v3642_v9 = vpack.c.bf16 %v9762_v63, %v9760_v38 }
0x12d8   : > { %v3607_v16 = vmul.f32 0.5, %v3606_v60  ;;  %7831 = vmatmul.msk.bf16.vlgmr.msrb.gmra.mxu1 %vm950_vm0, %v3642_v9  ;;  %7849 = vmatmul.msk.bf16.vlgmr.msra.gmra.mxu2 %vm950_vm0, %v3642_v9 }
0x12d9   : > { %5174 = vmatpush.bf16.msrb.mxu1 %v9732_v31  ;;  %5563 = vmatpush.bf16.msra.mxu2 %v9694_v52 }
0x12da   : > { %v3608_v56 = vsub.f32 1.5, %v3607_v16 }
0x12db   : > { %v8189_v5 = vpop.eup %8188 }
0x12dc   : > { %v3615_v61 = vmul.f32 %v8189_v5, %v3583_v51  ;;  %v3609_v57 = vmul.f32 %v8187_v50, %v3608_v56  ;;  %vm3621_vm12 = vweird.f32 %v8189_v5 }
0x12dd   : > { %5175 = vmatpush.bf16.msrb.mxu1 %v9741_v46  ;;  %5564 = vmatpush.bf16.msra.mxu2 %v9708_v59  ;;  %vm3622_vm14 = vmor %vm3620_vm13, %vm3621_vm12 }
0x12de   : > { %v3616_v25 = vmul.f32 %v8189_v5, %v3615_v61  ;;  %v3613_v47 = vsel %vm3612_vm11, %v8187_v50, %v3609_v57 }
0x12df   : > { %v3626_v62 = vmul.f32 %v3613_v47, %v9673_v48  ;;  %v3805_v48 = vpop.f32.mrf.mxu3 }
0x12e0   : > { %v3617_v8 = vmul.f32 0.5, %v3616_v25  ;;  %v3810_v21 = vrot.slane %v3805_v48, 1  ;;  %v3812_v16 = vrot.slane %v3805_v48, 3 }
0x12e1   : > { %v3633_v30 = vmul.f32 %v8035_v33, %v3626_v62 }
0x12e2   : > { %v3618_v10 = vsub.f32 1.5, %v3617_v8 }
0x12e3   : > { %v9774_v11 = vadd.f32 %v8036_v2, %v3633_v30 }
0x12e4   : > { %v3619_v1 = vmul.f32 %v8189_v5, %v3618_v10 }
0x12e5   : > { %11766 = vst [vmem:[#allocation9_spill] sm:$0xff] %v9774_v11 }
0x12e6   : > { %v3623_v58 = vsel %vm3622_vm14, %v8189_v5, %v3619_v1 }
0x12e7   : > { %v3627_v12 = vmul.f32 %v3623_v58, %v9679_v29  ;;  %v3807_v14 = vpop.f32.mrf.mxu3  ;;  %v8037_v29 = vld [vmem:[%s11667_s20] ss:$0 sm:$0xff] }
0x12e9   : > { %v3634_v4 = vmul.f32 %v8035_v33, %v3627_v12 }
0x12eb   : > { %v9776_v13 = vadd.f32 %v8036_v2, %v3634_v4  ;;  %v3811_v2 = vrot.slane %v3805_v48, 2 }
0x12ed   : > { %11767 = vst [vmem:[#allocation10_spill] sm:$0xff] %v9776_v13  ;;  %v3643_v7 = vpack.c.bf16 %v9776_v13, %v9774_v11 }
0x12ef   : > { %7832 = vmatmul.msk.bf16.gmra.mxu1 %vm950_vm0, %v3643_v7  ;;  %7850 = vmatmul.msk.bf16.gmra.mxu2 %vm950_vm0, %v3643_v7  ;;  %v9782_v39 = vpop.f32.mrf.mxu3 }
0x12f0   : > { %v3851_v41 = vrot.slane %v9782_v39, 1  ;;  %v3852_v51 = vrot.slane %v9782_v39, 2  ;;  %v3853_v47 = vrot.slane %v9782_v39, 3 }
0x12f7   : > { %v3848_v24 = vpop.f32.mrf.mxu3 }
0x1355   : > { %v3695_v17 = vpop.f32.mrf.mxu1 }
0x1356   : > { %v3696_v42 = vadd.f32 %v8037_v29, %v3695_v17 }
0x1358   : > { %3705 = vst [vmem:[#allocation2] sm:$0xff] %v3696_v42 }
0x135b   : > { %v3754_v32 = vpop.f32.mrf.mxu2 }
0x135c   : > { %v3755_v15 = vadd.f32 %v8038_v0, %v3754_v32 }
0x135d   : > { %v3697_v35 = vpop.f32.mrf.mxu1 }
0x135e   : > { %3764 = vst [vmem:[#allocation3] sm:$0xff] %v3755_v15  ;;  %v3698_v36 = vadd.f32 %v8037_v29, %v3697_v35 }
0x135f   : > { %v3776_v40 = vld [vmem:[#allocation2] sm:$0x1] }
0x1360   : > { %v9790_v18 = vadd.f32 %v3805_v48, %v3776_v40  ;;  %3706 = vst [vmem:[#allocation2 + $0x8] sm:$0xff] %v3698_v36 }
0x1362   : > { %8190 = vtanh.f32 %v9790_v18  ;;  %v7867_v14 = vmul.f32 -1.442695, %v9790_v18 }
0x1363   : > { %v3756_v37 = vpop.f32.mrf.mxu2 }
0x1364   : > { %v3757_v22 = vadd.f32 %v8038_v0, %v3756_v37 }
0x1365   : > { %v3821_v57 = vld [vmem:[#allocation3 + $0x7] sm:$0x1] }
0x1366   : > { %3765 = vst [vmem:[#allocation3 + $0x8] sm:$0xff] %v3757_v22  ;;  %v3858_v8 = vadd.f32 %v9782_v39, %v3821_v57 }
0x1367   : > { %v3777_v26 = vld [vmem:[#allocation2 + $0x8] sm:$0x1] }
0x1368   : > { %v8191_v27 = vpop.eup %8190  ;;  %v3818_v55 = vadd.f32 %v3810_v21, %v3777_v26  ;;  %v7871_v42 = vmul.f32 -1.442695, %v3858_v8 }
0x1369   : > { %3950 = vrot.lane.b32.xlu0 %v8191_v27, %s11757_s5 }
0x136a   : > { %8192 = vtanh.f32 %v3818_v55  ;;  %v7868_v4 = vmul.f32 -1.442695, %v3818_v55 }
0x136c   : > { %v3700_v34 = vpop.f32.mrf.mxu1 }
0x136d   : > { %v3822_v33 = vld [vmem:[#allocation3 + $0xf] sm:$0x1]  ;;  %v3701_v20 = vadd.f32 %v8037_v29, %v3700_v34 }
0x136e   : > { %v3859_v44 = vadd.f32 %v3851_v41, %v3822_v33 }
0x136f   : > { %3707 = vst [vmem:[#allocation2 + $0x10] sm:$0xff] %v3701_v20 }
0x1370   : > { %8194 = vtanh.f32 %v3859_v44  ;;  %v8193_v49 = vpop.eup %8192  ;;  %v7872_v32 = vmul.f32 -1.442695, %v3859_v44 }
0x1371   : > { %3952 = vrot.lane.b32.xlu2 %v8193_v49, %s11757_s5 }
0x1372   : > { %v3759_v53 = vpop.f32.mrf.mxu2 }
0x1373   : > { %v3760_v54 = vadd.f32 %v8038_v0, %v3759_v53 }
0x1374   : > { %v3702_v3 = vpop.f32.mrf.mxu1 }
0x1375   : > { %3766 = vst [vmem:[#allocation3 + $0x10] sm:$0xff] %v3760_v54  ;;  %v3703_v28 = vadd.f32 %v8037_v29, %v3702_v3 }
0x1376   : > { %v8195_v45 = vpop.eup %8194  ;;  %v3778_v23 = vld [vmem:[#allocation2 + $0x10] sm:$0x1] }
0x1377   : > { %4100 = vrot.lane.b32.xlu1 %v8195_v45, %s11757_s5  ;;  %3708 = vst [vmem:[#allocation2 + $0x18] sm:$0xff] %v3703_v28  ;;  %v3819_v50 = vadd.f32 %v3811_v2, %v3778_v23 }
0x1379   : > { %8196 = vtanh.f32 %v3819_v50  ;;  %v7869_v27 = vmul.f32 -1.442695, %v3819_v50 }
0x137a   : > { %v3761_v43 = vpop.f32.mrf.mxu2 }
0x137b   : > { %v3762_v60 = vadd.f32 %v8038_v0, %v3761_v43 }
0x137c   : > { %v3823_v9 = vld [vmem:[#allocation3 + $0x17] sm:$0x1] }
0x137d   : > { %3767 = vst [vmem:[#allocation3 + $0x18] sm:$0xff] %v3762_v60  ;;  %v3860_v56 = vadd.f32 %v3852_v51, %v3823_v9 }
0x137e   : > { %v3779_v5 = vld [vmem:[#allocation2 + $0x18] sm:$0x1] }
0x137f   : > { %v8197_v61 = vpop.eup %8196  ;;  %8198 = vtanh.f32 %v3860_v56  ;;  %v9798_v25 = vadd.f32 %v3812_v16, %v3779_v5  ;;  %v7873_v39 = vmul.f32 -1.442695, %v3860_v56 }
0x1380   : > { %3954 = vrot.lane.b32.xlu0 %v8197_v61, %s11757_s5 }
0x1381   : > { %8200 = vtanh.f32 %v9798_v25  ;;  %v7870_v2 = vmul.f32 -1.442695, %v9798_v25 }
0x1382   : > { %8202 = vtanh.f32 %v3858_v8 }
0x1384   : > { %v3824_v10 = vld [vmem:[#allocation3 + $0x1f] sm:$0x1] }
0x1385   : > { %v8199_v62 = vpop.eup %8198  ;;  %v9804_v1 = vadd.f32 %v3853_v47, %v3824_v10 }
0x1386   : > { %4102 = vrot.lane.b32.xlu2 %v8199_v62, %s11757_s5 }
0x1387   : > { %v8201_v58 = vpop.eup %8200  ;;  %8204 = vtanh.f32 %v9804_v1  ;;  %v7874_v56 = vmul.f32 -1.442695, %v9804_v1 }
0x1388   : > { %3956 = vrot.lane.b32.xlu1 %v8201_v58, %s11757_s5  ;;  %v8203_v12 = vpop.eup %8202  ;;  %8206 = vpow2.f32 %v7868_v4 }
0x138d   : > { %v8205_v30 = vpop.eup %8204 }
0x138e   : > { %4104 = vrot.lane.b32.xlu0 %v8205_v30, %s11757_s5  ;;  %4098 = vrot.lane.b32.xlu2 %v8203_v12, %s11757_s5  ;;  %v8207_v7 = vpop.eup %8206 }
0x138f   : > { %v3875_v48 = vadd.f32 1.0, %v8207_v7 }
0x1391   : > { %8208 = vrcp.f32 %v3875_v48  ;;  %v3904_v26 = vand.u32 2147483648, %v3875_v48  ;;  %vm3898_vm4 = vweird.f32 %v3875_v48  ;;  %v3902_v55 = vand.u32 2147483647, %v3875_v48 }
0x1392   : > { %8210 = vpow2.f32 %v7867_v14 }
0x1393   : > { %8212 = vpow2.f32 %v7873_v39  ;;  %v3905_v20 = vor.u32 1.1754944e-38, %v3904_v26  ;;  %vm3903_vm1 = vcmp.eq.f32.partialorder %v3902_v55, 8.507059e+37 }
0x1394   : > { %8214 = vpow2.f32 %v7871_v42 }
0x1397   : > { %v8209_v24 = vpop.eup %8208 }
0x1398   : > { %v8211_v29 = vpop.eup %8210  ;;  %v3894_v17 = vmul.f32 %v8209_v24, %v3875_v48  ;;  %vm3899_vm15 = vweird.f32 %v8209_v24 }
0x1399   : > { %v3874_v0 = vadd.f32 1.0, %v8211_v29  ;;  %v8213_v35 = vpop.eup %8212  ;;  %vm3900_vm5 = vmor %vm3898_vm4, %vm3899_vm15 }
0x139a   : > { %v3895_v15 = vsub.f32 1.0, %v3894_v17  ;;  %v9812_v40 = vadd.f32 1.0, %v8213_v35  ;;  %v8215_v37 = vpop.eup %8214 }
0x139b   : > { %8216 = vrcp.f32 %v3874_v0  ;;  %v9815_v41 = vadd.f32 1.0, %v8215_v37  ;;  %v3887_v5 = vand.u32 2147483647, %v3874_v0  ;;  %v3889_v61 = vand.u32 2147483648, %v3874_v0 }
0x139c   : > { %8218 = vpow2.f32 %v7872_v32  ;;  %v3896_v36 = vmul.f32 %v8209_v24, %v3895_v15  ;;  %vm3883_vm3 = vweird.f32 %v3874_v0  ;;  %v4067_v7 = vand.u32 2147483648, %v9812_v40 }
0x139d   : > { %8220 = vrcp.f32 %v9812_v40  ;;  %vm3888_vm7 = vcmp.eq.f32.partialorder %v3887_v5, 8.507059e+37  ;;  %v3890_v62 = vor.u32 1.1754944e-38, %v3889_v61  ;;  %vm4061_vm9 = vweird.f32 %v9812_v40 }
0x139e   : > { %v3897_v21 = vadd.f32 %v8209_v24, %v3896_v36  ;;  %8222 = vpow2.f32 %v7869_v27  ;;  %v4065_v39 = vand.u32 2147483647, %v9812_v40  ;;  %v4068_v32 = vor.u32 1.1754944e-38, %v4067_v7 }
0x139f   : > { %8224 = vrcp.f32 %v9815_v41  ;;  %vm4031_vm14 = vweird.f32 %v9815_v41  ;;  %v4035_v55 = vand.u32 2147483647, %v9815_v41 }
0x13a0   : > { %v3901_v44 = vsel %vm3900_vm5, %v8209_v24, %v3897_v21  ;;  %vm4066_vm11 = vcmp.eq.f32.partialorder %v4065_v39, 8.507059e+37 }
0x13a1   : > { %v8217_v18 = vpop.eup %8216  ;;  %v9820_v54 = vsel %vm3903_vm1, %v3905_v20, %v3901_v44  ;;  %vm4036_vm1 = vcmp.eq.f32.partialorder %v4035_v55, 8.507059e+37 }
0x13a2   : > { %v8219_v22 = vpop.eup %8218  ;;  %v3879_v33 = vmul.f32 %v8217_v18, %v3874_v0  ;;  %vm3884_vm2 = vweird.f32 %v8217_v18 }
0x13a3   : > { %v9817_v34 = vadd.f32 1.0, %v8219_v22  ;;  %v8221_v49 = vpop.eup %8220  ;;  %vm3885_vm6 = vmor %vm3883_vm3, %vm3884_vm2  ;;  %v4037_v22 = vand.u32 2147483648, %v9815_v41 }
0x13a4   : > { %v3880_v3 = vsub.f32 1.0, %v3879_v33  ;;  %v4057_v28 = vmul.f32 %v8221_v49, %v9812_v40  ;;  %v8223_v23 = vpop.eup %8222  ;;  %vm4062_vm8 = vweird.f32 %v8221_v49 }
0x13a5   : > { %8226 = vrcp.f32 %v9817_v34  ;;  %v9827_v43 = vpop.eup %8224  ;;  %v9831_v9 = vadd.f32 1.0, %v8223_v23  ;;  %vm4063_vm10 = vmor %vm4061_vm9, %vm4062_vm8  ;;  %v4052_v26 = vand.u32 2147483648, %v9817_v34  ;;  %vm4046_vm4 = vweird.f32 %v9817_v34 }
0x13a6   : > { %v3881_v50 = vmul.f32 %v8217_v18, %v3880_v3  ;;  %8228 = vpow2.f32 %v7870_v2  ;;  %v4058_v51 = vsub.f32 1.0, %v4057_v28  ;;  %v4027_v25 = vmul.f32 %v9827_v43, %v9815_v41 }
0x13a7   : > { %8230 = vrcp.f32 %v9831_v9  ;;  %vm4032_vm12 = vweird.f32 %v9827_v43  ;;  %v4050_v33 = vand.u32 2147483647, %v9817_v34  ;;  %v4038_v3 = vor.u32 1.1754944e-38, %v4037_v22 }
0x13a8   : > { %v3882_v16 = vadd.f32 %v8217_v18, %v3881_v50  ;;  %v4059_v57 = vmul.f32 %v8221_v49, %v4058_v51  ;;  %8232 = vpow2.f32 %v7874_v56  ;;  %v4028_v1 = vsub.f32 1.0, %v4027_v25  ;;  %vm9868_vm15 = vmor %vm4031_vm14, %vm4032_vm12 }
0x13a9   : > { %vm4051_vm2 = vcmp.eq.f32.partialorder %v4050_v33, 8.507059e+37  ;;  %v3919_v5 = vand.u32 2147483648, %v9831_v9  ;;  %v3917_v61 = vand.u32 2147483647, %v9831_v9 }
0x13aa   : > { %v3886_v10 = vsel %vm3885_vm6, %v8217_v18, %v3882_v16  ;;  %v4060_v58 = vadd.f32 %v8221_v49, %v4059_v57  ;;  %v4029_v42 = vmul.f32 %v9827_v43, %v4028_v1  ;;  %vm3913_vm6 = vweird.f32 %v9831_v9 }
0x13ab   : > { %v9829_v60 = vpop.eup %8226  ;;  %v9839_v4 = vsel %vm3888_vm7, %v3890_v62, %v3886_v10  ;;  %vm3918_vm8 = vcmp.eq.f32.partialorder %v3917_v61, 8.507059e+37 }
0x13ac   : > { %v4042_v8 = vmul.f32 %v9829_v60, %v9817_v34  ;;  %v8229_v47 = vpop.eup %8228  ;;  %v4064_v17 = vsel %vm4063_vm10, %v8221_v49, %v4060_v58  ;;  %v4030_v18 = vadd.f32 %v9827_v43, %v4029_v42  ;;  %vm4047_vm13 = vweird.f32 %v9829_v60 }
0x13ad   : > { %v9842_v48 = vadd.f32 1.0, %v8229_v47  ;;  %v9847_v24 = vpop.eup %8230  ;;  %v9855_v36 = vsel %vm4066_vm11, %v4068_v32, %v4064_v17  ;;  %vm4048_vm5 = vmor %vm4046_vm4, %vm4047_vm13  ;;  %v3920_v47 = vor.u32 1.1754944e-38, %v3919_v5 }
0x13ae   : > { %v4043_v12 = vsub.f32 1.0, %v4042_v8  ;;  %v8233_v29 = vpop.eup %8232  ;;  %v3909_v15 = vmul.f32 %v9847_v24, %v9831_v9  ;;  %v4034_v49 = vsel %vm9868_vm15, %v9827_v43, %v4030_v18  ;;  %vm3914_vm3 = vweird.f32 %v9847_v24 }
0x13af   : > { %8234 = vrcp.f32 %v9842_v48  ;;  %v9858_v40 = vadd.f32 1.0, %v8233_v29  ;;  %v9882_v34 = vsel %vm4036_vm1, %v4038_v3, %v4034_v49  ;;  %vm3915_vm7 = vmor %vm3913_vm6, %vm3914_vm3  ;;  %vm3928_vm10 = vweird.f32 %v9842_v48 }
0x13b0   : > { %v4044_v0 = vmul.f32 %v9829_v60, %v4043_v12  ;;  %v3910_v44 = vsub.f32 1.0, %v3909_v15  ;;  %v3932_v9 = vand.u32 2147483647, %v9842_v48  ;;  %vm4220_vm1 = vcmask 1042434  }
0x13b1   : > { %8236 = vrcp.f32 %v9858_v40  ;;  %v4082_v42 = vand.u32 2147483648, %v9858_v40  ;;  %vm4076_vm14 = vweird.f32 %v9858_v40  ;;  %v4080_v32 = vand.u32 2147483647, %v9858_v40 }
0x13b2   : > { %v4045_v21 = vadd.f32 %v9829_v60, %v4044_v0  ;;  %v3911_v41 = vmul.f32 %v9847_v24, %v3910_v44  ;;  %vm3933_vm12 = vcmp.eq.f32.partialorder %v3932_v9, 8.507059e+37  ;;  %vm3792_vm3 = vcmask 261120  }
0x13b3   : > { %v4083_v15 = vor.u32 1.1754944e-38, %v4082_v42  ;;  %vm4081_vm4 = vcmp.eq.f32.partialorder %v4080_v32, 8.507059e+37 }
0x13b5   : > { %v8235_v20 = vpop.eup %8234 }
0x13b6   : > { %v3924_v2 = vmul.f32 %v8235_v20, %v9842_v48  ;;  %vm3929_vm9 = vweird.f32 %v8235_v20 }
0x13b7   : > { %v8237_v16 = vpop.eup %8236  ;;  %vm3930_vm11 = vmor %vm3928_vm10, %vm3929_vm9 }
0x13b8   : > { %v3925_v56 = vsub.f32 1.0, %v3924_v2  ;;  %v4072_v57 = vmul.f32 %v8237_v16, %v9858_v40  ;;  %vm4077_vm13 = vweird.f32 %v8237_v16  ;;  %v3943_v40 = vmul.f32 0.0, %v9820_v54 }
0x13b9   : > { %vm4078_vm15 = vmor %vm4076_vm14, %vm4077_vm13 }
0x13ba   : > { %v3926_v8 = vmul.f32 %v8235_v20, %v3925_v56  ;;  %v4073_v10 = vsub.f32 1.0, %v4072_v57 }
0x13bc   : > { %v3927_v12 = vadd.f32 %v8235_v20, %v3926_v8  ;;  %v4074_v7 = vmul.f32 %v8237_v16, %v4073_v10 }
0x13cb   : > { %v3953_v53 = vpop.permute.xlu2 %3952 }
0x13cc   : > { %v3963_v45 = vmul.f32 %v3953_v53, %v9820_v54  ;;  %v4049_v53 = vsel %vm4048_vm5, %v9829_v60, %v4045_v21  ;;  %v3912_v60 = vadd.f32 %v9847_v24, %v3911_v41  ;;  %v3942_v21 = vmul.f32 0.0, %v9839_v4 }
0x13cd   : > { %vm4217_vm5 = vcmask 1041409  }
0x13ce   : > { %3972 = vrot.lane.b32.xlu1 %v3963_v45, %s11762_s30  ;;  %v4053_v45 = vor.u32 1.1754944e-38, %v4052_v26  ;;  %v3916_v25 = vsel %vm3915_vm7, %v9847_v24, %v3912_v60  ;;  %v4075_v24 = vadd.f32 %v8237_v16, %v4074_v7 }
0x13cf   : > { %v9897_v58 = vsel %vm3918_vm8, %v3920_v47, %v3916_v25 }
0x13d0   : > { %v9884_v50 = vsel %vm4051_vm2, %v4053_v45, %v4049_v53  ;;  %v4092_v45 = vmul.f32 0.0, %v9855_v36  ;;  %v3944_v61 = vmul.f32 0.0, %v9897_v58  ;;  %vm4223_vm2 = vcmask 1043459  }
0x13d1   : > { %v4091_v44 = vmul.f32 0.0, %v9884_v50 }
0x13db   : > { %v3951_v30 = vpop.permute.xlu0 %3950 }
0x13dc   : > { %v3962_v14 = vmul.f32 %v3951_v30, %v9839_v4  ;;  %v3934_v30 = vand.u32 2147483648, %v9842_v48  ;;  %v4079_v48 = vsel %vm4078_vm15, %v8237_v16, %v4075_v24 }
0x13de   : > { %3970 = vrot.lane.b32.xlu2 %v3962_v14, %s11762_s30  ;;  %v3931_v14 = vsel %vm3930_vm11, %v8235_v20, %v3927_v12  ;;  %v3935_v39 = vor.u32 1.1754944e-38, %v3934_v30 }
0x13e0   : > { %v4103_v35 = vpop.permute.xlu2 %4102  ;;  %v9904_v29 = vsel %vm3933_vm12, %v3935_v39, %v3931_v14 }
0x13e1   : > { %v4112_v37 = vmul.f32 %v4103_v35, %v9855_v36  ;;  %v3945_v47 = vmul.f32 0.0, %v9904_v29 }
0x13e3   : > { %4122 = vrot.lane.b32.xlu1 %v4112_v37, %s11762_s30  ;;  %v9911_v37 = vsel %vm4081_vm4, %v4083_v15, %v4079_v48 }
0x13e8   : > { %v4099_v28 = vpop.permute.xlu2 %4098 }
0x13e9   : > { %v4101_v23 = vpop.permute.xlu1 %4100  ;;  %v4110_v51 = vmul.f32 %v4099_v28, %v9882_v34  ;;  %v4090_v28 = vmul.f32 0.0, %v9882_v34 }
0x13ea   : > { %v4111_v43 = vmul.f32 %v4101_v23, %v9884_v50  ;;  %v4093_v23 = vmul.f32 0.0, %v9911_v37 }
0x13eb   : > { %4118 = vrot.lane.b32.xlu1 %v4110_v51, %s11762_s30 }
0x13ec   : > { %4120 = vrot.lane.b32.xlu2 %v4111_v43, %s11762_s30 }
0x13f2   : > { %v3955_v62 = vpop.permute.xlu0 %3954 }
0x13f3   : > { %v3964_v1 = vmul.f32 %v3955_v62, %v9897_v58 }
0x13f5   : > { %3974 = vrot.lane.b32.xlu0 %v3964_v1, %s11762_s30 }
0x13fa   : > { %v3957_v17 = vpop.permute.xlu1 %3956 }
0x13fb   : > { %v3965_v0 = vmul.f32 %v3957_v17, %v9904_v29 }
0x13fd   : > { %3976 = vrot.lane.b32.xlu0 %v3965_v0, %s11762_s30 }
0x1400   : > { %v4105_v35 = vpop.permute.xlu0 %4104 }
0x1401   : > { %v4113_v18 = vmul.f32 %v4105_v35, %v9911_v37 }
0x1403   : > { %4124 = vrot.lane.b32.xlu2 %v4113_v18, %s11762_s30 }
0x1438   : > { %v3971_v22 = vpop.permute.xlu2 %3970 }
0x1439   : > { %v9916_v26 = vadd.f32 %v3971_v22, %v3942_v21 }
0x143b   : > { %8238 = vtanh.f32 %v9916_v26 }
0x1440   : > { %v3973_v55 = vpop.permute.xlu1 %3972 }
0x1441   : > { %v8239_v27 = vpop.eup %8238  ;;  %v9920_v33 = vadd.f32 %v3973_v55, %v3943_v40 }
0x1442   : > { %3994 = vrot.lane.b32.xlu1 %v8239_v27, %s11757_s5 }
0x1443   : > { %8240 = vtanh.f32 %v9920_v33 }
0x1446   : > { %v4121_v20 = vpop.permute.xlu2 %4120 }
0x1447   : > { %v9925_v49 = vadd.f32 %v4121_v20, %v4091_v44 }
0x1449   : > { %8242 = vtanh.f32 %v9925_v49  ;;  %v8241_v53 = vpop.eup %8240 }
0x144a   : > { %3996 = vrot.lane.b32.xlu0 %v8241_v53, %s11757_s5 }
0x144f   : > { %v8243_v3 = vpop.eup %8242 }
0x1450   : > { %4144 = vrot.lane.b32.xlu1 %v8243_v3, %s11757_s5 }
0x1455   : > { %v4123_v41 = vpop.permute.xlu1 %4122 }
0x1456   : > { %v9931_v2 = vadd.f32 %v4123_v41, %v4092_v45 }
0x1458   : > { %8244 = vtanh.f32 %v9931_v2 }
0x145d   : > { %v4119_v51 = vpop.permute.xlu1 %4118  ;;  %v4125_v43 = vpop.permute.xlu2 %4124 }
0x145e   : > { %v8245_v16 = vpop.eup %8244  ;;  %v9936_v60 = vadd.f32 %v4119_v51, %v4090_v28  ;;  %v9938_v56 = vadd.f32 %v4125_v43, %v4093_v23 }
0x145f   : > { %4146 = vrot.lane.b32.xlu0 %v8245_v16, %s11757_s5 }
0x1460   : > { %8246 = vtanh.f32 %v9936_v60 }
0x1461   : > { %8248 = vtanh.f32 %v9938_v56 }
0x1466   : > { %v8247_v5 = vpop.eup %8246 }
0x1467   : > { %v8249_v57 = vpop.eup %8248  ;;  %v3975_v25 = vpop.permute.xlu0 %3974  ;;  %4142 = vrot.lane.b32.xlu0 %v8247_v5, %s11757_s5 }
0x1468   : > { %v9945_v8 = vadd.f32 %v3975_v25, %v3944_v61  ;;  %4148 = vrot.lane.b32.xlu1 %v8249_v57, %s11757_s5 }
0x146a   : > { %8250 = vtanh.f32 %v9945_v8 }
0x146f   : > { %v3977_v10 = vpop.permute.xlu0 %3976 }
0x1470   : > { %v8251_v62 = vpop.eup %8250  ;;  %v9950_v1 = vadd.f32 %v3977_v10, %v3945_v47 }
0x1471   : > { %3998 = vrot.lane.b32.xlu2 %v8251_v62, %s11757_s5 }
0x1472   : > { %8252 = vtanh.f32 %v9950_v1 }
0x1478   : > { %v8253_v12 = vpop.eup %8252 }
0x1479   : > { %4000 = vrot.lane.b32.xlu2 %v8253_v12, %s11757_s5 }
0x14b4   : > { %v3995_v30 = vpop.permute.xlu1 %3994 }
0x14b5   : > { %v9966_v0 = vmul.f32 %v3995_v30, %v9839_v4 }
0x14b7   : > { %v4204_v18 = vpack.c.bf16 %v9966_v0, %v9966_v0 }
0x14b9   : > { %v4212_v27 = vunpack.c.l.b16 %v4204_v18 }
0x14bc   : > { %v3997_v9 = vpop.permute.xlu0 %3996 }
0x14bd   : > { %v9956_v7 = vmul.f32 %v3997_v9, %v9820_v54 }
0x14bf   : > { %v4205_v24 = vpack.c.bf16 %v9956_v7, %v9956_v7 }
0x14c1   : > { %v4213_v48 = vunpack.c.l.b16 %v4205_v24 }
0x14c2   : > { %v4145_v17 = vpop.permute.xlu1 %4144 }
0x14c3   : > { %v9969_v15 = vmul.f32 %v4145_v17, %v9884_v50  ;;  %v4216_v22 = vrot.slane %v4213_v48, 7 }
0x14c5   : > { %v4261_v4 = vpack.c.bf16 %v9969_v15, %v9969_v15 }
0x14c7   : > { %v4269_v20 = vunpack.c.l.b16 %v4261_v4  ;;  %v4203_v4 = vld [vmem:[#allocation2 + $0x19] sm:$0x1] }
0x14c9   : > { %v4272_v61 = vrot.slane %v4269_v20, 7  ;;  %v4258_v20 = vld [vmem:[#allocation3 + $0x16] sm:$0x1] }
0x14cb   : > { %v3999_v14 = vpop.permute.xlu2 %3998 }
0x14cc   : > { %v9959_v39 = vmul.f32 %v3999_v14, %v9897_v58  ;;  %v4200_v14 = vld [vmem:[#allocation2 + $0x1] sm:$0x1] }
0x14ce   : > { %v4206_v42 = vpack.c.bf16 %v9959_v39, %v9959_v39 }
0x14d0   : > { %v4214_v54 = vunpack.c.l.b16 %v4206_v42 }
0x14d1   : > { %v4147_v32 = vpop.permute.xlu0 %4146 }
0x14d2   : > { %v9972_v35 = vmul.f32 %v4147_v32, %v9855_v36  ;;  %v4219_v50 = vrot.slane %v4214_v54, 6  ;;  %v4201_v32 = vld [vmem:[#allocation2 + $0x9] sm:$0x1] }
0x14d3   : > { %v4001_v58 = vpop.permute.xlu2 %4000 }
0x14d4   : > { %v9977_v21 = vmul.f32 %v4001_v58, %v9904_v29  ;;  %v4262_v36 = vpack.c.bf16 %v9972_v35, %v9972_v35  ;;  %v4218_v29 = vsel %vm4217_vm5, %v4216_v22, %v4212_v27  ;;  %v4202_v58 = vld [vmem:[#allocation2 + $0x11] sm:$0x1] }
0x14d5   : > { %v4221_v41 = vsel %vm4220_vm1, %v4219_v50, %v4218_v29 }
0x14d6   : > { %11770 = vst [vmem:[#allocation11_spill] sm:$0xff] %v9977_v21  ;;  %v4207_v40 = vpack.c.bf16 %v9977_v21, %v9977_v21  ;;  %v4270_v28 = vunpack.c.l.b16 %v4262_v36 }
0x14d8   : > { %v4215_v55 = vunpack.c.l.b16 %v4207_v40 }
0x14d9   : > { %v4143_v44 = vpop.permute.xlu0 %4142 }
0x14da   : > { %v4222_v53 = vrot.slane %v4215_v55, 5  ;;  %v9987_v3 = vmul.f32 %v4143_v44, %v9882_v34  ;;  %v4149_v45 = vpop.permute.xlu1 %4148  ;;  %v4274_v34 = vrot.slane %v4270_v28, 6  ;;  %v4257_v55 = vld [vmem:[#allocation3 + $0xe] sm:$0x1]  ;;  %v4259_v28 = vld [vmem:[#allocation3 + $0x1e] sm:$0x1] }
0x14db   : > { %v9991_v23 = vmul.f32 %v4149_v45, %v9911_v37 }
0x14dc   : > { %v4260_v51 = vpack.c.bf16 %v9987_v3, %v9987_v3  ;;  %v4224_v43 = vsel %vm4223_vm2, %v4222_v53, %v4221_v41 }
0x14dd   : > { %v4263_v16 = vpack.c.bf16 %v9991_v23, %v9991_v23  ;;  %v4225_v5 = vpack.c.b16 %v4224_v43, %v4224_v43 }
0x14de   : > { %v4268_v57 = vunpack.c.l.b16 %v4260_v51 }
0x14df   : > { %v4271_v25 = vunpack.c.l.b16 %v4263_v16  ;;  %4226 = vrot.lane.b32.xlu2 %v4225_v5, %s11762_s30  ;;  %v4256_v16 = vld [vmem:[#allocation3 + $0x6] sm:$0x1] }
0x14e0   : > { %v4273_v47 = vsel %vm4217_vm5, %v4272_v61, %v4268_v57 }
0x14e1   : > { %v4276_v10 = vrot.slane %v4271_v25, 5  ;;  %v4275_v37 = vsel %vm4220_vm1, %v4274_v34, %v4273_v47 }
0x14e3   : > { %v4277_v62 = vsel %vm4223_vm2, %v4276_v10, %v4275_v37 }
0x14e4   : > { %v4278_v12 = vpack.c.b16 %v4277_v62, %v4277_v62 }
0x14e6   : > { %4279 = vrot.lane.b32.xlu0 %v4278_v12, %s11762_s30 }
0x1539   : > { %v4227_v30 = vpop.permute.xlu2 %4226 }
0x153a   : > { %7875 = vmatmul.msk.bf16.vlgmr.msra.gmra.mxu0 %vm3792_vm3, %v4227_v30 }
0x153b   : > { %6005 = vmatpush.bf16.msra.mxu0 %v9694_v52 }
0x153f   : > { %6006 = vmatpush.bf16.msra.mxu0 %v9708_v59 }
0x1558   : > { %v4280_v9 = vpop.permute.xlu0 %4279 }
0x1559   : > { %7876 = vmatmul.msk.bf16.vlgmr.msra.gmra.mxu1 %vm3792_vm3, %v4280_v9 }
0x155a   : > { %6058 = vmatpush.bf16.msra.mxu1 %v9732_v31 }
0x155e   : > { %6059 = vmatpush.bf16.msra.mxu1 %v9741_v46 }
0x15b7   : > { %v4240_v24 = vpop.f32.mrf.mxu0 }
0x15b8   : > { %v4245_v17 = vrot.slane %v4240_v24, 1  ;;  %v4252_v42 = vadd.f32 %v4240_v24, %v4200_v14  ;;  %v4246_v48 = vrot.slane %v4240_v24, 2  ;;  %v4247_v22 = vrot.slane %v4240_v24, 3 }
0x15ba   : > { %v4253_v54 = vadd.f32 %v4245_v17, %v4201_v32  ;;  %8254 = vtanh.f32 %v4252_v42  ;;  %v4254_v18 = vadd.f32 %v4246_v48, %v4202_v58  ;;  %v4255_v46 = vadd.f32 %v4247_v22, %v4203_v4 }
0x15bb   : > { %v7877_v25 = vmul.f32 -1.442695, %v4252_v42 }
0x15bc   : > { %8256 = vtanh.f32 %v4253_v54  ;;  %v7878_v62 = vmul.f32 -1.442695, %v4253_v54  ;;  %v7879_v30 = vmul.f32 -1.442695, %v4254_v18  ;;  %v7880_v32 = vmul.f32 -1.442695, %v4255_v46 }
0x15bd   : > { %8258 = vtanh.f32 %v4254_v18 }
0x15be   : > { %8260 = vtanh.f32 %v4255_v46 }
0x15bf   : > { %v4242_v52 = vpop.f32.mrf.mxu0 }
0x15c0   : > { %v8255_v59 = vpop.eup %8254 }
0x15c1   : > { %4397 = vrot.lane.b32.xlu2 %v8255_v59, %s11757_s5 }
0x15c2   : > { %v8257_v31 = vpop.eup %8256 }
0x15c3   : > { %4399 = vrot.lane.b32.xlu1 %v8257_v31, %s11757_s5  ;;  %v8259_v40 = vpop.eup %8258 }
0x15c4   : > { %4401 = vrot.lane.b32.xlu0 %v8259_v40, %s11757_s5  ;;  %v8261_v50 = vpop.eup %8260 }
0x15cc   : > { %4403 = vrot.lane.b32.xlu0 %v8261_v50, %s11757_s5 }
0x15d6   : > { %v4293_v36 = vpop.f32.mrf.mxu1 }
0x15d7   : > { %v4298_v27 = vrot.slane %v4293_v36, 1  ;;  %v4299_v44 = vrot.slane %v4293_v36, 2  ;;  %v4300_v53 = vrot.slane %v4293_v36, 3  ;;  %v10017_v5 = vadd.f32 %v4293_v36, %v4256_v16 }
0x15d9   : > { %v4306_v29 = vadd.f32 %v4298_v27, %v4257_v55  ;;  %v10013_v45 = vadd.f32 %v4299_v44, %v4258_v20  ;;  %v4308_v51 = vadd.f32 %v4300_v53, %v4259_v28 }
0x15db   : > { %8262 = vtanh.f32 %v4306_v29  ;;  %v7882_v14 = vmul.f32 -1.442695, %v4306_v29  ;;  %v7884_v22 = vmul.f32 -1.442695, %v4308_v51 }
0x15dc   : > { %8264 = vtanh.f32 %v10013_v45 }
0x15dd   : > { %8266 = vtanh.f32 %v4308_v51 }
0x15de   : > { %v4295_v41 = vpop.f32.mrf.mxu1  ;;  %8268 = vtanh.f32 %v10017_v5 }
0x15df   : > { %8270 = vpow2.f32 %v7877_v25  ;;  %v7883_v25 = vmul.f32 -1.442695, %v10013_v45 }
0x15e1   : > { %v8263_v43 = vpop.eup %8262 }
0x15e2   : > { %4547 = vrot.lane.b32.xlu2 %v8263_v43, %s11757_s5  ;;  %v8265_v61 = vpop.eup %8264 }
0x15e3   : > { %4549 = vrot.lane.b32.xlu1 %v8265_v61, %s11757_s5  ;;  %v8267_v57 = vpop.eup %8266 }
0x15e4   : > { %v8269_v34 = vpop.eup %8268 }
0x15e5   : > { %v8271_v47 = vpop.eup %8270 }
0x15e6   : > { %v4321_v10 = vadd.f32 1.0, %v8271_v47 }
0x15e8   : > { %8272 = vrcp.f32 %v4321_v10  ;;  %v4336_v58 = vand.u32 2147483648, %v4321_v10  ;;  %vm4330_vm7 = vweird.f32 %v4321_v10  ;;  %v4334_v59 = vand.u32 2147483647, %v4321_v10 }
0x15e9   : > { %8274 = vpow2.f32 %v7878_v62 }
0x15ea   : > { %4551 = vrot.lane.b32.xlu2 %v8267_v57, %s11757_s5  ;;  %8276 = vpow2.f32 %v7879_v30  ;;  %v4337_v4 = vor.u32 1.1754944e-38, %v4336_v58  ;;  %vm4335_vm9 = vcmp.eq.f32.partialorder %v4334_v59, 8.507059e+37  ;;  %v7881_v58 = vmul.f32 -1.442695, %v10017_v5 }
0x15eb   : > { %4545 = vrot.lane.b32.xlu1 %v8269_v34, %s11757_s5  ;;  %8278 = vpow2.f32 %v7882_v14 }
0x15ec   : > { %8280 = vpow2.f32 %v7880_v32 }
0x15ee   : > { %v8273_v37 = vpop.eup %8272 }
0x15ef   : > { %v4326_v12 = vmul.f32 %v8273_v37, %v4321_v10  ;;  %v8275_v17 = vpop.eup %8274  ;;  %vm4331_vm6 = vweird.f32 %v8273_v37 }
0x15f0   : > { %v4322_v42 = vadd.f32 1.0, %v8275_v17  ;;  %v8277_v52 = vpop.eup %8276  ;;  %vm4332_vm8 = vmor %vm4330_vm7, %vm4331_vm6 }
0x15f1   : > { %v4327_v9 = vsub.f32 1.0, %v4326_v12  ;;  %v8279_v31 = vpop.eup %8278  ;;  %v10023_v18 = vadd.f32 1.0, %v8277_v52 }
0x15f2   : > { %8282 = vrcp.f32 %v4322_v42  ;;  %v10027_v50 = vadd.f32 1.0, %v8279_v31  ;;  %v8281_v27 = vpop.eup %8280  ;;  %v4351_v30 = vand.u32 2147483648, %v4322_v42  ;;  %vm4345_vm11 = vweird.f32 %v4322_v42 }
0x15f3   : > { %v4328_v24 = vmul.f32 %v8273_v37, %v4327_v9  ;;  %8284 = vpow2.f32 %v7884_v22  ;;  %v10033_v29 = vadd.f32 1.0, %v8281_v27  ;;  %v4349_v9 = vand.u32 2147483647, %v4322_v42 }
0x15f4   : > { %8286 = vrcp.f32 %v10023_v18  ;;  %v4366_v52 = vand.u32 2147483648, %v10023_v18  ;;  %vm4360_vm14 = vweird.f32 %v10023_v18  ;;  %v4364_v59 = vand.u32 2147483647, %v10023_v18 }
0x15f5   : > { %v4329_v48 = vadd.f32 %v8273_v37, %v4328_v24  ;;  %8288 = vrcp.f32 %v10027_v50  ;;  %vm4350_vm15 = vcmp.eq.f32.partialorder %v4349_v9, 8.507059e+37  ;;  %vm4493_vm7 = vweird.f32 %v10027_v50 }
0x15f6   : > { %8290 = vrcp.f32 %v10033_v29 }
0x15f7   : > { %v4333_v54 = vsel %vm4332_vm8, %v8273_v37, %v4329_v48  ;;  %vm4365_vm8 = vcmp.eq.f32.partialorder %v4364_v59, 8.507059e+37 }
0x15f8   : > { %v10025_v46 = vsel %vm4335_vm9, %v4337_v4, %v4333_v54  ;;  %v8283_v55 = vpop.eup %8282 }
0x15f9   : > { %v8285_v44 = vpop.eup %8284  ;;  %v4341_v20 = vmul.f32 %v8283_v55, %v4322_v42  ;;  %vm4346_vm10 = vweird.f32 %v8283_v55  ;;  %v4352_v42 = vor.u32 1.1754944e-38, %v4351_v30 }
0x15fa   : > { %v8287_v53 = vpop.eup %8286  ;;  %v10035_v41 = vadd.f32 1.0, %v8285_v44  ;;  %vm10051_vm12 = vmor %vm4345_vm11, %vm4346_vm10  ;;  %v4367_v44 = vor.u32 1.1754944e-38, %v4366_v52 }
0x15fb   : > { %v10038_v28 = vpop.eup %8288  ;;  %v4356_v51 = vmul.f32 %v8287_v53, %v10023_v18  ;;  %v4342_v43 = vsub.f32 1.0, %v4341_v20  ;;  %vm4361_vm13 = vweird.f32 %v8287_v53  ;;  %v4499_v18 = vand.u32 2147483648, %v10027_v50 }
0x15fc   : > { %8292 = vrcp.f32 %v10035_v41  ;;  %v4489_v16 = vmul.f32 %v10038_v28, %v10027_v50  ;;  %v10044_v34 = vpop.eup %8290  ;;  %vm10064_vm4 = vmor %vm4360_vm14, %vm4361_vm13  ;;  %vm4494_vm6 = vweird.f32 %v10038_v28  ;;  %v4497_v20 = vand.u32 2147483647, %v10027_v50 }
0x15fd   : > { %v4357_v61 = vsub.f32 1.0, %v4356_v51  ;;  %v4343_v57 = vmul.f32 %v8283_v55, %v4342_v43  ;;  %v4371_v12 = vmul.f32 %v10044_v34, %v10033_v29  ;;  %8294 = vpow2.f32 %v7883_v25  ;;  %vm4495_vm9 = vmor %vm4493_vm7, %vm4494_vm6 }
0x15fe   : > { %v4490_v47 = vsub.f32 1.0, %v4489_v16  ;;  %8296 = vpow2.f32 %v7881_v58  ;;  %v4500_v25 = vor.u32 1.1754944e-38, %v4499_v18  ;;  %vm4376_vm10 = vweird.f32 %v10044_v34 }
0x15ff   : > { %v4358_v37 = vmul.f32 %v8287_v53, %v4357_v61  ;;  %v4344_v62 = vadd.f32 %v8283_v55, %v4343_v57  ;;  %v4372_v48 = vsub.f32 1.0, %v4371_v12  ;;  %vm4498_vm11 = vcmp.eq.f32.partialorder %v4497_v20, 8.507059e+37 }
0x1600   : > { %v4491_v24 = vmul.f32 %v10038_v28, %v4490_v47  ;;  %v4381_v50 = vand.u32 2147483648, %v10033_v29 }
0x1601   : > { %v4359_v17 = vadd.f32 %v8287_v53, %v4358_v37  ;;  %v4348_v32 = vsel %vm10051_vm12, %v8283_v55, %v4344_v62  ;;  %v4373_v55 = vmul.f32 %v10044_v34, %v4372_v48  ;;  %vm4375_vm12 = vweird.f32 %v10033_v29 }
0x1602   : > { %v10047_v10 = vpop.eup %8292  ;;  %v10068_v31 = vsel %vm4350_vm15, %v4352_v42, %v4348_v32  ;;  %vm4377_vm13 = vmor %vm4375_vm12, %vm4376_vm10  ;;  %vm4523_vm15 = vweird.f32 %v10035_v41 }
0x1603   : > { %v4519_v45 = vmul.f32 %v10047_v10, %v10035_v41  ;;  %v8295_v22 = vpop.eup %8294  ;;  %v4374_v47 = vadd.f32 %v10044_v34, %v4373_v55  ;;  %vm4524_vm14 = vweird.f32 %v10047_v10 }
0x1604   : > { %v4471_v51 = vadd.f32 1.0, %v8295_v22  ;;  %v8297_v12 = vpop.eup %8296  ;;  %vm4525_vm6 = vmor %vm4523_vm15, %vm4524_vm14 }
0x1605   : > { %v4520_v5 = vsub.f32 1.0, %v4519_v45  ;;  %v4378_v14 = vsel %vm4377_vm13, %v10044_v34, %v4374_v47  ;;  %v4382_v45 = vor.u32 1.1754944e-38, %v4381_v50 }
0x1606   : > { %8298 = vrcp.f32 %v4471_v51  ;;  %v4514_v18 = vand.u32 2147483648, %v4471_v51  ;;  %v4512_v55 = vand.u32 2147483647, %v4471_v51 }
0x1607   : > { %v4521_v61 = vmul.f32 %v10047_v10, %v4520_v5 }
0x1609   : > { %v4522_v9 = vadd.f32 %v10047_v10, %v4521_v61 }
0x160b   : > { %v4526_v58 = vsel %vm4525_vm6, %v10047_v10, %v4522_v9  ;;  %v4389_v9 = vmul.f32 %v10025_v46, %v9916_v26 }
0x160c   : > { %v8299_v52 = vpop.eup %8298 }
0x160d   : > { %v4504_v54 = vmul.f32 %v8299_v52, %v4471_v51 }
0x161b   : > { %v4398_v40 = vpop.permute.xlu2 %4397 }
0x161c   : > { %v4409_v36 = vmul.f32 %v4398_v40, %v10025_v46  ;;  %v4492_v40 = vadd.f32 %v10038_v28, %v4491_v24  ;;  %v4529_v24 = vand.u32 2147483648, %v10035_v41 }
0x161e   : > { %4417 = vrot.lane.b32.xlu1 %v4409_v36, %s11762_s30  ;;  %v4363_v36 = vsel %vm10064_vm4, %v8287_v53, %v4359_v17  ;;  %v4496_v16 = vsel %vm4495_vm9, %v10038_v28, %v4492_v40  ;;  %v4379_v28 = vand.u32 2147483647, %v10033_v29  ;;  %v4527_v17 = vand.u32 2147483647, %v10035_v41 }
0x161f   : > { %v10080_v43 = vsel %vm4365_vm8, %v4367_v44, %v4363_v36  ;;  %v10089_v62 = vsel %vm4498_vm11, %v4500_v25, %v4496_v16  ;;  %v4469_v29 = vadd.f32 1.0, %v8297_v12  ;;  %v4530_v42 = vor.u32 1.1754944e-38, %v4529_v24 }
0x1620   : > { %vm4380_vm4 = vcmp.eq.f32.partialorder %v4379_v28, 8.507059e+37  ;;  %vm4528_vm7 = vcmp.eq.f32.partialorder %v4527_v17, 8.507059e+37  ;;  %vm4509_vm8 = vweird.f32 %v8299_v52  ;;  %vm4508_vm9 = vweird.f32 %v4471_v51 }
0x1621   : > { %v10101_v32 = vsel %vm4380_vm4, %v4382_v45, %v4378_v14  ;;  %8300 = vrcp.f32 %v4469_v29  ;;  %v10106_v59 = vsel %vm4528_vm7, %v4530_v42, %v4526_v58  ;;  %vm4510_vm10 = vmor %vm4508_vm9, %vm4509_vm8  ;;  %vm4513_vm11 = vcmp.eq.f32.partialorder %v4512_v55, 8.507059e+37 }
0x1622   : > { %v4484_v47 = vand.u32 2147483648, %v4469_v29  ;;  %vm4478_vm13 = vweird.f32 %v4469_v29  ;;  %v4482_v50 = vand.u32 2147483647, %v4469_v29  ;;  %v4391_v45 = vmul.f32 %v10080_v43, %v9945_v8 }
0x1623   : > { %v4392_v58 = vmul.f32 %v10101_v32, %v9950_v1  ;;  %v4390_v42 = vmul.f32 %v10068_v31, %v9920_v33  ;;  %v4538_v1 = vmul.f32 %v10089_v62, %v9925_v49 }
0x1624   : > { %v4485_v51 = vor.u32 1.1754944e-38, %v4484_v47  ;;  %vm4483_vm15 = vcmp.eq.f32.partialorder %v4482_v50, 8.507059e+37 }
0x1627   : > { %v8301_v40 = vpop.eup %8300 }
0x1628   : > { %v4474_v10 = vmul.f32 %v8301_v40, %v4469_v29  ;;  %vm4479_vm12 = vweird.f32 %v8301_v40 }
0x1629   : > { %vm4480_vm14 = vmor %vm4478_vm13, %vm4479_vm12 }
0x1635   : > { %v4400_v4 = vpop.permute.xlu1 %4399 }
0x1636   : > { %v4410_v27 = vmul.f32 %v4400_v4, %v10068_v31  ;;  %v4402_v53 = vpop.permute.xlu0 %4401  ;;  %v4505_v4 = vsub.f32 1.0, %v4504_v54 }
0x1637   : > { %v4411_v57 = vmul.f32 %v4402_v53, %v10080_v43  ;;  %v4515_v53 = vor.u32 1.1754944e-38, %v4514_v18 }
0x1638   : > { %4419 = vrot.lane.b32.xlu0 %v4410_v27, %s11762_s30  ;;  %v4506_v5 = vmul.f32 %v8299_v52, %v4505_v4  ;;  %v4475_v27 = vsub.f32 1.0, %v4474_v10 }
0x1639   : > { %4421 = vrot.lane.b32.xlu2 %v4411_v57, %s11762_s30 }
0x163a   : > { %v4507_v36 = vadd.f32 %v8299_v52, %v4506_v5  ;;  %v4476_v20 = vmul.f32 %v8301_v40, %v4475_v27  ;;  %v4540_v5 = vmul.f32 %v10106_v59, %v9938_v56 }
0x163c   : > { %v4548_v37 = vpop.permute.xlu2 %4547  ;;  %v4511_v44 = vsel %vm4510_vm10, %v8299_v52, %v4507_v36  ;;  %v4477_v25 = vadd.f32 %v8301_v40, %v4476_v20 }
0x163d   : > { %v4558_v30 = vmul.f32 %v4548_v37, %v10089_v62  ;;  %v10110_v16 = vsel %vm4513_vm11, %v4515_v53, %v4511_v44 }
0x163e   : > { %v4404_v48 = vpop.permute.xlu0 %4403  ;;  %v4481_v37 = vsel %vm4480_vm14, %v8301_v40, %v4477_v25  ;;  %v4539_v27 = vmul.f32 %v10110_v16, %v9931_v2 }
0x163f   : > { %4567 = vrot.lane.b32.xlu1 %v4558_v30, %s11762_s30  ;;  %v4412_v34 = vmul.f32 %v4404_v48, %v10101_v32  ;;  %v10114_v28 = vsel %vm4483_vm15, %v4485_v51, %v4481_v37 }
0x1640   : > { %v4537_v56 = vmul.f32 %v10114_v28, %v9936_v60 }
0x1641   : > { %4423 = vrot.lane.b32.xlu2 %v4412_v34, %s11762_s30 }
0x1644   : > { %v4552_v22 = vpop.permute.xlu2 %4551 }
0x1645   : > { %v4560_v41 = vmul.f32 %v4552_v22, %v10106_v59 }
0x1647   : > { %4571 = vrot.lane.b32.xlu1 %v4560_v41, %s11762_s30 }
0x1655   : > { %v4550_v61 = vpop.permute.xlu1 %4549 }
0x1656   : > { %v4559_v57 = vmul.f32 %v4550_v61, %v10110_v16 }
0x1658   : > { %4569 = vrot.lane.b32.xlu0 %v4559_v57, %s11762_s30 }
0x165d   : > { %v4546_v12 = vpop.permute.xlu1 %4545 }
0x165e   : > { %v4557_v30 = vmul.f32 %v4546_v12, %v10114_v28 }
0x1660   : > { %4565 = vrot.lane.b32.xlu0 %v4557_v30, %s11762_s30 }
0x1690   : > { %v4418_v14 = vpop.permute.xlu1 %4417 }
0x1691   : > { %v10120_v24 = vadd.f32 %v4418_v14, %v4389_v9 }
0x1693   : > { %8302 = vtanh.f32 %v10120_v24  ;;  %v4422_v17 = vpop.permute.xlu2 %4421 }
0x1694   : > { %v10125_v29 = vadd.f32 %v4422_v17, %v4391_v45 }
0x1696   : > { %8304 = vtanh.f32 %v10125_v29 }
0x1699   : > { %v8303_v48 = vpop.eup %8302 }
0x169a   : > { %4441 = vrot.lane.b32.xlu0 %v8303_v48, %s11757_s5 }
0x169b   : > { %v4424_v26 = vpop.permute.xlu2 %4423 }
0x169c   : > { %v8305_v52 = vpop.eup %8304  ;;  %v10131_v34 = vadd.f32 %v4424_v26, %v4392_v58 }
0x169d   : > { %4445 = vrot.lane.b32.xlu1 %v8305_v52, %s11757_s5 }
0x169e   : > { %8306 = vtanh.f32 %v10131_v34 }
0x16a4   : > { %v8307_v8 = vpop.eup %8306 }
0x16a5   : > { %4447 = vrot.lane.b32.xlu1 %v8307_v8, %s11757_s5 }
0x16aa   : > { %v4420_v22 = vpop.permute.xlu0 %4419 }
0x16ab   : > { %v10138_v41 = vadd.f32 %v4420_v22, %v4390_v42 }
0x16ad   : > { %8308 = vtanh.f32 %v10138_v41 }
0x16b1   : > { %v4568_v54 = vpop.permute.xlu1 %4567 }
0x16b2   : > { %v10143_v4 = vadd.f32 %v4568_v54, %v4538_v1 }
0x16b3   : > { %v8309_v40 = vpop.eup %8308 }
0x16b4   : > { %8310 = vtanh.f32 %v10143_v4  ;;  %4443 = vrot.lane.b32.xlu2 %v8309_v40, %s11757_s5 }
0x16b9   : > { %v4572_v33 = vpop.permute.xlu1 %4571 }
0x16ba   : > { %v8311_v10 = vpop.eup %8310  ;;  %v10149_v36 = vadd.f32 %v4572_v33, %v4540_v5 }
0x16bb   : > { %4591 = vrot.lane.b32.xlu0 %v8311_v10, %s11757_s5 }
0x16bc   : > { %8312 = vtanh.f32 %v10149_v36 }
0x16c2   : > { %v8313_v49 = vpop.eup %8312 }
0x16c3   : > { %4595 = vrot.lane.b32.xlu0 %v8313_v49, %s11757_s5 }
0x16ca   : > { %v4570_v18 = vpop.permute.xlu0 %4569 }
0x16cb   : > { %v10156_v55 = vadd.f32 %v4570_v18, %v4539_v27 }
0x16cd   : > { %8314 = vtanh.f32 %v10156_v55 }
0x16d2   : > { %v4566_v44 = vpop.permute.xlu0 %4565 }
0x16d3   : > { %v8315_v20 = vpop.eup %8314  ;;  %v10161_v53 = vadd.f32 %v4566_v44, %v4537_v56 }
0x16d4   : > { %4593 = vrot.lane.b32.xlu2 %v8315_v20, %s11757_s5 }
0x16d5   : > { %8316 = vtanh.f32 %v10161_v53 }
0x16db   : > { %v8317_v61 = vpop.eup %8316 }
0x16dc   : > { %4589 = vrot.lane.b32.xlu2 %v8317_v61, %s11757_s5 }
0x170c   : > { %v4442_v25 = vpop.permute.xlu0 %4441 }
0x170d   : > { %v10175_v37 = vmul.f32 %v4442_v25, %v10025_v46 }
0x170e   : > { %v4444_v2 = vpop.permute.xlu2 %4443 }
0x170f   : > { %v10167_v57 = vmul.f32 %v4444_v2, %v10068_v31  ;;  %v4446_v47 = vpop.permute.xlu1 %4445  ;;  %v4649_v30 = vpack.c.bf16 %v10175_v37, %v10175_v37 }
0x1710   : > { %v10172_v50 = vmul.f32 %v4446_v47, %v10080_v43 }
0x1711   : > { %v4650_v60 = vpack.c.bf16 %v10167_v57, %v10167_v57  ;;  %v4657_v17 = vunpack.c.l.b16 %v4649_v30  ;;  %v10224_v30 = vld [vmem:[%s11666_s19] sm:$0xff] }
0x1712   : > { %11775 = vst [vmem:[#allocation12_spill] sm:$0xff] %v10172_v50  ;;  %v4651_v51 = vpack.c.bf16 %v10172_v50, %v10172_v50 }
0x1713   : > { %v4658_v12 = vunpack.c.l.b16 %v4650_v60 }
0x1714   : > { %v4659_v31 = vunpack.c.l.b16 %v4651_v51 }
0x1715   : > { %v4661_v14 = vrot.slane %v4658_v12, 7  ;;  %v10218_v12 = vld [vmem:[%s11666_s19 + $0x8] sm:$0xff] }
0x1716   : > { %v4663_v48 = vrot.slane %v4659_v31, 6 }
0x1717   : > { %v4448_v9 = vpop.permute.xlu1 %4447  ;;  %v4662_v46 = vsel %vm4217_vm5, %v4661_v14, %v4657_v17  ;;  %v10237_v14 = vld [vmem:[%s11669_s22] sm:$0xff] }
0x1718   : > { %v10182_v45 = vmul.f32 %v4448_v9, %v10101_v32  ;;  %v4664_v52 = vsel %vm4220_vm1, %v4663_v48, %v4662_v46  ;;  %v10231_v9 = vld [vmem:[%s11669_s22 + $0x8] sm:$0xff]  ;;  %v4645_v17 = vld [vmem:[#allocation2 + $0x2] sm:$0x1] }
0x171a   : > { %11776 = vst [vmem:[#allocation13_spill] sm:$0xff] %v10182_v45  ;;  %v4652_v43 = vpack.c.bf16 %v10182_v45, %v10182_v45 }
0x171c   : > { %v4660_v58 = vunpack.c.l.b16 %v4652_v43 }
0x171e   : > { %v4665_v26 = vrot.slane %v4660_v58, 5  ;;  %v4646_v58 = vld [vmem:[#allocation2 + $0xa] sm:$0x1] }
0x1720   : > { %v4666_v8 = vsel %vm4223_vm2, %v4665_v26, %v4664_v52 }
0x1721   : > { %v4667_v42 = vpack.c.b16 %v4666_v8, %v4666_v8  ;;  %v4647_v8 = vld [vmem:[#allocation2 + $0x12] sm:$0x1] }
0x1723   : > { %4668 = vrot.lane.b32.xlu1 %v4667_v42, %s11762_s30 }
0x172d   : > { %v4592_v22 = vpop.permute.xlu0 %4591 }
0x172e   : > { %v4594_v1 = vpop.permute.xlu2 %4593  ;;  %v10191_v32 = vmul.f32 %v4592_v22, %v10089_v62 }
0x172f   : > { %v10194_v54 = vmul.f32 %v4594_v1, %v10110_v16 }
0x1730   : > { %v4703_v5 = vpack.c.bf16 %v10191_v32, %v10191_v32 }
0x1731   : > { %11777 = vst [vmem:[#allocation14_spill] sm:$0xff] %v10194_v54  ;;  %v4704_v10 = vpack.c.bf16 %v10194_v54, %v10194_v54 }
0x1732   : > { %v4711_v18 = vunpack.c.l.b16 %v4703_v5 }
0x1733   : > { %v4712_v56 = vunpack.c.l.b16 %v4704_v10 }
0x1734   : > { %v4714_v20 = vrot.slane %v4711_v18, 7 }
0x1735   : > { %v4596_v40 = vpop.permute.xlu0 %4595  ;;  %v4716_v2 = vrot.slane %v4712_v56, 6 }
0x1736   : > { %v10199_v33 = vmul.f32 %v4596_v40, %v10106_v59  ;;  %v4590_v27 = vpop.permute.xlu2 %4589 }
0x1737   : > { %v10206_v62 = vmul.f32 %v4590_v27, %v10114_v28 }
0x1738   : > { %11778 = vst [vmem:[#allocation15_spill] sm:$0xff] %v10199_v33  ;;  %v4705_v49 = vpack.c.bf16 %v10199_v33, %v10199_v33 }
0x1739   : > { %v4702_v44 = vpack.c.bf16 %v10206_v62, %v10206_v62 }
0x173a   : > { %v4713_v16 = vunpack.c.l.b16 %v4705_v49  ;;  %v4648_v49 = vld [vmem:[#allocation2 + $0x1a] sm:$0x1] }
0x173b   : > { %v4710_v61 = vunpack.c.l.b16 %v4702_v44 }
0x173c   : > { %v4718_v59 = vrot.slane %v4713_v16, 5 }
0x173d   : > { %v4715_v25 = vsel %vm4217_vm5, %v4714_v20, %v4710_v61  ;;  %v4699_v20 = vld [vmem:[#allocation3 + $0xd] sm:$0x1] }
0x173e   : > { %v4717_v47 = vsel %vm4220_vm1, %v4716_v2, %v4715_v25 }
0x173f   : > { %v4719_v60 = vsel %vm4223_vm2, %v4718_v59, %v4717_v47  ;;  %v4700_v59 = vld [vmem:[#allocation3 + $0x15] sm:$0x1] }
0x1740   : > { %v4720_v51 = vpack.c.b16 %v4719_v60, %v4719_v60  ;;  %v4701_v60 = vld [vmem:[#allocation3 + $0x1d] sm:$0x1] }
0x1742   : > { %4721 = vrot.lane.b32.xlu2 %v4720_v51, %s11762_s30 }
0x1795   : > { %v4669_v28 = vpop.permute.xlu1 %4668 }
0x1796   : > { %7885 = vmatmul.msk.bf16.vlgmr.msrb.gmra.mxu2 %vm3792_vm3, %v4669_v28  ;;  %v4698_v28 = vld [vmem:[#allocation3 + $0x5] sm:$0x1] }
0x1797   : > { %6447 = vmatpush.bf16.msrb.mxu2 %v10218_v12 }
0x179b   : > { %6448 = vmatpush.bf16.msrb.mxu2 %v10224_v30 }
0x179c   : > { %v4722_v31 = vpop.permute.xlu2 %4721 }
0x179d   : > { %7886 = vmatmul.msk.bf16.vlgmr.msrb.gmra.mxu3 %vm3792_vm3, %v4722_v31 }
0x179e   : > { %6500 = vmatpush.bf16.msrb.mxu3 %v10231_v9 }
0x17a2   : > { %6501 = vmatpush.bf16.msrb.mxu3 %v10237_v14 }
0x1819   : > { %v4682_v43 = vpop.f32.mrf.mxu2 }
0x181a   : > { %v4687_v48 = vrot.slane %v4682_v43, 1  ;;  %v4694_v46 = vadd.f32 %v4682_v43, %v4645_v17  ;;  %v4688_v26 = vrot.slane %v4682_v43, 2  ;;  %v4689_v5 = vrot.slane %v4682_v43, 3 }
0x181c   : > { %v4695_v52 = vadd.f32 %v4687_v48, %v4646_v58  ;;  %8318 = vtanh.f32 %v4694_v46  ;;  %v4696_v42 = vadd.f32 %v4688_v26, %v4647_v8  ;;  %v4697_v18 = vadd.f32 %v4689_v5, %v4648_v49 }
0x181d   : > { %v7887_v5 = vmul.f32 -1.442695, %v4694_v46 }
0x181e   : > { %8320 = vtanh.f32 %v4695_v52  ;;  %v7889_v26 = vmul.f32 -1.442695, %v4696_v42  ;;  %v7890_v8 = vmul.f32 -1.442695, %v4697_v18 }
0x181f   : > { %8322 = vtanh.f32 %v4696_v42 }
0x1820   : > { %v4735_v22 = vpop.f32.mrf.mxu3  ;;  %8324 = vtanh.f32 %v4697_v18 }
0x1821   : > { %v4684_v1 = vpop.f32.mrf.mxu2  ;;  %v4740_v27 = vrot.slane %v4735_v22, 1  ;;  %v4741_v16 = vrot.slane %v4735_v22, 2  ;;  %v4742_v25 = vrot.slane %v4735_v22, 3  ;;  %v4747_v17 = vadd.f32 %v4735_v22, %v4698_v28 }
0x1822   : > { %v8319_v40 = vpop.eup %8318 }
0x1823   : > { %4839 = vrot.lane.b32.xlu1 %v8319_v40, %s11757_s5  ;;  %v4748_v61 = vadd.f32 %v4740_v27, %v4699_v20  ;;  %v4749_v2 = vadd.f32 %v4741_v16, %v4700_v59  ;;  %v4750_v51 = vadd.f32 %v4742_v25, %v4701_v60 }
0x1824   : > { %v8321_v10 = vpop.eup %8320 }
0x1825   : > { %4841 = vrot.lane.b32.xlu0 %v8321_v10, %s11757_s5  ;;  %v8323_v44 = vpop.eup %8322  ;;  %8326 = vtanh.f32 %v4748_v61  ;;  %v7888_v10 = vmul.f32 -1.442695, %v4695_v52  ;;  %v7892_v46 = vmul.f32 -1.442695, %v4748_v61  ;;  %v7893_v52 = vmul.f32 -1.442695, %v4749_v2 }
0x1826   : > { %4843 = vrot.lane.b32.xlu2 %v8323_v44, %s11757_s5  ;;  %8328 = vtanh.f32 %v4749_v2  ;;  %v8325_v47 = vpop.eup %8324 }
0x1827   : > { %8330 = vtanh.f32 %v4750_v51 }
0x1828   : > { %v4737_v56 = vpop.f32.mrf.mxu3  ;;  %8332 = vtanh.f32 %v4747_v17 }
0x1829   : > { %8334 = vpow2.f32 %v7889_v26 }
0x182a   : > { %8336 = vpow2.f32 %v7890_v8 }
0x182b   : > { %v8327_v31 = vpop.eup %8326 }
0x182c   : > { %4989 = vrot.lane.b32.xlu1 %v8327_v31, %s11757_s5  ;;  %v8329_v43 = vpop.eup %8328 }
0x182d   : > { %4991 = vrot.lane.b32.xlu0 %v8329_v43, %s11757_s5  ;;  %v8331_v48 = vpop.eup %8330 }
0x182e   : > { %4845 = vrot.lane.b32.xlu2 %v8325_v47, %s11757_s5  ;;  %v8333_v58 = vpop.eup %8332 }
0x182f   : > { %v8335_v1 = vpop.eup %8334 }
0x1830   : > { %v4765_v40 = vadd.f32 1.0, %v8335_v1  ;;  %v8337_v22 = vpop.eup %8336  ;;  %v7894_v1 = vmul.f32 -1.442695, %v4750_v51 }
0x1831   : > { %v4766_v49 = vadd.f32 1.0, %v8337_v22 }
0x1832   : > { %8338 = vrcp.f32 %v4765_v40  ;;  %v4808_v31 = vand.u32 2147483648, %v4765_v40  ;;  %vm4802_vm6 = vweird.f32 %v4765_v40  ;;  %v4806_v43 = vand.u32 2147483647, %v4765_v40 }
0x1833   : > { %8340 = vpow2.f32 %v7887_v5  ;;  %v7891_v5 = vmul.f32 -1.442695, %v4747_v17  ;;  %v4823_v51 = vand.u32 2147483648, %v4766_v49  ;;  %vm4817_vm10 = vweird.f32 %v4766_v49 }
0x1834   : > { %4993 = vrot.lane.b32.xlu1 %v8331_v48, %s11757_s5  ;;  %8342 = vpow2.f32 %v7888_v10  ;;  %v4809_v61 = vor.u32 1.1754944e-38, %v4808_v31  ;;  %vm4807_vm8 = vcmp.eq.f32.partialorder %v4806_v43, 8.507059e+37 }
0x1835   : > { %4987 = vrot.lane.b32.xlu0 %v8333_v58, %s11757_s5  ;;  %8344 = vrcp.f32 %v4766_v49 }
0x1838   : > { %v8339_v27 = vpop.eup %8338 }
0x1839   : > { %v4798_v16 = vmul.f32 %v8339_v27, %v4765_v40  ;;  %v8341_v56 = vpop.eup %8340  ;;  %vm4803_vm4 = vweird.f32 %v8339_v27 }
0x183a   : > { %v8343_v44 = vpop.eup %8342  ;;  %v10248_v42 = vadd.f32 1.0, %v8341_v56  ;;  %vm4804_vm7 = vmor %vm4802_vm6, %vm4803_vm4 }
0x183b   : > { %v4799_v20 = vsub.f32 1.0, %v4798_v16  ;;  %v8345_v59 = vpop.eup %8344  ;;  %v10250_v18 = vadd.f32 1.0, %v8343_v44 }
0x183c   : > { %v4813_v47 = vmul.f32 %v8345_v59, %v4766_v49  ;;  %8346 = vrcp.f32 %v10248_v42  ;;  %vm4818_vm9 = vweird.f32 %v8345_v59  ;;  %vm4772_vm14 = vweird.f32 %v10248_v42 }
0x183d   : > { %v4800_v25 = vmul.f32 %v8339_v27, %v4799_v20  ;;  %8348 = vrcp.f32 %v10250_v18  ;;  %vm4819_vm11 = vmor %vm4817_vm10, %vm4818_vm9  ;;  %vm4787_vm6 = vweird.f32 %v10250_v18 }
0x183e   : > { %v4814_v28 = vsub.f32 1.0, %v4813_v47  ;;  %8350 = vpow2.f32 %v7892_v46 }
0x183f   : > { %v4801_v60 = vadd.f32 %v8339_v27, %v4800_v25  ;;  %8352 = vpow2.f32 %v7893_v52  ;;  %v4821_v25 = vand.u32 2147483647, %v4766_v49 }
0x1840   : > { %v4815_v26 = vmul.f32 %v8345_v59, %v4814_v28  ;;  %8354 = vpow2.f32 %v7894_v1 }
0x1841   : > { %v4805_v58 = vsel %vm4804_vm7, %v8339_v27, %v4801_v60  ;;  %8356 = vpow2.f32 %v7891_v5  ;;  %v4824_v60 = vor.u32 1.1754944e-38, %v4823_v51  ;;  %vm4822_vm12 = vcmp.eq.f32.partialorder %v4821_v25, 8.507059e+37 }
0x1842   : > { %v10254_v48 = vpop.eup %8346  ;;  %v10260_v16 = vsel %vm4807_vm8, %v4809_v61, %v4805_v58  ;;  %v4816_v56 = vadd.f32 %v8345_v59, %v4815_v26  ;;  %v4791_v51 = vand.u32 2147483647, %v10250_v18 }
0x1843   : > { %v10256_v8 = vpop.eup %8348  ;;  %v4768_v2 = vmul.f32 %v10254_v48, %v10248_v42  ;;  %vm4773_vm13 = vweird.f32 %v10254_v48 }
0x1844   : > { %v8351_v22 = vpop.eup %8350  ;;  %v4783_v27 = vmul.f32 %v10256_v8, %v10250_v18  ;;  %v4820_v46 = vsel %vm4819_vm11, %v8345_v59, %v4816_v56  ;;  %vm4788_vm15 = vweird.f32 %v10256_v8  ;;  %vm4774_vm4 = vmor %vm4772_vm14, %vm4773_vm13  ;;  %v4793_v56 = vand.u32 2147483648, %v10250_v18 }
0x1845   : > { %v8353_v44 = vpop.eup %8352  ;;  %v10265_v20 = vadd.f32 1.0, %v8351_v22  ;;  %v4769_v17 = vsub.f32 1.0, %v4768_v2  ;;  %v10272_v43 = vsel %vm4822_vm12, %v4824_v60, %v4820_v46  ;;  %v4778_v2 = vand.u32 2147483648, %v10248_v42  ;;  %vm4789_vm7 = vmor %vm4787_vm6, %vm4788_vm15 }
0x1846   : > { %v10268_v47 = vadd.f32 1.0, %v8353_v44  ;;  %v4784_v52 = vsub.f32 1.0, %v4783_v27  ;;  %v8355_v31 = vpop.eup %8354  ;;  %v4794_v60 = vor.u32 1.1754944e-38, %v4793_v56  ;;  %vm4792_vm9 = vcmp.eq.f32.partialorder %v4791_v51, 8.507059e+37 }
0x1847   : > { %8358 = vrcp.f32 %v10265_v20  ;;  %v4770_v28 = vmul.f32 %v10254_v48, %v4769_v17  ;;  %v8357_v1 = vpop.eup %8356  ;;  %v10277_v61 = vadd.f32 1.0, %v8355_v31  ;;  %v4779_v25 = vor.u32 1.1754944e-38, %v4778_v2 }
0x1848   : > { %8360 = vrcp.f32 %v10268_v47  ;;  %v4785_v26 = vmul.f32 %v10256_v8, %v4784_v52  ;;  %v10284_v5 = vadd.f32 1.0, %v8357_v1  ;;  %vm4935_vm11 = vweird.f32 %v10265_v20 }
0x1849   : > { %v4771_v59 = vadd.f32 %v10254_v48, %v4770_v28  ;;  %8362 = vrcp.f32 %v10277_v61  ;;  %v4941_v51 = vand.u32 2147483648, %v10265_v20  ;;  %vm4950_vm14 = vweird.f32 %v10268_v47 }
0x184a   : > { %8364 = vrcp.f32 %v10284_v5 }
0x184b   : > { %v4775_v44 = vsel %vm4774_vm4, %v10254_v48, %v4771_v59 }
0x184d   : > { %v8359_v22 = vpop.eup %8358 }
0x184e   : > { %v8361_v27 = vpop.eup %8360  ;;  %vm4936_vm10 = vweird.f32 %v8359_v22 }
0x184f   : > { %v4946_v28 = vmul.f32 %v8361_v27, %v10268_v47  ;;  %vm4951_vm12 = vweird.f32 %v8361_v27  ;;  %vm4937_vm13 = vmor %vm4935_vm11, %vm4936_vm10  ;;  %vm4920_vm11 = vweird.f32 %v10284_v5 }
0x1850   : > { %vm4952_vm15 = vmor %vm4950_vm14, %vm4951_vm12 }
0x1851   : > { %v4947_v1 = vsub.f32 1.0, %v4946_v28  ;;  %v4954_v28 = vand.u32 2147483647, %v10268_v47 }
0x1853   : > { %vm4955_vm6 = vcmp.eq.f32.partialorder %v4954_v28, 8.507059e+37 }
0x1880   : > { %v4844_v10 = vpop.permute.xlu2 %4843 }
0x1881   : > { %v4853_v40 = vmul.f32 %v4844_v10, %v10260_v16  ;;  %v4776_v10 = vand.u32 2147483647, %v10248_v42  ;;  %v4931_v42 = vmul.f32 %v8359_v22, %v10265_v20 }
0x1883   : > { %4863 = vrot.lane.b32.xlu1 %v4853_v40, %s11762_s30  ;;  %v4786_v40 = vadd.f32 %v10256_v8, %v4785_v26  ;;  %vm4777_vm8 = vcmp.eq.f32.partialorder %v4776_v10, 8.507059e+37  ;;  %v4948_v10 = vmul.f32 %v8361_v27, %v4947_v1 }
0x1884   : > { %v10297_v52 = vsel %vm4777_vm8, %v4779_v25, %v4775_v44  ;;  %v4939_v25 = vand.u32 2147483647, %v10265_v20  ;;  %vm4965_vm8 = vweird.f32 %v10277_v61 }
0x1885   : > { %v4790_v17 = vsel %vm4789_vm7, %v10256_v8, %v4786_v40 }
0x1886   : > { %v10301_v18 = vsel %vm4792_vm9, %v4794_v60, %v4790_v17  ;;  %vm4940_vm4 = vcmp.eq.f32.partialorder %v4939_v25, 8.507059e+37 }
0x1888   : > { %v4846_v58 = vpop.permute.xlu2 %4845 }
0x1889   : > { %v4854_v49 = vmul.f32 %v4846_v58, %v10272_v43  ;;  %v4932_v58 = vsub.f32 1.0, %v4931_v42  ;;  %v4949_v42 = vadd.f32 %v8361_v27, %v4948_v10 }
0x188b   : > { %4865 = vrot.lane.b32.xlu1 %v4854_v49, %s11762_s30  ;;  %v8363_v49 = vpop.eup %8362  ;;  %v4933_v59 = vmul.f32 %v8359_v22, %v4932_v58  ;;  %v4953_v58 = vsel %vm4952_vm15, %v8361_v27, %v4949_v42  ;;  %v4969_v27 = vand.u32 2147483647, %v10277_v61  ;;  %v4924_v42 = vand.u32 2147483647, %v10284_v5 }
0x188c   : > { %v8365_v8 = vpop.eup %8364  ;;  %v4961_v2 = vmul.f32 %v8363_v49, %v10277_v61  ;;  %vm4966_vm7 = vweird.f32 %v8363_v49 }
0x188d   : > { %v4916_v40 = vmul.f32 %v8365_v8, %v10284_v5  ;;  %v4934_v56 = vadd.f32 %v8359_v22, %v4933_v59  ;;  %vm4921_vm9 = vweird.f32 %v8365_v8  ;;  %vm4967_vm10 = vmor %vm4965_vm8, %vm4966_vm7  ;;  %vm4925_vm14 = vcmp.eq.f32.partialorder %v4924_v42, 8.507059e+37 }
0x188e   : > { %v4962_v44 = vsub.f32 1.0, %v4961_v2  ;;  %vm4922_vm12 = vmor %vm4920_vm11, %vm4921_vm9 }
0x188f   : > { %v4917_v17 = vsub.f32 1.0, %v4916_v40  ;;  %v4938_v60 = vsel %vm4937_vm13, %v8359_v22, %v4934_v56  ;;  %vm4970_vm13 = vcmp.eq.f32.partialorder %v4969_v27, 8.507059e+37 }
0x1895   : > { %v4840_v46 = vpop.permute.xlu1 %4839 }
0x1896   : > { %v4851_v48 = vmul.f32 %v4840_v46, %v10297_v52  ;;  %v4956_v46 = vand.u32 2147483648, %v10268_v47  ;;  %v4971_v47 = vand.u32 2147483648, %v10277_v61 }
0x1897   : > { %v4842_v31 = vpop.permute.xlu0 %4841 }
0x1898   : > { %v4852_v26 = vmul.f32 %v4842_v31, %v10301_v18  ;;  %4859 = vrot.lane.b32.xlu0 %v4851_v48, %s11762_s30  ;;  %v4963_v48 = vmul.f32 %v8363_v49, %v4962_v44  ;;  %v4942_v31 = vor.u32 1.1754944e-38, %v4941_v51  ;;  %v4957_v20 = vor.u32 1.1754944e-38, %v4956_v46 }
0x1899   : > { %v4926_v51 = vand.u32 2147483648, %v10284_v5  ;;  %v4832_v5 = vmul.f32 %v10301_v18, %v10138_v41 }
0x189a   : > { %4861 = vrot.lane.b32.xlu2 %v4852_v26, %s11762_s30  ;;  %v4918_v26 = vmul.f32 %v8365_v8, %v4917_v17  ;;  %v10314_v59 = vsel %vm4940_vm4, %v4942_v31, %v4938_v60  ;;  %v4964_v10 = vadd.f32 %v8363_v49, %v4963_v48  ;;  %v10317_v40 = vsel %vm4955_vm6, %v4957_v20, %v4953_v58 }
0x189b   : > { %v4972_v17 = vor.u32 1.1754944e-38, %v4971_v47  ;;  %v4927_v61 = vor.u32 1.1754944e-38, %v4926_v51 }
0x189c   : > { %v4919_v44 = vadd.f32 %v8365_v8, %v4918_v26  ;;  %v4968_v25 = vsel %vm4967_vm10, %v8363_v49, %v4964_v10 }
0x189d   : > { %v10328_v60 = vsel %vm4970_vm13, %v4972_v17, %v4968_v25 }
0x189e   : > { %v4990_v1 = vpop.permute.xlu1 %4989  ;;  %v4923_v46 = vsel %vm4922_vm12, %v8365_v8, %v4919_v44 }
0x189f   : > { %v5000_v2 = vmul.f32 %v4990_v1, %v10314_v59  ;;  %v4992_v22 = vpop.permute.xlu0 %4991  ;;  %v10331_v31 = vsel %vm4925_vm14, %v4927_v61, %v4923_v46  ;;  %v4833_v1 = vmul.f32 %v10260_v16, %v10125_v29  ;;  %v4981_v29 = vmul.f32 %v10317_v40, %v10156_v55 }
0x18a0   : > { %v5001_v56 = vmul.f32 %v4992_v22, %v10317_v40  ;;  %v4834_v22 = vmul.f32 %v10272_v43, %v10131_v34  ;;  %v4831_v34 = vmul.f32 %v10297_v52, %v10120_v24  ;;  %v4979_v17 = vmul.f32 %v10331_v31, %v10161_v53 }
0x18a1   : > { %5009 = vrot.lane.b32.xlu0 %v5000_v2, %s11762_s30 }
0x18a2   : > { %5011 = vrot.lane.b32.xlu2 %v5001_v56, %s11762_s30 }
0x18a6   : > { %v4994_v28 = vpop.permute.xlu1 %4993 }
0x18a7   : > { %v5002_v48 = vmul.f32 %v4994_v28, %v10328_v60  ;;  %v4988_v58 = vpop.permute.xlu0 %4987 }
0x18a8   : > { %v4999_v49 = vmul.f32 %v4988_v58, %v10331_v31 }
0x18a9   : > { %5013 = vrot.lane.b32.xlu0 %v5002_v48, %s11762_s30  ;;  %v4980_v48 = vmul.f32 %v10314_v59, %v10143_v4 }
0x18aa   : > { %5007 = vrot.lane.b32.xlu2 %v4999_v49, %s11762_s30  ;;  %v4982_v49 = vmul.f32 %v10328_v60, %v10149_v36 }
0x18f4   : > { %v4862_v8 = vpop.permute.xlu2 %4861 }
0x18f5   : > { %v10338_v26 = vadd.f32 %v4862_v8, %v4832_v5  ;;  %v4864_v20 = vpop.permute.xlu1 %4863 }
0x18f6   : > { %v10343_v2 = vadd.f32 %v4864_v20, %v4833_v1 }
0x18f7   : > { %8366 = vtanh.f32 %v10338_v26 }
0x18f8   : > { %8368 = vtanh.f32 %v10343_v2 }
0x18fc   : > { %v5012_v27 = vpop.permute.xlu2 %5011 }
0x18fd   : > { %v8367_v10 = vpop.eup %8366  ;;  %v4866_v41 = vpop.permute.xlu1 %4865  ;;  %v10355_v44 = vadd.f32 %v5012_v27, %v4981_v29 }
0x18fe   : > { %4885 = vrot.lane.b32.xlu1 %v8367_v10, %s11757_s5  ;;  %v8369_v47 = vpop.eup %8368  ;;  %v10349_v56 = vadd.f32 %v4866_v41, %v4834_v22 }
0x18ff   : > { %4887 = vrot.lane.b32.xlu0 %v8369_v47, %s11757_s5 }
0x1900   : > { %8370 = vtanh.f32 %v10349_v56 }
0x1901   : > { %8372 = vtanh.f32 %v10355_v44 }
0x1904   : > { %v5008_v46 = vpop.permute.xlu2 %5007 }
0x1905   : > { %v10366_v28 = vadd.f32 %v5008_v46, %v4979_v17 }
0x1906   : > { %v8371_v51 = vpop.eup %8370 }
0x1907   : > { %4889 = vrot.lane.b32.xlu0 %v8371_v51, %s11757_s5  ;;  %v8373_v55 = vpop.eup %8372 }
0x1908   : > { %5035 = vrot.lane.b32.xlu1 %v8373_v55, %s11757_s5 }
0x190a   : > { %v4860_v25 = vpop.permute.xlu0 %4859 }
0x190b   : > { %v10361_v42 = vadd.f32 %v4860_v25, %v4831_v34 }
0x190d   : > { %8374 = vtanh.f32 %v10361_v42 }
0x190e   : > { %8376 = vtanh.f32 %v10366_v28 }
0x1913   : > { %v8375_v61 = vpop.eup %8374  ;;  %v5010_v53 = vpop.permute.xlu0 %5009 }
0x1914   : > { %4883 = vrot.lane.b32.xlu2 %v8375_v61, %s11757_s5  ;;  %v8377_v24 = vpop.eup %8376  ;;  %v10374_v58 = vadd.f32 %v5010_v53, %v4980_v48 }
0x1915   : > { %5031 = vrot.lane.b32.xlu1 %v8377_v24, %s11757_s5 }
0x1916   : > { %8378 = vtanh.f32 %v10374_v58 }
0x191b   : > { %v5014_v5 = vpop.permute.xlu0 %5013 }
0x191c   : > { %v8379_v8 = vpop.eup %8378  ;;  %v10379_v1 = vadd.f32 %v5014_v5, %v4982_v49 }
0x191d   : > { %5033 = vrot.lane.b32.xlu2 %v8379_v8, %s11757_s5 }
0x191e   : > { %8380 = vtanh.f32 %v10379_v1 }
0x1924   : > { %v8381_v20 = vpop.eup %8380 }
0x1925   : > { %5037 = vrot.lane.b32.xlu2 %v8381_v20, %s11757_s5 }
0x196e   : > { %v4884_v22 = vpop.permute.xlu2 %4883 }
0x196f   : > { %v10393_v29 = vmul.f32 %v4884_v22, %v10297_v52 }
0x1970   : > { %v4886_v4 = vpop.permute.xlu1 %4885 }
0x1971   : > { %v10385_v10 = vmul.f32 %v4886_v4, %v10301_v18  ;;  %v4888_v41 = vpop.permute.xlu0 %4887  ;;  %v5091_v34 = vpack.c.bf16 %v10393_v29, %v10393_v29 }
0x1972   : > { %v10390_v47 = vmul.f32 %v4888_v41, %v10260_v16 }
0x1973   : > { %v5092_v36 = vpack.c.bf16 %v10385_v10, %v10385_v10  ;;  %v5099_v55 = vunpack.c.l.b16 %v5091_v34 }
0x1974   : > { %11779 = vst [vmem:[#allocation16_spill] sm:$0xff] %v10390_v47  ;;  %v5093_v27 = vpack.c.bf16 %v10390_v47, %v10390_v47 }
0x1975   : > { %v5100_v51 = vunpack.c.l.b16 %v5092_v36 }
0x1976   : > { %v5101_v18 = vunpack.c.l.b16 %v5093_v27 }
0x1977   : > { %v5103_v17 = vrot.slane %v5100_v51, 7  ;;  %v5034_v61 = vpop.permute.xlu2 %5033 }
0x1978   : > { %v5105_v52 = vrot.slane %v5101_v18, 6  ;;  %v10406_v49 = vmul.f32 %v5034_v61, %v10314_v59 }
0x1979   : > { %v4890_v25 = vpop.permute.xlu0 %4889  ;;  %v5104_v24 = vsel %vm4217_vm5, %v5103_v17, %v5099_v55 }
0x197a   : > { %v10400_v46 = vmul.f32 %v4890_v25, %v10272_v43  ;;  %v5036_v48 = vpop.permute.xlu1 %5035  ;;  %v5106_v43 = vsel %vm4220_vm1, %v5105_v52, %v5104_v24  ;;  %v5145_v4 = vpack.c.bf16 %v10406_v49, %v10406_v49 }
0x197b   : > { %v10409_v5 = vmul.f32 %v5036_v48, %v10317_v40 }
0x197c   : > { %11780 = vst [vmem:[#allocation17_spill] sm:$0xff] %v10400_v46  ;;  %v5094_v16 = vpack.c.bf16 %v10400_v46, %v10400_v46  ;;  %v5153_v40 = vunpack.c.l.b16 %v5145_v4 }
0x197d   : > { %11781 = vst [vmem:[#allocation18_spill] sm:$0xff] %v10409_v5  ;;  %v5146_v41 = vpack.c.bf16 %v10409_v5, %v10409_v5 }
0x197e   : > { %v5102_v53 = vunpack.c.l.b16 %v5094_v16  ;;  %v5156_v55 = vrot.slane %v5153_v40, 7  ;;  %v5089_v40 = vld [vmem:[#allocation2 + $0x13] sm:$0x1] }
0x197f   : > { %v5038_v36 = vpop.permute.xlu2 %5037  ;;  %v5154_v18 = vunpack.c.l.b16 %v5146_v41  ;;  %v5088_v41 = vld [vmem:[#allocation2 + $0xb] sm:$0x1] }
0x1980   : > { %v5107_v8 = vrot.slane %v5102_v53, 5  ;;  %v10418_v27 = vmul.f32 %v5038_v36, %v10328_v60 }
0x1981   : > { %v5158_v16 = vrot.slane %v5154_v18, 6 }
0x1982   : > { %v5108_v20 = vsel %vm4223_vm2, %v5107_v8, %v5106_v43  ;;  %11782 = vst [vmem:[#allocation19_spill] sm:$0xff] %v10418_v27  ;;  %v5147_v51 = vpack.c.bf16 %v10418_v27, %v10418_v27  ;;  %v5087_v43 = vld [vmem:[#allocation2 + $0x3] sm:$0x1] }
0x1983   : > { %v5109_v22 = vpack.c.b16 %v5108_v20, %v5108_v20 }
0x1984   : > { %v5155_v25 = vunpack.c.l.b16 %v5147_v51 }
0x1985   : > { %5110 = vrot.lane.b32.xlu0 %v5109_v22, %s11762_s30 }
0x1986   : > { %v5160_v60 = vrot.slane %v5155_v25, 5  ;;  %v5090_v25 = vld [vmem:[#allocation2 + $0x1b] sm:$0x1] }
0x1987   : > { %v5032_v59 = vpop.permute.xlu1 %5031 }
0x1988   : > { %v10424_v34 = vmul.f32 %v5032_v59, %v10331_v31 }
0x198a   : > { %v5144_v17 = vpack.c.bf16 %v10424_v34, %v10424_v34 }
0x198c   : > { %v5152_v61 = vunpack.c.l.b16 %v5144_v17 }
0x198e   : > { %v5157_v52 = vsel %vm4217_vm5, %v5156_v55, %v5152_v61 }
0x198f   : > { %v5159_v24 = vsel %vm4220_vm1, %v5158_v16, %v5157_v52  ;;  %v5142_v52 = vld [vmem:[#allocation3 + $0x14] sm:$0x1] }
0x1990   : > { %v5161_v48 = vsel %vm4223_vm2, %v5160_v60, %v5159_v24  ;;  %v5141_v60 = vld [vmem:[#allocation3 + $0xc] sm:$0x1] }
0x1991   : > { %v5162_v53 = vpack.c.b16 %v5161_v48, %v5161_v48 }
0x1993   : > { %5163 = vrot.lane.b32.xlu1 %v5162_v53, %s11762_s30 }
0x19f7   : > { %v5111_v31 = vpop.permute.xlu0 %5110 }
0x19f8   : > { %7895 = vmatmul.msk.bf16.vlgmr.msrb.gmra.mxu0 %vm3792_vm3, %v5111_v31 }
0x19f9   : > { %6889 = vmatpush.bf16.msrb.mxu0 %v10218_v12 }
0x19fd   : > { %6890 = vmatpush.bf16.msrb.mxu0 %v10224_v30 }
0x1a05   : > { %v5164_v8 = vpop.permute.xlu1 %5163 }
0x1a06   : > { %7896 = vmatmul.msk.bf16.vlgmr.msrb.gmra.mxu1 %vm3792_vm3, %v5164_v8 }
0x1a07   : > { %6942 = vmatpush.bf16.msrb.mxu1 %v10231_v9 }
0x1a0b   : > { %6943 = vmatpush.bf16.msrb.mxu1 %v10237_v14 }
0x1a75   : > { %v5124_v20 = vpop.f32.mrf.mxu0 }
0x1a76   : > { %v5129_v4 = vrot.slane %v5124_v20, 1  ;;  %v5136_v22 = vadd.f32 %v5124_v20, %v5087_v43  ;;  %v5130_v36 = vrot.slane %v5124_v20, 2  ;;  %v5131_v18 = vrot.slane %v5124_v20, 3  ;;  %v5143_v43 = vld [vmem:[#allocation3 + $0x1c] sm:$0x1] }
0x1a77   : > { %v5140_v20 = vld [vmem:[#allocation3 + $0x4] sm:$0x1] }
0x1a78   : > { %v5137_v59 = vadd.f32 %v5129_v4, %v5088_v41  ;;  %8382 = vtanh.f32 %v5136_v22  ;;  %v5138_v51 = vadd.f32 %v5130_v36, %v5089_v40  ;;  %v5139_v17 = vadd.f32 %v5131_v18, %v5090_v25 }
0x1a7a   : > { %8384 = vtanh.f32 %v5137_v59  ;;  %v7898_v18 = vmul.f32 -1.442695, %v5137_v59 }
0x1a7b   : > { %8386 = vtanh.f32 %v5138_v51 }
0x1a7c   : > { %8388 = vtanh.f32 %v5139_v17 }
0x1a7d   : > { %v5126_v12 = vpop.f32.mrf.mxu0 }
0x1a7e   : > { %v8383_v30 = vpop.eup %8382 }
0x1a7f   : > { %5281 = vrot.lane.b32.xlu0 %v8383_v30, %s11757_s5 }
0x1a80   : > { %v8385_v9 = vpop.eup %8384 }
0x1a81   : > { %5283 = vrot.lane.b32.xlu2 %v8385_v9, %s11757_s5  ;;  %v8387_v55 = vpop.eup %8386 }
0x1a82   : > { %5285 = vrot.lane.b32.xlu1 %v8387_v55, %s11757_s5  ;;  %v8389_v31 = vpop.eup %8388  ;;  %v7897_v55 = vmul.f32 -1.442695, %v5136_v22 }
0x1a83   : > { %v5177_v14 = vpop.f32.mrf.mxu1 }
0x1a84   : > { %v5182_v61 = vrot.slane %v5177_v14, 1  ;;  %v5183_v16 = vrot.slane %v5177_v14, 2  ;;  %v5184_v8 = vrot.slane %v5177_v14, 3  ;;  %v5189_v41 = vadd.f32 %v5177_v14, %v5140_v20 }
0x1a86   : > { %v5190_v24 = vadd.f32 %v5182_v61, %v5141_v60  ;;  %v5191_v48 = vadd.f32 %v5183_v16, %v5142_v52  ;;  %v10442_v4 = vadd.f32 %v5184_v8, %v5143_v43  ;;  %v7901_v60 = vmul.f32 -1.442695, %v5189_v41 }
0x1a87   : > { %v7899_v52 = vmul.f32 -1.442695, %v5138_v51 }
0x1a88   : > { %8390 = vtanh.f32 %v5190_v24  ;;  %v7903_v14 = vmul.f32 -1.442695, %v5191_v48 }
0x1a89   : > { %8392 = vtanh.f32 %v5191_v48 }
0x1a8a   : > { %5287 = vrot.lane.b32.xlu1 %v8389_v31, %s11757_s5  ;;  %8394 = vtanh.f32 %v10442_v4 }
0x1a8b   : > { %v5179_v53 = vpop.f32.mrf.mxu1  ;;  %8396 = vtanh.f32 %v5189_v41 }
0x1a8c   : > { %8398 = vpow2.f32 %v7898_v18 }
0x1a8e   : > { %v8391_v36 = vpop.eup %8390 }
0x1a8f   : > { %v8393_v40 = vpop.eup %8392  ;;  %5431 = vrot.lane.b32.xlu0 %v8391_v36, %s11757_s5  ;;  %v7900_v36 = vmul.f32 -1.442695, %v5139_v17 }
0x1a90   : > { %5433 = vrot.lane.b32.xlu2 %v8393_v40, %s11757_s5  ;;  %v8395_v12 = vpop.eup %8394 }
0x1a91   : > { %v8397_v30 = vpop.eup %8396 }
0x1a92   : > { %v8399_v9 = vpop.eup %8398 }
0x1a93   : > { %v5206_v25 = vadd.f32 1.0, %v8399_v9  ;;  %v7902_v9 = vmul.f32 -1.442695, %v5190_v24 }
0x1a95   : > { %8400 = vrcp.f32 %v5206_v25  ;;  %v5235_v51 = vand.u32 2147483648, %v5206_v25  ;;  %vm5229_vm4 = vweird.f32 %v5206_v25 }
0x1a96   : > { %8402 = vpow2.f32 %v7903_v14 }
0x1a97   : > { %5435 = vrot.lane.b32.xlu0 %v8395_v12, %s11757_s5  ;;  %8404 = vpow2.f32 %v7897_v55  ;;  %v5233_v12 = vand.u32 2147483647, %v5206_v25  ;;  %v5236_v14 = vor.u32 1.1754944e-38, %v5235_v51 }
0x1a98   : > { %5429 = vrot.lane.b32.xlu2 %v8397_v30, %s11757_s5  ;;  %8406 = vpow2.f32 %v7901_v60 }
0x1a99   : > { %8408 = vpow2.f32 %v7899_v52  ;;  %vm5234_vm7 = vcmp.eq.f32.partialorder %v5233_v12, 8.507059e+37 }
0x1a9b   : > { %v8401_v61 = vpop.eup %8400 }
0x1a9c   : > { %v5225_v16 = vmul.f32 %v8401_v61, %v5206_v25  ;;  %v8403_v53 = vpop.eup %8402  ;;  %vm5230_vm15 = vweird.f32 %v8401_v61 }
0x1a9d   : > { %v8405_v8 = vpop.eup %8404  ;;  %v10449_v43 = vadd.f32 1.0, %v8403_v53  ;;  %vm5231_vm6 = vmor %vm5229_vm4, %vm5230_vm15 }
0x1a9e   : > { %v5226_v31 = vsub.f32 1.0, %v5225_v16  ;;  %v10451_v20 = vadd.f32 1.0, %v8405_v8  ;;  %v8407_v22 = vpop.eup %8406 }
0x1a9f   : > { %8410 = vrcp.f32 %v10449_v43  ;;  %v8409_v48 = vpop.eup %8408  ;;  %v10455_v41 = vadd.f32 1.0, %v8407_v22  ;;  %vm5392_vm9 = vweird.f32 %v10449_v43 }
0x1aa0   : > { %v5227_v59 = vmul.f32 %v8401_v61, %v5226_v31  ;;  %8412 = vrcp.f32 %v10451_v20  ;;  %v10457_v30 = vadd.f32 1.0, %v8409_v48  ;;  %vm5214_vm12 = vweird.f32 %v10451_v20 }
0x1aa1   : > { %8414 = vpow2.f32 %v7900_v36 }
0x1aa2   : > { %v5228_v40 = vadd.f32 %v8401_v61, %v5227_v59  ;;  %8416 = vrcp.f32 %v10455_v41  ;;  %v7904_v59 = vmul.f32 -1.442695, %v10442_v4 }
0x1aa3   : > { %8418 = vrcp.f32 %v10457_v30 }
0x1aa4   : > { %v5232_v17 = vsel %vm5231_vm6, %v8401_v61, %v5228_v40  ;;  %8420 = vpow2.f32 %v7902_v9 }
0x1aa5   : > { %v8411_v18 = vpop.eup %8410  ;;  %v10463_v16 = vsel %vm5234_vm7, %v5236_v14, %v5232_v17  ;;  %vm5362_vm7 = vweird.f32 %v10455_v41 }
0x1aa6   : > { %v10460_v55 = vpop.eup %8412  ;;  %v5388_v52 = vmul.f32 %v8411_v18, %v10449_v43  ;;  %vm5393_vm8 = vweird.f32 %v8411_v18 }
0x1aa7   : > { %v8415_v25 = vpop.eup %8414  ;;  %v5210_v24 = vmul.f32 %v10460_v55, %v10451_v20  ;;  %vm5394_vm10 = vmor %vm5392_vm9, %vm5393_vm8  ;;  %vm5215_vm11 = vweird.f32 %v10460_v55  ;;  %vm5244_vm9 = vweird.f32 %v10457_v30 }
0x1aa8   : > { %v10470_v61 = vadd.f32 1.0, %v8415_v25  ;;  %v5389_v31 = vsub.f32 1.0, %v5388_v52  ;;  %v10472_v8 = vpop.eup %8416  ;;  %vm10502_vm14 = vmor %vm5214_vm12, %vm5215_vm11 }
0x1aa9   : > { %v10475_v36 = vpop.eup %8418  ;;  %v5211_v48 = vsub.f32 1.0, %v5210_v24  ;;  %v5358_v51 = vmul.f32 %v10472_v8, %v10455_v41  ;;  %vm5363_vm4 = vweird.f32 %v10472_v8 }
0x1aaa   : > { %v8421_v22 = vpop.eup %8420  ;;  %8422 = vrcp.f32 %v10470_v61  ;;  %v5390_v40 = vmul.f32 %v8411_v18, %v5389_v31  ;;  %v5240_v12 = vmul.f32 %v10475_v36, %v10457_v30  ;;  %vm5245_vm6 = vweird.f32 %v10475_v36  ;;  %vm5364_vm8 = vmor %vm5362_vm7, %vm5363_vm4 }
0x1aab   : > { %8424 = vpow2.f32 %v7904_v59  ;;  %v10482_v9 = vadd.f32 1.0, %v8421_v22  ;;  %v5212_v17 = vmul.f32 %v10460_v55, %v5211_v48  ;;  %v5359_v4 = vsub.f32 1.0, %v5358_v51 }
0x1aac   : > { %v5391_v14 = vadd.f32 %v8411_v18, %v5390_v40  ;;  %v5241_v52 = vsub.f32 1.0, %v5240_v12  ;;  %v5218_v59 = vand.u32 2147483647, %v10451_v20  ;;  %v5220_v22 = vand.u32 2147483648, %v10451_v20 }
0x1aad   : > { %8426 = vrcp.f32 %v10482_v9  ;;  %v5213_v31 = vadd.f32 %v10460_v55, %v5212_v17  ;;  %v5360_v40 = vmul.f32 %v10472_v8, %v5359_v4  ;;  %vm5377_vm7 = vweird.f32 %v10482_v9 }
0x1aae   : > { %v5395_v48 = vsel %vm5394_vm10, %v8411_v18, %v5391_v14  ;;  %v5242_v12 = vmul.f32 %v10475_v36, %v5241_v52  ;;  %vm10511_vm15 = vcmp.eq.f32.partialorder %v5218_v59, 8.507059e+37  ;;  %v5221_v4 = vor.u32 1.1754944e-38, %v5220_v22  ;;  %vm5246_vm10 = vmor %vm5244_vm9, %vm5245_vm6 }
0x1aaf   : > { %v5217_v14 = vsel %vm10502_vm14, %v10460_v55, %v5213_v31  ;;  %v5250_v55 = vand.u32 2147483648, %v10457_v30  ;;  %v5366_v59 = vand.u32 2147483647, %v10455_v41  ;;  %vm5259_vm14 = vweird.f32 %v10470_v61 }
0x1ab0   : > { %v10486_v25 = vpop.eup %8422 }
0x1ab1   : > { %v8425_v24 = vpop.eup %8424  ;;  %vm5367_vm11 = vcmp.eq.f32.partialorder %v5366_v59, 8.507059e+37  ;;  %v5251_v20 = vor.u32 1.1754944e-38, %v5250_v55 }
0x1ab2   : > { %v10500_v19 = vadd.f32 1.0, %v8425_v24  ;;  %v5368_v24 = vand.u32 2147483648, %v10455_v41 }
0x1ab4   : > { %8428 = vrcp.f32 %v10500_v19  ;;  %v5369_v41 = vor.u32 1.1754944e-38, %v5368_v24 }
0x1adb   : > { %v5284_v60 = vpop.permute.xlu2 %5283 }
0x1adc   : > { %v5294_v53 = vmul.f32 %v5284_v60, %v10463_v16  ;;  %v5398_v60 = vand.u32 2147483648, %v10449_v43 }
0x1ade   : > { %5303 = vrot.lane.b32.xlu1 %v5294_v53, %s11762_s30  ;;  %v5396_v53 = vand.u32 2147483647, %v10449_v43  ;;  %v5399_v51 = vor.u32 1.1754944e-38, %v5398_v60  ;;  %v5255_v43 = vmul.f32 %v10486_v25, %v10470_v61  ;;  %v10515_v60 = vpop.eup %8426 }
0x1adf   : > { %vm5378_vm4 = vweird.f32 %v10515_v60 }
0x1ae0   : > { %vm5397_vm13 = vcmp.eq.f32.partialorder %v5396_v53, 8.507059e+37  ;;  %v5361_v53 = vadd.f32 %v10472_v8, %v5360_v40  ;;  %v5256_v31 = vsub.f32 1.0, %v5255_v43  ;;  %v10530_v40 = vsel %vm10511_vm15, %v5221_v4, %v5217_v14 }
0x1ae1   : > { %v10506_v6 = vsel %vm5397_vm13, %v5399_v51, %v5395_v48  ;;  %v5243_v48 = vadd.f32 %v10475_v36, %v5242_v12  ;;  %v5248_v12 = vand.u32 2147483647, %v10457_v30  ;;  %v5373_v43 = vmul.f32 %v10515_v60, %v10482_v9 }
0x1ae2   : > { %v5365_v17 = vsel %vm5364_vm8, %v10472_v8, %v5361_v53  ;;  %v5257_v14 = vmul.f32 %v10486_v25, %v5256_v31  ;;  %vm5260_vm13 = vweird.f32 %v10486_v25  ;;  %v5263_v31 = vand.u32 2147483647, %v10470_v61  ;;  %vm5379_vm8 = vmor %vm5377_vm7, %vm5378_vm4 }
0x1ae3   : > { %v10543_v4 = vsel %vm5367_vm11, %v5369_v41, %v5365_v17  ;;  %vm5249_vm12 = vcmp.eq.f32.partialorder %v5248_v12, 8.507059e+37  ;;  %vm5261_vm15 = vmor %vm5259_vm14, %vm5260_vm13  ;;  %v5383_v17 = vand.u32 2147483648, %v10482_v9  ;;  %vm5407_vm11 = vweird.f32 %v10500_v19 }
0x1ae4   : > { %vm5264_vm6 = vcmp.eq.f32.partialorder %v5263_v31, 8.507059e+37 }
0x1aea   : > { %v5434_v18 = vpop.permute.xlu2 %5433 }
0x1aeb   : > { %v5443_v52 = vmul.f32 %v5434_v18, %v10506_v6  ;;  %v5247_v18 = vsel %vm5246_vm10, %v10475_v36, %v5243_v48  ;;  %v5258_v36 = vadd.f32 %v10486_v25, %v5257_v14  ;;  %v5265_v48 = vand.u32 2147483648, %v10470_v61 }
0x1aec   : > { %v10546_v53 = vsel %vm5249_vm12, %v5251_v20, %v5247_v18  ;;  %v5381_v61 = vand.u32 2147483647, %v10482_v9  ;;  %v5411_v9 = vand.u32 2147483647, %v10500_v19 }
0x1aed   : > { %5453 = vrot.lane.b32.xlu1 %v5443_v52, %s11762_s30  ;;  %v5374_v52 = vsub.f32 1.0, %v5373_v43 }
0x1aee   : > { %vm5382_vm9 = vcmp.eq.f32.partialorder %v5381_v61, 8.507059e+37  ;;  %vm5412_vm13 = vcmp.eq.f32.partialorder %v5411_v9, 8.507059e+37  ;;  %v5275_v9 = vmul.f32 %v10546_v53, %v10343_v2 }
0x1aef   : > { %v5375_v55 = vmul.f32 %v10515_v60, %v5374_v52 }
0x1af1   : > { %v5282_v22 = vpop.permute.xlu0 %5281  ;;  %v5376_v12 = vadd.f32 %v10515_v60, %v5375_v55 }
0x1af2   : > { %v5293_v51 = vmul.f32 %v5282_v22, %v10530_v40  ;;  %v5430_v30 = vpop.permute.xlu2 %5429  ;;  %v8429_v22 = vpop.eup %8428 }
0x1af3   : > { %v5441_v8 = vmul.f32 %v5430_v30, %v10543_v4  ;;  %v5403_v59 = vmul.f32 %v8429_v22, %v10500_v19  ;;  %v5384_v30 = vor.u32 1.1754944e-38, %v5383_v17  ;;  %vm5408_vm10 = vweird.f32 %v8429_v22 }
0x1af4   : > { %5301 = vrot.lane.b32.xlu2 %v5293_v51, %s11762_s30  ;;  %v5286_v13 = vpop.permute.xlu1 %5285  ;;  %v5266_v51 = vor.u32 1.1754944e-38, %v5265_v48  ;;  %v5413_v48 = vand.u32 2147483648, %v10500_v19  ;;  %vm5409_vm12 = vmor %vm5407_vm11, %vm5408_vm10  ;;  %v5274_v19 = vmul.f32 %v10463_v16, %v10338_v26 }
0x1af5   : > { %v5295_v24 = vmul.f32 %v5286_v13, %v10546_v53  ;;  %5449 = vrot.lane.b32.xlu1 %v5441_v8, %s11762_s30  ;;  %v5262_v13 = vsel %vm5261_vm15, %v10486_v25, %v5258_v36  ;;  %v5404_v43 = vsub.f32 1.0, %v5403_v59  ;;  %v5380_v25 = vsel %vm5379_vm8, %v10515_v60, %v5376_v12 }
0x1af6   : > { %v10562_v41 = vsel %vm5264_vm6, %v5266_v51, %v5262_v13  ;;  %v10569_v8 = vsel %vm5382_vm9, %v5384_v30, %v5380_v25  ;;  %v5414_v55 = vor.u32 1.1754944e-38, %v5413_v48  ;;  %v5273_v51 = vmul.f32 %v10530_v40, %v10361_v42 }
0x1af7   : > { %5305 = vrot.lane.b32.xlu0 %v5295_v24, %s11762_s30  ;;  %v5405_v20 = vmul.f32 %v8429_v22, %v5404_v43  ;;  %v5422_v42 = vmul.f32 %v10569_v8, %v10374_v58  ;;  %v5276_v2 = vmul.f32 %v10562_v41, %v10349_v56 }
0x1af9   : > { %v5406_v36 = vadd.f32 %v8429_v22, %v5405_v20 }
0x1afb   : > { %v5410_v60 = vsel %vm5409_vm12, %v8429_v22, %v5406_v36 }
0x1afc   : > { %v5288_v18 = vpop.permute.xlu1 %5287  ;;  %v10576_v31 = vsel %vm5412_vm13, %v5414_v55, %v5410_v60 }
0x1afd   : > { %v5296_v14 = vmul.f32 %v5288_v18, %v10562_v41 }
0x1aff   : > { %5307 = vrot.lane.b32.xlu0 %v5296_v14, %s11762_s30  ;;  %v5423_v14 = vmul.f32 %v10506_v6, %v10355_v44 }
0x1b01   : > { %v5432_v52 = vpop.permute.xlu0 %5431 }
0x1b02   : > { %v5442_v24 = vmul.f32 %v5432_v52, %v10569_v8  ;;  %v5424_v52 = vmul.f32 %v10576_v31, %v10379_v1 }
0x1b04   : > { %5451 = vrot.lane.b32.xlu2 %v5442_v24, %s11762_s30  ;;  %v5421_v24 = vmul.f32 %v10543_v4, %v10366_v28 }
0x1b09   : > { %v5436_v59 = vpop.permute.xlu0 %5435 }
0x1b0a   : > { %v5444_v13 = vmul.f32 %v5436_v59, %v10576_v31 }
0x1b0c   : > { %5455 = vrot.lane.b32.xlu2 %v5444_v13, %s11762_s30 }
0x1b4e   : > { %v5302_v12 = vpop.permute.xlu2 %5301 }
0x1b4f   : > { %v10582_v43 = vadd.f32 %v5302_v12, %v5273_v51 }
0x1b50   : > { %v5304_v17 = vpop.permute.xlu1 %5303 }
0x1b51   : > { %8430 = vtanh.f32 %v10582_v43  ;;  %v10587_v22 = vadd.f32 %v5304_v17, %v5274_v19 }
0x1b53   : > { %8432 = vtanh.f32 %v10587_v22 }
0x1b57   : > { %v8431_v18 = vpop.eup %8430 }
0x1b58   : > { %5325 = vrot.lane.b32.xlu1 %v8431_v18, %s11757_s5 }
0x1b59   : > { %v8433_v61 = vpop.eup %8432 }
0x1b5a   : > { %5327 = vrot.lane.b32.xlu0 %v8433_v61, %s11757_s5 }
0x1b5e   : > { %v5452_v26 = vpop.permute.xlu2 %5451 }
0x1b5f   : > { %v5454_v25 = vpop.permute.xlu1 %5453  ;;  %v10596_v20 = vadd.f32 %v5452_v26, %v5422_v42 }
0x1b60   : > { %v10598_v30 = vadd.f32 %v5454_v25, %v5423_v14 }
0x1b61   : > { %8434 = vtanh.f32 %v10596_v20 }
0x1b62   : > { %8436 = vtanh.f32 %v10598_v30 }
0x1b66   : > { %v5456_v58 = vpop.permute.xlu2 %5455 }
0x1b67   : > { %v8435_v36 = vpop.eup %8434  ;;  %v5450_v48 = vpop.permute.xlu1 %5449  ;;  %v10606_v44 = vadd.f32 %v5456_v58, %v5424_v52 }
0x1b68   : > { %v8437_v60 = vpop.eup %8436  ;;  %v10610_v55 = vadd.f32 %v5450_v48, %v5421_v24  ;;  %5475 = vrot.lane.b32.xlu1 %v8435_v36, %s11757_s5 }
0x1b69   : > { %v5306_v59 = vpop.permute.xlu0 %5305  ;;  %8438 = vtanh.f32 %v10606_v44  ;;  %5477 = vrot.lane.b32.xlu0 %v8437_v60, %s11757_s5 }
0x1b6a   : > { %v10615_v1 = vadd.f32 %v5306_v59, %v5275_v9  ;;  %8440 = vtanh.f32 %v10610_v55 }
0x1b6c   : > { %8442 = vtanh.f32 %v10615_v1 }
0x1b6f   : > { %v8439_v28 = vpop.eup %8438 }
0x1b70   : > { %v8441_v13 = vpop.eup %8440  ;;  %5479 = vrot.lane.b32.xlu1 %v8439_v28, %s11757_s5 }
0x1b71   : > { %v5308_v51 = vpop.permute.xlu0 %5307  ;;  %5473 = vrot.lane.b32.xlu0 %v8441_v13, %s11757_s5 }
0x1b72   : > { %v8443_v12 = vpop.eup %8442  ;;  %v10623_v19 = vadd.f32 %v5308_v51, %v5276_v2 }
0x1b73   : > { %5329 = vrot.lane.b32.xlu2 %v8443_v12, %s11757_s5 }
0x1b74   : > { %8444 = vtanh.f32 %v10623_v19 }
0x1b7a   : > { %v8445_v17 = vpop.eup %8444 }
0x1b7b   : > { %5331 = vrot.lane.b32.xlu2 %v8445_v17, %s11757_s5 }
0x1bca   : > { %v5326_v56 = vpop.permute.xlu1 %5325 }
0x1bcb   : > { %v10637_v25 = vmul.f32 %v5326_v56, %v10530_v40 }
0x1bcc   : > { %v5328_v18 = vpop.permute.xlu0 %5327 }
0x1bcd   : > { %v10629_v61 = vmul.f32 %v5328_v18, %v10463_v16  ;;  %v5330_v42 = vpop.permute.xlu2 %5329  ;;  %v5533_v58 = vpack.c.bf16 %v10637_v25, %v10637_v25 }
0x1bce   : > { %v10634_v26 = vmul.f32 %v5330_v42, %v10546_v53 }
0x1bcf   : > { %v5534_v14 = vpack.c.bf16 %v10629_v61, %v10629_v61  ;;  %v5541_v60 = vunpack.c.l.b16 %v5533_v58 }
0x1bd0   : > { %11787 = vst [vmem:[#allocation20_spill] sm:$0xff] %v10634_v26  ;;  %v5535_v52 = vpack.c.bf16 %v10634_v26, %v10634_v26 }
0x1bd1   : > { %v5542_v24 = vunpack.c.l.b16 %v5534_v14 }
0x1bd2   : > { %v5543_v16 = vunpack.c.l.b16 %v5535_v52 }
0x1bd3   : > { %v5545_v48 = vrot.slane %v5542_v24, 7 }
0x1bd4   : > { %v5547_v59 = vrot.slane %v5543_v16, 6 }
0x1bd5   : > { %v5332_v36 = vpop.permute.xlu2 %5331  ;;  %v5546_v40 = vsel %vm4217_vm5, %v5545_v48, %v5541_v60 }
0x1bd6   : > { %v10644_v9 = vmul.f32 %v5332_v36, %v10562_v41  ;;  %v5548_v12 = vsel %vm4220_vm1, %v5547_v59, %v5546_v40 }
0x1bd8   : > { %11788 = vst [vmem:[#allocation21_spill] sm:$0xff] %v10644_v9  ;;  %v5536_v53 = vpack.c.bf16 %v10644_v9, %v10644_v9 }
0x1bda   : > { %v5544_v28 = vunpack.c.l.b16 %v5536_v53  ;;  %v5476_v2 = vpop.permute.xlu1 %5475 }
0x1bdb   : > { %v5478_v13 = vpop.permute.xlu0 %5477  ;;  %v10651_v17 = vmul.f32 %v5476_v2, %v10569_v8 }
0x1bdc   : > { %v5549_v51 = vrot.slane %v5544_v28, 5  ;;  %v10654_v18 = vmul.f32 %v5478_v13, %v10506_v6 }
0x1bdd   : > { %v5587_v42 = vpack.c.bf16 %v10651_v17, %v10651_v17 }
0x1bde   : > { %11789 = vst [vmem:[#allocation22_spill] sm:$0xff] %v10654_v18  ;;  %v5550_v41 = vsel %vm4223_vm2, %v5549_v51, %v5548_v12  ;;  %v5588_v14 = vpack.c.bf16 %v10654_v18, %v10654_v18 }
0x1bdf   : > { %v5551_v56 = vpack.c.b16 %v5550_v41, %v5550_v41  ;;  %v5595_v8 = vunpack.c.l.b16 %v5587_v42  ;;  %v5529_v41 = vld [vmem:[#allocation2 + $0x4] sm:$0x1] }
0x1be0   : > { %v5596_v16 = vunpack.c.l.b16 %v5588_v14 }
0x1be1   : > { %5552 = vrot.lane.b32.xlu2 %v5551_v56, %s11762_s30  ;;  %v5598_v53 = vrot.slane %v5595_v8, 7 }
0x1be2   : > { %v5480_v52 = vpop.permute.xlu1 %5479  ;;  %v5600_v40 = vrot.slane %v5596_v16, 6  ;;  %v5531_v16 = vld [vmem:[#allocation2 + $0x14] sm:$0x1] }
0x1be3   : > { %v5474_v24 = vpop.permute.xlu0 %5473  ;;  %v10663_v58 = vmul.f32 %v5480_v52, %v10576_v31  ;;  %v5530_v52 = vld [vmem:[#allocation2 + $0xc] sm:$0x1] }
0x1be4   : > { %v10666_v6 = vmul.f32 %v5474_v24, %v10543_v4 }
0x1be5   : > { %11790 = vst [vmem:[#allocation23_spill] sm:$0xff] %v10663_v58  ;;  %v5589_v36 = vpack.c.bf16 %v10663_v58, %v10663_v58 }
0x1be6   : > { %v5586_v48 = vpack.c.bf16 %v10666_v6, %v10666_v6 }
0x1be7   : > { %v5597_v60 = vunpack.c.l.b16 %v5589_v36 }
0x1be8   : > { %v5594_v59 = vunpack.c.l.b16 %v5586_v48 }
0x1be9   : > { %v5602_v28 = vrot.slane %v5597_v60, 5 }
0x1bea   : > { %v5599_v2 = vsel %vm4217_vm5, %v5598_v53, %v5594_v59 }
0x1beb   : > { %v5601_v31 = vsel %vm4220_vm1, %v5600_v40, %v5599_v2  ;;  %v5532_v40 = vld [vmem:[#allocation2 + $0x1c] sm:$0x1] }
0x1bec   : > { %v5603_v13 = vsel %vm4223_vm2, %v5602_v28, %v5601_v31 }
0x1bed   : > { %v5604_v4 = vpack.c.b16 %v5603_v13, %v5603_v13 }
0x1bef   : > { %5605 = vrot.lane.b32.xlu0 %v5604_v4, %s11762_s30 }
0x1c3b   : > { %v5553_v51 = vpop.permute.xlu2 %5552 }
0x1c3c   : > { %7905 = vmatmul.msk.bf16.vlgmr.msra.gmra.mxu2 %vm3792_vm3, %v5553_v51  ;;  %v5583_v51 = vld [vmem:[#allocation3 + $0xb] sm:$0x1] }
0x1c61   : > { %v5606_v12 = vpop.permute.xlu0 %5605 }
0x1c62   : > { %7906 = vmatmul.msk.bf16.vlgmr.msra.gmra.mxu3 %vm3792_vm3, %v5606_v12 }
0x1cbf   : > { %v5566_v56 = vpop.f32.mrf.mxu2 }
0x1cc0   : > { %v5571_v42 = vrot.slane %v5566_v56, 1  ;;  %v5578_v14 = vadd.f32 %v5566_v56, %v5529_v41  ;;  %v5572_v24 = vrot.slane %v5566_v56, 2  ;;  %v5573_v53 = vrot.slane %v5566_v56, 3  ;;  %v5584_v56 = vld [vmem:[#allocation3 + $0x13] sm:$0x1] }
0x1cc2   : > { %v5579_v8 = vadd.f32 %v5571_v42, %v5530_v52  ;;  %8446 = vtanh.f32 %v5578_v14  ;;  %v5580_v36 = vadd.f32 %v5572_v24, %v5531_v16  ;;  %v5581_v28 = vadd.f32 %v5573_v53, %v5532_v40  ;;  %v5585_v16 = vld [vmem:[#allocation3 + $0x1b] sm:$0x1]  ;;  %v5582_v53 = vld [vmem:[#allocation3 + $0x3] sm:$0x1] }
0x1cc4   : > { %8448 = vtanh.f32 %v5579_v8 }
0x1cc5   : > { %8450 = vtanh.f32 %v5580_v36 }
0x1cc6   : > { %8452 = vtanh.f32 %v5581_v28 }
0x1cc7   : > { %v5568_v48 = vpop.f32.mrf.mxu2 }
0x1cc8   : > { %v8447_v60 = vpop.eup %8446 }
0x1cc9   : > { %5723 = vrot.lane.b32.xlu2 %v8447_v60, %s11757_s5 }
0x1cca   : > { %v8449_v59 = vpop.eup %8448 }
0x1ccb   : > { %5725 = vrot.lane.b32.xlu1 %v8449_v59, %s11757_s5  ;;  %v8451_v2 = vpop.eup %8450 }
0x1ccc   : > { %5727 = vrot.lane.b32.xlu0 %v8451_v2, %s11757_s5  ;;  %v8453_v31 = vpop.eup %8452  ;;  %v7907_v2 = vmul.f32 -1.442695, %v5578_v14 }
0x1cd4   : > { %5729 = vrot.lane.b32.xlu0 %v8453_v31, %s11757_s5 }
0x1ce5   : > { %v5619_v13 = vpop.f32.mrf.mxu3 }
0x1ce6   : > { %v5624_v4 = vrot.slane %v5619_v13, 1  ;;  %v5625_v12 = vrot.slane %v5619_v13, 2  ;;  %v5626_v42 = vrot.slane %v5619_v13, 3  ;;  %v10686_v59 = vadd.f32 %v5619_v13, %v5582_v53 }
0x1ce7   : > { %v7908_v13 = vmul.f32 -1.442695, %v5579_v8  ;;  %v7910_v53 = vmul.f32 -1.442695, %v5581_v28 }
0x1ce8   : > { %v5632_v41 = vadd.f32 %v5624_v4, %v5583_v51  ;;  %v10682_v52 = vadd.f32 %v5625_v12, %v5584_v56  ;;  %v5634_v48 = vadd.f32 %v5626_v42, %v5585_v16 }
0x1cea   : > { %8454 = vtanh.f32 %v5632_v41  ;;  %v7912_v63 = vmul.f32 -1.442695, %v5632_v41 }
0x1ceb   : > { %8456 = vtanh.f32 %v10682_v52 }
0x1cec   : > { %8458 = vtanh.f32 %v5634_v48 }
0x1ced   : > { %v5621_v24 = vpop.f32.mrf.mxu3  ;;  %8460 = vtanh.f32 %v10686_v59 }
0x1cee   : > { %8462 = vpow2.f32 %v7907_v2  ;;  %v7909_v24 = vmul.f32 -1.442695, %v5580_v36 }
0x1cf0   : > { %v8455_v60 = vpop.eup %8454 }
0x1cf1   : > { %5873 = vrot.lane.b32.xlu2 %v8455_v60, %s11757_s5  ;;  %v8457_v40 = vpop.eup %8456 }
0x1cf2   : > { %5875 = vrot.lane.b32.xlu1 %v8457_v40, %s11757_s5  ;;  %v8459_v31 = vpop.eup %8458 }
0x1cf3   : > { %v8461_v4 = vpop.eup %8460 }
0x1cf4   : > { %v8463_v51 = vpop.eup %8462 }
0x1cf5   : > { %v5647_v12 = vadd.f32 1.0, %v8463_v51 }
0x1cf7   : > { %8464 = vrcp.f32 %v5647_v12  ;;  %vm5656_vm15 = vweird.f32 %v5647_v12 }
0x1cf8   : > { %8466 = vpow2.f32 %v7908_v13 }
0x1cf9   : > { %5877 = vrot.lane.b32.xlu2 %v8459_v31, %s11757_s5  ;;  %8468 = vpow2.f32 %v7909_v24  ;;  %v5662_v31 = vand.u32 2147483648, %v5647_v12 }
0x1cfa   : > { %5871 = vrot.lane.b32.xlu1 %v8461_v4, %s11757_s5  ;;  %v5660_v4 = vand.u32 2147483647, %v5647_v12  ;;  %8470 = vpow2.f32 %v7910_v53 }
0x1cfb   : > { %v5663_v13 = vor.u32 1.1754944e-38, %v5662_v31 }
0x1cfc   : > { %vm5661_vm6 = vcmp.eq.f32.partialorder %v5660_v4, 8.507059e+37 }
0x1cfd   : > { %v8465_v56 = vpop.eup %8464 }
0x1cfe   : > { %v5652_v42 = vmul.f32 %v8465_v56, %v5647_v12  ;;  %v8467_v60 = vpop.eup %8466  ;;  %vm5657_vm14 = vweird.f32 %v8465_v56  ;;  %v7914_v12 = vmul.f32 -1.442695, %v5634_v48 }
0x1cff   : > { %v5648_v2 = vadd.f32 1.0, %v8467_v60  ;;  %v8469_v11 = vpop.eup %8468  ;;  %vm5658_vm4 = vmor %vm5656_vm15, %vm5657_vm14 }
0x1d00   : > { %v5653_v14 = vsub.f32 1.0, %v5652_v42  ;;  %v5649_v8 = vadd.f32 1.0, %v8469_v11  ;;  %v8471_v24 = vpop.eup %8470 }
0x1d01   : > { %8472 = vrcp.f32 %v5648_v2  ;;  %vm5671_vm8 = vweird.f32 %v5648_v2 }
0x1d02   : > { %v5654_v16 = vmul.f32 %v8465_v56, %v5653_v14  ;;  %8474 = vpow2.f32 %v7912_v63  ;;  %vm5686_vm11 = vweird.f32 %v5649_v8  ;;  %v5690_v9 = vand.u32 2147483647, %v5649_v8 }
0x1d03   : > { %8476 = vrcp.f32 %v5649_v8 }
0x1d04   : > { %v5655_v40 = vadd.f32 %v8465_v56, %v5654_v16  ;;  %v10696_v16 = vadd.f32 1.0, %v8471_v24  ;;  %8478 = vpow2.f32 %v7914_v12  ;;  %v5677_v12 = vand.u32 2147483648, %v5648_v2 }
0x1d05   : > { %vm5691_vm14 = vcmp.eq.f32.partialorder %v5690_v9, 8.507059e+37 }
0x1d06   : > { %v5659_v51 = vsel %vm5658_vm4, %v8465_v56, %v5655_v40  ;;  %8480 = vrcp.f32 %v10696_v16  ;;  %v5678_v38 = vor.u32 1.1754944e-38, %v5677_v12  ;;  %v5707_v12 = vand.u32 2147483648, %v10696_v16 }
0x1d07   : > { %v10692_v42 = vsel %vm5661_vm6, %v5663_v13, %v5659_v51  ;;  %v8473_v14 = vpop.eup %8472  ;;  %vm5701_vm4 = vweird.f32 %v10696_v16 }
0x1d08   : > { %v8475_v41 = vpop.eup %8474  ;;  %v5667_v56 = vmul.f32 %v8473_v14, %v5648_v2  ;;  %vm5672_vm7 = vweird.f32 %v8473_v14 }
0x1d09   : > { %v8477_v11 = vpop.eup %8476  ;;  %v10698_v60 = vadd.f32 1.0, %v8475_v41  ;;  %v5675_v41 = vand.u32 2147483647, %v5648_v2  ;;  %vm5673_vm9 = vmor %vm5671_vm8, %vm5672_vm7 }
0x1d0a   : > { %v5682_v63 = vmul.f32 %v8477_v11, %v5649_v8  ;;  %v5668_v53 = vsub.f32 1.0, %v5667_v56  ;;  %v8479_v40 = vpop.eup %8478  ;;  %vm5687_vm10 = vweird.f32 %v8477_v11 }
0x1d0b   : > { %8482 = vrcp.f32 %v10698_v60  ;;  %v10704_v48 = vadd.f32 1.0, %v8479_v40  ;;  %vm5676_vm12 = vcmp.eq.f32.partialorder %v5675_v41, 8.507059e+37  ;;  %vm5688_vm13 = vmor %vm5686_vm11, %vm5687_vm10  ;;  %vm5819_vm8 = vweird.f32 %v10698_v60 }
0x1d0c   : > { %v5683_v31 = vsub.f32 1.0, %v5682_v63  ;;  %v5669_v4 = vmul.f32 %v8473_v14, %v5668_v53  ;;  %v10702_v51 = vpop.eup %8480 }
0x1d0d   : > { %v5697_v24 = vmul.f32 %v10702_v51, %v10696_v16  ;;  %8484 = vrcp.f32 %v10704_v48  ;;  %vm5702_vm15 = vweird.f32 %v10702_v51 }
0x1d0e   : > { %vm5703_vm6 = vmor %vm5701_vm4, %vm5702_vm15 }
0x1d0f   : > { %v5698_v40 = vsub.f32 1.0, %v5697_v24 }
0x1d11   : > { %v10706_v13 = vpop.eup %8482 }
0x1d12   : > { %v5815_v56 = vmul.f32 %v10706_v13, %v10698_v60  ;;  %vm5820_vm7 = vweird.f32 %v10706_v13 }
0x1d13   : > { %v8485_v26 = vpop.eup %8484  ;;  %vm5821_vm10 = vmor %vm5819_vm8, %vm5820_vm7 }
0x1d14   : > { %v5816_v2 = vsub.f32 1.0, %v5815_v56 }
0x1d23   : > { %v5724_v36 = vpop.permute.xlu2 %5723 }
0x1d24   : > { %v5735_v28 = vmul.f32 %v5724_v36, %v10692_v42  ;;  %v5684_v36 = vmul.f32 %v8477_v11, %v5683_v31  ;;  %v7913_v31 = vmul.f32 -1.442695, %v10682_v52 }
0x1d26   : > { %5743 = vrot.lane.b32.xlu1 %v5735_v28, %s11762_s30  ;;  %v5670_v28 = vadd.f32 %v8473_v14, %v5669_v4  ;;  %v5685_v63 = vadd.f32 %v8477_v11, %v5684_v36  ;;  %v5692_v4 = vand.u32 2147483648, %v5649_v8  ;;  %v5699_v36 = vmul.f32 %v10702_v51, %v5698_v40 }
0x1d27   : > { %8486 = vpow2.f32 %v7913_v31  ;;  %v5817_v8 = vmul.f32 %v10706_v13, %v5816_v2 }
0x1d28   : > { %v5674_v53 = vsel %vm5673_vm9, %v8473_v14, %v5670_v28  ;;  %v5689_v46 = vsel %vm5688_vm13, %v8477_v11, %v5685_v63  ;;  %v5693_v14 = vor.u32 1.1754944e-38, %v5692_v4  ;;  %v5700_v11 = vadd.f32 %v10702_v51, %v5699_v36 }
0x1d29   : > { %v10714_v58 = vsel %vm5676_vm12, %v5678_v38, %v5674_v53  ;;  %v5845_v38 = vmul.f32 %v8485_v26, %v10704_v48  ;;  %v5818_v9 = vadd.f32 %v10706_v13, %v5817_v8  ;;  %v5825_v63 = vand.u32 2147483648, %v10698_v60 }
0x1d2a   : > { %v10719_v28 = vsel %vm5691_vm14, %v5693_v14, %v5689_v46  ;;  %v5705_v46 = vand.u32 2147483647, %v10696_v16  ;;  %v5704_v56 = vsel %vm5703_vm6, %v10702_v51, %v5700_v11  ;;  %v5823_v53 = vand.u32 2147483647, %v10698_v60 }
0x1d2b   : > { %v5846_v41 = vsub.f32 1.0, %v5845_v38  ;;  %v5822_v4 = vsel %vm5821_vm10, %v10706_v13, %v5818_v9  ;;  %v5826_v51 = vor.u32 1.1754944e-38, %v5825_v63  ;;  %vm5850_vm12 = vweird.f32 %v8485_v26 }
0x1d2c   : > { %vm5706_vm9 = vcmp.eq.f32.partialorder %v5705_v46, 8.507059e+37  ;;  %vm5824_vm11 = vcmp.eq.f32.partialorder %v5823_v53, 8.507059e+37  ;;  %vm5849_vm13 = vweird.f32 %v10704_v48  ;;  %v5853_v13 = vand.u32 2147483647, %v10704_v48 }
0x1d2d   : > { %v5847_v2 = vmul.f32 %v8485_v26, %v5846_v41  ;;  %vm5851_vm14 = vmor %vm5849_vm13, %vm5850_vm12 }
0x1d2e   : > { %vm5854_vm15 = vcmp.eq.f32.partialorder %v5853_v13, 8.507059e+37 }
0x1d2f   : > { %v5848_v38 = vadd.f32 %v8485_v26, %v5847_v2 }
0x1d3d   : > { %v5726_v18 = vpop.permute.xlu1 %5725 }
0x1d3e   : > { %v5736_v27 = vmul.f32 %v5726_v18, %v10714_v58  ;;  %v5728_v52 = vpop.permute.xlu0 %5727  ;;  %v7911_v18 = vmul.f32 -1.442695, %v10686_v59  ;;  %v5708_v59 = vor.u32 1.1754944e-38, %v5707_v12 }
0x1d3f   : > { %v5737_v24 = vmul.f32 %v5728_v52, %v10719_v28  ;;  %v10741_v52 = vsel %vm5824_vm11, %v5826_v51, %v5822_v4 }
0x1d40   : > { %5745 = vrot.lane.b32.xlu0 %v5736_v27, %s11762_s30  ;;  %v8487_v27 = vpop.eup %8486  ;;  %8488 = vpow2.f32 %v7911_v18  ;;  %v10737_v16 = vsel %vm5706_vm9, %v5708_v59, %v5704_v56  ;;  %v5852_v18 = vsel %vm5851_vm14, %v8485_v26, %v5848_v38 }
0x1d41   : > { %5747 = vrot.lane.b32.xlu2 %v5737_v24, %s11762_s30  ;;  %v5797_v40 = vadd.f32 1.0, %v8487_v27  ;;  %v5855_v24 = vand.u32 2147483648, %v10704_v48 }
0x1d43   : > { %8490 = vrcp.f32 %v5797_v40  ;;  %v5856_v46 = vor.u32 1.1754944e-38, %v5855_v24  ;;  %v5840_v26 = vand.u32 2147483648, %v5797_v40  ;;  %vm5834_vm6 = vweird.f32 %v5797_v40 }
0x1d44   : > { %v5838_v2 = vand.u32 2147483647, %v5797_v40 }
0x1d45   : > { %v10749_v27 = vsel %vm5854_vm15, %v5856_v46, %v5852_v18 }
0x1d46   : > { %v5730_v31 = vpop.permute.xlu0 %5729  ;;  %v8489_v60 = vpop.eup %8488  ;;  %vm5839_vm8 = vcmp.eq.f32.partialorder %v5838_v2, 8.507059e+37 }
0x1d47   : > { %v5738_v36 = vmul.f32 %v5730_v31, %v10737_v16  ;;  %v5795_v11 = vadd.f32 1.0, %v8489_v60 }
0x1d49   : > { %5749 = vrot.lane.b32.xlu2 %v5738_v36, %s11762_s30  ;;  %v8491_v12 = vpop.eup %8490  ;;  %8492 = vrcp.f32 %v5795_v11  ;;  %v5810_v13 = vand.u32 2147483648, %v5795_v11  ;;  %vm5804_vm10 = vweird.f32 %v5795_v11  ;;  %v5808_v18 = vand.u32 2147483647, %v5795_v11 }
0x1d4a   : > { %v5830_v56 = vmul.f32 %v8491_v12, %v5797_v40  ;;  %vm5835_vm4 = vweird.f32 %v8491_v12 }
0x1d4b   : > { %v5874_v14 = vpop.permute.xlu2 %5873  ;;  %vm5836_vm7 = vmor %vm5834_vm6, %vm5835_vm4  ;;  %v5811_v40 = vor.u32 1.1754944e-38, %v5810_v13  ;;  %vm5809_vm12 = vcmp.eq.f32.partialorder %v5808_v18, 8.507059e+37  ;;  %v5866_v13 = vmul.f32 %v10749_v27, %v10606_v44 }
0x1d4c   : > { %v5884_v8 = vmul.f32 %v5874_v14, %v10741_v52  ;;  %v5831_v63 = vsub.f32 1.0, %v5830_v56  ;;  %v5841_v14 = vor.u32 1.1754944e-38, %v5840_v26  ;;  %v5715_v56 = vmul.f32 %v10692_v42, %v10582_v43 }
0x1d4e   : > { %5893 = vrot.lane.b32.xlu1 %v5884_v8, %s11762_s30  ;;  %v5832_v53 = vmul.f32 %v8491_v12, %v5831_v63 }
0x1d4f   : > { %v8493_v59 = vpop.eup %8492 }
0x1d50   : > { %v5800_v31 = vmul.f32 %v8493_v59, %v5795_v11  ;;  %v5833_v48 = vadd.f32 %v8491_v12, %v5832_v53  ;;  %vm5805_vm9 = vweird.f32 %v8493_v59  ;;  %v5717_v11 = vmul.f32 %v10719_v28, %v10615_v1 }
0x1d51   : > { %vm5806_vm11 = vmor %vm5804_vm10, %vm5805_vm9 }
0x1d52   : > { %v5801_v4 = vsub.f32 1.0, %v5800_v31  ;;  %v5837_v36 = vsel %vm5836_vm7, %v8491_v12, %v5833_v48 }
0x1d53   : > { %v5878_v9 = vpop.permute.xlu2 %5877  ;;  %v10753_v8 = vsel %vm5839_vm8, %v5841_v14, %v5837_v36  ;;  %v5716_v36 = vmul.f32 %v10714_v58, %v10587_v22 }
0x1d54   : > { %v5886_v41 = vmul.f32 %v5878_v9, %v10749_v27  ;;  %v5802_v51 = vmul.f32 %v8493_v59, %v5801_v4  ;;  %v5718_v4 = vmul.f32 %v10737_v16, %v10623_v19 }
0x1d56   : > { %5897 = vrot.lane.b32.xlu1 %v5886_v41, %s11762_s30  ;;  %v5803_v24 = vadd.f32 %v8493_v59, %v5802_v51 }
0x1d58   : > { %v5807_v46 = vsel %vm5806_vm11, %v8493_v59, %v5803_v24 }
0x1d59   : > { %v10757_v12 = vsel %vm5809_vm12, %v5811_v40, %v5807_v46 }
0x1d5a   : > { %v5863_v44 = vmul.f32 %v10757_v12, %v10610_v55 }
0x1d64   : > { %v5876_v60 = vpop.permute.xlu1 %5875 }
0x1d65   : > { %v5885_v38 = vmul.f32 %v5876_v60, %v10753_v8  ;;  %v5864_v60 = vmul.f32 %v10741_v52, %v10596_v20  ;;  %v5865_v20 = vmul.f32 %v10753_v8, %v10598_v30 }
0x1d67   : > { %5895 = vrot.lane.b32.xlu0 %v5885_v38, %s11762_s30 }
0x1d6c   : > { %v5872_v9 = vpop.permute.xlu1 %5871 }
0x1d6d   : > { %v5883_v41 = vmul.f32 %v5872_v9, %v10757_v12 }
0x1d6f   : > { %5891 = vrot.lane.b32.xlu0 %v5883_v41, %s11762_s30 }
0x1d98   : > { %v5744_v63 = vpop.permute.xlu1 %5743 }
0x1d99   : > { %v10763_v53 = vadd.f32 %v5744_v63, %v5715_v56 }
0x1d9b   : > { %8494 = vtanh.f32 %v10763_v53  ;;  %v5748_v59 = vpop.permute.xlu2 %5747 }
0x1d9c   : > { %v10768_v31 = vadd.f32 %v5748_v59, %v5717_v11 }
0x1d9e   : > { %8496 = vtanh.f32 %v10768_v31 }
0x1da1   : > { %v8495_v48 = vpop.eup %8494 }
0x1da2   : > { %5767 = vrot.lane.b32.xlu0 %v8495_v48, %s11757_s5 }
0x1da3   : > { %v5750_v43 = vpop.permute.xlu2 %5749 }
0x1da4   : > { %v8497_v26 = vpop.eup %8496  ;;  %v10774_v2 = vadd.f32 %v5750_v43, %v5718_v4 }
0x1da5   : > { %5771 = vrot.lane.b32.xlu1 %v8497_v26, %s11757_s5 }
0x1da6   : > { %8498 = vtanh.f32 %v10774_v2 }
0x1dac   : > { %v8499_v1 = vpop.eup %8498 }
0x1dad   : > { %5773 = vrot.lane.b32.xlu1 %v8499_v1, %s11757_s5 }
0x1db2   : > { %v5746_v51 = vpop.permute.xlu0 %5745 }
0x1db3   : > { %v10781_v14 = vadd.f32 %v5746_v51, %v5716_v36 }
0x1db5   : > { %8500 = vtanh.f32 %v10781_v14 }
0x1dbb   : > { %v8501_v19 = vpop.eup %8500 }
0x1dbc   : > { %5769 = vrot.lane.b32.xlu2 %v8501_v19, %s11757_s5 }
0x1dc0   : > { %v5894_v38 = vpop.permute.xlu1 %5893 }
0x1dc1   : > { %v10787_v24 = vadd.f32 %v5894_v38, %v5864_v60 }
0x1dc3   : > { %8502 = vtanh.f32 %v10787_v24 }
0x1dc8   : > { %v5898_v22 = vpop.permute.xlu1 %5897 }
0x1dc9   : > { %v8503_v18 = vpop.eup %8502  ;;  %v10792_v46 = vadd.f32 %v5898_v22, %v5866_v13 }
0x1dca   : > { %5917 = vrot.lane.b32.xlu0 %v8503_v18, %s11757_s5 }
0x1dcb   : > { %8504 = vtanh.f32 %v10792_v46 }
0x1dd1   : > { %v8505_v40 = vpop.eup %8504 }
0x1dd2   : > { %5921 = vrot.lane.b32.xlu0 %v8505_v40, %s11757_s5 }
0x1dd9   : > { %v5896_v9 = vpop.permute.xlu0 %5895 }
0x1dda   : > { %v10799_v41 = vadd.f32 %v5896_v9, %v5865_v20 }
0x1ddc   : > { %8506 = vtanh.f32 %v10799_v41 }
0x1de1   : > { %v5892_v56 = vpop.permute.xlu0 %5891 }
0x1de2   : > { %v8507_v63 = vpop.eup %8506  ;;  %v10804_v11 = vadd.f32 %v5892_v56, %v5863_v44 }
0x1de3   : > { %5919 = vrot.lane.b32.xlu2 %v8507_v63, %s11757_s5 }
0x1de4   : > { %8508 = vtanh.f32 %v10804_v11 }
0x1dea   : > { %v8509_v59 = vpop.eup %8508 }
0x1deb   : > { %5915 = vrot.lane.b32.xlu2 %v8509_v59, %s11757_s5 }
0x1e14   : > { %v5768_v4 = vpop.permute.xlu0 %5767 }
0x1e15   : > { %v10818_v1 = vmul.f32 %v5768_v4, %v10692_v42 }
0x1e16   : > { %v5770_v30 = vpop.permute.xlu2 %5769 }
0x1e17   : > { %v10810_v48 = vmul.f32 %v5770_v30, %v10714_v58  ;;  %v5772_v43 = vpop.permute.xlu1 %5771  ;;  %v5975_v19 = vpack.c.bf16 %v10818_v1, %v10818_v1 }
0x1e18   : > { %v10815_v26 = vmul.f32 %v5772_v43, %v10719_v28 }
0x1e19   : > { %v5976_v55 = vpack.c.bf16 %v10810_v48, %v10810_v48  ;;  %v5983_v22 = vunpack.c.l.b16 %v5975_v19 }
0x1e1a   : > { %11791 = vst [vmem:[#allocation24_spill] sm:$0xff] %v10815_v26  ;;  %v5977_v36 = vpack.c.bf16 %v10815_v26, %v10815_v26 }
0x1e1b   : > { %v5984_v51 = vunpack.c.l.b16 %v5976_v55 }
0x1e1c   : > { %v5985_v58 = vunpack.c.l.b16 %v5977_v36 }
0x1e1d   : > { %v5987_v38 = vrot.slane %v5984_v51, 7 }
0x1e1e   : > { %v5989_v18 = vrot.slane %v5985_v58, 6 }
0x1e1f   : > { %v5774_v60 = vpop.permute.xlu1 %5773  ;;  %v5988_v42 = vsel %vm4217_vm5, %v5987_v38, %v5983_v22 }
0x1e20   : > { %v10825_v13 = vmul.f32 %v5774_v60, %v10737_v16  ;;  %v5990_v9 = vsel %vm4220_vm1, %v5989_v18, %v5988_v42 }
0x1e22   : > { %11792 = vst [vmem:[#allocation25_spill] sm:$0xff] %v10825_v13  ;;  %v5978_v28 = vpack.c.bf16 %v10825_v13, %v10825_v13 }
0x1e24   : > { %v5986_v40 = vunpack.c.l.b16 %v5978_v28 }
0x1e26   : > { %v5991_v20 = vrot.slane %v5986_v40, 5 }
0x1e28   : > { %v5992_v44 = vsel %vm4223_vm2, %v5991_v20, %v5990_v9 }
0x1e29   : > { %v5993_v56 = vpack.c.b16 %v5992_v44, %v5992_v44 }
0x1e2b   : > { %5994 = vrot.lane.b32.xlu1 %v5993_v56, %s11762_s30  ;;  %v5971_v56 = vld [vmem:[#allocation2 + $0x5] sm:$0x1] }
0x1e3c   : > { %v5918_v63 = vpop.permute.xlu0 %5917 }
0x1e3d   : > { %v5920_v59 = vpop.permute.xlu2 %5919  ;;  %v10834_v16 = vmul.f32 %v5918_v63, %v10741_v52 }
0x1e3e   : > { %v10837_v30 = vmul.f32 %v5920_v59, %v10753_v8 }
0x1e3f   : > { %v6029_v43 = vpack.c.bf16 %v10834_v16, %v10834_v16 }
0x1e40   : > { %11793 = vst [vmem:[#allocation26_spill] sm:$0xff] %v10837_v30  ;;  %v6030_v36 = vpack.c.bf16 %v10837_v30, %v10837_v30 }
0x1e41   : > { %v6037_v58 = vunpack.c.l.b16 %v6029_v43  ;;  %v5972_v43 = vld [vmem:[#allocation2 + $0xd] sm:$0x1] }
0x1e42   : > { %v6038_v60 = vunpack.c.l.b16 %v6030_v36 }
0x1e43   : > { %v6040_v22 = vrot.slane %v6037_v58, 7 }
0x1e44   : > { %v5922_v4 = vpop.permute.xlu0 %5921  ;;  %v6042_v18 = vrot.slane %v6038_v60, 6 }
0x1e45   : > { %v10842_v55 = vmul.f32 %v5922_v4, %v10749_v27  ;;  %v5916_v19 = vpop.permute.xlu2 %5915 }
0x1e46   : > { %v10849_v52 = vmul.f32 %v5916_v19, %v10757_v12  ;;  %v5973_v19 = vld [vmem:[#allocation2 + $0x15] sm:$0x1] }
0x1e47   : > { %11794 = vst [vmem:[#allocation27_spill] sm:$0xff] %v10842_v55  ;;  %v6031_v51 = vpack.c.bf16 %v10842_v55, %v10842_v55 }
0x1e48   : > { %v6028_v38 = vpack.c.bf16 %v10849_v52, %v10849_v52 }
0x1e49   : > { %v6039_v8 = vunpack.c.l.b16 %v6031_v51 }
0x1e4a   : > { %v6036_v28 = vunpack.c.l.b16 %v6028_v38 }
0x1e4b   : > { %v6044_v27 = vrot.slane %v6039_v8, 5 }
0x1e4c   : > { %v6041_v42 = vsel %vm4217_vm5, %v6040_v22, %v6036_v28  ;;  %v5974_v28 = vld [vmem:[#allocation2 + $0x1d] sm:$0x1] }
0x1e4d   : > { %v6043_v40 = vsel %vm4220_vm1, %v6042_v18, %v6041_v42 }
0x1e4e   : > { %v6045_v20 = vsel %vm4223_vm2, %v6044_v27, %v6043_v40 }
0x1e4f   : > { %v6046_v9 = vpack.c.b16 %v6045_v20, %v6045_v20  ;;  %v6025_v20 = vld [vmem:[#allocation3 + $0xa] sm:$0x1] }
0x1e51   : > { %6047 = vrot.lane.b32.xlu2 %v6046_v9, %s11762_s30 }
0x1e9d   : > { %v5995_v12 = vpop.permute.xlu1 %5994 }
0x1e9e   : > { %7915 = vmatmul.msk.bf16.vlgmr.msra.gmra.mxu0 %vm3792_vm3, %v5995_v12 }
0x1eab   : > { %v6048_v44 = vpop.permute.xlu2 %6047 }
0x1eac   : > { %7916 = vmatmul.msk.bf16.vlgmr.msra.gmra.mxu1 %vm3792_vm3, %v6048_v44  ;;  %v6026_v44 = vld [vmem:[#allocation3 + $0x12] sm:$0x1] }
0x1f1b   : > { %v6008_v63 = vpop.f32.mrf.mxu0 }
0x1f1c   : > { %v6013_v59 = vrot.slane %v6008_v63, 1  ;;  %v6020_v4 = vadd.f32 %v6008_v63, %v5971_v56  ;;  %v6014_v36 = vrot.slane %v6008_v63, 2  ;;  %v6015_v38 = vrot.slane %v6008_v63, 3 }
0x1f1e   : > { %v6021_v51 = vadd.f32 %v6013_v59, %v5972_v43  ;;  %8510 = vtanh.f32 %v6020_v4  ;;  %v6022_v58 = vadd.f32 %v6014_v36, %v5973_v19  ;;  %v6023_v27 = vadd.f32 %v6015_v38, %v5974_v28  ;;  %v6027_v59 = vld [vmem:[#allocation3 + $0x1a] sm:$0x1] }
0x1f20   : > { %8512 = vtanh.f32 %v6021_v51 }
0x1f21   : > { %8514 = vtanh.f32 %v6022_v58 }
0x1f22   : > { %8516 = vtanh.f32 %v6023_v27 }
0x1f23   : > { %v6010_v8 = vpop.f32.mrf.mxu0 }
0x1f24   : > { %v8511_v60 = vpop.eup %8510 }
0x1f25   : > { %6165 = vrot.lane.b32.xlu1 %v8511_v60, %s11757_s5  ;;  %v6024_v60 = vld [vmem:[#allocation3 + $0x2] sm:$0x1] }
0x1f26   : > { %v8513_v22 = vpop.eup %8512 }
0x1f27   : > { %6167 = vrot.lane.b32.xlu0 %v8513_v22, %s11757_s5  ;;  %v8515_v42 = vpop.eup %8514 }
0x1f28   : > { %6169 = vrot.lane.b32.xlu2 %v8515_v42, %s11757_s5  ;;  %v8517_v36 = vpop.eup %8516 }
0x1f29   : > { %v6061_v18 = vpop.f32.mrf.mxu1 }
0x1f2a   : > { %v6066_v40 = vrot.slane %v6061_v18, 1  ;;  %v6067_v9 = vrot.slane %v6061_v18, 2  ;;  %v6068_v56 = vrot.slane %v6061_v18, 3  ;;  %v6073_v38 = vadd.f32 %v6061_v18, %v6024_v60 }
0x1f2b   : > { %v7918_v18 = vmul.f32 -1.442695, %v6021_v51 }
0x1f2c   : > { %v6074_v12 = vadd.f32 %v6066_v40, %v6025_v20  ;;  %v6075_v63 = vadd.f32 %v6067_v9, %v6026_v44  ;;  %v6076_v19 = vadd.f32 %v6068_v56, %v6027_v59  ;;  %v7919_v40 = vmul.f32 -1.442695, %v6022_v58 }
0x1f2d   : > { %v7920_v20 = vmul.f32 -1.442695, %v6023_v27  ;;  %v7917_v59 = vmul.f32 -1.442695, %v6020_v4 }
0x1f2e   : > { %8518 = vtanh.f32 %v6074_v12 }
0x1f2f   : > { %8520 = vtanh.f32 %v6075_v63 }
0x1f30   : > { %6171 = vrot.lane.b32.xlu2 %v8517_v36, %s11757_s5  ;;  %8522 = vtanh.f32 %v6076_v19 }
0x1f31   : > { %v6063_v43 = vpop.f32.mrf.mxu1  ;;  %8524 = vtanh.f32 %v6073_v38 }
0x1f32   : > { %8526 = vpow2.f32 %v7919_v40  ;;  %v7922_v40 = vmul.f32 -1.442695, %v6074_v12 }
0x1f33   : > { %8528 = vpow2.f32 %v7920_v20 }
0x1f34   : > { %v8519_v8 = vpop.eup %8518 }
0x1f35   : > { %6315 = vrot.lane.b32.xlu1 %v8519_v8, %s11757_s5  ;;  %v8521_v22 = vpop.eup %8520 }
0x1f36   : > { %6317 = vrot.lane.b32.xlu0 %v8521_v22, %s11757_s5  ;;  %v8523_v28 = vpop.eup %8522 }
0x1f37   : > { %v8525_v42 = vpop.eup %8524 }
0x1f38   : > { %v8527_v9 = vpop.eup %8526 }
0x1f39   : > { %v6091_v44 = vadd.f32 1.0, %v8527_v9  ;;  %v8529_v56 = vpop.eup %8528 }
0x1f3a   : > { %v6092_v43 = vadd.f32 1.0, %v8529_v56  ;;  %v7923_v56 = vmul.f32 -1.442695, %v6075_v63 }
0x1f3b   : > { %8530 = vrcp.f32 %v6091_v44  ;;  %vm6128_vm14 = vweird.f32 %v6091_v44 }
0x1f3c   : > { %8532 = vpow2.f32 %v7917_v59  ;;  %v6134_v59 = vand.u32 2147483648, %v6091_v44  ;;  %vm6143_vm7 = vweird.f32 %v6092_v43 }
0x1f3d   : > { %6319 = vrot.lane.b32.xlu1 %v8523_v28, %s11757_s5  ;;  %8534 = vpow2.f32 %v7918_v18  ;;  %v6132_v18 = vand.u32 2147483647, %v6091_v44 }
0x1f3e   : > { %6313 = vrot.lane.b32.xlu0 %v8525_v42, %s11757_s5  ;;  %8536 = vrcp.f32 %v6092_v43  ;;  %v6135_v13 = vor.u32 1.1754944e-38, %v6134_v59 }
0x1f3f   : > { %vm6133_vm4 = vcmp.eq.f32.partialorder %v6132_v18, 8.507059e+37 }
0x1f41   : > { %v8531_v36 = vpop.eup %8530 }
0x1f42   : > { %v6124_v8 = vmul.f32 %v8531_v36, %v6091_v44  ;;  %v8533_v60 = vpop.eup %8532  ;;  %vm6129_vm13 = vweird.f32 %v8531_v36 }
0x1f43   : > { %v8535_v22 = vpop.eup %8534  ;;  %v10867_v58 = vadd.f32 1.0, %v8533_v60  ;;  %v7924_v60 = vmul.f32 -1.442695, %v6076_v19  ;;  %vm6130_vm15 = vmor %vm6128_vm14, %vm6129_vm13 }
0x1f44   : > { %v6125_v28 = vsub.f32 1.0, %v6124_v8  ;;  %v8537_v42 = vpop.eup %8536  ;;  %v10869_v27 = vadd.f32 1.0, %v8535_v22 }
0x1f45   : > { %v6139_v9 = vmul.f32 %v8537_v42, %v6092_v43  ;;  %8538 = vrcp.f32 %v10867_v58  ;;  %vm6144_vm6 = vweird.f32 %v8537_v42  ;;  %vm6098_vm11 = vweird.f32 %v10867_v58 }
0x1f46   : > { %v6126_v20 = vmul.f32 %v8531_v36, %v6125_v28  ;;  %8540 = vrcp.f32 %v10869_v27  ;;  %vm6145_vm8 = vmor %vm6143_vm7, %vm6144_vm6  ;;  %vm6113_vm14 = vweird.f32 %v10869_v27 }
0x1f47   : > { %8542 = vpow2.f32 %v7922_v40  ;;  %v6140_v51 = vsub.f32 1.0, %v6139_v9 }
0x1f48   : > { %v6127_v4 = vadd.f32 %v8531_v36, %v6126_v20  ;;  %8544 = vpow2.f32 %v7923_v56  ;;  %v7921_v20 = vmul.f32 -1.442695, %v6073_v38  ;;  %v6147_v56 = vand.u32 2147483647, %v6092_v43 }
0x1f49   : > { %v6141_v12 = vmul.f32 %v8537_v42, %v6140_v51  ;;  %8546 = vpow2.f32 %v7924_v60  ;;  %v6149_v51 = vand.u32 2147483648, %v6092_v43 }
0x1f4a   : > { %v6131_v22 = vsel %vm6130_vm15, %v8531_v36, %v6127_v4  ;;  %8548 = vpow2.f32 %v7921_v20  ;;  %vm6148_vm9 = vcmp.eq.f32.partialorder %v6147_v56, 8.507059e+37 }
0x1f4b   : > { %v10873_v8 = vpop.eup %8538  ;;  %v10879_v63 = vsel %vm6133_vm4, %v6135_v13, %v6131_v22  ;;  %v6142_v19 = vadd.f32 %v8537_v42, %v6141_v12  ;;  %v6150_v22 = vor.u32 1.1754944e-38, %v6149_v51  ;;  %v6102_v51 = vand.u32 2147483647, %v10867_v58 }
0x1f4c   : > { %v10875_v28 = vpop.eup %8540  ;;  %v6094_v40 = vmul.f32 %v10873_v8, %v10867_v58  ;;  %vm6099_vm10 = vweird.f32 %v10873_v8 }
0x1f4d   : > { %v8543_v55 = vpop.eup %8542  ;;  %v6109_v36 = vmul.f32 %v10875_v28, %v10869_v27  ;;  %v6146_v13 = vsel %vm6145_vm8, %v8537_v42, %v6142_v19  ;;  %vm6114_vm12 = vweird.f32 %v10875_v28  ;;  %vm6100_vm13 = vmor %vm6098_vm11, %vm6099_vm10  ;;  %vm6103_vm4 = vcmp.eq.f32.partialorder %v6102_v51, 8.507059e+37 }
0x1f4e   : > { %v10884_v4 = vadd.f32 1.0, %v8543_v55  ;;  %v6095_v59 = vsub.f32 1.0, %v6094_v40  ;;  %v8545_v38 = vpop.eup %8544  ;;  %vm6115_vm15 = vmor %vm6113_vm14, %vm6114_vm12 }
0x1f4f   : > { %v6110_v18 = vsub.f32 1.0, %v6109_v36  ;;  %v8547_v60 = vpop.eup %8546  ;;  %v10888_v12 = vadd.f32 1.0, %v8545_v38  ;;  %v6104_v36 = vand.u32 2147483648, %v10867_v58 }
0x1f50   : > { %8550 = vrcp.f32 %v10884_v4  ;;  %v6096_v55 = vmul.f32 %v10873_v8, %v6095_v59  ;;  %v10895_v26 = vadd.f32 1.0, %v8547_v60  ;;  %v8549_v42 = vpop.eup %8548  ;;  %v6119_v59 = vand.u32 2147483648, %v10869_v27 }
0x1f51   : > { %v6111_v40 = vmul.f32 %v10875_v28, %v6110_v18  ;;  %8552 = vrcp.f32 %v10888_v12  ;;  %v10909_v38 = vadd.f32 1.0, %v8549_v42  ;;  %v6117_v18 = vand.u32 2147483647, %v10869_v27 }
0x1f52   : > { %v6097_v20 = vadd.f32 %v10873_v8, %v6096_v55  ;;  %8554 = vrcp.f32 %v10895_v26  ;;  %v6105_v58 = vor.u32 1.1754944e-38, %v6104_v36  ;;  %vm6261_vm8 = vweird.f32 %v10884_v4 }
0x1f53   : > { %v6112_v56 = vadd.f32 %v10875_v28, %v6111_v40  ;;  %v6120_v40 = vor.u32 1.1754944e-38, %v6119_v59  ;;  %8556 = vrcp.f32 %v10909_v38  ;;  %vm6118_vm6 = vcmp.eq.f32.partialorder %v6117_v18, 8.507059e+37 }
0x1f54   : > { %vm6276_vm12 = vweird.f32 %v10888_v12 }
0x1f55   : > { %v6116_v55 = vsel %vm6115_vm15, %v10875_v28, %v6112_v56  ;;  %vm6291_vm15 = vweird.f32 %v10895_v26 }
0x1f56   : > { %v8551_v19 = vpop.eup %8550  ;;  %v10919_v27 = vsel %vm6118_vm6, %v6120_v40, %v6116_v55 }
0x1f57   : > { %v6257_v60 = vmul.f32 %v8551_v19, %v10884_v4  ;;  %vm6262_vm7 = vweird.f32 %v8551_v19 }
0x1f82   : > { %v6170_v44 = vpop.permute.xlu2 %6169 }
0x1f83   : > { %v6179_v9 = vmul.f32 %v6170_v44, %v10879_v63  ;;  %v10891_v44 = vsel %vm6148_vm9, %v6150_v22, %v6146_v13  ;;  %v6101_v13 = vsel %vm6100_vm13, %v10873_v8, %v6097_v20  ;;  %v8553_v22 = vpop.eup %8552  ;;  %v6258_v8 = vsub.f32 1.0, %v6257_v60  ;;  %vm6263_vm9 = vmor %vm6261_vm8, %vm6262_vm7 }
0x1f84   : > { %v8555_v20 = vpop.eup %8554  ;;  %v6272_v36 = vmul.f32 %v8553_v22, %v10888_v12  ;;  %v6267_v60 = vand.u32 2147483648, %v10884_v4  ;;  %vm6277_vm10 = vweird.f32 %v8553_v22 }
0x1f85   : > { %6189 = vrot.lane.b32.xlu1 %v6179_v9, %s11762_s30  ;;  %v6259_v28 = vmul.f32 %v8551_v19, %v6258_v8  ;;  %v6287_v56 = vmul.f32 %v8555_v20, %v10895_v26  ;;  %vm6278_vm13 = vmor %vm6276_vm12, %vm6277_vm10  ;;  %vm6292_vm14 = vweird.f32 %v8555_v20 }
0x1f86   : > { %v6273_v59 = vsub.f32 1.0, %v6272_v36  ;;  %v6268_v8 = vor.u32 1.1754944e-38, %v6267_v60  ;;  %vm6293_vm6 = vmor %vm6291_vm15, %vm6292_vm14 }
0x1f87   : > { %v6288_v18 = vsub.f32 1.0, %v6287_v56 }
0x1f88   : > { %v6274_v55 = vmul.f32 %v8553_v22, %v6273_v59  ;;  %v6280_v59 = vand.u32 2147483647, %v10888_v12 }
0x1f8a   : > { %v6172_v9 = vpop.permute.xlu2 %6171 }
0x1f8b   : > { %v6180_v43 = vmul.f32 %v6172_v9, %v10891_v44 }
0x1f8d   : > { %6191 = vrot.lane.b32.xlu1 %v6180_v43, %s11762_s30  ;;  %v10915_v43 = vsel %vm6103_vm4, %v6105_v58, %v6101_v13  ;;  %v8557_v13 = vpop.eup %8556  ;;  %v6260_v58 = vadd.f32 %v8551_v19, %v6259_v28  ;;  %v6282_v28 = vand.u32 2147483648, %v10888_v12  ;;  %vm6281_vm4 = vcmp.eq.f32.partialorder %v6280_v59, 8.507059e+37 }
0x1f8e   : > { %vm6247_vm7 = vweird.f32 %v8557_v13 }
0x1f8f   : > { %v6264_v40 = vsel %vm6263_vm9, %v8551_v19, %v6260_v58  ;;  %v6297_v58 = vand.u32 2147483648, %v10895_v26  ;;  %v6283_v60 = vor.u32 1.1754944e-38, %v6282_v28  ;;  %vm6246_vm9 = vweird.f32 %v10909_v38 }
0x1f90   : > { %vm6248_vm10 = vmor %vm6246_vm9, %vm6247_vm7 }
0x1f97   : > { %v6166_v9 = vpop.permute.xlu1 %6165 }
0x1f98   : > { %v6177_v42 = vmul.f32 %v6166_v9, %v10915_v43  ;;  %v6242_v9 = vmul.f32 %v8557_v13, %v10909_v38 }
0x1f99   : > { %v6168_v30 = vpop.permute.xlu0 %6167 }
0x1f9a   : > { %v6178_v51 = vmul.f32 %v6168_v30, %v10919_v27  ;;  %6185 = vrot.lane.b32.xlu0 %v6177_v42, %s11762_s30  ;;  %v6265_v30 = vand.u32 2147483647, %v10884_v4  ;;  %v6289_v42 = vmul.f32 %v8555_v20, %v6288_v18  ;;  %v6243_v36 = vsub.f32 1.0, %v6242_v9 }
0x1f9c   : > { %6187 = vrot.lane.b32.xlu2 %v6178_v51, %s11762_s30  ;;  %v6275_v51 = vadd.f32 %v8553_v22, %v6274_v55  ;;  %vm6266_vm11 = vcmp.eq.f32.partialorder %v6265_v30, 8.507059e+37  ;;  %v6290_v4 = vadd.f32 %v8555_v20, %v6289_v42  ;;  %v6244_v18 = vmul.f32 %v8557_v13, %v6243_v36 }
0x1f9d   : > { %v10931_v47 = vsel %vm6266_vm11, %v6268_v8, %v6264_v40  ;;  %v6295_v55 = vand.u32 2147483647, %v10895_v26  ;;  %v6298_v42 = vor.u32 1.1754944e-38, %v6297_v58  ;;  %v6252_v8 = vand.u32 2147483648, %v10909_v38 }
0x1f9e   : > { %v6279_v19 = vsel %vm6278_vm13, %v8553_v22, %v6275_v51  ;;  %v6294_v30 = vsel %vm6293_vm6, %v8555_v20, %v6290_v4  ;;  %v6245_v22 = vadd.f32 %v8557_v13, %v6244_v18  ;;  %v6250_v26 = vand.u32 2147483647, %v10909_v38 }
0x1f9f   : > { %v10940_v9 = vsel %vm6281_vm4, %v6283_v60, %v6279_v19  ;;  %vm6296_vm8 = vcmp.eq.f32.partialorder %v6295_v55, 8.507059e+37  ;;  %v6253_v28 = vor.u32 1.1754944e-38, %v6252_v8  ;;  %v6158_v19 = vmul.f32 %v10919_v27, %v10781_v14 }
0x1fa0   : > { %v6249_v20 = vsel %vm6248_vm10, %v8557_v13, %v6245_v22  ;;  %vm6251_vm11 = vcmp.eq.f32.partialorder %v6250_v26, 8.507059e+37  ;;  %v6159_v13 = vmul.f32 %v10879_v63, %v10768_v31  ;;  %v6307_v31 = vmul.f32 %v10940_v9, %v10799_v41 }
0x1fa7   : > { %v6316_v56 = vpop.permute.xlu1 %6315 }
0x1fa8   : > { %v6326_v54 = vmul.f32 %v6316_v56, %v10931_v47  ;;  %v6318_v12 = vpop.permute.xlu0 %6317  ;;  %v10951_v56 = vsel %vm6251_vm11, %v6253_v28, %v6249_v20 }
0x1fa9   : > { %v6327_v40 = vmul.f32 %v6318_v12, %v10940_v9  ;;  %v6160_v12 = vmul.f32 %v10891_v44, %v10774_v2 }
0x1faa   : > { %6335 = vrot.lane.b32.xlu0 %v6326_v54, %s11762_s30  ;;  %v10945_v54 = vsel %vm6296_vm8, %v6298_v42, %v6294_v30 }
0x1fab   : > { %6337 = vrot.lane.b32.xlu2 %v6327_v40, %s11762_s30 }
0x1faf   : > { %v6320_v51 = vpop.permute.xlu1 %6319 }
0x1fb0   : > { %v6328_v36 = vmul.f32 %v6320_v51, %v10945_v54  ;;  %v6314_v59 = vpop.permute.xlu0 %6313  ;;  %v6157_v51 = vmul.f32 %v10915_v43, %v10763_v53 }
0x1fb1   : > { %v6325_v4 = vmul.f32 %v6314_v59, %v10951_v56 }
0x1fb2   : > { %6339 = vrot.lane.b32.xlu0 %v6328_v36, %s11762_s30  ;;  %v6305_v36 = vmul.f32 %v10951_v56, %v10804_v11  ;;  %v6308_v11 = vmul.f32 %v10945_v54, %v10792_v46 }
0x1fb3   : > { %6333 = vrot.lane.b32.xlu2 %v6325_v4, %s11762_s30  ;;  %v6306_v4 = vmul.f32 %v10931_v47, %v10787_v24 }
0x1ff6   : > { %v6188_v58 = vpop.permute.xlu2 %6187 }
0x1ff7   : > { %v10957_v38 = vadd.f32 %v6188_v58, %v6158_v19  ;;  %v6190_v18 = vpop.permute.xlu1 %6189 }
0x1ff8   : > { %v10962_v60 = vadd.f32 %v6190_v18, %v6159_v13 }
0x1ff9   : > { %8558 = vtanh.f32 %v10957_v38 }
0x1ffa   : > { %8560 = vtanh.f32 %v10962_v60 }
0x1fff   : > { %v8559_v55 = vpop.eup %8558  ;;  %v6192_v14 = vpop.permute.xlu1 %6191 }
0x2000   : > { %6211 = vrot.lane.b32.xlu1 %v8559_v55, %s11757_s5  ;;  %v8561_v30 = vpop.eup %8560  ;;  %v10968_v40 = vadd.f32 %v6192_v14, %v6160_v12 }
0x2001   : > { %6213 = vrot.lane.b32.xlu0 %v8561_v30, %s11757_s5 }
0x2002   : > { %8562 = vtanh.f32 %v10968_v40 }
0x2005   : > { %v6338_v42 = vpop.permute.xlu2 %6337 }
0x2006   : > { %v10974_v22 = vadd.f32 %v6338_v42, %v6307_v31 }
0x2008   : > { %v8563_v8 = vpop.eup %8562  ;;  %8564 = vtanh.f32 %v10974_v22 }
0x2009   : > { %6215 = vrot.lane.b32.xlu0 %v8563_v8, %s11757_s5 }
0x200c   : > { %v6186_v2 = vpop.permute.xlu0 %6185 }
0x200d   : > { %v10980_v26 = vadd.f32 %v6186_v2, %v6157_v51  ;;  %v6334_v41 = vpop.permute.xlu2 %6333 }
0x200e   : > { %v8565_v20 = vpop.eup %8564  ;;  %v10985_v28 = vadd.f32 %v6334_v41, %v6305_v36 }
0x200f   : > { %8566 = vtanh.f32 %v10980_v26  ;;  %6361 = vrot.lane.b32.xlu1 %v8565_v20, %s11757_s5 }
0x2010   : > { %8568 = vtanh.f32 %v10985_v28 }
0x2015   : > { %v8567_v53 = vpop.eup %8566 }
0x2016   : > { %6209 = vrot.lane.b32.xlu2 %v8567_v53, %s11757_s5  ;;  %v8569_v59 = vpop.eup %8568 }
0x2017   : > { %6357 = vrot.lane.b32.xlu1 %v8569_v59, %s11757_s5 }
0x201c   : > { %v6336_v19 = vpop.permute.xlu0 %6335 }
0x201d   : > { %v10993_v58 = vadd.f32 %v6336_v19, %v6306_v4 }
0x201f   : > { %8570 = vtanh.f32 %v10993_v58 }
0x2024   : > { %v6340_v13 = vpop.permute.xlu0 %6339 }
0x2025   : > { %v8571_v18 = vpop.eup %8570  ;;  %v10998_v55 = vadd.f32 %v6340_v13, %v6308_v11 }
0x2026   : > { %6359 = vrot.lane.b32.xlu2 %v8571_v18, %s11757_s5 }
0x2027   : > { %8572 = vtanh.f32 %v10998_v55 }
0x202d   : > { %v8573_v12 = vpop.eup %8572 }
0x202e   : > { %6363 = vrot.lane.b32.xlu2 %v8573_v12, %s11757_s5 }
0x2070   : > { %v6210_v30 = vpop.permute.xlu2 %6209 }
0x2071   : > { %v11012_v8 = vmul.f32 %v6210_v30, %v10915_v43 }
0x2072   : > { %v6212_v24 = vpop.permute.xlu1 %6211 }
0x2073   : > { %v11004_v14 = vmul.f32 %v6212_v24, %v10919_v27  ;;  %v6214_v31 = vpop.permute.xlu0 %6213  ;;  %v6417_v36 = vpack.c.bf16 %v11012_v8, %v11012_v8 }
0x2074   : > { %v11009_v42 = vmul.f32 %v6214_v31, %v10879_v63 }
0x2075   : > { %v6418_v46 = vpack.c.bf16 %v11004_v14, %v11004_v14  ;;  %v6425_v4 = vunpack.c.l.b16 %v6417_v36 }
0x2076   : > { %11795 = vst [vmem:[#allocation28_spill] sm:$0xff] %v11009_v42  ;;  %v6419_v51 = vpack.c.bf16 %v11009_v42, %v11009_v42 }
0x2077   : > { %v6426_v2 = vunpack.c.l.b16 %v6418_v46 }
0x2078   : > { %v6427_v27 = vunpack.c.l.b16 %v6419_v51 }
0x2079   : > { %v6429_v20 = vrot.slane %v6426_v2, 7 }
0x207a   : > { %v6431_v43 = vrot.slane %v6427_v27, 6 }
0x207b   : > { %v6216_v41 = vpop.permute.xlu0 %6215  ;;  %v6430_v19 = vsel %vm4217_vm5, %v6429_v20, %v6425_v4 }
0x207c   : > { %v11019_v53 = vmul.f32 %v6216_v41, %v10891_v44  ;;  %v6432_v12 = vsel %vm4220_vm1, %v6431_v43, %v6430_v19 }
0x207e   : > { %11796 = vst [vmem:[#allocation29_spill] sm:$0xff] %v11019_v53  ;;  %v6420_v63 = vpack.c.bf16 %v11019_v53, %v11019_v53 }
0x2080   : > { %v6360_v59 = vpop.permute.xlu2 %6359  ;;  %v6428_v11 = vunpack.c.l.b16 %v6420_v63 }
0x2081   : > { %v6362_v13 = vpop.permute.xlu1 %6361  ;;  %v11026_v24 = vmul.f32 %v6360_v59, %v10931_v47 }
0x2082   : > { %v6433_v18 = vrot.slane %v6428_v11, 5  ;;  %v11029_v30 = vmul.f32 %v6362_v13, %v10940_v9 }
0x2083   : > { %v6471_v2 = vpack.c.bf16 %v11026_v24, %v11026_v24 }
0x2084   : > { %11797 = vst [vmem:[#allocation30_spill] sm:$0xff] %v11029_v30  ;;  %v6434_v44 = vsel %vm4223_vm2, %v6433_v18, %v6432_v12  ;;  %v6472_v36 = vpack.c.bf16 %v11029_v30, %v11029_v30 }
0x2085   : > { %v6435_v46 = vpack.c.b16 %v6434_v44, %v6434_v44  ;;  %v6479_v27 = vunpack.c.l.b16 %v6471_v2 }
0x2086   : > { %v6480_v59 = vunpack.c.l.b16 %v6472_v36 }
0x2087   : > { %6436 = vrot.lane.b32.xlu0 %v6435_v46, %s11762_s30  ;;  %v6482_v4 = vrot.slane %v6479_v27, 7 }
0x2088   : > { %v6364_v31 = vpop.permute.xlu2 %6363  ;;  %v6484_v19 = vrot.slane %v6480_v59, 6 }
0x2089   : > { %v11033_v51 = vmul.f32 %v6364_v31, %v10945_v54  ;;  %v6358_v9 = vpop.permute.xlu1 %6357  ;;  %v6413_v31 = vld [vmem:[#allocation2 + $0x6] sm:$0x1] }
0x208a   : > { %v11043_v41 = vmul.f32 %v6358_v9, %v10951_v56 }
0x208b   : > { %11798 = vst [vmem:[#allocation31_spill] sm:$0xff] %v11033_v51  ;;  %v6473_v47 = vpack.c.bf16 %v11033_v51, %v11033_v51 }
0x208c   : > { %v6470_v54 = vpack.c.bf16 %v11043_v41, %v11043_v41 }
0x208d   : > { %v6481_v20 = vunpack.c.l.b16 %v6473_v47  ;;  %v6414_v47 = vld [vmem:[#allocation2 + $0xe] sm:$0x1] }
0x208e   : > { %v6478_v63 = vunpack.c.l.b16 %v6470_v54 }
0x208f   : > { %v6486_v43 = vrot.slane %v6481_v20, 5  ;;  %v6415_v20 = vld [vmem:[#allocation2 + $0x16] sm:$0x1] }
0x2090   : > { %v6483_v11 = vsel %vm4217_vm5, %v6482_v4, %v6478_v63 }
0x2091   : > { %v6485_v13 = vsel %vm4220_vm1, %v6484_v19, %v6483_v11  ;;  %v6416_v19 = vld [vmem:[#allocation2 + $0x1e] sm:$0x1] }
0x2092   : > { %v6487_v18 = vsel %vm4223_vm2, %v6486_v43, %v6485_v13 }
0x2093   : > { %v6488_v12 = vpack.c.b16 %v6487_v18, %v6487_v18 }
0x2095   : > { %6489 = vrot.lane.b32.xlu1 %v6488_v12, %s11762_s30 }
0x20f9   : > { %v6437_v56 = vpop.permute.xlu0 %6436 }
0x20fa   : > { %7925 = vmatmul.msk.bf16.vlgmr.msrb.gmra.mxu2 %vm3792_vm3, %v6437_v56  ;;  %v6467_v56 = vld [vmem:[#allocation3 + $0x9] sm:$0x1] }
0x2107   : > { %v6490_v44 = vpop.permute.xlu1 %6489 }
0x2108   : > { %7926 = vmatmul.msk.bf16.vlgmr.msrb.gmra.mxu3 %vm3792_vm3, %v6490_v44 }
0x217d   : > { %v6450_v46 = vpop.f32.mrf.mxu2 }
0x217e   : > { %v6455_v2 = vrot.slane %v6450_v46, 1  ;;  %v6462_v36 = vadd.f32 %v6450_v46, %v6413_v31  ;;  %v6456_v9 = vrot.slane %v6450_v46, 2  ;;  %v6457_v63 = vrot.slane %v6450_v46, 3 }
0x2180   : > { %v6463_v27 = vadd.f32 %v6455_v2, %v6414_v47  ;;  %8574 = vtanh.f32 %v6462_v36  ;;  %v6464_v59 = vadd.f32 %v6456_v9, %v6415_v20  ;;  %v6465_v11 = vadd.f32 %v6457_v63, %v6416_v19  ;;  %v6468_v2 = vld [vmem:[#allocation3 + $0x11] sm:$0x1]  ;;  %v6469_v9 = vld [vmem:[#allocation3 + $0x19] sm:$0x1] }
0x2182   : > { %8576 = vtanh.f32 %v6463_v27 }
0x2183   : > { %8578 = vtanh.f32 %v6464_v59 }
0x2184   : > { %8580 = vtanh.f32 %v6465_v11 }
0x2185   : > { %v6452_v54 = vpop.f32.mrf.mxu2 }
0x2186   : > { %v8575_v4 = vpop.eup %8574 }
0x2187   : > { %6607 = vrot.lane.b32.xlu0 %v8575_v4, %s11757_s5 }
0x2188   : > { %v8577_v43 = vpop.eup %8576 }
0x2189   : > { %6609 = vrot.lane.b32.xlu2 %v8577_v43, %s11757_s5  ;;  %v8579_v18 = vpop.eup %8578  ;;  %v6466_v43 = vld [vmem:[#allocation3 + $0x1] sm:$0x1] }
0x218a   : > { %6611 = vrot.lane.b32.xlu1 %v8579_v18, %s11757_s5  ;;  %v8581_v54 = vpop.eup %8580 }
0x218b   : > { %v6503_v13 = vpop.f32.mrf.mxu3 }
0x218c   : > { %v6508_v12 = vrot.slane %v6503_v13, 1  ;;  %v6509_v44 = vrot.slane %v6503_v13, 2  ;;  %v6510_v47 = vrot.slane %v6503_v13, 3  ;;  %v6515_v19 = vadd.f32 %v6503_v13, %v6466_v43 }
0x218d   : > { %v7929_v43 = vmul.f32 -1.442695, %v6464_v59 }
0x218e   : > { %v6516_v31 = vadd.f32 %v6508_v12, %v6467_v56  ;;  %v6517_v46 = vadd.f32 %v6509_v44, %v6468_v2  ;;  %v6518_v4 = vadd.f32 %v6510_v47, %v6469_v9  ;;  %v7928_v44 = vmul.f32 -1.442695, %v6463_v27 }
0x2190   : > { %8582 = vtanh.f32 %v6516_v31  ;;  %v7933_v9 = vmul.f32 -1.442695, %v6517_v46 }
0x2191   : > { %8584 = vtanh.f32 %v6517_v46 }
0x2192   : > { %6613 = vrot.lane.b32.xlu1 %v8581_v54, %s11757_s5  ;;  %8586 = vtanh.f32 %v6518_v4 }
0x2193   : > { %v6505_v20 = vpop.f32.mrf.mxu3  ;;  %8588 = vtanh.f32 %v6515_v19 }
0x2194   : > { %8590 = vpow2.f32 %v7928_v44  ;;  %v7927_v20 = vmul.f32 -1.442695, %v6462_v36  ;;  %v7930_v44 = vmul.f32 -1.442695, %v6465_v11 }
0x2196   : > { %v8583_v63 = vpop.eup %8582 }
0x2197   : > { %6757 = vrot.lane.b32.xlu0 %v8583_v63, %s11757_s5  ;;  %v8585_v18 = vpop.eup %8584  ;;  %v7931_v63 = vmul.f32 -1.442695, %v6515_v19 }
0x2198   : > { %6759 = vrot.lane.b32.xlu2 %v8585_v18, %s11757_s5  ;;  %v8587_v12 = vpop.eup %8586 }
0x2199   : > { %v8589_v56 = vpop.eup %8588 }
0x219a   : > { %v8591_v2 = vpop.eup %8590 }
0x219b   : > { %v6532_v47 = vadd.f32 1.0, %v8591_v2  ;;  %v7932_v2 = vmul.f32 -1.442695, %v6516_v31 }
0x219d   : > { %8592 = vrcp.f32 %v6532_v47  ;;  %v6561_v59 = vand.u32 2147483648, %v6532_v47  ;;  %vm6555_vm13 = vweird.f32 %v6532_v47 }
0x219e   : > { %8594 = vpow2.f32 %v7933_v9 }
0x219f   : > { %6761 = vrot.lane.b32.xlu0 %v8587_v12, %s11757_s5  ;;  %8596 = vpow2.f32 %v7927_v20  ;;  %v6559_v20 = vand.u32 2147483647, %v6532_v47 }
0x21a0   : > { %6755 = vrot.lane.b32.xlu2 %v8589_v56, %s11757_s5  ;;  %8598 = vpow2.f32 %v7931_v63  ;;  %v6562_v63 = vor.u32 1.1754944e-38, %v6561_v59 }
0x21a1   : > { %8600 = vpow2.f32 %v7929_v43  ;;  %vm6560_vm15 = vcmp.eq.f32.partialorder %v6559_v20, 8.507059e+37 }
0x21a3   : > { %v8593_v54 = vpop.eup %8592 }
0x21a4   : > { %v6551_v13 = vmul.f32 %v8593_v54, %v6532_v47  ;;  %v8595_v18 = vpop.eup %8594  ;;  %vm6556_vm12 = vweird.f32 %v8593_v54 }
0x21a5   : > { %v8597_v12 = vpop.eup %8596  ;;  %v11061_v42 = vadd.f32 1.0, %v8595_v18  ;;  %vm6557_vm14 = vmor %vm6555_vm13, %vm6556_vm12 }
0x21a6   : > { %v6552_v51 = vsub.f32 1.0, %v6551_v13  ;;  %v11063_v56 = vadd.f32 1.0, %v8597_v12  ;;  %v8599_v36 = vpop.eup %8598 }
0x21a7   : > { %8602 = vrcp.f32 %v11061_v42  ;;  %v8601_v46 = vpop.eup %8600  ;;  %v11067_v19 = vadd.f32 1.0, %v8599_v36  ;;  %vm6718_vm6 = vweird.f32 %v11061_v42  ;;  %v6722_v53 = vand.u32 2147483647, %v11061_v42 }
0x21a8   : > { %v6553_v27 = vmul.f32 %v8593_v54, %v6552_v51  ;;  %8604 = vrcp.f32 %v11063_v56  ;;  %v11069_v13 = vadd.f32 1.0, %v8601_v46  ;;  %v6546_v5 = vand.u32 2147483648, %v11063_v56 }
0x21a9   : > { %8606 = vpow2.f32 %v7930_v44  ;;  %vm6540_vm9 = vweird.f32 %v11063_v56  ;;  %vm6723_vm10 = vcmp.eq.f32.partialorder %v6722_v53, 8.507059e+37  ;;  %v6692_v50 = vand.u32 2147483647, %v11067_v19 }
0x21aa   : > { %v6554_v9 = vadd.f32 %v8593_v54, %v6553_v27  ;;  %8608 = vpow2.f32 %v7932_v2  ;;  %v7934_v27 = vmul.f32 -1.442695, %v6518_v4  ;;  %v6547_v53 = vor.u32 1.1754944e-38, %v6546_v5 }
0x21ab   : > { %8610 = vrcp.f32 %v11067_v19 }
0x21ac   : > { %v6558_v11 = vsel %vm6557_vm14, %v8593_v54, %v6554_v9  ;;  %8612 = vrcp.f32 %v11069_v13 }
0x21ad   : > { %v8603_v51 = vpop.eup %8602  ;;  %v11075_v18 = vsel %vm6560_vm15, %v6562_v63, %v6558_v11  ;;  %8614 = vpow2.f32 %v7934_v27  ;;  %vm6688_vm15 = vweird.f32 %v11067_v19 }
0x21ae   : > { %v11072_v31 = vpop.eup %8604  ;;  %v6714_v12 = vmul.f32 %v8603_v51, %v11061_v42  ;;  %vm6719_vm4 = vweird.f32 %v8603_v51 }
0x21af   : > { %v8607_v47 = vpop.eup %8606  ;;  %v6536_v54 = vmul.f32 %v11072_v31, %v11063_v56  ;;  %vm11104_vm7 = vmor %vm6718_vm6, %vm6719_vm4  ;;  %vm6541_vm8 = vweird.f32 %v11072_v31  ;;  %vm6570_vm6 = vweird.f32 %v11069_v13 }
0x21b0   : > { %v8609_v36 = vpop.eup %8608  ;;  %v11082_v46 = vadd.f32 1.0, %v8607_v47  ;;  %v6715_v2 = vsub.f32 1.0, %v6714_v12  ;;  %vm11122_vm11 = vmor %vm6540_vm9, %vm6541_vm8  ;;  %vm6693_vm8 = vcmp.eq.f32.partialorder %v6692_v50, 8.507059e+37 }
0x21b1   : > { %v11084_v9 = vpop.eup %8610  ;;  %v11088_v20 = vadd.f32 1.0, %v8609_v36  ;;  %v6537_v11 = vsub.f32 1.0, %v6536_v54  ;;  %v6724_v36 = vand.u32 2147483648, %v11061_v42 }
0x21b2   : > { %v11086_v59 = vpop.eup %8612  ;;  %8616 = vrcp.f32 %v11082_v46  ;;  %v6716_v4 = vmul.f32 %v8603_v51, %v6715_v2  ;;  %v6684_v63 = vmul.f32 %v11084_v9, %v11067_v19  ;;  %vm6689_vm13 = vweird.f32 %v11084_v9 }
0x21b3   : > { %8618 = vrcp.f32 %v11088_v20  ;;  %v8615_v12 = vpop.eup %8614  ;;  %v6538_v47 = vmul.f32 %v11072_v31, %v6537_v11  ;;  %v6725_v42 = vor.u32 1.1754944e-38, %v6724_v36  ;;  %vm6571_vm14 = vweird.f32 %v11086_v59  ;;  %vm6690_vm4 = vmor %vm6688_vm15, %vm6689_vm13 }
0x21b4   : > { %v6717_v27 = vadd.f32 %v8603_v51, %v6716_v4  ;;  %v11100_v2 = vadd.f32 1.0, %v8615_v12  ;;  %v6544_v4 = vand.u32 2147483647, %v11063_v56  ;;  %v6589_v50 = vand.u32 2147483647, %v11082_v46 }
0x21b5   : > { %v6539_v11 = vadd.f32 %v11072_v31, %v6538_v47 }
0x21b6   : > { %8620 = vrcp.f32 %v11100_v2  ;;  %vm6545_vm12 = vcmp.eq.f32.partialorder %v6544_v4, 8.507059e+37  ;;  %v6576_v4 = vand.u32 2147483648, %v11069_v13 }
0x21b8   : > { %v11098_v30 = vpop.eup %8616 }
0x21b9   : > { %v6581_v47 = vmul.f32 %v11098_v30, %v11082_v46 }
0x21e3   : > { %v6610_v43 = vpop.permute.xlu2 %6609 }
0x21e4   : > { %v6620_v44 = vmul.f32 %v6610_v43, %v11075_v18  ;;  %v6566_v43 = vmul.f32 %v11086_v59, %v11069_v13 }
0x21e6   : > { %6629 = vrot.lane.b32.xlu1 %v6620_v44, %s11762_s30  ;;  %v6685_v44 = vsub.f32 1.0, %v6684_v63  ;;  %v6567_v54 = vsub.f32 1.0, %v6566_v43  ;;  %v11111_v63 = vpop.eup %8618  ;;  %v6721_v43 = vsel %vm11104_vm7, %v8603_v51, %v6717_v27  ;;  %v6543_v27 = vsel %vm11122_vm11, %v11072_v31, %v6539_v11  ;;  %vm6572_vm7 = vmor %vm6570_vm6, %vm6571_vm14 }
0x21e7   : > { %v11126_v51 = vsel %vm6723_vm10, %v6725_v42, %v6721_v43  ;;  %v6699_v56 = vmul.f32 %v11111_v63, %v11088_v20  ;;  %v6582_v42 = vsub.f32 1.0, %v6581_v47  ;;  %v11142_v11 = vsel %vm6545_vm12, %v6547_v53, %v6543_v27  ;;  %v8621_v47 = vpop.eup %8620 }
0x21e8   : > { %v6686_v12 = vmul.f32 %v11084_v9, %v6685_v44  ;;  %v6568_v33 = vmul.f32 %v11086_v59, %v6567_v54  ;;  %v6694_v54 = vand.u32 2147483648, %v11067_v19  ;;  %v6577_v53 = vor.u32 1.1754944e-38, %v6576_v4 }
0x21e9   : > { %vm6586_vm10 = vweird.f32 %v11098_v30  ;;  %vm6585_vm11 = vweird.f32 %v11082_v46  ;;  %vm6704_vm12 = vweird.f32 %v11111_v63  ;;  %vm6703_vm14 = vweird.f32 %v11088_v20 }
0x21ea   : > { %v6687_v36 = vadd.f32 %v11084_v9, %v6686_v12  ;;  %v6569_v43 = vadd.f32 %v11086_v59, %v6568_v33  ;;  %v6574_v33 = vand.u32 2147483647, %v11069_v13  ;;  %v6700_v12 = vsub.f32 1.0, %v6699_v56  ;;  %vm6587_vm13 = vmor %vm6585_vm11, %vm6586_vm10 }
0x21eb   : > { %v6695_v19 = vor.u32 1.1754944e-38, %v6694_v54  ;;  %vm6705_vm15 = vmor %vm6703_vm14, %vm6704_vm12  ;;  %vm4174_vm11 = vcmask 253952   ;;  %vm4195_vm12 = vcmask 516352  }
0x21ec   : > { %v6573_v27 = vsel %vm6572_vm7, %v11086_v59, %v6569_v43  ;;  %vm6575_vm9 = vcmp.eq.f32.partialorder %v6574_v33, 8.507059e+37  ;;  %v6701_v13 = vmul.f32 %v11111_v63, %v6700_v12  ;;  %v6707_v12 = vand.u32 2147483647, %v11088_v20 }
0x21ed   : > { %v11159_v54 = vsel %vm6575_vm9, %v6577_v53, %v6573_v27  ;;  %vm6734_vm7 = vweird.f32 %v8621_v47 }
0x21ee   : > { %vm6708_vm6 = vcmp.eq.f32.partialorder %v6707_v12, 8.507059e+37 }
0x21f2   : > { %v6760_v45 = vpop.permute.xlu2 %6759 }
0x21f3   : > { %v6769_v44 = vmul.f32 %v6760_v45, %v11126_v51  ;;  %v6691_v45 = vsel %vm6690_vm4, %v11084_v9, %v6687_v36  ;;  %v6729_v9 = vmul.f32 %v8621_v47, %v11100_v2  ;;  %vm6590_vm4 = vcmp.eq.f32.partialorder %v6589_v50, 8.507059e+37 }
0x21f5   : > { %6779 = vrot.lane.b32.xlu1 %v6769_v44, %s11762_s30  ;;  %v6583_v44 = vmul.f32 %v11098_v30, %v6582_v42  ;;  %v6591_v42 = vand.u32 2147483648, %v11082_v46  ;;  %v6730_v4 = vsub.f32 1.0, %v6729_v9 }
0x21f7   : > { %v6584_v43 = vadd.f32 %v11098_v30, %v6583_v44  ;;  %v6731_v46 = vmul.f32 %v8621_v47, %v6730_v4  ;;  %v6599_v4 = vmul.f32 %v11142_v11, %v10980_v26 }
0x21f9   : > { %v6608_v31 = vpop.permute.xlu0 %6607  ;;  %v6588_v33 = vsel %vm6587_vm13, %v11098_v30, %v6584_v43 }
0x21fa   : > { %v6619_v5 = vmul.f32 %v6608_v31, %v11142_v11  ;;  %v11154_v31 = vsel %vm6693_vm8, %v6695_v19, %v6691_v45  ;;  %v6756_v21 = vpop.permute.xlu2 %6755  ;;  %v6592_v45 = vor.u32 1.1754944e-38, %v6591_v42  ;;  %vm6733_vm8 = vweird.f32 %v11100_v2 }
0x21fb   : > { %v6767_v56 = vmul.f32 %v6756_v21, %v11154_v31  ;;  %v6702_v21 = vadd.f32 %v11111_v63, %v6701_v13  ;;  %vm6735_vm9 = vmor %vm6733_vm8, %vm6734_vm7 }
0x21fc   : > { %6627 = vrot.lane.b32.xlu2 %v6619_v5, %s11762_s30  ;;  %v6612_v36 = vpop.permute.xlu1 %6611  ;;  %v6709_v5 = vand.u32 2147483648, %v11088_v20  ;;  %v11176_v27 = vsel %vm6590_vm4, %v6592_v45, %v6588_v33  ;;  %v6732_v20 = vadd.f32 %v8621_v47, %v6731_v46 }
0x21fd   : > { %v6621_v59 = vmul.f32 %v6612_v36, %v11159_v54  ;;  %6775 = vrot.lane.b32.xlu1 %v6767_v56, %s11762_s30  ;;  %v6706_v19 = vsel %vm6705_vm15, %v11111_v63, %v6702_v21  ;;  %v6739_v36 = vand.u32 2147483648, %v11100_v2  ;;  %v6737_v63 = vand.u32 2147483647, %v11100_v2 }
0x21fe   : > { %v6710_v53 = vor.u32 1.1754944e-38, %v6709_v5  ;;  %v6600_v2 = vmul.f32 %v11075_v18, %v10957_v38  ;;  %v6749_v38 = vmul.f32 %v11126_v51, %v10974_v22 }
0x21ff   : > { %6631 = vrot.lane.b32.xlu0 %v6621_v59, %s11762_s30  ;;  %v6736_v59 = vsel %vm6735_vm9, %v8621_v47, %v6732_v20  ;;  %v6740_v43 = vor.u32 1.1754944e-38, %v6739_v36  ;;  %vm6738_vm10 = vcmp.eq.f32.partialorder %v6737_v63, 8.507059e+37  ;;  %v6601_v63 = vmul.f32 %v11159_v54, %v10962_v60 }
0x2200   : > { %v11179_v56 = vsel %vm6708_vm6, %v6710_v53, %v6706_v19 }
0x2201   : > { %v11187_v42 = vsel %vm6738_vm10, %v6740_v43, %v6736_v59  ;;  %v6748_v26 = vmul.f32 %v11179_v56, %v10993_v58  ;;  %v6747_v58 = vmul.f32 %v11154_v31, %v10985_v28  ;;  %v6602_v28 = vmul.f32 %v11176_v27, %v10968_v40 }
0x2204   : > { %v6614_v44 = vpop.permute.xlu1 %6613 }
0x2205   : > { %v6622_v13 = vmul.f32 %v6614_v44, %v11176_v27 }
0x2207   : > { %6633 = vrot.lane.b32.xlu0 %v6622_v13, %s11762_s30 }
0x2209   : > { %v6758_v9 = vpop.permute.xlu0 %6757 }
0x220a   : > { %v6768_v30 = vmul.f32 %v6758_v9, %v11179_v56  ;;  %v6750_v9 = vmul.f32 %v11187_v42, %v10998_v55 }
0x220c   : > { %6777 = vrot.lane.b32.xlu2 %v6768_v30, %s11762_s30 }
0x2211   : > { %v6762_v50 = vpop.permute.xlu0 %6761 }
0x2212   : > { %v6770_v21 = vmul.f32 %v6762_v50, %v11187_v42 }
0x2214   : > { %6781 = vrot.lane.b32.xlu2 %v6770_v21, %s11762_s30 }
0x2256   : > { %v6628_v5 = vpop.permute.xlu2 %6627 }
0x2257   : > { %v11193_v33 = vadd.f32 %v6628_v5, %v6599_v4 }
0x2258   : > { %v6630_v12 = vpop.permute.xlu1 %6629 }
0x2259   : > { %8622 = vtanh.f32 %v11193_v33  ;;  %v11198_v47 = vadd.f32 %v6630_v12, %v6600_v2 }
0x225b   : > { %8624 = vtanh.f32 %v11198_v47 }
0x225f   : > { %v8623_v45 = vpop.eup %8622 }
0x2260   : > { %6651 = vrot.lane.b32.xlu1 %v8623_v45, %s11757_s5 }
0x2261   : > { %v8625_v19 = vpop.eup %8624 }
0x2262   : > { %6653 = vrot.lane.b32.xlu0 %v8625_v19, %s11757_s5 }
0x2266   : > { %v6778_v46 = vpop.permute.xlu2 %6777 }
0x2267   : > { %v11205_v44 = vadd.f32 %v6778_v46, %v6748_v26  ;;  %v6780_v53 = vpop.permute.xlu1 %6779 }
0x2268   : > { %v11210_v13 = vadd.f32 %v6780_v53, %v6749_v38 }
0x2269   : > { %8626 = vtanh.f32 %v11205_v44 }
0x226a   : > { %8628 = vtanh.f32 %v11210_v13 }
0x226e   : > { %v6782_v30 = vpop.permute.xlu2 %6781 }
0x226f   : > { %v8627_v20 = vpop.eup %8626  ;;  %v11215_v36 = vadd.f32 %v6782_v30, %v6750_v9  ;;  %v6776_v22 = vpop.permute.xlu1 %6775 }
0x2270   : > { %6801 = vrot.lane.b32.xlu1 %v8627_v20, %s11757_s5  ;;  %v8629_v59 = vpop.eup %8628  ;;  %v11223_v43 = vadd.f32 %v6776_v22, %v6747_v58 }
0x2271   : > { %8630 = vtanh.f32 %v11215_v36  ;;  %v6632_v55 = vpop.permute.xlu0 %6631  ;;  %6803 = vrot.lane.b32.xlu0 %v8629_v59, %s11757_s5 }
0x2272   : > { %v11226_v50 = vadd.f32 %v6632_v55, %v6601_v63  ;;  %8632 = vtanh.f32 %v11223_v43 }
0x2274   : > { %8634 = vtanh.f32 %v11226_v50 }
0x2277   : > { %v8631_v21 = vpop.eup %8630 }
0x2278   : > { %6805 = vrot.lane.b32.xlu1 %v8631_v21, %s11757_s5  ;;  %v8633_v4 = vpop.eup %8632 }
0x2279   : > { %v6634_v60 = vpop.permute.xlu0 %6633  ;;  %6799 = vrot.lane.b32.xlu0 %v8633_v4, %s11757_s5 }
0x227a   : > { %v8635_v5 = vpop.eup %8634  ;;  %v11234_v2 = vadd.f32 %v6634_v60, %v6602_v28 }
0x227b   : > { %6655 = vrot.lane.b32.xlu2 %v8635_v5, %s11757_s5 }
0x227c   : > { %8636 = vtanh.f32 %v11234_v2 }
0x2280   : > { %4162 = vrot.lane.b32.xlu1 %v9966_v0, %s11762_s30 }
0x2282   : > { %v8637_v12 = vpop.eup %8636 }
0x2283   : > { %6657 = vrot.lane.b32.xlu2 %v8637_v12, %s11757_s5 }
0x2288   : > { %4185 = vrot.lane.b32.xlu1 %v9969_v15, %s11757_s5 }
0x2290   : > { %4629 = vrot.lane.b32.xlu1 %v10206_v62, %s11757_s5 }
0x2298   : > { %5053 = vrot.lane.b32.xlu1 %v10385_v10, %s11762_s30 }
0x22a0   : > { %5493 = vrot.lane.b32.xlu1 %v10637_v25, %s11762_s30 }
0x22a8   : > { %5515 = vrot.lane.b32.xlu1 %v10651_v17, %s11757_s5 }
0x22b0   : > { %5955 = vrot.lane.b32.xlu1 %v10849_v52, %s11757_s5 }
0x22b8   : > { %6379 = vrot.lane.b32.xlu1 %v11004_v14, %s11762_s30 }
0x22d2   : > { %v6652_v0 = vpop.permute.xlu1 %6651 }
0x22d3   : > { %v6663_v15 = vmul.f32 %v6652_v0, %v11142_v11 }
0x22d4   : > { %v6654_v40 = vpop.permute.xlu0 %6653 }
0x22d5   : > { %v11257_v62 = vmul.f32 %v6654_v40, %v11075_v18  ;;  %6819 = vrot.lane.b32.xlu1 %v6663_v15, %s11762_s30  ;;  %v6656_v10 = vpop.permute.xlu2 %6655  ;;  %v6859_v45 = vpack.c.bf16 %v6663_v15, %v6663_v15 }
0x22d6   : > { %v11263_v17 = vmul.f32 %v6656_v10, %v11159_v54 }
0x22d7   : > { %v6860_v25 = vpack.c.bf16 %v11257_v62, %v11257_v62  ;;  %v6867_v38 = vunpack.c.l.b16 %v6859_v45 }
0x22d8   : > { %v6861_v52 = vpack.c.bf16 %v11263_v17, %v11263_v17 }
0x22d9   : > { %v6868_v14 = vunpack.c.l.b16 %v6860_v25 }
0x22da   : > { %v6869_v19 = vunpack.c.l.b16 %v6861_v52 }
0x22db   : > { %v6871_v26 = vrot.slane %v6868_v14, 7 }
0x22dc   : > { %v6873_v9 = vrot.slane %v6869_v19, 6 }
0x22dd   : > { %v6658_v11 = vpop.permute.xlu2 %6657  ;;  %v6872_v54 = vsel %vm4217_vm5, %v6871_v26, %v6867_v38 }
0x22de   : > { %v11268_v18 = vmul.f32 %v6658_v11, %v11176_v27  ;;  %v6874_v22 = vsel %vm4220_vm1, %v6873_v9, %v6872_v54 }
0x22e0   : > { %v6862_v53 = vpack.c.bf16 %v11268_v18, %v11268_v18 }
0x22e2   : > { %v6802_v46 = vpop.permute.xlu1 %6801  ;;  %v6870_v30 = vunpack.c.l.b16 %v6862_v53 }
0x22e3   : > { %v6804_v20 = vpop.permute.xlu0 %6803  ;;  %v11275_v63 = vmul.f32 %v6802_v46, %v11179_v56 }
0x22e4   : > { %v6875_v58 = vrot.slane %v6870_v30, 5  ;;  %v11278_v59 = vmul.f32 %v6804_v20, %v11126_v51 }
0x22e5   : > { %v6913_v4 = vpack.c.bf16 %v11275_v63, %v11275_v63 }
0x22e6   : > { %v6876_v27 = vsel %vm4223_vm2, %v6875_v58, %v6874_v22  ;;  %v6914_v60 = vpack.c.bf16 %v11278_v59, %v11278_v59 }
0x22e7   : > { %v6877_v21 = vpack.c.b16 %v6876_v27, %v6876_v27  ;;  %v6921_v5 = vunpack.c.l.b16 %v6913_v4  ;;  %v6855_v27 = vld [vmem:[#allocation2 + $0x7] sm:$0x1] }
0x22e9   : > { %6878 = vrot.lane.b32.xlu2 %v6877_v21, %s11762_s30  ;;  %v6924_v10 = vrot.slane %v6921_v5, 7  ;;  %v6858_v5 = vld [vmem:[#allocation2 + $0x1f] sm:$0x1] }
0x22ea   : > { %v6806_v55 = vpop.permute.xlu1 %6805 }
0x22eb   : > { %v11282_v28 = vmul.f32 %v6806_v55, %v11187_v42  ;;  %v6800_v51 = vpop.permute.xlu0 %6799  ;;  %v6922_v42 = vunpack.c.l.b16 %v6914_v60  ;;  %v6856_v60 = vld [vmem:[#allocation2 + $0xf] sm:$0x1] }
0x22ec   : > { %v11292_v12 = vmul.f32 %v6800_v51, %v11154_v31 }
0x22ed   : > { %v6915_v56 = vpack.c.bf16 %v11282_v28, %v11282_v28  ;;  %v6926_v14 = vrot.slane %v6922_v42, 6 }
0x22ee   : > { %v6912_v15 = vpack.c.bf16 %v11292_v12, %v11292_v12 }
0x22ef   : > { %v6923_v0 = vunpack.c.l.b16 %v6915_v56 }
0x22f0   : > { %v6920_v25 = vunpack.c.l.b16 %v6912_v15 }
0x22f1   : > { %v6928_v52 = vrot.slane %v6923_v0, 5  ;;  %4164 = vrot.lane.b32.xlu2 %v9956_v7, %s11762_s30 }
0x22f2   : > { %v4163_v40 = vpop.permute.xlu1 %4162  ;;  %v6925_v45 = vsel %vm4217_vm5, %v6924_v10, %v6920_v25 }
0x22f3   : > { %4175 = vst.msk [vmem:[#allocation4] sm:$0x1] %vm4174_vm11, %v4163_v40  ;;  %v6927_v31 = vsel %vm4220_vm1, %v6926_v14, %v6925_v45  ;;  %v6857_v40 = vld [vmem:[#allocation2 + $0x17] sm:$0x1] }
0x22f4   : > { %v6929_v19 = vsel %vm4223_vm2, %v6928_v52, %v6927_v31  ;;  %v6908_v31 = vld [vmem:[#allocation3] sm:$0x1] }
0x22f5   : > { %v6930_v11 = vpack.c.b16 %v6929_v19, %v6929_v19 }
0x22f7   : > { %6931 = vrot.lane.b32.xlu0 %v6930_v11, %s11762_s30 }
0x22f9   : > { %4609 = vrot.lane.b32.xlu2 %v10175_v37, %s11762_s30 }
0x22fa   : > { %v4186_v26 = vpop.permute.xlu1 %4185 }
0x22fb   : > { %4197 = vst.msk [vmem:[#allocation4 + $0xf] sm:$0x1] %vm4195_vm12, %v4186_v26 }
0x22ff   : > { %4183 = vrot.lane.b32.xlu0 %v9987_v3, %s11757_s5 }
0x2301   : > { %4631 = vrot.lane.b32.xlu2 %v10191_v32, %s11757_s5 }
0x2302   : > { %v4630_v46 = vpop.permute.xlu1 %4629 }
0x2303   : > { %4641 = vst.msk [vmem:[#allocation4 + $0x6] sm:$0x1] %vm4195_vm12, %v4630_v46  ;;  %v6909_v46 = vld [vmem:[#allocation3 + $0x8] sm:$0x1] }
0x2307   : > { %4611 = vrot.lane.b32.xlu0 %v10167_v57, %s11762_s30 }
0x2309   : > { %5071 = vrot.lane.b32.xlu2 %v10424_v34, %s11757_s5 }
0x230a   : > { %v5054_v7 = vpop.permute.xlu1 %5053 }
0x230b   : > { %5064 = vst.msk [vmem:[#allocation4 + $0xa] sm:$0x1] %vm4174_vm11, %v5054_v7 }
0x230f   : > { %5051 = vrot.lane.b32.xlu0 %v10393_v29, %s11762_s30 }
0x2311   : > { %5495 = vrot.lane.b32.xlu2 %v10629_v61, %s11762_s30 }
0x2312   : > { %v5494_v38 = vpop.permute.xlu1 %5493 }
0x2313   : > { %5505 = vst.msk [vmem:[#allocation4 + $0x3] sm:$0x1] %vm4174_vm11, %v5494_v38 }
0x2317   : > { %5073 = vrot.lane.b32.xlu0 %v10406_v49, %s11757_s5 }
0x2319   : > { %5935 = vrot.lane.b32.xlu2 %v10818_v1, %s11762_s30 }
0x231a   : > { %v5516_v3 = vpop.permute.xlu1 %5515 }
0x231b   : > { %5526 = vst.msk [vmem:[#allocation4 + $0xc] sm:$0x1] %vm4195_vm12, %v5516_v3  ;;  %v6911_v3 = vld [vmem:[#allocation3 + $0x18] sm:$0x1] }
0x231f   : > { %5513 = vrot.lane.b32.xlu0 %v10666_v6, %s11757_s5 }
0x2321   : > { %5957 = vrot.lane.b32.xlu2 %v10834_v16, %s11757_s5 }
0x2322   : > { %v5956_v57 = vpop.permute.xlu1 %5955 }
0x2323   : > { %5967 = vst.msk [vmem:[#allocation4 + $0x3] sm:$0x1] %vm4195_vm12, %v5956_v57 }
0x2327   : > { %5937 = vrot.lane.b32.xlu0 %v10810_v48, %s11762_s30 }
0x2329   : > { %6397 = vrot.lane.b32.xlu2 %v11043_v41, %s11757_s5 }
0x232a   : > { %v6380_v37 = vpop.permute.xlu1 %6379 }
0x232f   : > { %6377 = vrot.lane.b32.xlu0 %v11012_v8, %s11762_s30 }
0x2331   : > { %6821 = vrot.lane.b32.xlu2 %v11257_v62, %s11762_s30 }
0x2337   : > { %6399 = vrot.lane.b32.xlu0 %v11026_v24, %s11757_s5 }
0x2343   : > { %v6879_v32 = vpop.permute.xlu2 %6878 }
0x2344   : > { %7935 = vmatmul.msk.bf16.vlgmr.msrb.gmra.mxu0 %vm3792_vm3, %v6879_v32 }
0x2347   : > { %v6820_v29 = vpop.permute.xlu1 %6819 }
0x2348   : > { %6831 = vst.msk [vmem:[#allocation4 + $0x6] sm:$0x1] %vm4174_vm11, %v6820_v29 }
0x234b   : > { %v4165_v49 = vpop.permute.xlu2 %4164 }
0x234c   : > { %4176 = vst.msk [vmem:[#allocation4 + $0x8] sm:$0x1] %vm4174_vm11, %v4165_v49 }
0x2353   : > { %v4610_v34 = vpop.permute.xlu2 %4609 }
0x2354   : > { %4621 = vst.msk [vmem:[#allocation4 + $0x1] sm:$0x1] %vm4174_vm11, %v4610_v34 }
0x235b   : > { %v4632_v61 = vpop.permute.xlu2 %4631 }
0x235c   : > { %4642 = vst.msk [vmem:[#allocation4 + $0xe] sm:$0x1] %vm4195_vm12, %v4632_v61  ;;  %v6910_v61 = vld [vmem:[#allocation3 + $0x10] sm:$0x1] }
0x2363   : > { %v5072_v6 = vpop.permute.xlu2 %5071 }
0x2364   : > { %5083 = vst.msk [vmem:[#allocation4 + $0x5] sm:$0x1] %vm4195_vm12, %v5072_v6 }
0x2369   : > { %v6932_v48 = vpop.permute.xlu0 %6931 }
0x236a   : > { %7936 = vmatmul.msk.bf16.vlgmr.msrb.gmra.mxu1 %vm3792_vm3, %v6932_v48 }
0x236b   : > { %v5496_v1 = vpop.permute.xlu2 %5495 }
0x236c   : > { %5506 = vst.msk [vmem:[#allocation4 + $0xb] sm:$0x1] %vm4174_vm11, %v5496_v1 }
0x2371   : > { %v4184_v16 = vpop.permute.xlu0 %4183 }
0x2372   : > { %4196 = vst.msk [vmem:[#allocation4 + $0x7] sm:$0x1] %vm4195_vm12, %v4184_v16 }
0x2373   : > { %v5936_v8 = vpop.permute.xlu2 %5935 }
0x2379   : > { %v4612_v24 = vpop.permute.xlu0 %4611 }
0x237a   : > { %4622 = vst.msk [vmem:[#allocation4 + $0x9] sm:$0x1] %vm4174_vm11, %v4612_v24 }
0x237b   : > { %v5958_v41 = vpop.permute.xlu2 %5957 }
0x237c   : > { %5968 = vst.msk [vmem:[#allocation4 + $0xb] sm:$0x1] %vm4195_vm12, %v5958_v41 }
0x2381   : > { %v5052_v62 = vpop.permute.xlu0 %5051 }
0x2382   : > { %5063 = vst.msk [vmem:[#allocation4 + $0x2] sm:$0x1] %vm4174_vm11, %v5052_v62 }
0x2383   : > { %v6398_v53 = vpop.permute.xlu2 %6397 }
0x2384   : > { %6409 = vst.msk [vmem:[#allocation4 + $0x2] sm:$0x1] %vm4195_vm12, %v6398_v53 }
0x2389   : > { %v5074_v9 = vpop.permute.xlu0 %5073 }
0x238a   : > { %5084 = vst.msk [vmem:[#allocation4 + $0xd] sm:$0x1] %vm4195_vm12, %v5074_v9 }
0x238b   : > { %v6822_v54 = vpop.permute.xlu2 %6821  ;;  %6390 = vst.msk [vmem:[#allocation4 + $0xd] sm:$0x1] %vm4174_vm11, %v6380_v37 }
0x238c   : > { %6832 = vst.msk [vmem:[#allocation4 + $0xe] sm:$0x1] %vm4174_vm11, %v6822_v54 }
0x2391   : > { %v5514_v30 = vpop.permute.xlu0 %5513 }
0x2392   : > { %5525 = vst.msk [vmem:[#allocation4 + $0x4] sm:$0x1] %vm4195_vm12, %v5514_v30 }
0x2393   : > { %5947 = vst.msk [vmem:[#allocation4 + $0x4] sm:$0x1] %vm4174_vm11, %v5936_v8 }
0x2399   : > { %v5938_v20 = vpop.permute.xlu0 %5937 }
0x239a   : > { %5948 = vst.msk [vmem:[#allocation4 + $0xc] sm:$0x1] %vm4174_vm11, %v5938_v20 }
0x23a1   : > { %v6378_v58 = vpop.permute.xlu0 %6377 }
0x23a2   : > { %6389 = vst.msk [vmem:[#allocation4 + $0x5] sm:$0x1] %vm4174_vm11, %v6378_v58 }
0x23a9   : > { %v6400_v22 = vpop.permute.xlu0 %6399 }
0x23aa   : > { %6410 = vst.msk [vmem:[#allocation4 + $0xa] sm:$0x1] %vm4195_vm12, %v6400_v22 }
0x23c1   : > { %v6892_v55 = vpop.f32.mrf.mxu0 }
0x23c2   : > { %v6897_v21 = vrot.slane %v6892_v55, 1  ;;  %v6904_v4 = vadd.f32 %v6892_v55, %v6855_v27  ;;  %v6899_v56 = vrot.slane %v6892_v55, 3  ;;  %v6898_v0 = vrot.slane %v6892_v55, 2 }
0x23c4   : > { %v6905_v51 = vadd.f32 %v6897_v21, %v6856_v60  ;;  %8638 = vtanh.f32 %v6904_v4  ;;  %v6907_v42 = vadd.f32 %v6899_v56, %v6858_v5  ;;  %v6906_v25 = vadd.f32 %v6898_v0, %v6857_v40 }
0x23c6   : > { %8640 = vtanh.f32 %v6905_v51  ;;  %v7938_v48 = vmul.f32 -1.442695, %v6905_v51  ;;  %v7939_v1 = vmul.f32 -1.442695, %v6906_v25  ;;  %v7940_v9 = vmul.f32 -1.442695, %v6907_v42 }
0x23c7   : > { %8642 = vtanh.f32 %v6907_v42 }
0x23c8   : > { %8644 = vtanh.f32 %v6906_v25 }
0x23c9   : > { %v6894_v15 = vpop.f32.mrf.mxu0 }
0x23ca   : > { %v8639_v10 = vpop.eup %8638 }
0x23cb   : > { %7049 = vrot.lane.b32.xlu1 %v8639_v10, %s11757_s5 }
0x23cc   : > { %v8641_v52 = vpop.eup %8640 }
0x23cd   : > { %7051 = vrot.lane.b32.xlu2 %v8641_v52, %s11757_s5  ;;  %v8643_v14 = vpop.eup %8642 }
0x23ce   : > { %7055 = vrot.lane.b32.xlu0 %v8643_v14, %s11757_s5  ;;  %v8645_v45 = vpop.eup %8644 }
0x23d5   : > { %7053 = vrot.lane.b32.xlu2 %v8645_v45, %s11757_s5 }
0x23e7   : > { %v6945_v19 = vpop.f32.mrf.mxu1 }
0x23e8   : > { %v6950_v11 = vrot.slane %v6945_v19, 1  ;;  %v11366_v26 = vadd.f32 %v6945_v19, %v6908_v31  ;;  %v6952_v7 = vrot.slane %v6945_v19, 3  ;;  %v6951_v49 = vrot.slane %v6945_v19, 2 }
0x23ea   : > { %v11368_v38 = vadd.f32 %v6950_v11, %v6909_v46  ;;  %8646 = vtanh.f32 %v11366_v26  ;;  %v6960_v57 = vadd.f32 %v6952_v7, %v6911_v3  ;;  %v11374_v6 = vadd.f32 %v6951_v49, %v6910_v61 }
0x23ec   : > { %8648 = vtanh.f32 %v11368_v38  ;;  %v7944_v42 = vmul.f32 -1.442695, %v6960_v57 }
0x23ed   : > { %8650 = vtanh.f32 %v6960_v57 }
0x23ee   : > { %8652 = vtanh.f32 %v11374_v6 }
0x23ef   : > { %v6947_v37 = vpop.f32.mrf.mxu1  ;;  %8654 = vpow2.f32 %v7938_v48 }
0x23f0   : > { %v8647_v32 = vpop.eup %8646  ;;  %8656 = vpow2.f32 %v7939_v1  ;;  %v7941_v1 = vmul.f32 -1.442695, %v11366_v26 }
0x23f1   : > { %7197 = vrot.lane.b32.xlu0 %v8647_v32, %s11757_s5 }
0x23f2   : > { %v8649_v29 = vpop.eup %8648 }
0x23f3   : > { %7199 = vrot.lane.b32.xlu1 %v8649_v29, %s11757_s5  ;;  %v8651_v34 = vpop.eup %8650 }
0x23f4   : > { %7203 = vrot.lane.b32.xlu2 %v8651_v34, %s11757_s5  ;;  %v8653_v16 = vpop.eup %8652 }
0x23f5   : > { %v8655_v8 = vpop.eup %8654 }
0x23f6   : > { %v6974_v24 = vadd.f32 1.0, %v8655_v8 }
0x23f8   : > { %8658 = vrcp.f32 %v6974_v24  ;;  %vm6997_vm1 = vweird.f32 %v6974_v24  ;;  %v7001_v60 = vand.u32 2147483647, %v6974_v24 }
0x23f9   : > { %6839 = vrot.lane.b32.xlu0 %v11292_v12, %s11757_s5  ;;  %v11803_v12 = vld [vmem:[#allocation11_spill] sm:$0xff] }
0x23fa   : > { %vm7002_vm3 = vcmp.eq.f32.partialorder %v7001_v60, 8.507059e+37 }
0x23fb   : > { %6841 = vrot.lane.b32.xlu1 %v11275_v63, %s11757_s5  ;;  %v8657_v63 = vpop.eup %8656 }
0x23fc   : > { %4187 = vrot.lane.b32.xlu2 %v9972_v35, %s11757_s5  ;;  %v6975_v41 = vadd.f32 1.0, %v8657_v63  ;;  %v7937_v35 = vmul.f32 -1.442695, %v6904_v4  ;;  %v7003_v4 = vand.u32 2147483648, %v6974_v24 }
0x23fe   : > { %v8659_v62 = vpop.eup %8658  ;;  %8660 = vrcp.f32 %v6975_v41  ;;  %v7004_v0 = vor.u32 1.1754944e-38, %v7003_v4  ;;  %v7018_v14 = vand.u32 2147483648, %v6975_v41  ;;  %vm7012_vm14 = vweird.f32 %v6975_v41 }
0x23ff   : > { %8662 = vpow2.f32 %v7937_v35  ;;  %v6993_v53 = vmul.f32 %v8659_v62, %v6974_v24  ;;  %vm6998_vm5 = vweird.f32 %v8659_v62  ;;  %v7016_v45 = vand.u32 2147483647, %v6975_v41 }
0x2400   : > { %8664 = vpow2.f32 %v7940_v9  ;;  %vm6999_vm2 = vmor %vm6997_vm1, %vm6998_vm5  ;;  %v7019_v11 = vor.u32 1.1754944e-38, %v7018_v14  ;;  %v7942_v24 = vmul.f32 -1.442695, %v11368_v38 }
0x2401   : > { %4166 = vrot.lane.b32.xlu0 %v9959_v39, %s11762_s30  ;;  %v11804_v39 = vld [vmem:[#allocation12_spill] sm:$0xff]  ;;  %v6994_v54 = vsub.f32 1.0, %v6993_v53  ;;  %vm7017_vm4 = vcmp.eq.f32.partialorder %v7016_v45, 8.507059e+37 }
0x2403   : > { %7201 = vrot.lane.b32.xlu1 %v8653_v16, %s11757_s5 }
0x2404   : > { %v8661_v30 = vpop.eup %8660 }
0x2405   : > { %v8663_v20 = vpop.eup %8662  ;;  %v7008_v58 = vmul.f32 %v8661_v30, %v6975_v41  ;;  %vm7013_vm13 = vweird.f32 %v8661_v30 }
0x2406   : > { %v6973_v22 = vadd.f32 1.0, %v8663_v20  ;;  %v8665_v21 = vpop.eup %8664  ;;  %vm7014_vm15 = vmor %vm7012_vm14, %vm7013_vm13 }
0x2407   : > { %v7009_v55 = vsub.f32 1.0, %v7008_v58  ;;  %v11393_v56 = vadd.f32 1.0, %v8665_v21 }
0x2408   : > { %8666 = vrcp.f32 %v6973_v22  ;;  %v6988_v16 = vand.u32 2147483648, %v6973_v22  ;;  %vm6982_vm7 = vweird.f32 %v6973_v22  ;;  %v6986_v8 = vand.u32 2147483647, %v6973_v22 }
0x2409   : > { %4189 = vrot.lane.b32.xlu0 %v9991_v23, %s11757_s5  ;;  %v6995_v23 = vmul.f32 %v8659_v62, %v6994_v54  ;;  %v7010_v5 = vmul.f32 %v8661_v30, %v7009_v55  ;;  %8668 = vrcp.f32 %v11393_v56  ;;  %v7033_v9 = vand.u32 2147483648, %v11393_v56 }
0x240a   : > { %8670 = vpow2.f32 %v7944_v42  ;;  %v6989_v41 = vor.u32 1.1754944e-38, %v6988_v16  ;;  %vm6987_vm9 = vcmp.eq.f32.partialorder %v6986_v8, 8.507059e+37  ;;  %vm7027_vm5 = vweird.f32 %v11393_v56 }
0x240b   : > { %4168 = vrot.lane.b32.xlu1 %v11803_v12, %s11762_s30  ;;  %v6996_v27 = vadd.f32 %v8659_v62, %v6995_v23  ;;  %v7011_v52 = vadd.f32 %v8661_v30, %v7010_v5  ;;  %v7031_v38 = vand.u32 2147483647, %v11393_v56  ;;  %v7034_v23 = vor.u32 1.1754944e-38, %v7033_v9 }
0x240d   : > { %v7000_v51 = vsel %vm6999_vm2, %v8659_v62, %v6996_v27  ;;  %v7015_v19 = vsel %vm7014_vm15, %v8661_v30, %v7011_v52  ;;  %vm7032_vm2 = vcmp.eq.f32.partialorder %v7031_v38, 8.507059e+37  ;;  %v11806_v38 = vld [vmem:[#allocation18_spill] sm:$0xff] }
0x240e   : > { %v8667_v15 = vpop.eup %8666  ;;  %v11395_v40 = vsel %vm7002_vm3, %v7004_v0, %v7000_v51  ;;  %v11400_v3 = vsel %vm7017_vm4, %v7019_v11, %v7015_v19  ;;  %v7943_v51 = vmul.f32 -1.442695, %v11374_v6 }
0x240f   : > { %v6978_v31 = vmul.f32 %v8667_v15, %v6973_v22  ;;  %v8669_v46 = vpop.eup %8668  ;;  %vm6983_vm6 = vweird.f32 %v8667_v15 }
0x2410   : > { %v8671_v37 = vpop.eup %8670  ;;  %v7023_v29 = vmul.f32 %v8669_v46, %v11393_v56  ;;  %vm6984_vm8 = vmor %vm6982_vm7, %vm6983_vm6  ;;  %vm7028_vm10 = vweird.f32 %v8669_v46 }
0x2411   : > { %v6979_v7 = vsub.f32 1.0, %v6978_v31  ;;  %v7124_v34 = vadd.f32 1.0, %v8671_v37  ;;  %vm7029_vm1 = vmor %vm7027_vm5, %vm7028_vm10 }
0x2412   : > { %v7024_v61 = vsub.f32 1.0, %v7023_v29 }
0x2413   : > { %4613 = vrot.lane.b32.xlu1 %v11804_v39, %s11762_s30  ;;  %v6980_v49 = vmul.f32 %v8667_v15, %v6979_v7  ;;  %8672 = vrcp.f32 %v7124_v34  ;;  %v7181_v0 = vand.u32 2147483648, %v7124_v34  ;;  %vm7175_vm13 = vweird.f32 %v7124_v34 }
0x2414   : > { %v7025_v63 = vmul.f32 %v8669_v46, %v7024_v61  ;;  %8674 = vpow2.f32 %v7941_v1 }
0x2415   : > { %v6981_v48 = vadd.f32 %v8667_v15, %v6980_v49  ;;  %8676 = vpow2.f32 %v7942_v24  ;;  %v7182_v52 = vor.u32 1.1754944e-38, %v7181_v0 }
0x2416   : > { %v7026_v53 = vadd.f32 %v8669_v46, %v7025_v63 }
0x2417   : > { %v6985_v12 = vsel %vm6984_vm8, %v8667_v15, %v6981_v48  ;;  %v7179_v15 = vand.u32 2147483647, %v7124_v34 }
0x2418   : > { %v11407_v62 = vsel %vm6987_vm9, %v6989_v41, %v6985_v12  ;;  %v7030_v20 = vsel %vm7029_vm1, %v8669_v46, %v7026_v53 }
0x2419   : > { %v8673_v35 = vpop.eup %8672  ;;  %v11414_v27 = vsel %vm7032_vm2, %v7034_v23, %v7030_v20  ;;  %vm7180_vm15 = vcmp.eq.f32.partialorder %v7179_v15, 8.507059e+37 }
0x241a   : > { %v7171_v54 = vmul.f32 %v8673_v35, %v7124_v34  ;;  %v8675_v30 = vpop.eup %8674  ;;  %vm7176_vm3 = vweird.f32 %v8673_v35  ;;  %v11805_v34 = vld [vmem:[#allocation15_spill] sm:$0xff] }
0x241b   : > { %v8677_v58 = vpop.eup %8676  ;;  %v7121_v22 = vadd.f32 1.0, %v8675_v30  ;;  %vm7177_vm14 = vmor %vm7175_vm13, %vm7176_vm3 }
0x241c   : > { %v7172_v21 = vsub.f32 1.0, %v7171_v54  ;;  %v7122_v60 = vadd.f32 1.0, %v8677_v58 }
0x241d   : > { %8678 = vrcp.f32 %v7121_v22  ;;  %v7136_v61 = vand.u32 2147483648, %v7121_v22  ;;  %vm7130_vm6 = vweird.f32 %v7121_v22  ;;  %v7134_v48 = vand.u32 2147483647, %v7121_v22 }
0x241e   : > { %v7173_v56 = vmul.f32 %v8673_v35, %v7172_v21  ;;  %8680 = vrcp.f32 %v7122_v60  ;;  %v7151_v8 = vand.u32 2147483648, %v7122_v60  ;;  %vm7145_vm9 = vweird.f32 %v7122_v60  ;;  %v11807_v21 = vld [vmem:[#allocation13_spill] sm:$0xff] }
0x241f   : > { %8682 = vpow2.f32 %v7943_v51  ;;  %v7149_v63 = vand.u32 2147483647, %v7122_v60  ;;  %v7137_v12 = vor.u32 1.1754944e-38, %v7136_v61  ;;  %vm7135_vm5 = vcmp.eq.f32.partialorder %v7134_v48, 8.507059e+37 }
0x2420   : > { %v7174_v5 = vadd.f32 %v8673_v35, %v7173_v56  ;;  %v11808_v56 = vld [vmem:[#allocation14_spill] sm:$0xff] }
0x2421   : > { %vm7150_vm1 = vcmp.eq.f32.partialorder %v7149_v63, 8.507059e+37 }
0x2423   : > { %v8679_v42 = vpop.eup %8678 }
0x2424   : > { %v7126_v14 = vmul.f32 %v8679_v42, %v7121_v22  ;;  %vm7131_vm4 = vweird.f32 %v8679_v42 }
0x2425   : > { %vm7132_vm8 = vmor %vm7130_vm6, %vm7131_vm4 }
0x2426   : > { %v7127_v46 = vsub.f32 1.0, %v7126_v14 }
0x2427   : > { %v7052_v10 = vpop.permute.xlu2 %7051 }
0x2428   : > { %v7062_v25 = vmul.f32 %v7052_v10, %v11395_v40  ;;  %v8681_v10 = vpop.eup %8680  ;;  %v7128_v37 = vmul.f32 %v8679_v42, %v7127_v46  ;;  %v11812_v46 = vld [vmem:[#allocation20_spill] sm:$0xff] }
0x2429   : > { %v8683_v45 = vpop.eup %8682  ;;  %v7141_v11 = vmul.f32 %v8681_v10, %v7122_v60  ;;  %vm7146_vm7 = vweird.f32 %v8681_v10 }
0x242a   : > { %7071 = vrot.lane.b32.xlu1 %v7062_v25, %s11762_s30  ;;  %v7178_v25 = vsel %vm7177_vm14, %v8673_v35, %v7174_v5  ;;  %v7123_v7 = vadd.f32 1.0, %v8683_v45  ;;  %v7129_v49 = vadd.f32 %v8679_v42, %v7128_v37  ;;  %vm7147_vm10 = vmor %vm7145_vm9, %vm7146_vm7 }
0x242b   : > { %v11419_v19 = vsel %vm7180_vm15, %v7182_v52, %v7178_v25  ;;  %v11809_v52 = vld [vmem:[#allocation16_spill] sm:$0xff] }
0x242c   : > { %8684 = vrcp.f32 %v7123_v7  ;;  %v7133_v24 = vsel %vm7132_vm8, %v8679_v42, %v7129_v49  ;;  %v7166_v60 = vand.u32 2147483648, %v7123_v7  ;;  %vm7160_vm3 = vweird.f32 %v7123_v7 }
0x242d   : > { %v7164_v51 = vand.u32 2147483647, %v7123_v7 }
0x242e   : > { %v7167_v42 = vor.u32 1.1754944e-38, %v7166_v60 }
0x242f   : > { %v7054_v57 = vpop.permute.xlu2 %7053  ;;  %vm7165_vm14 = vcmp.eq.f32.partialorder %v7164_v51, 8.507059e+37  ;;  %v11818_v51 = vld [vmem:[#allocation29_spill] sm:$0xff] }
0x2430   : > { %v7063_v32 = vmul.f32 %v7054_v57, %v11400_v3  ;;  %v7142_v57 = vsub.f32 1.0, %v7141_v11  ;;  %v11811_v11 = vld [vmem:[#allocation17_spill] sm:$0xff] }
0x2432   : > { %7073 = vrot.lane.b32.xlu1 %v7063_v32, %s11762_s30  ;;  %v7143_v29 = vmul.f32 %v8681_v10, %v7142_v57  ;;  %v8685_v16 = vpop.eup %8684 }
0x2433   : > { %v7156_v35 = vmul.f32 %v8685_v16, %v7123_v7  ;;  %vm7161_vm2 = vweird.f32 %v8685_v16  ;;  %v7042_v7 = vmul.f32 %v11395_v40, %v11198_v47 }
0x2434   : > { %v7144_v1 = vadd.f32 %v8681_v10, %v7143_v29  ;;  %vm7162_vm13 = vmor %vm7160_vm3, %vm7161_vm2 }
0x2435   : > { %v7157_v23 = vsub.f32 1.0, %v7156_v35 }
0x2436   : > { %v7148_v41 = vsel %vm7147_vm10, %v8681_v10, %v7144_v1 }
0x2437   : > { %v7158_v58 = vmul.f32 %v8685_v16, %v7157_v23 }
0x243d   : > { %v7050_v39 = vpop.permute.xlu1 %7049 }
0x243e   : > { %v7061_v26 = vmul.f32 %v7050_v39, %v11407_v62  ;;  %v11426_v39 = vsel %vm7135_vm5, %v7137_v12, %v7133_v24 }
0x243f   : > { %v7189_v12 = vmul.f32 %v11426_v39, %v11223_v43 }
0x2440   : > { %7069 = vrot.lane.b32.xlu0 %v7061_v26, %s11762_s30  ;;  %v7056_v55 = vpop.permute.xlu0 %7055  ;;  %v7152_v26 = vor.u32 1.1754944e-38, %v7151_v8 }
0x2441   : > { %v7064_v4 = vmul.f32 %v7056_v55, %v11414_v27 }
0x2442   : > { %v11431_v54 = vsel %vm7150_vm1, %v7152_v26, %v7148_v41 }
0x2443   : > { %7075 = vrot.lane.b32.xlu2 %v7064_v4, %s11762_s30  ;;  %v7159_v4 = vadd.f32 %v8685_v16, %v7158_v58 }
0x2445   : > { %v7163_v5 = vsel %vm7162_vm13, %v8685_v16, %v7159_v4  ;;  %v11817_v4 = vld [vmem:[#allocation24_spill] sm:$0xff] }
0x2446   : > { %v11443_v15 = vsel %vm7165_vm14, %v7167_v42, %v7163_v5  ;;  %v11819_v5 = vld [vmem:[#allocation27_spill] sm:$0xff] }
0x244e   : > { %v7204_v31 = vpop.permute.xlu2 %7203 }
0x244f   : > { %v7212_v6 = vmul.f32 %v7204_v31, %v11419_v19  ;;  %v11810_v31 = vld [vmem:[#allocation19_spill] sm:$0xff] }
0x2451   : > { %7223 = vrot.lane.b32.xlu1 %v7212_v6, %s11762_s30 }
0x2456   : > { %v4188_v32 = vpop.permute.xlu2 %4187 }
0x2457   : > { %4198 = vst.msk [vmem:[#allocation4 + $0x17] sm:$0x1] %vm4195_vm12, %v4188_v32  ;;  %v7044_v32 = vmul.f32 %v11414_v27, %v11234_v2  ;;  %v7041_v2 = vmul.f32 %v11407_v62, %v11193_v33  ;;  %v7192_v33 = vmul.f32 %v11419_v19, %v11215_v36  ;;  %v11815_v36 = vld [vmem:[#allocation21_spill] sm:$0xff] }
0x2459   : > { %4635 = vrot.lane.b32.xlu1 %v11805_v34, %s11757_s5  ;;  %v7043_v34 = vmul.f32 %v11400_v3, %v11226_v50  ;;  %v11813_v50 = vld [vmem:[#allocation23_spill] sm:$0xff] }
0x2461   : > { %5075 = vrot.lane.b32.xlu1 %v11806_v38, %s11757_s5 }
0x2463   : > { %v7198_v53 = vpop.permute.xlu0 %7197 }
0x2464   : > { %v7209_v9 = vmul.f32 %v7198_v53, %v11426_v39  ;;  %v11814_v53 = vld [vmem:[#allocation22_spill] sm:$0xff] }
0x2465   : > { %v7200_v30 = vpop.permute.xlu1 %7199 }
0x2466   : > { %v7210_v20 = vmul.f32 %v7200_v30, %v11431_v54  ;;  %7217 = vrot.lane.b32.xlu2 %v7209_v9, %s11762_s30 }
0x2468   : > { %7219 = vrot.lane.b32.xlu0 %v7210_v20, %s11762_s30 }
0x246b   : > { %v6840_v22 = vpop.permute.xlu0 %6839 }
0x246c   : > { %6851 = vst.msk [vmem:[#allocation4 + $0x1] sm:$0x1] %vm4195_vm12, %v6840_v22 }
0x246d   : > { %v6842_v55 = vpop.permute.xlu1 %6841 }
0x246e   : > { %6852 = vst.msk [vmem:[#allocation4 + $0x9] sm:$0x1] %vm4195_vm12, %v6842_v55  ;;  %4615 = vrot.lane.b32.xlu2 %v11807_v21, %s11762_s30  ;;  %v11816_v55 = vld [vmem:[#allocation26_spill] sm:$0xff]  ;;  %v7190_v21 = vmul.f32 %v11431_v54, %v11205_v44  ;;  %v7191_v44 = vmul.f32 %v11443_v15, %v11210_v13  ;;  %v11822_v13 = vld [vmem:[#allocation28_spill] sm:$0xff] }
0x2470   : > { %4633 = vrot.lane.b32.xlu0 %v11808_v56, %s11757_s5 }
0x2473   : > { %v4167_v0 = vpop.permute.xlu0 %4166 }
0x2474   : > { %4177 = vst.msk [vmem:[#allocation4 + $0x10] sm:$0x1] %vm4174_vm11, %v4167_v0 }
0x2475   : > { %v7202_v10 = vpop.permute.xlu1 %7201 }
0x2476   : > { %v7211_v25 = vmul.f32 %v7202_v10, %v11443_v15  ;;  %5055 = vrot.lane.b32.xlu2 %v11809_v52, %s11762_s30  ;;  %v11820_v10 = vld [vmem:[#allocation30_spill] sm:$0xff] }
0x2478   : > { %7221 = vrot.lane.b32.xlu0 %v7211_v25, %s11762_s30 }
0x247b   : > { %v4190_v14 = vpop.permute.xlu0 %4189 }
0x247c   : > { %4199 = vst.msk [vmem:[#allocation4 + $0x1f] sm:$0x1] %vm4195_vm12, %v4190_v14  ;;  %v11821_v14 = vld [vmem:[#allocation25_spill] sm:$0xff] }
0x247d   : > { %v4169_v45 = vpop.permute.xlu1 %4168 }
0x247e   : > { %4178 = vst.msk [vmem:[#allocation4 + $0x18] sm:$0x1] %vm4174_vm11, %v4169_v45  ;;  %5077 = vrot.lane.b32.xlu2 %v11810_v31, %s11757_s5 }
0x2480   : > { %5057 = vrot.lane.b32.xlu0 %v11811_v11, %s11762_s30  ;;  %v11823_v11 = vld [vmem:[#allocation31_spill] sm:$0xff] }
0x2485   : > { %v4614_v6 = vpop.permute.xlu1 %4613 }
0x2486   : > { %4623 = vst.msk [vmem:[#allocation4 + $0x11] sm:$0x1] %vm4174_vm11, %v4614_v6 }
0x2488   : > { %5497 = vrot.lane.b32.xlu0 %v11812_v46, %s11762_s30 }
0x249c   : > { %v7072_v57 = vpop.permute.xlu1 %7071 }
0x249d   : > { %v7082_v37 = vadd.f32 %v7072_v57, %v7042_v7  ;;  %v7076_v29 = vpop.permute.xlu2 %7075 }
0x249e   : > { %v7084_v49 = vadd.f32 %v7076_v29, %v7044_v32 }
0x249f   : > { %8686 = vtanh.f32 %v7082_v37 }
0x24a0   : > { %8688 = vtanh.f32 %v7084_v49 }
0x24a4   : > { %v7074_v61 = vpop.permute.xlu1 %7073 }
0x24a5   : > { %v8687_v48 = vpop.eup %8686  ;;  %v7083_v1 = vadd.f32 %v7074_v61, %v7043_v34 }
0x24a6   : > { %7095 = vrot.lane.b32.xlu0 %v8687_v48, %s11757_s5  ;;  %v8689_v16 = vpop.eup %8688 }
0x24a7   : > { %8690 = vtanh.f32 %v7083_v1  ;;  %7099 = vrot.lane.b32.xlu1 %v8689_v16, %s11757_s5 }
0x24ad   : > { %v8691_v47 = vpop.eup %8690 }
0x24ae   : > { %7097 = vrot.lane.b32.xlu0 %v8691_v47, %s11757_s5 }
0x24b2   : > { %v7070_v8 = vpop.permute.xlu0 %7069 }
0x24b3   : > { %v7081_v24 = vadd.f32 %v7070_v8, %v7041_v2 }
0x24b5   : > { %8692 = vtanh.f32 %v7081_v24 }
0x24b6   : > { %5519 = vrot.lane.b32.xlu0 %v11813_v50, %s11757_s5 }
0x24bb   : > { %v8693_v63 = vpop.eup %8692 }
0x24bc   : > { %7093 = vrot.lane.b32.xlu2 %v8693_v63, %s11757_s5 }
0x24c0   : > { %v7218_v41 = vpop.permute.xlu2 %7217 }
0x24c1   : > { %v7229_v35 = vadd.f32 %v7218_v41, %v7189_v12  ;;  %v8008_v41 = vld [vmem:[%s11671_s24 + $0x18] sm:$0xff] }
0x24c2   : > { %7353 = vmatpush.bf16.msra.mxu2 %v8008_v41 }
0x24c3   : > { %8694 = vtanh.f32 %v7229_v35  ;;  %v7224_v26 = vpop.permute.xlu1 %7223  ;;  %v8007_v35 = vld [vmem:[%s11671_s24 + $0x10] sm:$0xff] }
0x24c4   : > { %5517 = vrot.lane.b32.xlu2 %v11814_v53, %s11757_s5  ;;  %v7232_v9 = vadd.f32 %v7224_v26, %v7192_v33  ;;  %v8006_v33 = vld [vmem:[%s11671_s24 + $0x8] sm:$0xff]  ;;  %v8005_v26 = vld [vmem:[%s11671_s24] sm:$0xff] }
0x24c6   : > { %8696 = vtanh.f32 %v7232_v9  ;;  %7354 = vmatpush.bf16.msra.mxu2 %v8007_v35 }
0x24c8   : > { %v4616_v38 = vpop.permute.xlu2 %4615 }
0x24c9   : > { %v8695_v30 = vpop.eup %8694  ;;  %4624 = vst.msk [vmem:[#allocation4 + $0x19] sm:$0x1] %vm4174_vm11, %v4616_v38 }
0x24ca   : > { %7241 = vrot.lane.b32.xlu1 %v8695_v30, %s11757_s5  ;;  %7355 = vmatpush.bf16.msra.mxu2 %v8006_v33 }
0x24cb   : > { %v4636_v20 = vpop.permute.xlu1 %4635 }
0x24cc   : > { %v8697_v43 = vpop.eup %8696  ;;  %4644 = vst.msk [vmem:[#allocation4 + $0x1e] sm:$0x1] %vm4195_vm12, %v4636_v20 }
0x24cd   : > { %7247 = vrot.lane.b32.xlu0 %v8697_v43, %s11757_s5 }
0x24ce   : > { %7356 = vmatpush.bf16.msra.mxu2 %v8005_v26 }
0x24d0   : > { %v5056_v23 = vpop.permute.xlu2 %5055 }
0x24d1   : > { %5065 = vst.msk [vmem:[#allocation4 + $0x12] sm:$0x1] %vm4174_vm11, %v5056_v23 }
0x24d2   : > { %5499 = vrot.lane.b32.xlu1 %v11815_v36, %s11762_s30 }
0x24d3   : > { %v5076_v58 = vpop.permute.xlu1 %5075 }
0x24d4   : > { %5085 = vst.msk [vmem:[#allocation4 + $0x15] sm:$0x1] %vm4195_vm12, %v5076_v58 }
0x24d5   : > { %5959 = vrot.lane.b32.xlu0 %v11816_v55, %s11757_s5 }
0x24d8   : > { %v5078_v22 = vpop.permute.xlu2 %5077 }
0x24d9   : > { %5086 = vst.msk [vmem:[#allocation4 + $0x1d] sm:$0x1] %vm4195_vm12, %v5078_v22 }
0x24da   : > { %5939 = vrot.lane.b32.xlu1 %v11817_v4, %s11762_s30  ;;  %v7220_v60 = vpop.permute.xlu0 %7219 }
0x24db   : > { %v7230_v56 = vadd.f32 %v7220_v60, %v7190_v21 }
0x24dd   : > { %8698 = vtanh.f32 %v7230_v56  ;;  %6383 = vrot.lane.b32.xlu0 %v11818_v51, %s11762_s30 }
0x24e2   : > { %5961 = vrot.lane.b32.xlu1 %v11819_v5, %s11757_s5  ;;  %v4634_v0 = vpop.permute.xlu0 %4633 }
0x24e3   : > { %v8699_v42 = vpop.eup %8698  ;;  %4643 = vst.msk [vmem:[#allocation4 + $0x16] sm:$0x1] %vm4195_vm12, %v4634_v0 }
0x24e4   : > { %7243 = vrot.lane.b32.xlu2 %v8699_v42, %s11757_s5  ;;  %v8039_v42 = vld [vmem:[%s11672_s25] ss:$0 sm:$0xff] }
0x24e5   : > { %6823 = vrot.lane.b32.xlu0 %v11263_v17, %s11762_s30 }
0x24ea   : > { %6401 = vrot.lane.b32.xlu1 %v11820_v10, %s11757_s5  ;;  %v7222_v25 = vpop.permute.xlu0 %7221 }
0x24eb   : > { %v7231_v52 = vadd.f32 %v7222_v25, %v7191_v44  ;;  %v11824_v25 = vld [vmem:[#allocation7_spill] sm:$0xff] }
0x24ec   : > { %5941 = vrot.lane.b32.xlu2 %v11821_v14, %s11762_s30 }
0x24ed   : > { %8700 = vtanh.f32 %v7231_v52 }
0x24f2   : > { %6825 = vrot.lane.b32.xlu1 %v11268_v18, %s11762_s30  ;;  %v5058_v45 = vpop.permute.xlu0 %5057 }
0x24f3   : > { %v8701_v31 = vpop.eup %8700  ;;  %5066 = vst.msk [vmem:[#allocation4 + $0x1a] sm:$0x1] %vm4174_vm11, %v5058_v45 }
0x24f4   : > { %7245 = vrot.lane.b32.xlu2 %v8701_v31, %s11757_s5 }
0x24fa   : > { %v5498_v17 = vpop.permute.xlu0 %5497 }
0x24fb   : > { %5507 = vst.msk [vmem:[#allocation4 + $0x13] sm:$0x1] %vm4174_vm11, %v5498_v17  ;;  %v11825_v17 = vld [vmem:[#allocation8_spill] sm:$0xff] }
0x24fc   : > { %6381 = vrot.lane.b32.xlu2 %v11822_v13, %s11762_s30 }
0x2504   : > { %6403 = vrot.lane.b32.xlu2 %v11823_v11, %s11757_s5 }
0x2516   : > { %v7094_v6 = vpop.permute.xlu2 %7093 }
0x2517   : > { %v7105_v46 = vmul.f32 %v7094_v6, %v11407_v62 }
0x2518   : > { %v7096_v7 = vpop.permute.xlu0 %7095 }
0x2519   : > { %v7106_v18 = vmul.f32 %v7096_v7, %v11395_v40  ;;  %7261 = vrot.lane.b32.xlu2 %v7105_v46, %s11762_s30  ;;  %v7100_v29 = vpop.permute.xlu1 %7099  ;;  %v11826_v7 = vld [vmem:[#allocation9_spill] sm:$0xff] }
0x251b   : > { %7263 = vrot.lane.b32.xlu0 %v7106_v18, %s11762_s30 }
0x251e   : > { %v5518_v57 = vpop.permute.xlu2 %5517 }
0x251f   : > { %5527 = vst.msk [vmem:[#allocation4 + $0x14] sm:$0x1] %vm4195_vm12, %v5518_v57 }
0x2520   : > { %v7098_v37 = vpop.permute.xlu0 %7097 }
0x2521   : > { %v7107_v1 = vmul.f32 %v7098_v37, %v11400_v3  ;;  %v7108_v3 = vmul.f32 %v7100_v29, %v11414_v27  ;;  %v11827_v29 = vld [vmem:[#allocation10_spill] sm:$0xff] }
0x2523   : > { %6845 = vrot.lane.b32.xlu0 %v11282_v28, %s11757_s5 }
0x2528   : > { %v5520_v32 = vpop.permute.xlu0 %5519 }
0x2529   : > { %5528 = vst.msk [vmem:[#allocation4 + $0x1c] sm:$0x1] %vm4195_vm12, %v5520_v32 }
0x253c   : > { %v7242_v49 = vpop.permute.xlu1 %7241 }
0x253d   : > { %v7253_v62 = vmul.f32 %v7242_v49, %v11426_v39 }
0x253e   : > { %v7244_v34 = vpop.permute.xlu2 %7243 }
0x253f   : > { %v7254_v40 = vmul.f32 %v7244_v34, %v11431_v54  ;;  %7281 = vrot.lane.b32.xlu1 %v7253_v62, %s11757_s5  ;;  %v7248_v61 = vpop.permute.xlu0 %7247 }
0x2540   : > { %v7256_v16 = vmul.f32 %v7248_v61, %v11419_v19 }
0x2541   : > { %7283 = vrot.lane.b32.xlu2 %v7254_v40, %s11757_s5  ;;  %v11828_v40 = vld [vmem:[#allocation5_spill] sm:$0xff] }
0x2544   : > { %v5500_v48 = vpop.permute.xlu1 %5499 }
0x2545   : > { %5508 = vst.msk [vmem:[#allocation4 + $0x1b] sm:$0x1] %vm4174_vm11, %v5500_v48 }
0x2546   : > { %v5942_v28 = vpop.permute.xlu2 %5941 }
0x2547   : > { %5950 = vst.msk [vmem:[#allocation4 + $0x1c] sm:$0x1] %vm4174_vm11, %v5942_v28  ;;  %7265 = vrot.lane.b32.xlu1 %v7107_v1, %s11762_s30  ;;  %v5960_v39 = vpop.permute.xlu0 %5959 }
0x2548   : > { %5969 = vst.msk [vmem:[#allocation4 + $0x13] sm:$0x1] %vm4195_vm12, %v5960_v39 }
0x2549   : > { %6843 = vrot.lane.b32.xlu2 %v11278_v59, %s11757_s5 }
0x254c   : > { %v5940_v54 = vpop.permute.xlu1 %5939 }
0x254d   : > { %5949 = vst.msk [vmem:[#allocation4 + $0x14] sm:$0x1] %vm4174_vm11, %v5940_v54 }
0x254e   : > { %v7246_v47 = vpop.permute.xlu2 %7245 }
0x254f   : > { %v7255_v2 = vmul.f32 %v7246_v47, %v11443_v15  ;;  %7287 = vrot.lane.b32.xlu1 %v7256_v16, %s11757_s5  ;;  %v6384_v59 = vpop.permute.xlu0 %6383 }
0x2550   : > { %6392 = vst.msk [vmem:[#allocation4 + $0x1d] sm:$0x1] %vm4174_vm11, %v6384_v59 }
0x2551   : > { %7285 = vrot.lane.b32.xlu0 %v7255_v2, %s11757_s5  ;;  %7267 = vrot.lane.b32.xlu2 %v7108_v3, %s11762_s30  ;;  %s7614_s30 = sshll.u32 %s11831_s11, 3 }
0x2552   : > { %s11630_s10 = scalar_lea.vmem %s11675_s28, %s7614_s30 }
0x2554   : > { %v5962_v8 = vpop.permute.xlu1 %5961 }
0x2555   : > { %5970 = vst.msk [vmem:[#allocation4 + $0x1b] sm:$0x1] %vm4195_vm12, %v5962_v8 }
0x2556   : > { %v6382_v19 = vpop.permute.xlu2 %6381 }
0x2557   : > { %6391 = vst.msk [vmem:[#allocation4 + $0x15] sm:$0x1] %vm4174_vm11, %v6382_v19  ;;  %v6824_v24 = vpop.permute.xlu0 %6823  ;;  %v11829_v19 = vld [vmem:[#allocation6_spill] sm:$0xff] }
0x2558   : > { %6833 = vst.msk [vmem:[#allocation4 + $0x16] sm:$0x1] %vm4174_vm11, %v6824_v24 }
0x255c   : > { %v6402_v27 = vpop.permute.xlu1 %6401 }
0x255d   : > { %6411 = vst.msk [vmem:[#allocation4 + $0x12] sm:$0x1] %vm4195_vm12, %v6402_v27 }
0x255e   : > { %v6404_v15 = vpop.permute.xlu2 %6403 }
0x255f   : > { %6412 = vst.msk [vmem:[#allocation4 + $0x1a] sm:$0x1] %vm4195_vm12, %v6404_v15 }
0x2564   : > { %v6826_v50 = vpop.permute.xlu1 %6825 }
0x2565   : > { %6834 = vst.msk [vmem:[#allocation4 + $0x1e] sm:$0x1] %vm4174_vm11, %v6826_v50 }
0x2573   : > { %v7262_v63 = vpop.permute.xlu2 %7261 }
0x2574   : > { %7273 = vst.msk [vmem:[#allocation4 + $0x7] sm:$0x1] %vm4174_vm11, %v7262_v63 }
0x258d   : > { %v7264_v12 = vpop.permute.xlu0 %7263 }
0x258e   : > { %7274 = vst.msk [vmem:[#allocation4 + $0xf] sm:$0x1] %vm4174_vm11, %v7264_v12 }
0x2595   : > { %v6846_v53 = vpop.permute.xlu0 %6845 }
0x2596   : > { %6854 = vst.msk [vmem:[#allocation4 + $0x19] sm:$0x1] %vm4195_vm12, %v6846_v53 }
0x259b   : > { %v7284_v9 = vpop.permute.xlu2 %7283 }
0x259c   : > { %7294 = vst.msk [vmem:[#allocation4 + $0x8] sm:$0x1] %vm4195_vm12, %v7284_v9 }
0x25a3   : > { %v6844_v38 = vpop.permute.xlu2 %6843  ;;  %v7298_v43 = vld [vmem:[#allocation4 + $0x8] sm:$0xff] }
0x25a4   : > { %6853 = vst.msk [vmem:[#allocation4 + $0x11] sm:$0x1] %vm4195_vm12, %v6844_v38  ;;  %v7302_v22 = vmax.f32 %v7298_v43, 0.0 }
0x25ab   : > { %v7268_v30 = vpop.permute.xlu2 %7267 }
0x25ac   : > { %7276 = vst.msk [vmem:[#allocation4 + $0x1f] sm:$0x1] %vm4174_vm11, %v7268_v30 }
0x25b1   : > { %v7282_v20 = vpop.permute.xlu1 %7281 }
0x25b2   : > { %7293 = vst.msk [vmem:[#allocation4] sm:$0x1] %vm4195_vm12, %v7282_v20 }
0x25b9   : > { %v7266_v23 = vpop.permute.xlu1 %7265  ;;  %v7297_v36 = vld [vmem:[#allocation4] sm:$0xff] }
0x25ba   : > { %7275 = vst.msk [vmem:[#allocation4 + $0x17] sm:$0x1] %vm4174_vm11, %v7266_v23  ;;  %v7301_v58 = vmax.f32 %v7297_v36, 0.0 }
0x25bc   : > { %v7305_v55 = vpack.c.bf16 %v7302_v22, %v7301_v58 }
0x25be   : > { %7961 = vmatmul.msk.bf16.vlgmr.msra.gmra.mxu2 %vm950_vm0, %v7305_v55 }
0x25c1   : > { %v7288_v21 = vpop.permute.xlu1 %7287 }
0x25c2   : > { %7296 = vst.msk [vmem:[#allocation4 + $0x18] sm:$0x1] %vm4195_vm12, %v7288_v21 }
0x25c3   : > { %v7286_v4 = vpop.permute.xlu0 %7285 }
0x25c4   : > { %7295 = vst.msk [vmem:[#allocation4 + $0x10] sm:$0x1] %vm4195_vm12, %v7286_v4 }
0x25c9   : > { %v7300_v60 = vld [vmem:[#allocation4 + $0x18] sm:$0xff] }
0x25ca   : > { %v7304_v5 = vmax.f32 %v7300_v60, 0.0 }
0x25cb   : > { %v7299_v56 = vld [vmem:[#allocation4 + $0x10] sm:$0xff] }
0x25cc   : > { %v7303_v51 = vmax.f32 %v7299_v56, 0.0 }
0x25ce   : > { %v7306_v0 = vpack.c.bf16 %v7304_v5, %v7303_v51 }
0x25d0   : > { %7962 = vmatmul.msk.bf16.gmra.mxu2 %vm950_vm0, %v7306_v0 }
0x2641   : > { %v7358_v44 = vpop.f32.mrf.mxu2 }
0x2642   : > { %v7359_v10 = vadd.f32 %v8039_v42, %v7358_v44 }
0x2644   : > { %v7368_v52 = vadd.f32 %v7359_v10, %v11824_v25 }
0x2646   : > { %v7374_v14 = vsel %vm950_vm0, %v7368_v52, 0.0 }
0x2647   : > { %7375 = vadd.xlane.f32.xlu2 %v7374_v14 }
0x2649   : > { %v7360_v45 = vpop.f32.mrf.mxu2 }
0x264a   : > { %v7361_v31 = vadd.f32 %v8039_v42, %v7360_v45 }
0x264c   : > { %v7369_v13 = vadd.f32 %v7361_v31, %v11825_v17 }
0x264e   : > { %v7377_v11 = vsel %vm950_vm0, %v7369_v13, 0.0 }
0x264f   : > { %7378 = vadd.xlane.f32.xlu0 %v7377_v11 }
0x2653   : > { %v7363_v6 = vpop.f32.mrf.mxu2 }
0x2654   : > { %v7364_v46 = vadd.f32 %v8039_v42, %v7363_v6 }
0x2656   : > { %v7370_v18 = vadd.f32 %v7364_v46, %v11826_v7 }
0x2658   : > { %v7380_v57 = vsel %vm950_vm0, %v7370_v18, 0.0 }
0x2659   : > { %7381 = vadd.xlane.f32.xlu1 %v7380_v57 }
0x265b   : > { %v7365_v37 = vpop.f32.mrf.mxu2 }
0x265c   : > { %v7366_v32 = vadd.f32 %v8039_v42, %v7365_v37 }
0x265e   : > { %v7371_v49 = vadd.f32 %v7366_v32, %v11827_v29 }
0x2660   : > { %v7383_v62 = vsel %vm950_vm0, %v7371_v49, 0.0 }
0x2661   : > { %7384 = vadd.xlane.f32.xlu2 %v7383_v62 }
0x26ba   : > { %v7376_v34 = vpop.xlane.xlu2 %7375 }
0x26bb   : > { %v7386_v61 = vmul.f32 %v7376_v34, %v11828_v40 }
0x26bd   : > { %v7390_v48 = vrot.slane %v7386_v61, 4 }
0x26bf   : > { %v7391_v1 = vadd.f32 %v7390_v48, %v7386_v61 }
0x26c1   : > { %v7392_v28 = vrot.slane %v7391_v1, 2 }
0x26c2   : > { %v7379_v39 = vpop.xlane.xlu0 %7378 }
0x26c3   : > { %v7393_v54 = vadd.f32 %v7392_v28, %v7391_v1  ;;  %v7387_v16 = vmul.f32 %v7379_v39, %v11828_v40 }
0x26c5   : > { %v7394_v47 = vrot.slane %v7393_v54, 1  ;;  %v7396_v3 = vrot.slane %v7387_v16, 4 }
0x26c7   : > { %v7395_v2 = vadd.f32 %v7394_v47, %v7393_v54  ;;  %v7397_v59 = vadd.f32 %v7396_v3, %v7387_v16 }
0x26c9   : > { %v7398_v8 = vrot.slane %v7397_v59, 2  ;;  %v7414_v24 = vmul.f32 %v7395_v2, %v11829_v19 }
0x26cb   : > { %v7399_v27 = vadd.f32 %v7398_v8, %v7397_v59  ;;  %v11587_v15 = vsub.f32 %v7368_v52, %v7414_v24 }
0x26cc   : > { %v7382_v50 = vpop.xlane.xlu1 %7381 }
0x26cd   : > { %v7400_v63 = vrot.slane %v7399_v27, 1  ;;  %v7388_v12 = vmul.f32 %v7382_v50, %v11828_v40  ;;  %v7422_v41 = vmul.f32 %v11587_v15, %v11587_v15 }
0x26cf   : > { %v7401_v35 = vadd.f32 %v7400_v63, %v7399_v27  ;;  %v7402_v53 = vrot.slane %v7388_v12, 4  ;;  %v7426_v33 = vsel %vm950_vm0, %v7422_v41, 0.0 }
0x26d0   : > { %7427 = vadd.xlane.f32.xlu0 %v7426_v33 }
0x26d1   : > { %v7403_v26 = vadd.f32 %v7402_v53, %v7388_v12  ;;  %v7415_v9 = vmul.f32 %v7401_v35, %v11829_v19 }
0x26d3   : > { %v7404_v38 = vrot.slane %v7403_v26, 2  ;;  %v11594_v30 = vsub.f32 %v7369_v13, %v7415_v9 }
0x26d4   : > { %v7385_v20 = vpop.xlane.xlu2 %7384 }
0x26d5   : > { %v7405_v43 = vadd.f32 %v7404_v38, %v7403_v26  ;;  %v7389_v23 = vmul.f32 %v7385_v20, %v11828_v40  ;;  %v7423_v36 = vmul.f32 %v11594_v30, %v11594_v30 }
0x26d7   : > { %v7406_v58 = vrot.slane %v7405_v43, 1  ;;  %v7408_v22 = vrot.slane %v7389_v23, 4  ;;  %v7429_v55 = vsel %vm950_vm0, %v7423_v36, 0.0 }
0x26d8   : > { %7430 = vadd.xlane.f32.xlu1 %v7429_v55 }
0x26d9   : > { %v7407_v21 = vadd.f32 %v7406_v58, %v7405_v43  ;;  %v7409_v4 = vadd.f32 %v7408_v22, %v7389_v23 }
0x26db   : > { %v7410_v60 = vrot.slane %v7409_v4, 2  ;;  %v7416_v56 = vmul.f32 %v7407_v21, %v11829_v19  ;;  %v8041_v21 = vld [vmem:[%s11674_s27] ss:$0 sm:$0xff] }
0x26dd   : > { %v7411_v51 = vadd.f32 %v7410_v60, %v7409_v4  ;;  %v11601_v5 = vsub.f32 %v7370_v18, %v7416_v56 }
0x26df   : > { %v7412_v0 = vrot.slane %v7411_v51, 1  ;;  %v7424_v42 = vmul.f32 %v11601_v5, %v11601_v5 }
0x26e1   : > { %v7413_v44 = vadd.f32 %v7412_v0, %v7411_v51  ;;  %v7432_v10 = vsel %vm950_vm0, %v7424_v42, 0.0 }
0x26e2   : > { %7433 = vadd.xlane.f32.xlu2 %v7432_v10 }
0x26e3   : > { %v7417_v25 = vmul.f32 %v7413_v44, %v11829_v19 }
0x26e5   : > { %v11607_v52 = vsub.f32 %v7371_v49, %v7417_v25 }
0x26e7   : > { %v7425_v14 = vmul.f32 %v11607_v52, %v11607_v52 }
0x26e9   : > { %v7435_v45 = vsel %vm950_vm0, %v7425_v14, 0.0 }
0x26ea   : > { %7436 = vadd.xlane.f32.xlu0 %v7435_v45 }
0x2743   : > { %v7428_v31 = vpop.xlane.xlu0 %7427 }
0x2744   : > { %v7438_v17 = vmul.f32 %v7428_v31, %v11828_v40 }
0x2746   : > { %v7442_v13 = vrot.slane %v7438_v17, 4 }
0x2748   : > { %v7443_v11 = vadd.f32 %v7442_v13, %v7438_v17 }
0x274a   : > { %v7444_v6 = vrot.slane %v7443_v11, 2 }
0x274b   : > { %v7431_v46 = vpop.xlane.xlu1 %7430 }
0x274c   : > { %v7445_v7 = vadd.f32 %v7444_v6, %v7443_v11  ;;  %v7439_v18 = vmul.f32 %v7431_v46, %v11828_v40 }
0x274e   : > { %v7446_v57 = vrot.slane %v7445_v7, 1  ;;  %v7448_v37 = vrot.slane %v7439_v18, 4 }
0x2750   : > { %v7447_v32 = vadd.f32 %v7446_v57, %v7445_v7  ;;  %v7449_v29 = vadd.f32 %v7448_v37, %v7439_v18 }
0x2752   : > { %v7466_v49 = vmul.f32 %v7447_v32, %v11829_v19  ;;  %v7450_v62 = vrot.slane %v7449_v29, 2 }
0x2754   : > { %v7470_v34 = vadd.f32 1e-12, %v7466_v49  ;;  %v7451_v61 = vadd.f32 %v7450_v62, %v7449_v29 }
0x2755   : > { %v7434_v48 = vpop.xlane.xlu2 %7433 }
0x2756   : > { %8702 = vrsqrt.f32 %v7470_v34  ;;  %v7452_v1 = vrot.slane %v7451_v61, 1  ;;  %v7440_v28 = vmul.f32 %v7434_v48, %v11828_v40  ;;  %vm7480_vm12 = vweird.f32 %v7470_v34 }
0x2758   : > { %v7453_v39 = vadd.f32 %v7452_v1, %v7451_v61  ;;  %v7454_v54 = vrot.slane %v7440_v28, 4 }
0x275a   : > { %v7467_v16 = vmul.f32 %v7453_v39, %v11829_v19  ;;  %v7455_v47 = vadd.f32 %v7454_v54, %v7440_v28 }
0x275c   : > { %v8703_v3 = vpop.eup %8702  ;;  %v7471_v2 = vadd.f32 1e-12, %v7467_v16  ;;  %v7456_v59 = vrot.slane %v7455_v47, 2 }
0x275d   : > { %v7475_v8 = vmul.f32 %v8703_v3, %v7470_v34  ;;  %v7437_v24 = vpop.xlane.xlu0 %7436  ;;  %vm7481_vm11 = vweird.f32 %v8703_v3 }
0x275e   : > { %8704 = vrsqrt.f32 %v7471_v2  ;;  %v7457_v27 = vadd.f32 %v7456_v59, %v7455_v47  ;;  %v7441_v50 = vmul.f32 %v7437_v24, %v11828_v40  ;;  %v8040_v40 = vld [vmem:[%s11673_s26] ss:$0 sm:$0xff]  ;;  %vm7482_vm15 = vmor %vm7480_vm12, %vm7481_vm11  ;;  %vm7490_vm6 = vweird.f32 %v7471_v2 }
0x275f   : > { %v7476_v63 = vmul.f32 %v8703_v3, %v7475_v8 }
0x2760   : > { %v7458_v12 = vrot.slane %v7457_v27, 1  ;;  %v7460_v41 = vrot.slane %v7441_v50, 4 }
0x2761   : > { %v7477_v35 = vmul.f32 0.5, %v7476_v63 }
0x2762   : > { %v7459_v53 = vadd.f32 %v7458_v12, %v7457_v27  ;;  %v7461_v33 = vadd.f32 %v7460_v41, %v7441_v50 }
0x2763   : > { %v7478_v26 = vsub.f32 1.5, %v7477_v35 }
0x2764   : > { %v8705_v9 = vpop.eup %8704  ;;  %v7468_v38 = vmul.f32 %v7459_v53, %v11829_v19  ;;  %v7462_v20 = vrot.slane %v7461_v33, 2 }
0x2765   : > { %v7479_v43 = vmul.f32 %v8703_v3, %v7478_v26  ;;  %v7485_v23 = vmul.f32 %v8705_v9, %v7471_v2  ;;  %vm7491_vm4 = vweird.f32 %v8705_v9 }
0x2766   : > { %v7472_v36 = vadd.f32 1e-12, %v7468_v38  ;;  %v7463_v58 = vadd.f32 %v7462_v20, %v7461_v33  ;;  %vm7492_vm7 = vmor %vm7490_vm6, %vm7491_vm4 }
0x2767   : > { %v7483_v22 = vsel %vm7482_vm15, %v8703_v3, %v7479_v43  ;;  %v7486_v55 = vmul.f32 %v8705_v9, %v7485_v23 }
0x2768   : > { %v7514_v4 = vmul.f32 %v7483_v22, %v11587_v15  ;;  %8706 = vrsqrt.f32 %v7472_v36  ;;  %v7464_v60 = vrot.slane %v7463_v58, 1  ;;  %vm7500_vm9 = vweird.f32 %v7472_v36 }
0x2769   : > { %v7487_v56 = vmul.f32 0.5, %v7486_v55 }
0x276a   : > { %v7521_v51 = vmul.f32 %v8040_v40, %v7514_v4  ;;  %v7465_v0 = vadd.f32 %v7464_v60, %v7463_v58 }
0x276b   : > { %v7488_v42 = vsub.f32 1.5, %v7487_v56 }
0x276c   : > { %v7528_v44 = vadd.f32 %v8041_v21, %v7521_v51  ;;  %v7469_v10 = vmul.f32 %v7465_v0, %v11829_v19 }
0x276d   : > { %v7489_v25 = vmul.f32 %v8705_v9, %v7488_v42 }
0x276e   : > { %v8707_v15 = vpop.eup %8706  ;;  %7532 = vst.msk [vmem:[%s11630_s10] sm:$0xff] %vm950_vm0, %v7528_v44  ;;  %v7473_v14 = vadd.f32 1e-12, %v7469_v10 }
0x276f   : > { %v7493_v45 = vsel %vm7492_vm7, %v8705_v9, %v7489_v25  ;;  %v7495_v31 = vmul.f32 %v8707_v15, %v7472_v36  ;;  %vm7501_vm8 = vweird.f32 %v8707_v15 }
0x2770   : > { %v7515_v17 = vmul.f32 %v7493_v45, %v11594_v30  ;;  %8708 = vrsqrt.f32 %v7473_v14  ;;  %vm7502_vm10 = vmor %vm7500_vm9, %vm7501_vm8  ;;  %vm7510_vm1 = vweird.f32 %v7473_v14 }
0x2771   : > { %v7496_v13 = vmul.f32 %v8707_v15, %v7495_v31 }
0x2772   : > { %v7522_v11 = vmul.f32 %v8040_v40, %v7515_v17 }
0x2773   : > { %v7497_v6 = vmul.f32 0.5, %v7496_v13 }
0x2774   : > { %v7529_v46 = vadd.f32 %v8041_v21, %v7522_v11 }
0x2775   : > { %v7498_v7 = vsub.f32 1.5, %v7497_v6 }
0x2776   : > { %v8709_v19 = vpop.eup %8708  ;;  %7533 = vst.msk [vmem:[%s11630_s10 + $0x8] sm:$0xff] %vm950_vm0, %v7529_v46 }
0x2777   : > { %v7499_v18 = vmul.f32 %v8707_v15, %v7498_v7  ;;  %v7505_v57 = vmul.f32 %v8709_v19, %v7473_v14  ;;  %vm7511_vm5 = vweird.f32 %v8709_v19 }
0x2778   : > { %vm7512_vm2 = vmor %vm7510_vm1, %vm7511_vm5 }
0x2779   : > { %v7503_v37 = vsel %vm7502_vm10, %v8707_v15, %v7499_v18  ;;  %v7506_v32 = vmul.f32 %v8709_v19, %v7505_v57 }
0x277a   : > { %v7516_v30 = vmul.f32 %v7503_v37, %v11601_v5 }
0x277b   : > { %v7507_v29 = vmul.f32 0.5, %v7506_v32 }
0x277c   : > { %v7523_v49 = vmul.f32 %v8040_v40, %v7516_v30 }
0x277d   : > { %v7508_v62 = vsub.f32 1.5, %v7507_v29 }
0x277e   : > { %v7530_v34 = vadd.f32 %v8041_v21, %v7523_v49 }
0x277f   : > { %v7509_v61 = vmul.f32 %v8709_v19, %v7508_v62 }
0x2780   : > { %7534 = vst.msk [vmem:[%s11630_s10 + $0x10] sm:$0xff] %vm950_vm0, %v7530_v34 }
0x2781   : > { %v7513_v48 = vsel %vm7512_vm2, %v8709_v19, %v7509_v61 }
0x2782   : > { %v7517_v1 = vmul.f32 %v7513_v48, %v11607_v52 }
0x2784   : > { %v7524_v28 = vmul.f32 %v8040_v40, %v7517_v1 }
0x2786   : > { %v7531_v39 = vadd.f32 %v8041_v21, %v7524_v28 }
0x2788   : > { %7535 = vst.msk [vmem:[%s11630_s10 + $0x18] sm:$0xff] %vm950_vm0, %v7531_v39 }
0x2789 PF: > { %s38_s8 = sadd.s32 1, %s8720_s8  }
0x278a   : > { %p35_p4 = scmp.ge.s32.totalorder %s38_s8, 6  }
0x278c   :  { %37 = sbr.rel (!%p35_p4) target bundleno = 14 (0xe), region = 165 }

</bundles_post_ra>
